<compile_context>
chip_gen: v6e
topology: v6e:2x2x1
jax: 0.10.0
libtpu: 0.0.40
codegen_flags: <defaults>
</compile_context>

<pallas_src>
import functools

import numpy as np
import jax
import jax.numpy as jnp
from jax.experimental import pallas as pl
from jax.experimental.pallas import tpu as pltpu

H_IN, W_IN = 18, 11          # raw input grid
H_E, W_E = 9, 6              # encoder / latent grid
H_D, W_D = 18, 12            # decoder grid before Trim(0, 1)
SP_E = H_E * W_E             # 54
SP_D = H_D * W_D             # 216


# ----------------------------------------------------------------------------
# Host-side constants (0/1 masks and gather/flatten operands), built once.
# ----------------------------------------------------------------------------
def precompute_constants(hidden, n):
    m_e, m_d = n * SP_E, n * SP_D

    # validity masks for the in-kernel shift+mask im2col (3x3 taps)
    mask9 = np.zeros((9, m_e), np.float32)
    for ki in range(3):
        for kj in range(3):
            t = ki * 3 + kj
            for m in range(m_e):
                oi, oj = (m % SP_E) // W_E, m % W_E
                if 0 <= oi + ki - 1 < H_E and 0 <= oj + kj - 1 < W_E:
                    mask9[t, m] = 1.0
    mask18 = np.zeros((9, m_d), np.float32)
    for ki in range(3):
        for kj in range(3):
            t = ki * 3 + kj
            for m in range(m_d):
                oi, oj = (m % SP_D) // W_D, m % W_D
                if 0 <= oi + 1 - ki < H_D and 0 <= oj + 1 - kj < W_D:
                    mask18[t, m] = 1.0

    # torch-order flatten / unflatten expressed as matmuls:
    #   Flat[c*54+s, n] = A[c, n*54+s]   <=>  Flat = ((L @ A) * D) @ C
    #   A[c, n*54+s]    = F[c*54+s, n]   <=>  A    = L.T @ ((F @ C.T) * D)
    r = hidden * SP_E
    L = np.zeros((r, hidden), np.float32)
    for rr in range(r):
        L[rr, rr // SP_E] = 1.0
    D = np.zeros((r, m_e), np.float32)
    for rr in range(r):
        for m in range(m_e):
            if rr % SP_E == m % SP_E:
                D[rr, m] = 1.0
    C = np.zeros((m_e, n), np.float32)
    for m in range(m_e):
        C[m, m // SP_E] = 1.0

    # per-tap gather matrices for ConvTranspose2d(k=4, s=2, p=1): (9,6)->(18,12)
    S1 = np.zeros((16, m_e, m_d), np.float32)
    for ki in range(4):
        for kj in range(4):
            t = ki * 4 + kj
            for oi in range(H_D):
                di = oi + 1 - ki
                if di < 0 or di % 2 or di // 2 >= H_E:
                    continue
                ii = di // 2
                for oj in range(W_D):
                    dj = oj + 1 - kj
                    if dj < 0 or dj % 2 or dj // 2 >= W_E:
                        continue
                    ij = dj // 2
                    for nn in range(n):
                        S1[t, nn * SP_E + ii * W_E + ij,
                           nn * SP_D + oi * W_D + oj] = 1.0

    to = jnp.asarray
    return dict(mask9=to(mask9), mask18=to(mask18), L=to(L), LT=to(L.T),
                D=to(D), C=to(C), CT=to(C.T), S1=to(S1))


# ----------------------------------------------------------------------------
# The single fused Pallas kernel
# ----------------------------------------------------------------------------
def _vae_fused_kernel(
        p1_ref, w1_ref, w2_ref, w3_ref, w4_ref, mask9_ref,
        l_ref, d_ref, c_ref,
        wz_ref, bz_ref, noise_ref, grade_ref,
        wd_ref, bd_ref, lt_ref, ct_ref,
        s1_ref, wt1_ref, wt2_ref, wt3_ref, wt4_ref, bt4_ref, mask18_ref,
        enc_ref, mean_ref, logvar_ref, dec_ref,
        *, z_dim, var_weight):
    eps = 1e-5
    slope = 0.01  # nn.LeakyReLU default

    def dot(a, b):
        return jnp.dot(a, b, preferred_element_type=jnp.float32)

    def bn(y):
        # nn.BatchNorm2d in training mode, affine identity (gamma=1, beta=0),
        # one-pass biased batch statistics per channel (= per sublane row).
        mu = jnp.mean(y, axis=1, keepdims=True)
        var = jnp.mean(y * y, axis=1, keepdims=True) - mu * mu
        return (y - mu) * jax.lax.rsqrt(var + eps)

    def lrelu(y):
        return jnp.where(y >= 0, y, slope * y)

    def conv3x3(a, wmat, mask, w_img, off):
        # stride-1 3x3 "same" conv on the (C, N*H*W) flat layout:
        # zero-pad lanes once, take 9 static lane-shifted views, mask the
        # out-of-bounds taps, one matmul against the reordered weight.
        c_in, m = a.shape
        pad = w_img + 2
        z = jnp.zeros((c_in, pad), dtype=a.dtype)
        ap = jnp.concatenate([z, a, z], axis=1)
        blocks = []
        for ki in range(3):
            for kj in range(3):
                dr, dc = off(ki, kj)
                s = dr * w_img + dc
                t = ki * 3 + kj
                blocks.append(mask[t:t + 1, :] * ap[:, pad + s: pad + s + m])
        p = jnp.concatenate(blocks, axis=0)          # (9*C_in, M)
        return dot(wmat, p)

    enc_off = lambda ki, kj: (ki - 1, kj - 1)        # Conv2d, pad=1
    dec_off = lambda ki, kj: (1 - ki, 1 - kj)        # ConvTranspose2d, pad=1

    # ------------------------------ encoder ------------------------------
    a = lrelu(bn(dot(w1_ref[...], p1_ref[...])))     # conv1 (k5, s2, p2)
    m9 = mask9_ref[...]
    a = lrelu(bn(conv3x3(a, w2_ref[...], m9, W_E, enc_off)))
    a = lrelu(bn(conv3x3(a, w3_ref[...], m9, W_E, enc_off)))
    a = lrelu(bn(conv3x3(a, w4_ref[...], m9, W_E, enc_off)))

    # flatten to torch order (c*54 + s) and run both z-linears as one matmul
    flat = dot(dot(l_ref[...], a) * d_ref[...], c_ref[...])      # (hidden*54, N)
    z = dot(wz_ref[...], flat) + bz_ref[...]                     # (2*z_dim, N)
    mean_t = z[:z_dim, :]
    logvar_t = z[z_dim:, :]
    # TODO(synk): torch.randn stream is not reproducible in JAX — standard
    # normal noise is generated with jax.random and passed in explicitly.
    enc_t = mean_t + var_weight * jnp.exp(0.5 * logvar_t) * noise_ref[...]
    mean_ref[...] = mean_t
    logvar_ref[...] = logvar_t
    enc_ref[...] = enc_t

    # ------------------------------ decoder ------------------------------
    dz = jnp.concatenate([enc_t, grade_ref[...]], axis=0)        # (z_dim+14, N)
    dlin = dot(wd_ref[...], dz) + bd_ref[...]                    # (hidden*54, N)
    a = dot(lt_ref[...], dot(dlin, ct_ref[...]) * d_ref[...])    # (hidden, N*54)

    # ConvTranspose2d(k=4, s=2, p=1) via 16 per-tap 0/1 gather matmuls
    # (no dilated-zero buffer is ever materialized).
    blocks = [dot(a, s1_ref[t]) for t in range(16)]              # (hidden, N*216)
    a = lrelu(bn(dot(wt1_ref[...], jnp.concatenate(blocks, axis=0))))

    m18 = mask18_ref[...]
    a = lrelu(bn(conv3x3(a, wt2_ref[...], m18, W_D, dec_off)))
    a = lrelu(bn(conv3x3(a, wt3_ref[...], m18, W_D, dec_off)))
    y = conv3x3(a, wt4_ref[...], m18, W_D, dec_off) + bt4_ref[...]   # (1, N*216)
    dec_ref[...] = 1.0 / (1.0 + jnp.exp(-y))                     # Sigmoid


# ----------------------------------------------------------------------------
# JAX wrapper: input prep, one-time weight layout plumbing, single pallas_call
# ----------------------------------------------------------------------------
def _conv1_patches(x):
    # im2col for the first conv (k=5, s=2, p=2) — pure preprocessing of the raw
    # (N, 1, 18, 11) input feeding the fused kernel (no inter-kernel traffic).
    n = x.shape[0]
    xp = jnp.pad(x, ((0, 0), (0, 0), (2, 2), (2, 2)))
    blocks = []
    for ki in range(5):
        for kj in range(5):
            blocks.append(xp[:, 0, ki:ki + 2 * H_E - 1:2, kj:kj + 2 * W_E - 1:2])
    return jnp.stack(blocks, axis=0).reshape(25, n * SP_E)       # (25, N*54)


@functools.partial(jax.jit, static_argnames=("hidden", "z_dim", "var_weight"))
def vae_conv_forward(params, consts, x, grade, noise, *, hidden, z_dim,
                     var_weight=1.0):
    n = x.shape[0]
    f32 = jnp.float32

    # weight layout plumbing: (C_out, K) matmul form with tap-major /
    # channel-minor columns, matching the in-kernel patch ordering.
    w1m = params["enc_w1"].reshape(hidden, 25).astype(f32)

    def enc_w(w):       # Conv2d (co, ci, 3, 3) -> (co, 9*ci)
        return w.transpose(0, 2, 3, 1).reshape(hidden, 9 * hidden).astype(f32)

    def dec_w(w, k, cout):  # ConvTranspose2d (ci, co, k, k) -> (co, k*k*ci)
        return w.transpose(1, 2, 3, 0).reshape(cout, k * k * hidden).astype(f32)

    w2m, w3m, w4m = (enc_w(params["enc_w2"]), enc_w(params["enc_w3"]),
                     enc_w(params["enc_w4"]))
    wt1m = dec_w(params["dec_w1"], 4, hidden)
    wt2m = dec_w(params["dec_w2"], 3, hidden)
    wt3m = dec_w(params["dec_w3"], 3, hidden)
    wt4m = dec_w(params["dec_w4"], 3, 1)
    bt4 = params["dec_b4"].reshape(1, 1).astype(f32)
    wz_all = jnp.concatenate([params["zmean_w"], params["zlogvar_w"]],
                             axis=0).astype(f32)
    bz_all = jnp.concatenate([params["zmean_b"], params["zlogvar_b"]]
                             ).reshape(2 * z_dim, 1).astype(f32)
    wd = params["dec_lin_w"].astype(f32)
    bd = params["dec_lin_b"].reshape(hidden * SP_E, 1).astype(f32)
    # NOTE: enc_b1..4 / dec_b1..3 are intentionally unused: each is followed by
    # BatchNorm2d whose mean subtraction cancels the bias exactly.

    p1 = _conv1_patches(x.astype(f32))

    kern = functools.partial(_vae_fused_kernel, z_dim=z_dim,
                             var_weight=float(var_weight))
    vmem = pl.BlockSpec(memory_space=pltpu.MemorySpace.VMEM)
    out_shape = (
        jax.ShapeDtypeStruct((z_dim, n), f32),       # encoded^T
        jax.ShapeDtypeStruct((z_dim, n), f32),       # mean^T
        jax.ShapeDtypeStruct((z_dim, n), f32),       # log_var^T
        jax.ShapeDtypeStruct((1, n * SP_D), f32),    # decoded, pre-trim, flat
    )
    enc_t, mean_t, logvar_t, dec_flat = pl.pallas_call(
        kern,
        out_shape=out_shape,
        in_specs=[vmem] * 24,
        out_specs=(vmem, vmem, vmem, vmem),
        compiler_params=pltpu.CompilerParams(
            vmem_limit_bytes=64 * 1024 * 1024),
    )(p1, w1m, w2m, w3m, w4m, consts["mask9"],
      consts["L"], consts["D"], consts["C"],
      wz_all, bz_all, noise.T.astype(f32), grade.T.astype(f32),
      wd, bd, consts["LT"], consts["CT"],
      consts["S1"], wt1m, wt2m, wt3m, wt4m, bt4, consts["mask18"])

    encoded, mean, log_var = enc_t.T, mean_t.T, logvar_t.T
    decoded = dec_flat.reshape(n, H_D, W_D)[:, :, 1:][:, None, :, :]  # Trim(0,1)
    return encoded, mean, log_var, decoded


# ----------------------------------------------------------------------------
# Parameters (deterministic, PyTorch-default-style uniform init, torch layouts)
# ----------------------------------------------------------------------------
def init_params(key, hidden, z_dim):
    ks = iter(jax.random.split(key, 40))

    def u(shape, bound):
        return jax.random.uniform(next(ks), shape, jnp.float32, -bound, bound)

    def conv_init(cout, cin, k):
        bound = 1.0 / (cin * k * k) ** 0.5
        return u((cout, cin, k, k), bound), u((cout,), bound)

    def convt_init(cin, cout, k):
        bound = 1.0 / (cout * k * k) ** 0.5
        return u((cin, cout, k, k), bound), u((cout,), bound)

    def lin_init(out_f, in_f):
        bound = 1.0 / in_f ** 0.5
        return u((out_f, in_f), bound), u((out_f,), bound)

    p = {}
    p["enc_w1"], p["enc_b1"] = conv_init(hidden, 1, 5)
    p["enc_w2"], p["enc_b2"] = conv_init(hidden, hidden, 3)
    p["enc_w3"], p["enc_b3"] = conv_init(hidden, hidden, 3)
    p["enc_w4"], p["enc_b4"] = conv_init(hidden, hidden, 3)
    p["zmean_w"], p["zmean_b"] = lin_init(z_dim, hidden * 9 * 6)
    p["zlogvar_w"], p["zlogvar_b"] = lin_init(z_dim, hidden * 9 * 6)
    p["dec_lin_w"], p["dec_lin_b"] = lin_init(hidden * 9 * 6, z_dim + 14)
    p["dec_w1"], p["dec_b1"] = convt_init(hidden, hidden, 4)
    p["dec_w2"], p["dec_b2"] = convt_init(hidden, hidden, 3)
    p["dec_w3"], p["dec_b3"] = convt_init(hidden, hidden, 3)
    p["dec_w4"], p["dec_b4"] = convt_init(hidden, 1, 3)
    return p


# ----------------------------------------------------------------------------
if __name__ == "__main__":
    hidden, z_dim, batch = 8, 16, 2
    key = jax.random.PRNGKey(0)
    kp, kx, kg, kn = jax.random.split(key, 4)

    params = init_params(kp, hidden, z_dim)
    consts = precompute_constants(hidden, batch)
    x = jax.random.normal(kx, (batch, 1, H_IN, W_IN), jnp.float32)  # NCHW
    grade = jax.random.normal(kg, (batch, 14), jnp.float32)
    noise = jax.random.normal(kn, (batch, z_dim), jnp.float32)

    encoded, mean, log_var, decoded = vae_conv_forward(
        params, consts, x, grade, noise, hidden=hidden, z_dim=z_dim,
        var_weight=1.0)
    jax.block_until_ready((encoded, mean, log_var, decoded))

    assert encoded.shape == (batch, z_dim)
    assert mean.shape == (batch, z_dim)
    assert log_var.shape == (batch, z_dim)
    assert decoded.shape == (batch, 1, H_IN, W_IN)
    assert bool(jnp.all(jnp.isfinite(decoded)))
    print("KERNEL_OK")
</pallas_src>

<mosaic_0001>
module attributes {stable_mosaic.version = 11 : i64} {
  func.func @_vae_fused_kernel(%arg0: memref<25x108xf32, #tpu.memory_space<vmem>>, %arg1: memref<8x25xf32, #tpu.memory_space<vmem>>, %arg2: memref<8x72xf32, #tpu.memory_space<vmem>>, %arg3: memref<8x72xf32, #tpu.memory_space<vmem>>, %arg4: memref<8x72xf32, #tpu.memory_space<vmem>>, %arg5: memref<9x108xf32, #tpu.memory_space<vmem>>, %arg6: memref<432x8xf32, #tpu.memory_space<vmem>>, %arg7: memref<432x108xf32, #tpu.memory_space<vmem>>, %arg8: memref<108x2xf32, #tpu.memory_space<vmem>>, %arg9: memref<32x432xf32, #tpu.memory_space<vmem>>, %arg10: memref<32x1xf32, #tpu.memory_space<vmem>>, %arg11: memref<16x2xf32, #tpu.memory_space<vmem>>, %arg12: memref<14x2xf32, #tpu.memory_space<vmem>>, %arg13: memref<432x30xf32, #tpu.memory_space<vmem>>, %arg14: memref<432x1xf32, #tpu.memory_space<vmem>>, %arg15: memref<8x432xf32, #tpu.memory_space<vmem>>, %arg16: memref<2x108xf32, #tpu.memory_space<vmem>>, %arg17: memref<16x108x432xf32, #tpu.memory_space<vmem>>, %arg18: memref<8x128xf32, #tpu.memory_space<vmem>>, %arg19: memref<8x72xf32, #tpu.memory_space<vmem>>, %arg20: memref<8x72xf32, #tpu.memory_space<vmem>>, %arg21: memref<1x72xf32, #tpu.memory_space<vmem>>, %arg22: memref<1x1xf32, #tpu.memory_space<vmem>>, %arg23: memref<9x432xf32, #tpu.memory_space<vmem>>, %arg24: memref<16x2xf32, #tpu.memory_space<vmem>>, %arg25: memref<16x2xf32, #tpu.memory_space<vmem>>, %arg26: memref<16x2xf32, #tpu.memory_space<vmem>>, %arg27: memref<1x432xf32, #tpu.memory_space<vmem>>) attributes {dimension_semantics = [], scalar_prefetch = 0 : i64, scratch_operands = 0 : i64, tpu.core_type = #tpu.core_type<tc>} {
    %c0 = arith.constant 0 : index
    %c0_0 = arith.constant 0 : index
    %0 = vector.load %arg1[%c0, %c0_0] : memref<8x25xf32, #tpu.memory_space<vmem>>, vector<8x25xf32>
    %c0_1 = arith.constant 0 : index
    %c0_2 = arith.constant 0 : index
    %1 = vector.load %arg0[%c0_1, %c0_2] : memref<25x108xf32, #tpu.memory_space<vmem>>, vector<25x108xf32>
    %cst = arith.constant dense<0.000000e+00> : vector<8x108xf32>
    %2 = tpu.matmul %0, %1, %cst {dimension_numbers = #tpu.dot_dimension_numbers<[1], [0], [0], [1], [0, 0, 1, 1], [], []>} : vector<8x25xf32>, vector<25x108xf32>, vector<8x108xf32> -> vector<8x108xf32>
    %cst_3 = arith.constant dense<0.000000e+00> : vector<8xf32>
    %3 = vector.multi_reduction <add>, %2, %cst_3 [1] : vector<8x108xf32> to vector<8xf32>
    %4 = vector.shape_cast %3 : vector<8xf32> to vector<8x1xf32>
    %cst_4 = arith.constant 1.080000e+02 : f32
    %5 = vector.broadcast %cst_4 : f32 to vector<8x1xf32>
    %6 = arith.divf %4, %5 : vector<8x1xf32>
    %7 = arith.mulf %2, %2 : vector<8x108xf32>
    %cst_5 = arith.constant dense<0.000000e+00> : vector<8xf32>
    %8 = vector.multi_reduction <add>, %7, %cst_5 [1] : vector<8x108xf32> to vector<8xf32>
    %9 = vector.shape_cast %8 : vector<8xf32> to vector<8x1xf32>
    %cst_6 = arith.constant 1.080000e+02 : f32
    %10 = vector.broadcast %cst_6 : f32 to vector<8x1xf32>
    %11 = arith.divf %9, %10 : vector<8x1xf32>
    %12 = arith.mulf %6, %6 : vector<8x1xf32>
    %13 = arith.subf %11, %12 : vector<8x1xf32>
    %14 = vector.broadcast %6 : vector<8x1xf32> to vector<8x108xf32>
    %15 = arith.subf %2, %14 : vector<8x108xf32>
    %cst_7 = arith.constant 9.99999974E-6 : f32
    %16 = vector.broadcast %cst_7 : f32 to vector<8x1xf32>
    %17 = arith.addf %13, %16 : vector<8x1xf32>
    %18 = math.rsqrt %17 : vector<8x1xf32>
    %19 = vector.broadcast %18 : vector<8x1xf32> to vector<8x108xf32>
    %20 = arith.mulf %15, %19 : vector<8x108xf32>
    %cst_8 = arith.constant 0.000000e+00 : f32
    %21 = vector.broadcast %cst_8 : f32 to vector<8x108xf32>
    %22 = arith.cmpf oge, %20, %21 : vector<8x108xf32>
    %cst_9 = arith.constant 0.00999999977 : f32
    %23 = vector.broadcast %cst_9 : f32 to vector<8x108xf32>
    %24 = arith.mulf %23, %20 : vector<8x108xf32>
    %25 = arith.select %22, %20, %24 : vector<8x108xi1>, vector<8x108xf32>
    %c0_10 = arith.constant 0 : index
    %c0_11 = arith.constant 0 : index
    %26 = vector.load %arg5[%c0_10, %c0_11] : memref<9x108xf32, #tpu.memory_space<vmem>>, vector<9x108xf32>
    %c0_12 = arith.constant 0 : index
    %c0_13 = arith.constant 0 : index
    %27 = vector.load %arg2[%c0_12, %c0_13] : memref<8x72xf32, #tpu.memory_space<vmem>>, vector<8x72xf32>
    %cst_14 = arith.constant 0.000000e+00 : f32
    %28 = vector.broadcast %cst_14 : f32 to vector<8x8xf32>
    %29 = tpu.concatenate %28, %25, %28 in 1 : vector<8x8xf32>, vector<8x108xf32>, vector<8x8xf32> -> vector<8x124xf32>
    %30 = vector.extract_strided_slice %26 {offsets = [0, 0], sizes = [1, 108], strides = [1, 1]} : vector<9x108xf32> to vector<1x108xf32>
    %31 = vector.extract_strided_slice %29 {offsets = [0, 1], sizes = [8, 108], strides = [1, 1]} : vector<8x124xf32> to vector<8x108xf32>
    %32 = vector.broadcast %30 : vector<1x108xf32> to vector<8x108xf32>
    %33 = arith.mulf %32, %31 : vector<8x108xf32>
    %34 = vector.extract_strided_slice %26 {offsets = [1, 0], sizes = [1, 108], strides = [1, 1]} : vector<9x108xf32> to vector<1x108xf32>
    %35 = vector.extract_strided_slice %29 {offsets = [0, 2], sizes = [8, 108], strides = [1, 1]} : vector<8x124xf32> to vector<8x108xf32>
    %36 = vector.broadcast %34 : vector<1x108xf32> to vector<8x108xf32>
    %37 = arith.mulf %36, %35 : vector<8x108xf32>
    %38 = vector.extract_strided_slice %26 {offsets = [2, 0], sizes = [1, 108], strides = [1, 1]} : vector<9x108xf32> to vector<1x108xf32>
    %39 = vector.extract_strided_slice %29 {offsets = [0, 3], sizes = [8, 108], strides = [1, 1]} : vector<8x124xf32> to vector<8x108xf32>
    %40 = vector.broadcast %38 : vector<1x108xf32> to vector<8x108xf32>
    %41 = arith.mulf %40, %39 : vector<8x108xf32>
    %42 = vector.extract_strided_slice %26 {offsets = [3, 0], sizes = [1, 108], strides = [1, 1]} : vector<9x108xf32> to vector<1x108xf32>
    %43 = vector.extract_strided_slice %29 {offsets = [0, 7], sizes = [8, 108], strides = [1, 1]} : vector<8x124xf32> to vector<8x108xf32>
    %44 = vector.broadcast %42 : vector<1x108xf32> to vector<8x108xf32>
    %45 = arith.mulf %44, %43 : vector<8x108xf32>
    %46 = vector.extract_strided_slice %26 {offsets = [4, 0], sizes = [1, 108], strides = [1, 1]} : vector<9x108xf32> to vector<1x108xf32>
    %47 = vector.extract_strided_slice %29 {offsets = [0, 8], sizes = [8, 108], strides = [1, 1]} : vector<8x124xf32> to vector<8x108xf32>
    %48 = vector.broadcast %46 : vector<1x108xf32> to vector<8x108xf32>
    %49 = arith.mulf %48, %47 : vector<8x108xf32>
    %50 = vector.extract_strided_slice %26 {offsets = [5, 0], sizes = [1, 108], strides = [1, 1]} : vector<9x108xf32> to vector<1x108xf32>
    %51 = vector.extract_strided_slice %29 {offsets = [0, 9], sizes = [8, 108], strides = [1, 1]} : vector<8x124xf32> to vector<8x108xf32>
    %52 = vector.broadcast %50 : vector<1x108xf32> to vector<8x108xf32>
    %53 = arith.mulf %52, %51 : vector<8x108xf32>
    %54 = vector.extract_strided_slice %26 {offsets = [6, 0], sizes = [1, 108], strides = [1, 1]} : vector<9x108xf32> to vector<1x108xf32>
    %55 = vector.extract_strided_slice %29 {offsets = [0, 13], sizes = [8, 108], strides = [1, 1]} : vector<8x124xf32> to vector<8x108xf32>
    %56 = vector.broadcast %54 : vector<1x108xf32> to vector<8x108xf32>
    %57 = arith.mulf %56, %55 : vector<8x108xf32>
    %58 = vector.extract_strided_slice %26 {offsets = [7, 0], sizes = [1, 108], strides = [1, 1]} : vector<9x108xf32> to vector<1x108xf32>
    %59 = vector.extract_strided_slice %29 {offsets = [0, 14], sizes = [8, 108], strides = [1, 1]} : vector<8x124xf32> to vector<8x108xf32>
    %60 = vector.broadcast %58 : vector<1x108xf32> to vector<8x108xf32>
    %61 = arith.mulf %60, %59 : vector<8x108xf32>
    %62 = vector.extract_strided_slice %26 {offsets = [8, 0], sizes = [1, 108], strides = [1, 1]} : vector<9x108xf32> to vector<1x108xf32>
    %63 = vector.extract_strided_slice %29 {offsets = [0, 15], sizes = [8, 108], strides = [1, 1]} : vector<8x124xf32> to vector<8x108xf32>
    %64 = vector.broadcast %62 : vector<1x108xf32> to vector<8x108xf32>
    %65 = arith.mulf %64, %63 : vector<8x108xf32>
    %66 = tpu.concatenate %33, %37, %41, %45, %49, %53, %57, %61, %65 in 0 : vector<8x108xf32>, vector<8x108xf32>, vector<8x108xf32>, vector<8x108xf32>, vector<8x108xf32>, vector<8x108xf32>, vector<8x108xf32>, vector<8x108xf32>, vector<8x108xf32> -> vector<72x108xf32>
    %cst_15 = arith.constant dense<0.000000e+00> : vector<8x108xf32>
    %67 = tpu.matmul %27, %66, %cst_15 {dimension_numbers = #tpu.dot_dimension_numbers<[1], [0], [0], [1], [0, 0, 1, 1], [], []>} : vector<8x72xf32>, vector<72x108xf32>, vector<8x108xf32> -> vector<8x108xf32>
    %cst_16 = arith.constant dense<0.000000e+00> : vector<8xf32>
    %68 = vector.multi_reduction <add>, %67, %cst_16 [1] : vector<8x108xf32> to vector<8xf32>
    %69 = vector.shape_cast %68 : vector<8xf32> to vector<8x1xf32>
    %cst_17 = arith.constant 1.080000e+02 : f32
    %70 = vector.broadcast %cst_17 : f32 to vector<8x1xf32>
    %71 = arith.divf %69, %70 : vector<8x1xf32>
    %72 = arith.mulf %67, %67 : vector<8x108xf32>
    %cst_18 = arith.constant dense<0.000000e+00> : vector<8xf32>
    %73 = vector.multi_reduction <add>, %72, %cst_18 [1] : vector<8x108xf32> to vector<8xf32>
    %74 = vector.shape_cast %73 : vector<8xf32> to vector<8x1xf32>
    %cst_19 = arith.constant 1.080000e+02 : f32
    %75 = vector.broadcast %cst_19 : f32 to vector<8x1xf32>
    %76 = arith.divf %74, %75 : vector<8x1xf32>
    %77 = arith.mulf %71, %71 : vector<8x1xf32>
    %78 = arith.subf %76, %77 : vector<8x1xf32>
    %79 = vector.broadcast %71 : vector<8x1xf32> to vector<8x108xf32>
    %80 = arith.subf %67, %79 : vector<8x108xf32>
    %cst_20 = arith.constant 9.99999974E-6 : f32
    %81 = vector.broadcast %cst_20 : f32 to vector<8x1xf32>
    %82 = arith.addf %78, %81 : vector<8x1xf32>
    %83 = math.rsqrt %82 : vector<8x1xf32>
    %84 = vector.broadcast %83 : vector<8x1xf32> to vector<8x108xf32>
    %85 = arith.mulf %80, %84 : vector<8x108xf32>
    %cst_21 = arith.constant 0.000000e+00 : f32
    %86 = vector.broadcast %cst_21 : f32 to vector<8x108xf32>
    %87 = arith.cmpf oge, %85, %86 : vector<8x108xf32>
    %cst_22 = arith.constant 0.00999999977 : f32
    %88 = vector.broadcast %cst_22 : f32 to vector<8x108xf32>
    %89 = arith.mulf %88, %85 : vector<8x108xf32>
    %90 = arith.select %87, %85, %89 : vector<8x108xi1>, vector<8x108xf32>
    %c0_23 = arith.constant 0 : index
    %c0_24 = arith.constant 0 : index
    %91 = vector.load %arg3[%c0_23, %c0_24] : memref<8x72xf32, #tpu.memory_space<vmem>>, vector<8x72xf32>
    %cst_25 = arith.constant 0.000000e+00 : f32
    %92 = vector.broadcast %cst_25 : f32 to vector<8x8xf32>
    %93 = tpu.concatenate %92, %90, %92 in 1 : vector<8x8xf32>, vector<8x108xf32>, vector<8x8xf32> -> vector<8x124xf32>
    %94 = vector.extract_strided_slice %26 {offsets = [0, 0], sizes = [1, 108], strides = [1, 1]} : vector<9x108xf32> to vector<1x108xf32>
    %95 = vector.extract_strided_slice %93 {offsets = [0, 1], sizes = [8, 108], strides = [1, 1]} : vector<8x124xf32> to vector<8x108xf32>
    %96 = vector.broadcast %94 : vector<1x108xf32> to vector<8x108xf32>
    %97 = arith.mulf %96, %95 : vector<8x108xf32>
    %98 = vector.extract_strided_slice %26 {offsets = [1, 0], sizes = [1, 108], strides = [1, 1]} : vector<9x108xf32> to vector<1x108xf32>
    %99 = vector.extract_strided_slice %93 {offsets = [0, 2], sizes = [8, 108], strides = [1, 1]} : vector<8x124xf32> to vector<8x108xf32>
    %100 = vector.broadcast %98 : vector<1x108xf32> to vector<8x108xf32>
    %101 = arith.mulf %100, %99 : vector<8x108xf32>
    %102 = vector.extract_strided_slice %26 {offsets = [2, 0], sizes = [1, 108], strides = [1, 1]} : vector<9x108xf32> to vector<1x108xf32>
    %103 = vector.extract_strided_slice %93 {offsets = [0, 3], sizes = [8, 108], strides = [1, 1]} : vector<8x124xf32> to vector<8x108xf32>
    %104 = vector.broadcast %102 : vector<1x108xf32> to vector<8x108xf32>
    %105 = arith.mulf %104, %103 : vector<8x108xf32>
    %106 = vector.extract_strided_slice %26 {offsets = [3, 0], sizes = [1, 108], strides = [1, 1]} : vector<9x108xf32> to vector<1x108xf32>
    %107 = vector.extract_strided_slice %93 {offsets = [0, 7], sizes = [8, 108], strides = [1, 1]} : vector<8x124xf32> to vector<8x108xf32>
    %108 = vector.broadcast %106 : vector<1x108xf32> to vector<8x108xf32>
    %109 = arith.mulf %108, %107 : vector<8x108xf32>
    %110 = vector.extract_strided_slice %26 {offsets = [4, 0], sizes = [1, 108], strides = [1, 1]} : vector<9x108xf32> to vector<1x108xf32>
    %111 = vector.extract_strided_slice %93 {offsets = [0, 8], sizes = [8, 108], strides = [1, 1]} : vector<8x124xf32> to vector<8x108xf32>
    %112 = vector.broadcast %110 : vector<1x108xf32> to vector<8x108xf32>
    %113 = arith.mulf %112, %111 : vector<8x108xf32>
    %114 = vector.extract_strided_slice %26 {offsets = [5, 0], sizes = [1, 108], strides = [1, 1]} : vector<9x108xf32> to vector<1x108xf32>
    %115 = vector.extract_strided_slice %93 {offsets = [0, 9], sizes = [8, 108], strides = [1, 1]} : vector<8x124xf32> to vector<8x108xf32>
    %116 = vector.broadcast %114 : vector<1x108xf32> to vector<8x108xf32>
    %117 = arith.mulf %116, %115 : vector<8x108xf32>
    %118 = vector.extract_strided_slice %26 {offsets = [6, 0], sizes = [1, 108], strides = [1, 1]} : vector<9x108xf32> to vector<1x108xf32>
    %119 = vector.extract_strided_slice %93 {offsets = [0, 13], sizes = [8, 108], strides = [1, 1]} : vector<8x124xf32> to vector<8x108xf32>
    %120 = vector.broadcast %118 : vector<1x108xf32> to vector<8x108xf32>
    %121 = arith.mulf %120, %119 : vector<8x108xf32>
    %122 = vector.extract_strided_slice %26 {offsets = [7, 0], sizes = [1, 108], strides = [1, 1]} : vector<9x108xf32> to vector<1x108xf32>
    %123 = vector.extract_strided_slice %93 {offsets = [0, 14], sizes = [8, 108], strides = [1, 1]} : vector<8x124xf32> to vector<8x108xf32>
    %124 = vector.broadcast %122 : vector<1x108xf32> to vector<8x108xf32>
    %125 = arith.mulf %124, %123 : vector<8x108xf32>
    %126 = vector.extract_strided_slice %26 {offsets = [8, 0], sizes = [1, 108], strides = [1, 1]} : vector<9x108xf32> to vector<1x108xf32>
    %127 = vector.extract_strided_slice %93 {offsets = [0, 15], sizes = [8, 108], strides = [1, 1]} : vector<8x124xf32> to vector<8x108xf32>
    %128 = vector.broadcast %126 : vector<1x108xf32> to vector<8x108xf32>
    %129 = arith.mulf %128, %127 : vector<8x108xf32>
    %130 = tpu.concatenate %97, %101, %105, %109, %113, %117, %121, %125, %129 in 0 : vector<8x108xf32>, vector<8x108xf32>, vector<8x108xf32>, vector<8x108xf32>, vector<8x108xf32>, vector<8x108xf32>, vector<8x108xf32>, vector<8x108xf32>, vector<8x108xf32> -> vector<72x108xf32>
    %cst_26 = arith.constant dense<0.000000e+00> : vector<8x108xf32>
    %131 = tpu.matmul %91, %130, %cst_26 {dimension_numbers = #tpu.dot_dimension_numbers<[1], [0], [0], [1], [0, 0, 1, 1], [], []>} : vector<8x72xf32>, vector<72x108xf32>, vector<8x108xf32> -> vector<8x108xf32>
    %cst_27 = arith.constant dense<0.000000e+00> : vector<8xf32>
    %132 = vector.multi_reduction <add>, %131, %cst_27 [1] : vector<8x108xf32> to vector<8xf32>
    %133 = vector.shape_cast %132 : vector<8xf32> to vector<8x1xf32>
    %cst_28 = arith.constant 1.080000e+02 : f32
    %134 = vector.broadcast %cst_28 : f32 to vector<8x1xf32>
    %135 = arith.divf %133, %134 : vector<8x1xf32>
    %136 = arith.mulf %131, %131 : vector<8x108xf32>
    %cst_29 = arith.constant dense<0.000000e+00> : vector<8xf32>
    %137 = vector.multi_reduction <add>, %136, %cst_29 [1] : vector<8x108xf32> to vector<8xf32>
    %138 = vector.shape_cast %137 : vector<8xf32> to vector<8x1xf32>
    %cst_30 = arith.constant 1.080000e+02 : f32
    %139 = vector.broadcast %cst_30 : f32 to vector<8x1xf32>
    %140 = arith.divf %138, %139 : vector<8x1xf32>
    %141 = arith.mulf %135, %135 : vector<8x1xf32>
    %142 = arith.subf %140, %141 : vector<8x1xf32>
    %143 = vector.broadcast %135 : vector<8x1xf32> to vector<8x108xf32>
    %144 = arith.subf %131, %143 : vector<8x108xf32>
    %cst_31 = arith.constant 9.99999974E-6 : f32
    %145 = vector.broadcast %cst_31 : f32 to vector<8x1xf32>
    %146 = arith.addf %142, %145 : vector<8x1xf32>
    %147 = math.rsqrt %146 : vector<8x1xf32>
    %148 = vector.broadcast %147 : vector<8x1xf32> to vector<8x108xf32>
    %149 = arith.mulf %144, %148 : vector<8x108xf32>
    %cst_32 = arith.constant 0.000000e+00 : f32
    %150 = vector.broadcast %cst_32 : f32 to vector<8x108xf32>
    %151 = arith.cmpf oge, %149, %150 : vector<8x108xf32>
    %cst_33 = arith.constant 0.00999999977 : f32
    %152 = vector.broadcast %cst_33 : f32 to vector<8x108xf32>
    %153 = arith.mulf %152, %149 : vector<8x108xf32>
    %154 = arith.select %151, %149, %153 : vector<8x108xi1>, vector<8x108xf32>
    %c0_34 = arith.constant 0 : index
    %c0_35 = arith.constant 0 : index
    %155 = vector.load %arg4[%c0_34, %c0_35] : memref<8x72xf32, #tpu.memory_space<vmem>>, vector<8x72xf32>
    %cst_36 = arith.constant 0.000000e+00 : f32
    %156 = vector.broadcast %cst_36 : f32 to vector<8x8xf32>
    %157 = tpu.concatenate %156, %154, %156 in 1 : vector<8x8xf32>, vector<8x108xf32>, vector<8x8xf32> -> vector<8x124xf32>
    %158 = vector.extract_strided_slice %26 {offsets = [0, 0], sizes = [1, 108], strides = [1, 1]} : vector<9x108xf32> to vector<1x108xf32>
    %159 = vector.extract_strided_slice %157 {offsets = [0, 1], sizes = [8, 108], strides = [1, 1]} : vector<8x124xf32> to vector<8x108xf32>
    %160 = vector.broadcast %158 : vector<1x108xf32> to vector<8x108xf32>
    %161 = arith.mulf %160, %159 : vector<8x108xf32>
    %162 = vector.extract_strided_slice %26 {offsets = [1, 0], sizes = [1, 108], strides = [1, 1]} : vector<9x108xf32> to vector<1x108xf32>
    %163 = vector.extract_strided_slice %157 {offsets = [0, 2], sizes = [8, 108], strides = [1, 1]} : vector<8x124xf32> to vector<8x108xf32>
    %164 = vector.broadcast %162 : vector<1x108xf32> to vector<8x108xf32>
    %165 = arith.mulf %164, %163 : vector<8x108xf32>
    %166 = vector.extract_strided_slice %26 {offsets = [2, 0], sizes = [1, 108], strides = [1, 1]} : vector<9x108xf32> to vector<1x108xf32>
    %167 = vector.extract_strided_slice %157 {offsets = [0, 3], sizes = [8, 108], strides = [1, 1]} : vector<8x124xf32> to vector<8x108xf32>
    %168 = vector.broadcast %166 : vector<1x108xf32> to vector<8x108xf32>
    %169 = arith.mulf %168, %167 : vector<8x108xf32>
    %170 = vector.extract_strided_slice %26 {offsets = [3, 0], sizes = [1, 108], strides = [1, 1]} : vector<9x108xf32> to vector<1x108xf32>
    %171 = vector.extract_strided_slice %157 {offsets = [0, 7], sizes = [8, 108], strides = [1, 1]} : vector<8x124xf32> to vector<8x108xf32>
    %172 = vector.broadcast %170 : vector<1x108xf32> to vector<8x108xf32>
    %173 = arith.mulf %172, %171 : vector<8x108xf32>
    %174 = vector.extract_strided_slice %26 {offsets = [4, 0], sizes = [1, 108], strides = [1, 1]} : vector<9x108xf32> to vector<1x108xf32>
    %175 = vector.extract_strided_slice %157 {offsets = [0, 8], sizes = [8, 108], strides = [1, 1]} : vector<8x124xf32> to vector<8x108xf32>
    %176 = vector.broadcast %174 : vector<1x108xf32> to vector<8x108xf32>
    %177 = arith.mulf %176, %175 : vector<8x108xf32>
    %178 = vector.extract_strided_slice %26 {offsets = [5, 0], sizes = [1, 108], strides = [1, 1]} : vector<9x108xf32> to vector<1x108xf32>
    %179 = vector.extract_strided_slice %157 {offsets = [0, 9], sizes = [8, 108], strides = [1, 1]} : vector<8x124xf32> to vector<8x108xf32>
    %180 = vector.broadcast %178 : vector<1x108xf32> to vector<8x108xf32>
    %181 = arith.mulf %180, %179 : vector<8x108xf32>
    %182 = vector.extract_strided_slice %26 {offsets = [6, 0], sizes = [1, 108], strides = [1, 1]} : vector<9x108xf32> to vector<1x108xf32>
    %183 = vector.extract_strided_slice %157 {offsets = [0, 13], sizes = [8, 108], strides = [1, 1]} : vector<8x124xf32> to vector<8x108xf32>
    %184 = vector.broadcast %182 : vector<1x108xf32> to vector<8x108xf32>
    %185 = arith.mulf %184, %183 : vector<8x108xf32>
    %186 = vector.extract_strided_slice %26 {offsets = [7, 0], sizes = [1, 108], strides = [1, 1]} : vector<9x108xf32> to vector<1x108xf32>
    %187 = vector.extract_strided_slice %157 {offsets = [0, 14], sizes = [8, 108], strides = [1, 1]} : vector<8x124xf32> to vector<8x108xf32>
    %188 = vector.broadcast %186 : vector<1x108xf32> to vector<8x108xf32>
    %189 = arith.mulf %188, %187 : vector<8x108xf32>
    %190 = vector.extract_strided_slice %26 {offsets = [8, 0], sizes = [1, 108], strides = [1, 1]} : vector<9x108xf32> to vector<1x108xf32>
    %191 = vector.extract_strided_slice %157 {offsets = [0, 15], sizes = [8, 108], strides = [1, 1]} : vector<8x124xf32> to vector<8x108xf32>
    %192 = vector.broadcast %190 : vector<1x108xf32> to vector<8x108xf32>
    %193 = arith.mulf %192, %191 : vector<8x108xf32>
    %194 = tpu.concatenate %161, %165, %169, %173, %177, %181, %185, %189, %193 in 0 : vector<8x108xf32>, vector<8x108xf32>, vector<8x108xf32>, vector<8x108xf32>, vector<8x108xf32>, vector<8x108xf32>, vector<8x108xf32>, vector<8x108xf32>, vector<8x108xf32> -> vector<72x108xf32>
    %cst_37 = arith.constant dense<0.000000e+00> : vector<8x108xf32>
    %195 = tpu.matmul %155, %194, %cst_37 {dimension_numbers = #tpu.dot_dimension_numbers<[1], [0], [0], [1], [0, 0, 1, 1], [], []>} : vector<8x72xf32>, vector<72x108xf32>, vector<8x108xf32> -> vector<8x108xf32>
    %cst_38 = arith.constant dense<0.000000e+00> : vector<8xf32>
    %196 = vector.multi_reduction <add>, %195, %cst_38 [1] : vector<8x108xf32> to vector<8xf32>
    %197 = vector.shape_cast %196 : vector<8xf32> to vector<8x1xf32>
    %cst_39 = arith.constant 1.080000e+02 : f32
    %198 = vector.broadcast %cst_39 : f32 to vector<8x1xf32>
    %199 = arith.divf %197, %198 : vector<8x1xf32>
    %200 = arith.mulf %195, %195 : vector<8x108xf32>
    %cst_40 = arith.constant dense<0.000000e+00> : vector<8xf32>
    %201 = vector.multi_reduction <add>, %200, %cst_40 [1] : vector<8x108xf32> to vector<8xf32>
    %202 = vector.shape_cast %201 : vector<8xf32> to vector<8x1xf32>
    %cst_41 = arith.constant 1.080000e+02 : f32
    %203 = vector.broadcast %cst_41 : f32 to vector<8x1xf32>
    %204 = arith.divf %202, %203 : vector<8x1xf32>
    %205 = arith.mulf %199, %199 : vector<8x1xf32>
    %206 = arith.subf %204, %205 : vector<8x1xf32>
    %207 = vector.broadcast %199 : vector<8x1xf32> to vector<8x108xf32>
    %208 = arith.subf %195, %207 : vector<8x108xf32>
    %cst_42 = arith.constant 9.99999974E-6 : f32
    %209 = vector.broadcast %cst_42 : f32 to vector<8x1xf32>
    %210 = arith.addf %206, %209 : vector<8x1xf32>
    %211 = math.rsqrt %210 : vector<8x1xf32>
    %212 = vector.broadcast %211 : vector<8x1xf32> to vector<8x108xf32>
    %213 = arith.mulf %208, %212 : vector<8x108xf32>
    %cst_43 = arith.constant 0.000000e+00 : f32
    %214 = vector.broadcast %cst_43 : f32 to vector<8x108xf32>
    %215 = arith.cmpf oge, %213, %214 : vector<8x108xf32>
    %cst_44 = arith.constant 0.00999999977 : f32
    %216 = vector.broadcast %cst_44 : f32 to vector<8x108xf32>
    %217 = arith.mulf %216, %213 : vector<8x108xf32>
    %218 = arith.select %215, %213, %217 : vector<8x108xi1>, vector<8x108xf32>
    %c0_45 = arith.constant 0 : index
    %c0_46 = arith.constant 0 : index
    %219 = vector.load %arg6[%c0_45, %c0_46] : memref<432x8xf32, #tpu.memory_space<vmem>>, vector<432x8xf32>
    %cst_47 = arith.constant dense<0.000000e+00> : vector<432x108xf32>
    %220 = tpu.matmul %219, %218, %cst_47 {dimension_numbers = #tpu.dot_dimension_numbers<[1], [0], [0], [1], [0, 0, 1, 1], [], []>} : vector<432x8xf32>, vector<8x108xf32>, vector<432x108xf32> -> vector<432x108xf32>
    %c0_48 = arith.constant 0 : index
    %c0_49 = arith.constant 0 : index
    %221 = vector.load %arg7[%c0_48, %c0_49] : memref<432x108xf32, #tpu.memory_space<vmem>>, vector<432x108xf32>
    %222 = arith.mulf %220, %221 : vector<432x108xf32>
    %c0_50 = arith.constant 0 : index
    %c0_51 = arith.constant 0 : index
    %223 = vector.load %arg8[%c0_50, %c0_51] : memref<108x2xf32, #tpu.memory_space<vmem>>, vector<108x2xf32>
    %cst_52 = arith.constant dense<0.000000e+00> : vector<432x2xf32>
    %224 = tpu.matmul %222, %223, %cst_52 {dimension_numbers = #tpu.dot_dimension_numbers<[1], [0], [0], [1], [0, 0, 1, 1], [], []>} : vector<432x108xf32>, vector<108x2xf32>, vector<432x2xf32> -> vector<432x2xf32>
    %c0_53 = arith.constant 0 : index
    %c0_54 = arith.constant 0 : index
    %225 = vector.load %arg9[%c0_53, %c0_54] : memref<32x432xf32, #tpu.memory_space<vmem>>, vector<32x432xf32>
    %cst_55 = arith.constant dense<0.000000e+00> : vector<32x2xf32>
    %226 = tpu.matmul %225, %224, %cst_55 {dimension_numbers = #tpu.dot_dimension_numbers<[1], [0], [0], [1], [0, 0, 1, 1], [], []>} : vector<32x432xf32>, vector<432x2xf32>, vector<32x2xf32> -> vector<32x2xf32>
    %c0_56 = arith.constant 0 : index
    %c0_57 = arith.constant 0 : index
    %227 = vector.load %arg10[%c0_56, %c0_57] : memref<32x1xf32, #tpu.memory_space<vmem>>, vector<32x1xf32>
    %228 = vector.broadcast %227 : vector<32x1xf32> to vector<32x2xf32>
    %229 = arith.addf %226, %228 : vector<32x2xf32>
    %230 = vector.extract_strided_slice %229 {offsets = [0, 0], sizes = [16, 2], strides = [1, 1]} : vector<32x2xf32> to vector<16x2xf32>
    %231 = vector.extract_strided_slice %229 {offsets = [16, 0], sizes = [16, 2], strides = [1, 1]} : vector<32x2xf32> to vector<16x2xf32>
    %cst_58 = arith.constant 5.000000e-01 : f32
    %232 = vector.broadcast %cst_58 : f32 to vector<16x2xf32>
    %233 = arith.mulf %232, %231 : vector<16x2xf32>
    %234 = math.exp %233 : vector<16x2xf32>
    %cst_59 = arith.constant 1.000000e+00 : f32
    %235 = vector.broadcast %cst_59 : f32 to vector<16x2xf32>
    %236 = arith.mulf %235, %234 : vector<16x2xf32>
    %c0_60 = arith.constant 0 : index
    %c0_61 = arith.constant 0 : index
    %237 = vector.load %arg11[%c0_60, %c0_61] : memref<16x2xf32, #tpu.memory_space<vmem>>, vector<16x2xf32>
    %238 = arith.mulf %236, %237 : vector<16x2xf32>
    %239 = arith.addf %230, %238 : vector<16x2xf32>
    %c0_62 = arith.constant 0 : index
    %c0_63 = arith.constant 0 : index
    %240 = vector.load %arg25[%c0_62, %c0_63] : memref<16x2xf32, #tpu.memory_space<vmem>>, vector<16x2xf32>
    tpu.vector_store %arg25[%c0_62, %c0_63], %230 {strides = array<i32>} : memref<16x2xf32, #tpu.memory_space<vmem>>, vector<16x2xf32>,
    %c0_64 = arith.constant 0 : index
    %c0_65 = arith.constant 0 : index
    %241 = vector.load %arg26[%c0_64, %c0_65] : memref<16x2xf32, #tpu.memory_space<vmem>>, vector<16x2xf32>
    tpu.vector_store %arg26[%c0_64, %c0_65], %231 {strides = array<i32>} : memref<16x2xf32, #tpu.memory_space<vmem>>, vector<16x2xf32>,
    %c0_66 = arith.constant 0 : index
    %c0_67 = arith.constant 0 : index
    %242 = vector.load %arg24[%c0_66, %c0_67] : memref<16x2xf32, #tpu.memory_space<vmem>>, vector<16x2xf32>
    tpu.vector_store %arg24[%c0_66, %c0_67], %239 {strides = array<i32>} : memref<16x2xf32, #tpu.memory_space<vmem>>, vector<16x2xf32>,
    %c0_68 = arith.constant 0 : index
    %c0_69 = arith.constant 0 : index
    %243 = vector.load %arg12[%c0_68, %c0_69] : memref<14x2xf32, #tpu.memory_space<vmem>>, vector<14x2xf32>
    %244 = tpu.concatenate %239, %243 in 0 : vector<16x2xf32>, vector<14x2xf32> -> vector<30x2xf32>
    %c0_70 = arith.constant 0 : index
    %c0_71 = arith.constant 0 : index
    %245 = vector.load %arg13[%c0_70, %c0_71] : memref<432x30xf32, #tpu.memory_space<vmem>>, vector<432x30xf32>
    %cst_72 = arith.constant dense<0.000000e+00> : vector<432x2xf32>
    %246 = tpu.matmul %245, %244, %cst_72 {dimension_numbers = #tpu.dot_dimension_numbers<[1], [0], [0], [1], [0, 0, 1, 1], [], []>} : vector<432x30xf32>, vector<30x2xf32>, vector<432x2xf32> -> vector<432x2xf32>
    %c0_73 = arith.constant 0 : index
    %c0_74 = arith.constant 0 : index
    %247 = vector.load %arg14[%c0_73, %c0_74] : memref<432x1xf32, #tpu.memory_space<vmem>>, vector<432x1xf32>
    %248 = vector.broadcast %247 : vector<432x1xf32> to vector<432x2xf32>
    %249 = arith.addf %246, %248 : vector<432x2xf32>
    %c0_75 = arith.constant 0 : index
    %c0_76 = arith.constant 0 : index
    %250 = vector.load %arg15[%c0_75, %c0_76] : memref<8x432xf32, #tpu.memory_space<vmem>>, vector<8x432xf32>
    %c0_77 = arith.constant 0 : index
    %c0_78 = arith.constant 0 : index
    %251 = vector.load %arg16[%c0_77, %c0_78] : memref<2x108xf32, #tpu.memory_space<vmem>>, vector<2x108xf32>
    %cst_79 = arith.constant dense<0.000000e+00> : vector<432x108xf32>
    %252 = tpu.matmul %249, %251, %cst_79 {dimension_numbers = #tpu.dot_dimension_numbers<[1], [0], [0], [1], [0, 0, 1, 1], [], []>} : vector<432x2xf32>, vector<2x108xf32>, vector<432x108xf32> -> vector<432x108xf32>
    %c0_80 = arith.constant 0 : index
    %c0_81 = arith.constant 0 : index
    %253 = vector.load %arg7[%c0_80, %c0_81] : memref<432x108xf32, #tpu.memory_space<vmem>>, vector<432x108xf32>
    %254 = arith.mulf %252, %253 : vector<432x108xf32>
    %cst_82 = arith.constant dense<0.000000e+00> : vector<8x108xf32>
    %255 = tpu.matmul %250, %254, %cst_82 {dimension_numbers = #tpu.dot_dimension_numbers<[1], [0], [0], [1], [0, 0, 1, 1], [], []>} : vector<8x432xf32>, vector<432x108xf32>, vector<8x108xf32> -> vector<8x108xf32>
    %c0_83 = arith.constant 0 : index
    %c0_84 = arith.constant 0 : index
    %c0_85 = arith.constant 0 : index
    %256 = vector.load %arg17[%c0_83, %c0_84, %c0_85] : memref<16x108x432xf32, #tpu.memory_space<vmem>>, vector<1x108x432xf32>
    %257 = vector.shape_cast %256 : vector<1x108x432xf32> to vector<108x432xf32>
    %cst_86 = arith.constant dense<0.000000e+00> : vector<8x432xf32>
    %258 = tpu.matmul %255, %257, %cst_86 {dimension_numbers = #tpu.dot_dimension_numbers<[1], [0], [0], [1], [0, 0, 1, 1], [], []>} : vector<8x108xf32>, vector<108x432xf32>, vector<8x432xf32> -> vector<8x432xf32>
    %c1 = arith.constant 1 : index
    %c0_87 = arith.constant 0 : index
    %c0_88 = arith.constant 0 : index
    %259 = vector.load %arg17[%c1, %c0_87, %c0_88] : memref<16x108x432xf32, #tpu.memory_space<vmem>>, vector<1x108x432xf32>
    %260 = vector.shape_cast %259 : vector<1x108x432xf32> to vector<108x432xf32>
    %cst_89 = arith.constant dense<0.000000e+00> : vector<8x432xf32>
    %261 = tpu.matmul %255, %260, %cst_89 {dimension_numbers = #tpu.dot_dimension_numbers<[1], [0], [0], [1], [0, 0, 1, 1], [], []>} : vector<8x108xf32>, vector<108x432xf32>, vector<8x432xf32> -> vector<8x432xf32>
    %c2 = arith.constant 2 : index
    %c0_90 = arith.constant 0 : index
    %c0_91 = arith.constant 0 : index
    %262 = vector.load %arg17[%c2, %c0_90, %c0_91] : memref<16x108x432xf32, #tpu.memory_space<vmem>>, vector<1x108x432xf32>
    %263 = vector.shape_cast %262 : vector<1x108x432xf32> to vector<108x432xf32>
    %cst_92 = arith.constant dense<0.000000e+00> : vector<8x432xf32>
    %264 = tpu.matmul %255, %263, %cst_92 {dimension_numbers = #tpu.dot_dimension_numbers<[1], [0], [0], [1], [0, 0, 1, 1], [], []>} : vector<8x108xf32>, vector<108x432xf32>, vector<8x432xf32> -> vector<8x432xf32>
    %c3 = arith.constant 3 : index
    %c0_93 = arith.constant 0 : index
    %c0_94 = arith.constant 0 : index
    %265 = vector.load %arg17[%c3, %c0_93, %c0_94] : memref<16x108x432xf32, #tpu.memory_space<vmem>>, vector<1x108x432xf32>
    %266 = vector.shape_cast %265 : vector<1x108x432xf32> to vector<108x432xf32>
    %cst_95 = arith.constant dense<0.000000e+00> : vector<8x432xf32>
    %267 = tpu.matmul %255, %266, %cst_95 {dimension_numbers = #tpu.dot_dimension_numbers<[1], [0], [0], [1], [0, 0, 1, 1], [], []>} : vector<8x108xf32>, vector<108x432xf32>, vector<8x432xf32> -> vector<8x432xf32>
    %c4 = arith.constant 4 : index
    %c0_96 = arith.constant 0 : index
    %c0_97 = arith.constant 0 : index
    %268 = vector.load %arg17[%c4, %c0_96, %c0_97] : memref<16x108x432xf32, #tpu.memory_space<vmem>>, vector<1x108x432xf32>
    %269 = vector.shape_cast %268 : vector<1x108x432xf32> to vector<108x432xf32>
    %cst_98 = arith.constant dense<0.000000e+00> : vector<8x432xf32>
    %270 = tpu.matmul %255, %269, %cst_98 {dimension_numbers = #tpu.dot_dimension_numbers<[1], [0], [0], [1], [0, 0, 1, 1], [], []>} : vector<8x108xf32>, vector<108x432xf32>, vector<8x432xf32> -> vector<8x432xf32>
    %c5 = arith.constant 5 : index
    %c0_99 = arith.constant 0 : index
    %c0_100 = arith.constant 0 : index
    %271 = vector.load %arg17[%c5, %c0_99, %c0_100] : memref<16x108x432xf32, #tpu.memory_space<vmem>>, vector<1x108x432xf32>
    %272 = vector.shape_cast %271 : vector<1x108x432xf32> to vector<108x432xf32>
    %cst_101 = arith.constant dense<0.000000e+00> : vector<8x432xf32>
    %273 = tpu.matmul %255, %272, %cst_101 {dimension_numbers = #tpu.dot_dimension_numbers<[1], [0], [0], [1], [0, 0, 1, 1], [], []>} : vector<8x108xf32>, vector<108x432xf32>, vector<8x432xf32> -> vector<8x432xf32>
    %c6 = arith.constant 6 : index
    %c0_102 = arith.constant 0 : index
    %c0_103 = arith.constant 0 : index
    %274 = vector.load %arg17[%c6, %c0_102, %c0_103] : memref<16x108x432xf32, #tpu.memory_space<vmem>>, vector<1x108x432xf32>
    %275 = vector.shape_cast %274 : vector<1x108x432xf32> to vector<108x432xf32>
    %cst_104 = arith.constant dense<0.000000e+00> : vector<8x432xf32>
    %276 = tpu.matmul %255, %275, %cst_104 {dimension_numbers = #tpu.dot_dimension_numbers<[1], [0], [0], [1], [0, 0, 1, 1], [], []>} : vector<8x108xf32>, vector<108x432xf32>, vector<8x432xf32> -> vector<8x432xf32>
    %c7 = arith.constant 7 : index
    %c0_105 = arith.constant 0 : index
    %c0_106 = arith.constant 0 : index
    %277 = vector.load %arg17[%c7, %c0_105, %c0_106] : memref<16x108x432xf32, #tpu.memory_space<vmem>>, vector<1x108x432xf32>
    %278 = vector.shape_cast %277 : vector<1x108x432xf32> to vector<108x432xf32>
    %cst_107 = arith.constant dense<0.000000e+00> : vector<8x432xf32>
    %279 = tpu.matmul %255, %278, %cst_107 {dimension_numbers = #tpu.dot_dimension_numbers<[1], [0], [0], [1], [0, 0, 1, 1], [], []>} : vector<8x108xf32>, vector<108x432xf32>, vector<8x432xf32> -> vector<8x432xf32>
    %c8 = arith.constant 8 : index
    %c0_108 = arith.constant 0 : index
    %c0_109 = arith.constant 0 : index
    %280 = vector.load %arg17[%c8, %c0_108, %c0_109] : memref<16x108x432xf32, #tpu.memory_space<vmem>>, vector<1x108x432xf32>
    %281 = vector.shape_cast %280 : vector<1x108x432xf32> to vector<108x432xf32>
    %cst_110 = arith.constant dense<0.000000e+00> : vector<8x432xf32>
    %282 = tpu.matmul %255, %281, %cst_110 {dimension_numbers = #tpu.dot_dimension_numbers<[1], [0], [0], [1], [0, 0, 1, 1], [], []>} : vector<8x108xf32>, vector<108x432xf32>, vector<8x432xf32> -> vector<8x432xf32>
    %c9 = arith.constant 9 : index
    %c0_111 = arith.constant 0 : index
    %c0_112 = arith.constant 0 : index
    %283 = vector.load %arg17[%c9, %c0_111, %c0_112] : memref<16x108x432xf32, #tpu.memory_space<vmem>>, vector<1x108x432xf32>
    %284 = vector.shape_cast %283 : vector<1x108x432xf32> to vector<108x432xf32>
    %cst_113 = arith.constant dense<0.000000e+00> : vector<8x432xf32>
    %285 = tpu.matmul %255, %284, %cst_113 {dimension_numbers = #tpu.dot_dimension_numbers<[1], [0], [0], [1], [0, 0, 1, 1], [], []>} : vector<8x108xf32>, vector<108x432xf32>, vector<8x432xf32> -> vector<8x432xf32>
    %c10 = arith.constant 10 : index
    %c0_114 = arith.constant 0 : index
    %c0_115 = arith.constant 0 : index
    %286 = vector.load %arg17[%c10, %c0_114, %c0_115] : memref<16x108x432xf32, #tpu.memory_space<vmem>>, vector<1x108x432xf32>
    %287 = vector.shape_cast %286 : vector<1x108x432xf32> to vector<108x432xf32>
    %cst_116 = arith.constant dense<0.000000e+00> : vector<8x432xf32>
    %288 = tpu.matmul %255, %287, %cst_116 {dimension_numbers = #tpu.dot_dimension_numbers<[1], [0], [0], [1], [0, 0, 1, 1], [], []>} : vector<8x108xf32>, vector<108x432xf32>, vector<8x432xf32> -> vector<8x432xf32>
    %c11 = arith.constant 11 : index
    %c0_117 = arith.constant 0 : index
    %c0_118 = arith.constant 0 : index
    %289 = vector.load %arg17[%c11, %c0_117, %c0_118] : memref<16x108x432xf32, #tpu.memory_space<vmem>>, vector<1x108x432xf32>
    %290 = vector.shape_cast %289 : vector<1x108x432xf32> to vector<108x432xf32>
    %cst_119 = arith.constant dense<0.000000e+00> : vector<8x432xf32>
    %291 = tpu.matmul %255, %290, %cst_119 {dimension_numbers = #tpu.dot_dimension_numbers<[1], [0], [0], [1], [0, 0, 1, 1], [], []>} : vector<8x108xf32>, vector<108x432xf32>, vector<8x432xf32> -> vector<8x432xf32>
    %c12 = arith.constant 12 : index
    %c0_120 = arith.constant 0 : index
    %c0_121 = arith.constant 0 : index
    %292 = vector.load %arg17[%c12, %c0_120, %c0_121] : memref<16x108x432xf32, #tpu.memory_space<vmem>>, vector<1x108x432xf32>
    %293 = vector.shape_cast %292 : vector<1x108x432xf32> to vector<108x432xf32>
    %cst_122 = arith.constant dense<0.000000e+00> : vector<8x432xf32>
    %294 = tpu.matmul %255, %293, %cst_122 {dimension_numbers = #tpu.dot_dimension_numbers<[1], [0], [0], [1], [0, 0, 1, 1], [], []>} : vector<8x108xf32>, vector<108x432xf32>, vector<8x432xf32> -> vector<8x432xf32>
    %c13 = arith.constant 13 : index
    %c0_123 = arith.constant 0 : index
    %c0_124 = arith.constant 0 : index
    %295 = vector.load %arg17[%c13, %c0_123, %c0_124] : memref<16x108x432xf32, #tpu.memory_space<vmem>>, vector<1x108x432xf32>
    %296 = vector.shape_cast %295 : vector<1x108x432xf32> to vector<108x432xf32>
    %cst_125 = arith.constant dense<0.000000e+00> : vector<8x432xf32>
    %297 = tpu.matmul %255, %296, %cst_125 {dimension_numbers = #tpu.dot_dimension_numbers<[1], [0], [0], [1], [0, 0, 1, 1], [], []>} : vector<8x108xf32>, vector<108x432xf32>, vector<8x432xf32> -> vector<8x432xf32>
    %c14 = arith.constant 14 : index
    %c0_126 = arith.constant 0 : index
    %c0_127 = arith.constant 0 : index
    %298 = vector.load %arg17[%c14, %c0_126, %c0_127] : memref<16x108x432xf32, #tpu.memory_space<vmem>>, vector<1x108x432xf32>
    %299 = vector.shape_cast %298 : vector<1x108x432xf32> to vector<108x432xf32>
    %cst_128 = arith.constant dense<0.000000e+00> : vector<8x432xf32>
    %300 = tpu.matmul %255, %299, %cst_128 {dimension_numbers = #tpu.dot_dimension_numbers<[1], [0], [0], [1], [0, 0, 1, 1], [], []>} : vector<8x108xf32>, vector<108x432xf32>, vector<8x432xf32> -> vector<8x432xf32>
    %c15 = arith.constant 15 : index
    %c0_129 = arith.constant 0 : index
    %c0_130 = arith.constant 0 : index
    %301 = vector.load %arg17[%c15, %c0_129, %c0_130] : memref<16x108x432xf32, #tpu.memory_space<vmem>>, vector<1x108x432xf32>
    %302 = vector.shape_cast %301 : vector<1x108x432xf32> to vector<108x432xf32>
    %cst_131 = arith.constant dense<0.000000e+00> : vector<8x432xf32>
    %303 = tpu.matmul %255, %302, %cst_131 {dimension_numbers = #tpu.dot_dimension_numbers<[1], [0], [0], [1], [0, 0, 1, 1], [], []>} : vector<8x108xf32>, vector<108x432xf32>, vector<8x432xf32> -> vector<8x432xf32>
    %c0_132 = arith.constant 0 : index
    %c0_133 = arith.constant 0 : index
    %304 = vector.load %arg18[%c0_132, %c0_133] : memref<8x128xf32, #tpu.memory_space<vmem>>, vector<8x128xf32>
    %305 = tpu.concatenate %258, %261, %264, %267, %270, %273, %276, %279, %282, %285, %288, %291, %294, %297, %300, %303 in 0 : vector<8x432xf32>, vector<8x432xf32>, vector<8x432xf32>, vector<8x432xf32>, vector<8x432xf32>, vector<8x432xf32>, vector<8x432xf32>, vector<8x432xf32>, vector<8x432xf32>, vector<8x432xf32>, vector<8x432xf32>, vector<8x432xf32>, vector<8x432xf32>, vector<8x432xf32>, vector<8x432xf32>, vector<8x432xf32> -> vector<128x432xf32>
    %cst_134 = arith.constant dense<0.000000e+00> : vector<8x432xf32>
    %306 = tpu.matmul %304, %305, %cst_134 {dimension_numbers = #tpu.dot_dimension_numbers<[1], [0], [0], [1], [0, 0, 1, 1], [], []>} : vector<8x128xf32>, vector<128x432xf32>, vector<8x432xf32> -> vector<8x432xf32>
    %cst_135 = arith.constant dense<0.000000e+00> : vector<8xf32>
    %307 = vector.multi_reduction <add>, %306, %cst_135 [1] : vector<8x432xf32> to vector<8xf32>
    %308 = vector.shape_cast %307 : vector<8xf32> to vector<8x1xf32>
    %cst_136 = arith.constant 4.320000e+02 : f32
    %309 = vector.broadcast %cst_136 : f32 to vector<8x1xf32>
    %310 = arith.divf %308, %309 : vector<8x1xf32>
    %311 = arith.mulf %306, %306 : vector<8x432xf32>
    %cst_137 = arith.constant dense<0.000000e+00> : vector<8xf32>
    %312 = vector.multi_reduction <add>, %311, %cst_137 [1] : vector<8x432xf32> to vector<8xf32>
    %313 = vector.shape_cast %312 : vector<8xf32> to vector<8x1xf32>
    %cst_138 = arith.constant 4.320000e+02 : f32
    %314 = vector.broadcast %cst_138 : f32 to vector<8x1xf32>
    %315 = arith.divf %313, %314 : vector<8x1xf32>
    %316 = arith.mulf %310, %310 : vector<8x1xf32>
    %317 = arith.subf %315, %316 : vector<8x1xf32>
    %318 = vector.broadcast %310 : vector<8x1xf32> to vector<8x432xf32>
    %319 = arith.subf %306, %318 : vector<8x432xf32>
    %cst_139 = arith.constant 9.99999974E-6 : f32
    %320 = vector.broadcast %cst_139 : f32 to vector<8x1xf32>
    %321 = arith.addf %317, %320 : vector<8x1xf32>
    %322 = math.rsqrt %321 : vector<8x1xf32>
    %323 = vector.broadcast %322 : vector<8x1xf32> to vector<8x432xf32>
    %324 = arith.mulf %319, %323 : vector<8x432xf32>
    %cst_140 = arith.constant 0.000000e+00 : f32
    %325 = vector.broadcast %cst_140 : f32 to vector<8x432xf32>
    %326 = arith.cmpf oge, %324, %325 : vector<8x432xf32>
    %cst_141 = arith.constant 0.00999999977 : f32
    %327 = vector.broadcast %cst_141 : f32 to vector<8x432xf32>
    %328 = arith.mulf %327, %324 : vector<8x432xf32>
    %329 = arith.select %326, %324, %328 : vector<8x432xi1>, vector<8x432xf32>
    %c0_142 = arith.constant 0 : index
    %c0_143 = arith.constant 0 : index
    %330 = vector.load %arg23[%c0_142, %c0_143] : memref<9x432xf32, #tpu.memory_space<vmem>>, vector<9x432xf32>
    %c0_144 = arith.constant 0 : index
    %c0_145 = arith.constant 0 : index
    %331 = vector.load %arg19[%c0_144, %c0_145] : memref<8x72xf32, #tpu.memory_space<vmem>>, vector<8x72xf32>
    %cst_146 = arith.constant 0.000000e+00 : f32
    %332 = vector.broadcast %cst_146 : f32 to vector<8x14xf32>
    %333 = tpu.concatenate %332, %329, %332 in 1 : vector<8x14xf32>, vector<8x432xf32>, vector<8x14xf32> -> vector<8x460xf32>
    %334 = vector.extract_strided_slice %330 {offsets = [0, 0], sizes = [1, 432], strides = [1, 1]} : vector<9x432xf32> to vector<1x432xf32>
    %335 = vector.extract_strided_slice %333 {offsets = [0, 27], sizes = [8, 432], strides = [1, 1]} : vector<8x460xf32> to vector<8x432xf32>
    %336 = vector.broadcast %334 : vector<1x432xf32> to vector<8x432xf32>
    %337 = arith.mulf %336, %335 : vector<8x432xf32>
    %338 = vector.extract_strided_slice %330 {offsets = [1, 0], sizes = [1, 432], strides = [1, 1]} : vector<9x432xf32> to vector<1x432xf32>
    %339 = vector.extract_strided_slice %333 {offsets = [0, 26], sizes = [8, 432], strides = [1, 1]} : vector<8x460xf32> to vector<8x432xf32>
    %340 = vector.broadcast %338 : vector<1x432xf32> to vector<8x432xf32>
    %341 = arith.mulf %340, %339 : vector<8x432xf32>
    %342 = vector.extract_strided_slice %330 {offsets = [2, 0], sizes = [1, 432], strides = [1, 1]} : vector<9x432xf32> to vector<1x432xf32>
    %343 = vector.extract_strided_slice %333 {offsets = [0, 25], sizes = [8, 432], strides = [1, 1]} : vector<8x460xf32> to vector<8x432xf32>
    %344 = vector.broadcast %342 : vector<1x432xf32> to vector<8x432xf32>
    %345 = arith.mulf %344, %343 : vector<8x432xf32>
    %346 = vector.extract_strided_slice %330 {offsets = [3, 0], sizes = [1, 432], strides = [1, 1]} : vector<9x432xf32> to vector<1x432xf32>
    %347 = vector.extract_strided_slice %333 {offsets = [0, 15], sizes = [8, 432], strides = [1, 1]} : vector<8x460xf32> to vector<8x432xf32>
    %348 = vector.broadcast %346 : vector<1x432xf32> to vector<8x432xf32>
    %349 = arith.mulf %348, %347 : vector<8x432xf32>
    %350 = vector.extract_strided_slice %330 {offsets = [4, 0], sizes = [1, 432], strides = [1, 1]} : vector<9x432xf32> to vector<1x432xf32>
    %351 = vector.extract_strided_slice %333 {offsets = [0, 14], sizes = [8, 432], strides = [1, 1]} : vector<8x460xf32> to vector<8x432xf32>
    %352 = vector.broadcast %350 : vector<1x432xf32> to vector<8x432xf32>
    %353 = arith.mulf %352, %351 : vector<8x432xf32>
    %354 = vector.extract_strided_slice %330 {offsets = [5, 0], sizes = [1, 432], strides = [1, 1]} : vector<9x432xf32> to vector<1x432xf32>
    %355 = vector.extract_strided_slice %333 {offsets = [0, 13], sizes = [8, 432], strides = [1, 1]} : vector<8x460xf32> to vector<8x432xf32>
    %356 = vector.broadcast %354 : vector<1x432xf32> to vector<8x432xf32>
    %357 = arith.mulf %356, %355 : vector<8x432xf32>
    %358 = vector.extract_strided_slice %330 {offsets = [6, 0], sizes = [1, 432], strides = [1, 1]} : vector<9x432xf32> to vector<1x432xf32>
    %359 = vector.extract_strided_slice %333 {offsets = [0, 3], sizes = [8, 432], strides = [1, 1]} : vector<8x460xf32> to vector<8x432xf32>
    %360 = vector.broadcast %358 : vector<1x432xf32> to vector<8x432xf32>
    %361 = arith.mulf %360, %359 : vector<8x432xf32>
    %362 = vector.extract_strided_slice %330 {offsets = [7, 0], sizes = [1, 432], strides = [1, 1]} : vector<9x432xf32> to vector<1x432xf32>
    %363 = vector.extract_strided_slice %333 {offsets = [0, 2], sizes = [8, 432], strides = [1, 1]} : vector<8x460xf32> to vector<8x432xf32>
    %364 = vector.broadcast %362 : vector<1x432xf32> to vector<8x432xf32>
    %365 = arith.mulf %364, %363 : vector<8x432xf32>
    %366 = vector.extract_strided_slice %330 {offsets = [8, 0], sizes = [1, 432], strides = [1, 1]} : vector<9x432xf32> to vector<1x432xf32>
    %367 = vector.extract_strided_slice %333 {offsets = [0, 1], sizes = [8, 432], strides = [1, 1]} : vector<8x460xf32> to vector<8x432xf32>
    %368 = vector.broadcast %366 : vector<1x432xf32> to vector<8x432xf32>
    %369 = arith.mulf %368, %367 : vector<8x432xf32>
    %370 = tpu.concatenate %337, %341, %345, %349, %353, %357, %361, %365, %369 in 0 : vector<8x432xf32>, vector<8x432xf32>, vector<8x432xf32>, vector<8x432xf32>, vector<8x432xf32>, vector<8x432xf32>, vector<8x432xf32>, vector<8x432xf32>, vector<8x432xf32> -> vector<72x432xf32>
    %cst_147 = arith.constant dense<0.000000e+00> : vector<8x432xf32>
    %371 = tpu.matmul %331, %370, %cst_147 {dimension_numbers = #tpu.dot_dimension_numbers<[1], [0], [0], [1], [0, 0, 1, 1], [], []>} : vector<8x72xf32>, vector<72x432xf32>, vector<8x432xf32> -> vector<8x432xf32>
    %cst_148 = arith.constant dense<0.000000e+00> : vector<8xf32>
    %372 = vector.multi_reduction <add>, %371, %cst_148 [1] : vector<8x432xf32> to vector<8xf32>
    %373 = vector.shape_cast %372 : vector<8xf32> to vector<8x1xf32>
    %cst_149 = arith.constant 4.320000e+02 : f32
    %374 = vector.broadcast %cst_149 : f32 to vector<8x1xf32>
    %375 = arith.divf %373, %374 : vector<8x1xf32>
    %376 = arith.mulf %371, %371 : vector<8x432xf32>
    %cst_150 = arith.constant dense<0.000000e+00> : vector<8xf32>
    %377 = vector.multi_reduction <add>, %376, %cst_150 [1] : vector<8x432xf32> to vector<8xf32>
    %378 = vector.shape_cast %377 : vector<8xf32> to vector<8x1xf32>
    %cst_151 = arith.constant 4.320000e+02 : f32
    %379 = vector.broadcast %cst_151 : f32 to vector<8x1xf32>
    %380 = arith.divf %378, %379 : vector<8x1xf32>
    %381 = arith.mulf %375, %375 : vector<8x1xf32>
    %382 = arith.subf %380, %381 : vector<8x1xf32>
    %383 = vector.broadcast %375 : vector<8x1xf32> to vector<8x432xf32>
    %384 = arith.subf %371, %383 : vector<8x432xf32>
    %cst_152 = arith.constant 9.99999974E-6 : f32
    %385 = vector.broadcast %cst_152 : f32 to vector<8x1xf32>
    %386 = arith.addf %382, %385 : vector<8x1xf32>
    %387 = math.rsqrt %386 : vector<8x1xf32>
    %388 = vector.broadcast %387 : vector<8x1xf32> to vector<8x432xf32>
    %389 = arith.mulf %384, %388 : vector<8x432xf32>
    %cst_153 = arith.constant 0.000000e+00 : f32
    %390 = vector.broadcast %cst_153 : f32 to vector<8x432xf32>
    %391 = arith.cmpf oge, %389, %390 : vector<8x432xf32>
    %cst_154 = arith.constant 0.00999999977 : f32
    %392 = vector.broadcast %cst_154 : f32 to vector<8x432xf32>
    %393 = arith.mulf %392, %389 : vector<8x432xf32>
    %394 = arith.select %391, %389, %393 : vector<8x432xi1>, vector<8x432xf32>
    %c0_155 = arith.constant 0 : index
    %c0_156 = arith.constant 0 : index
    %395 = vector.load %arg20[%c0_155, %c0_156] : memref<8x72xf32, #tpu.memory_space<vmem>>, vector<8x72xf32>
    %cst_157 = arith.constant 0.000000e+00 : f32
    %396 = vector.broadcast %cst_157 : f32 to vector<8x14xf32>
    %397 = tpu.concatenate %396, %394, %396 in 1 : vector<8x14xf32>, vector<8x432xf32>, vector<8x14xf32> -> vector<8x460xf32>
    %398 = vector.extract_strided_slice %330 {offsets = [0, 0], sizes = [1, 432], strides = [1, 1]} : vector<9x432xf32> to vector<1x432xf32>
    %399 = vector.extract_strided_slice %397 {offsets = [0, 27], sizes = [8, 432], strides = [1, 1]} : vector<8x460xf32> to vector<8x432xf32>
    %400 = vector.broadcast %398 : vector<1x432xf32> to vector<8x432xf32>
    %401 = arith.mulf %400, %399 : vector<8x432xf32>
    %402 = vector.extract_strided_slice %330 {offsets = [1, 0], sizes = [1, 432], strides = [1, 1]} : vector<9x432xf32> to vector<1x432xf32>
    %403 = vector.extract_strided_slice %397 {offsets = [0, 26], sizes = [8, 432], strides = [1, 1]} : vector<8x460xf32> to vector<8x432xf32>
    %404 = vector.broadcast %402 : vector<1x432xf32> to vector<8x432xf32>
    %405 = arith.mulf %404, %403 : vector<8x432xf32>
    %406 = vector.extract_strided_slice %330 {offsets = [2, 0], sizes = [1, 432], strides = [1, 1]} : vector<9x432xf32> to vector<1x432xf32>
    %407 = vector.extract_strided_slice %397 {offsets = [0, 25], sizes = [8, 432], strides = [1, 1]} : vector<8x460xf32> to vector<8x432xf32>
    %408 = vector.broadcast %406 : vector<1x432xf32> to vector<8x432xf32>
    %409 = arith.mulf %408, %407 : vector<8x432xf32>
    %410 = vector.extract_strided_slice %330 {offsets = [3, 0], sizes = [1, 432], strides = [1, 1]} : vector<9x432xf32> to vector<1x432xf32>
    %411 = vector.extract_strided_slice %397 {offsets = [0, 15], sizes = [8, 432], strides = [1, 1]} : vector<8x460xf32> to vector<8x432xf32>
    %412 = vector.broadcast %410 : vector<1x432xf32> to vector<8x432xf32>
    %413 = arith.mulf %412, %411 : vector<8x432xf32>
    %414 = vector.extract_strided_slice %330 {offsets = [4, 0], sizes = [1, 432], strides = [1, 1]} : vector<9x432xf32> to vector<1x432xf32>
    %415 = vector.extract_strided_slice %397 {offsets = [0, 14], sizes = [8, 432], strides = [1, 1]} : vector<8x460xf32> to vector<8x432xf32>
    %416 = vector.broadcast %414 : vector<1x432xf32> to vector<8x432xf32>
    %417 = arith.mulf %416, %415 : vector<8x432xf32>
    %418 = vector.extract_strided_slice %330 {offsets = [5, 0], sizes = [1, 432], strides = [1, 1]} : vector<9x432xf32> to vector<1x432xf32>
    %419 = vector.extract_strided_slice %397 {offsets = [0, 13], sizes = [8, 432], strides = [1, 1]} : vector<8x460xf32> to vector<8x432xf32>
    %420 = vector.broadcast %418 : vector<1x432xf32> to vector<8x432xf32>
    %421 = arith.mulf %420, %419 : vector<8x432xf32>
    %422 = vector.extract_strided_slice %330 {offsets = [6, 0], sizes = [1, 432], strides = [1, 1]} : vector<9x432xf32> to vector<1x432xf32>
    %423 = vector.extract_strided_slice %397 {offsets = [0, 3], sizes = [8, 432], strides = [1, 1]} : vector<8x460xf32> to vector<8x432xf32>
    %424 = vector.broadcast %422 : vector<1x432xf32> to vector<8x432xf32>
    %425 = arith.mulf %424, %423 : vector<8x432xf32>
    %426 = vector.extract_strided_slice %330 {offsets = [7, 0], sizes = [1, 432], strides = [1, 1]} : vector<9x432xf32> to vector<1x432xf32>
    %427 = vector.extract_strided_slice %397 {offsets = [0, 2], sizes = [8, 432], strides = [1, 1]} : vector<8x460xf32> to vector<8x432xf32>
    %428 = vector.broadcast %426 : vector<1x432xf32> to vector<8x432xf32>
    %429 = arith.mulf %428, %427 : vector<8x432xf32>
    %430 = vector.extract_strided_slice %330 {offsets = [8, 0], sizes = [1, 432], strides = [1, 1]} : vector<9x432xf32> to vector<1x432xf32>
    %431 = vector.extract_strided_slice %397 {offsets = [0, 1], sizes = [8, 432], strides = [1, 1]} : vector<8x460xf32> to vector<8x432xf32>
    %432 = vector.broadcast %430 : vector<1x432xf32> to vector<8x432xf32>
    %433 = arith.mulf %432, %431 : vector<8x432xf32>
    %434 = tpu.concatenate %401, %405, %409, %413, %417, %421, %425, %429, %433 in 0 : vector<8x432xf32>, vector<8x432xf32>, vector<8x432xf32>, vector<8x432xf32>, vector<8x432xf32>, vector<8x432xf32>, vector<8x432xf32>, vector<8x432xf32>, vector<8x432xf32> -> vector<72x432xf32>
    %cst_158 = arith.constant dense<0.000000e+00> : vector<8x432xf32>
    %435 = tpu.matmul %395, %434, %cst_158 {dimension_numbers = #tpu.dot_dimension_numbers<[1], [0], [0], [1], [0, 0, 1, 1], [], []>} : vector<8x72xf32>, vector<72x432xf32>, vector<8x432xf32> -> vector<8x432xf32>
    %cst_159 = arith.constant dense<0.000000e+00> : vector<8xf32>
    %436 = vector.multi_reduction <add>, %435, %cst_159 [1] : vector<8x432xf32> to vector<8xf32>
    %437 = vector.shape_cast %436 : vector<8xf32> to vector<8x1xf32>
    %cst_160 = arith.constant 4.320000e+02 : f32
    %438 = vector.broadcast %cst_160 : f32 to vector<8x1xf32>
    %439 = arith.divf %437, %438 : vector<8x1xf32>
    %440 = arith.mulf %435, %435 : vector<8x432xf32>
    %cst_161 = arith.constant dense<0.000000e+00> : vector<8xf32>
    %441 = vector.multi_reduction <add>, %440, %cst_161 [1] : vector<8x432xf32> to vector<8xf32>
    %442 = vector.shape_cast %441 : vector<8xf32> to vector<8x1xf32>
    %cst_162 = arith.constant 4.320000e+02 : f32
    %443 = vector.broadcast %cst_162 : f32 to vector<8x1xf32>
    %444 = arith.divf %442, %443 : vector<8x1xf32>
    %445 = arith.mulf %439, %439 : vector<8x1xf32>
    %446 = arith.subf %444, %445 : vector<8x1xf32>
    %447 = vector.broadcast %439 : vector<8x1xf32> to vector<8x432xf32>
    %448 = arith.subf %435, %447 : vector<8x432xf32>
    %cst_163 = arith.constant 9.99999974E-6 : f32
    %449 = vector.broadcast %cst_163 : f32 to vector<8x1xf32>
    %450 = arith.addf %446, %449 : vector<8x1xf32>
    %451 = math.rsqrt %450 : vector<8x1xf32>
    %452 = vector.broadcast %451 : vector<8x1xf32> to vector<8x432xf32>
    %453 = arith.mulf %448, %452 : vector<8x432xf32>
    %cst_164 = arith.constant 0.000000e+00 : f32
    %454 = vector.broadcast %cst_164 : f32 to vector<8x432xf32>
    %455 = arith.cmpf oge, %453, %454 : vector<8x432xf32>
    %cst_165 = arith.constant 0.00999999977 : f32
    %456 = vector.broadcast %cst_165 : f32 to vector<8x432xf32>
    %457 = arith.mulf %456, %453 : vector<8x432xf32>
    %458 = arith.select %455, %453, %457 : vector<8x432xi1>, vector<8x432xf32>
    %c0_166 = arith.constant 0 : index
    %c0_167 = arith.constant 0 : index
    %459 = vector.load %arg21[%c0_166, %c0_167] : memref<1x72xf32, #tpu.memory_space<vmem>>, vector<1x72xf32>
    %cst_168 = arith.constant 0.000000e+00 : f32
    %460 = vector.broadcast %cst_168 : f32 to vector<8x14xf32>
    %461 = tpu.concatenate %460, %458, %460 in 1 : vector<8x14xf32>, vector<8x432xf32>, vector<8x14xf32> -> vector<8x460xf32>
    %462 = vector.extract_strided_slice %330 {offsets = [0, 0], sizes = [1, 432], strides = [1, 1]} : vector<9x432xf32> to vector<1x432xf32>
    %463 = vector.extract_strided_slice %461 {offsets = [0, 27], sizes = [8, 432], strides = [1, 1]} : vector<8x460xf32> to vector<8x432xf32>
    %464 = vector.broadcast %462 : vector<1x432xf32> to vector<8x432xf32>
    %465 = arith.mulf %464, %463 : vector<8x432xf32>
    %466 = vector.extract_strided_slice %330 {offsets = [1, 0], sizes = [1, 432], strides = [1, 1]} : vector<9x432xf32> to vector<1x432xf32>
    %467 = vector.extract_strided_slice %461 {offsets = [0, 26], sizes = [8, 432], strides = [1, 1]} : vector<8x460xf32> to vector<8x432xf32>
    %468 = vector.broadcast %466 : vector<1x432xf32> to vector<8x432xf32>
    %469 = arith.mulf %468, %467 : vector<8x432xf32>
    %470 = vector.extract_strided_slice %330 {offsets = [2, 0], sizes = [1, 432], strides = [1, 1]} : vector<9x432xf32> to vector<1x432xf32>
    %471 = vector.extract_strided_slice %461 {offsets = [0, 25], sizes = [8, 432], strides = [1, 1]} : vector<8x460xf32> to vector<8x432xf32>
    %472 = vector.broadcast %470 : vector<1x432xf32> to vector<8x432xf32>
    %473 = arith.mulf %472, %471 : vector<8x432xf32>
    %474 = vector.extract_strided_slice %330 {offsets = [3, 0], sizes = [1, 432], strides = [1, 1]} : vector<9x432xf32> to vector<1x432xf32>
    %475 = vector.extract_strided_slice %461 {offsets = [0, 15], sizes = [8, 432], strides = [1, 1]} : vector<8x460xf32> to vector<8x432xf32>
    %476 = vector.broadcast %474 : vector<1x432xf32> to vector<8x432xf32>
    %477 = arith.mulf %476, %475 : vector<8x432xf32>
    %478 = vector.extract_strided_slice %330 {offsets = [4, 0], sizes = [1, 432], strides = [1, 1]} : vector<9x432xf32> to vector<1x432xf32>
    %479 = vector.extract_strided_slice %461 {offsets = [0, 14], sizes = [8, 432], strides = [1, 1]} : vector<8x460xf32> to vector<8x432xf32>
    %480 = vector.broadcast %478 : vector<1x432xf32> to vector<8x432xf32>
    %481 = arith.mulf %480, %479 : vector<8x432xf32>
    %482 = vector.extract_strided_slice %330 {offsets = [5, 0], sizes = [1, 432], strides = [1, 1]} : vector<9x432xf32> to vector<1x432xf32>
    %483 = vector.extract_strided_slice %461 {offsets = [0, 13], sizes = [8, 432], strides = [1, 1]} : vector<8x460xf32> to vector<8x432xf32>
    %484 = vector.broadcast %482 : vector<1x432xf32> to vector<8x432xf32>
    %485 = arith.mulf %484, %483 : vector<8x432xf32>
    %486 = vector.extract_strided_slice %330 {offsets = [6, 0], sizes = [1, 432], strides = [1, 1]} : vector<9x432xf32> to vector<1x432xf32>
    %487 = vector.extract_strided_slice %461 {offsets = [0, 3], sizes = [8, 432], strides = [1, 1]} : vector<8x460xf32> to vector<8x432xf32>
    %488 = vector.broadcast %486 : vector<1x432xf32> to vector<8x432xf32>
    %489 = arith.mulf %488, %487 : vector<8x432xf32>
    %490 = vector.extract_strided_slice %330 {offsets = [7, 0], sizes = [1, 432], strides = [1, 1]} : vector<9x432xf32> to vector<1x432xf32>
    %491 = vector.extract_strided_slice %461 {offsets = [0, 2], sizes = [8, 432], strides = [1, 1]} : vector<8x460xf32> to vector<8x432xf32>
    %492 = vector.broadcast %490 : vector<1x432xf32> to vector<8x432xf32>
    %493 = arith.mulf %492, %491 : vector<8x432xf32>
    %494 = vector.extract_strided_slice %330 {offsets = [8, 0], sizes = [1, 432], strides = [1, 1]} : vector<9x432xf32> to vector<1x432xf32>
    %495 = vector.extract_strided_slice %461 {offsets = [0, 1], sizes = [8, 432], strides = [1, 1]} : vector<8x460xf32> to vector<8x432xf32>
    %496 = vector.broadcast %494 : vector<1x432xf32> to vector<8x432xf32>
    %497 = arith.mulf %496, %495 : vector<8x432xf32>
    %498 = tpu.concatenate %465, %469, %473, %477, %481, %485, %489, %493, %497 in 0 : vector<8x432xf32>, vector<8x432xf32>, vector<8x432xf32>, vector<8x432xf32>, vector<8x432xf32>, vector<8x432xf32>, vector<8x432xf32>, vector<8x432xf32>, vector<8x432xf32> -> vector<72x432xf32>
    %cst_169 = arith.constant dense<0.000000e+00> : vector<1x432xf32>
    %499 = tpu.matmul %459, %498, %cst_169 {dimension_numbers = #tpu.dot_dimension_numbers<[1], [0], [0], [1], [0, 0, 1, 1], [], []>} : vector<1x72xf32>, vector<72x432xf32>, vector<1x432xf32> -> vector<1x432xf32>
    %c0_170 = arith.constant 0 : index
    %c0_171 = arith.constant 0 : index
    %500 = vector.load %arg22[%c0_170, %c0_171] : memref<1x1xf32, #tpu.memory_space<vmem>>, vector<1x1xf32>
    %501 = vector.broadcast %500 : vector<1x1xf32> to vector<1x432xf32>
    %502 = arith.addf %499, %501 : vector<1x432xf32>
    %cst_172 = arith.constant 0.000000e+00 : f32
    %503 = vector.broadcast %cst_172 : f32 to vector<1x432xf32>
    %504 = arith.subf %503, %502 : vector<1x432xf32>
    %505 = math.exp %504 : vector<1x432xf32>
    %cst_173 = arith.constant 1.000000e+00 : f32
    %506 = vector.broadcast %cst_173 : f32 to vector<1x432xf32>
    %507 = arith.addf %506, %505 : vector<1x432xf32>
    %cst_174 = arith.constant 1.000000e+00 : f32
    %508 = vector.broadcast %cst_174 : f32 to vector<1x432xf32>
    %509 = arith.divf %508, %507 : vector<1x432xf32>
    %c0_175 = arith.constant 0 : index
    %c0_176 = arith.constant 0 : index
    %510 = vector.load %arg27[%c0_175, %c0_176] : memref<1x432xf32, #tpu.memory_space<vmem>>, vector<1x432xf32>
    tpu.vector_store %arg27[%c0_175, %c0_176], %509 {strides = array<i32>} : memref<1x432xf32, #tpu.memory_space<vmem>>, vector<1x432xf32>,
    return
  }
}

</mosaic_0001>

<bundles_post_ra>
// kernel: vae_conv_forward.1
= control target key start
LH: loop header
LB: loop body
LE: loop exit
PB: predicated region body
PF: predicated region fallthrough
CT: control target
= control target key end

     0   :  { %vm92_vm0 = vcmask 1040384   ;;  %v10616_v0 = vmov 0.0   ;;  %vm10617_vm1 = vmmov 0   ;;  %vm88_vm2 = vcmask 203776   ;;  %s10624_s30 = smov 120   ;;  %s10627_s28 = smov 126   ;;  %s15928_s0 = inlined_call_operand.vmem [shape: f32[25,108], index: 0, kind: input, shape index: {}]   ;;  %s15929_s1 = inlined_call_operand.vmem [shape: f32[8,25], index: 1, kind: input, shape index: {}]   ;;  %s15930_s5 = inlined_call_operand.vmem [shape: f32[9,108], index: 5, kind: input, shape index: {}]   ;;  %s15931_s2 = inlined_call_operand.vmem [shape: f32[8,72], index: 2, kind: input, shape index: {}]   ;;  %s15932_s3 = inlined_call_operand.vmem [shape: f32[8,72], index: 3, kind: input, shape index: {}]   ;;  %s15933_s4 = inlined_call_operand.vmem [shape: f32[8,72], index: 4, kind: input, shape index: {}]   ;;  %s15934_s6 = inlined_call_operand.vmem [shape: f32[432,8], index: 6, kind: input, shape index: {}]   ;;  %s15935_s8 = inlined_call_operand.vmem [shape: f32[108,2], index: 8, kind: input, shape index: {}]   ;;  %s15936_s7 = inlined_call_operand.vmem [shape: f32[432,108], index: 7, kind: input, shape index: {}]   ;;  %s15937_s10 = inlined_call_operand.vmem [shape: f32[32,1], index: 10, kind: input, shape index: {}]   ;;  %s15938_s14 = inlined_call_operand.vmem [shape: f32[432,1], index: 14, kind: input, shape index: {}]   ;;  %s15939_s9 = inlined_call_operand.vmem [shape: f32[32,432], index: 9, kind: input, shape index: {}]   ;;  %s15940_s12 = inlined_call_operand.vmem [shape: f32[14,2], index: 12, kind: input, shape index: {}]   ;;  %s15941_s13 = inlined_call_operand.vmem [shape: f32[432,30], index: 13, kind: input, shape index: {}]   ;;  %s15942_s25 = inlined_call_operand.vmem [shape: f32[16,2], index: 25, kind: output, shape index: {1}]   ;;  %s15943_s26 = inlined_call_operand.vmem [shape: f32[16,2], index: 26, kind: output, shape index: {2}]   ;;  %s15944_s11 = inlined_call_operand.vmem [shape: f32[16,2], index: 11, kind: input, shape index: {}]   ;;  %s15945_s24 = inlined_call_operand.vmem [shape: f32[16,2], index: 24, kind: output, shape index: {0}]   ;;  %s15946_s16 = inlined_call_operand.vmem [shape: f32[2,108], index: 16, kind: input, shape index: {}]   ;;  %s15947_s15 = inlined_call_operand.vmem [shape: f32[8,432], index: 15, kind: input, shape index: {}]   ;;  %s15948_s17 = inlined_call_operand.vmem [shape: f32[16,108,432], index: 17, kind: input, shape index: {}]   ;;  %s15949_s18 = inlined_call_operand.vmem [shape: f32[8,128], index: 18, kind: input, shape index: {}]   ;;  %s15950_s23 = inlined_call_operand.vmem [shape: f32[9,432], index: 23, kind: input, shape index: {}]   ;;  %s15951_s19 = inlined_call_operand.vmem [shape: f32[8,72], index: 19, kind: input, shape index: {}]   ;;  %s15952_s20 = inlined_call_operand.vmem [shape: f32[8,72], index: 20, kind: input, shape index: {}]   ;;  %s15953_s22 = inlined_call_operand.<no memory space> [shape: f32[1,1], index: 22, kind: input, shape index: {}]   ;;  %s15954_s21 = inlined_call_operand.vmem [shape: f32[1,72], index: 21, kind: input, shape index: {}]   ;;  %s15955_s27 = inlined_call_operand.vmem [shape: f32[1,432], index: 27, kind: output, shape index: {3}]  }
   0x1   :  { %15973 = sst [smem:[#allocation3_spill]] %s15928_s0  ;;  %10122 = vmatprep.subr.mxu0 %v10616_v0  ;;  %10130 = vmatprep.mubr.msk.f32.mxu0 %vm10617_vm1, %v10616_v0  ;;  %vm166_vm3 = vcmask 883712   ;;  %vm193_vm5 = vcmask 64512   ;;  %vm195_vm6 = vcmask 949248   ;;  %v197_v26 = vlaneseq }
   0x2   :  { %15974 = sst [smem:[#allocation4_spill]] %s15929_s1  ;;  %10133 = vmatprep.subr.mxu1 %v10616_v0  ;;  %10151 = vmatprep.mubr.msk.f32.mxu1 %vm10617_vm1, %v10616_v0  ;;  %vm270_vm7 = vcmask 588800   ;;  %vm1467_vm10 = vcmask 1043456   ;;  %vm15972_vm12 = vcmask 392192   ;;  %vm2591_vm13 = vcmask 1045504   ;;  %s10630_s1 = smov 103  }
   0x3   :  { %15975 = sst [smem:[#allocation5_spill]] %s15930_s5  ;;  %s15968_s5 = smov 115   ;;  %v10816_v27 = vshrl.u32 %v197_v26, 7  ;;  %vm2428_vm14 = vcmask 244736   ;;  %vm2041_vm15 = vcmask 15360  }
   0x4   :  { %15976 = sst [smem:[#allocation6_spill]] %s15931_s2  ;;  %s15966_s2 = smov 114  }
   0x5   :  { %15977 = sst [smem:[#allocation7_spill]] %s15932_s3  ;;  %s15964_s3 = smov 113   ;;  %v10819_v28 = vsub.s32 7, %v10816_v27  ;;  %v10825_v30 = vsub.s32 6, %v10816_v27  ;;  %v10840_v37 = vsub.s32 5, %v10816_v27  ;;  %v10849_v42 = vsub.s32 4, %v10816_v27 }
   0x6   :  { %15978 = sst [smem:[#allocation8_spill]] %s15933_s4  ;;  %s15970_s4 = smov 125   ;;  %v10858_v46 = vsub.s32 3, %v10816_v27  ;;  %v10866_v50 = vsub.s32 2, %v10816_v27  ;;  %v10874_v54 = vsub.s32 1, %v10816_v27  ;;  %v10877_v55 = vsub.s32 0, %v10816_v27 }
   0x7   :  { %15979 = sst [smem:[#allocation9_spill]] %s15934_s6 }
   0x8   :  { %15980 = sst [smem:[#allocation10_spill]] %s15935_s8  ;;  %s10621_s8 = smov 127  }
   0x9   :  { %15981 = sst [smem:[#allocation11_spill]] %s15936_s7 }
   0xa   :  { %15982 = sst [smem:[#allocation12_spill]] %s15937_s10  ;;  %s10625_s10 = smov 121  }
   0xb   :  { %15983 = sst [smem:[#allocation13_spill]] %s15938_s14 }
   0xc   :  { %15984 = sst [smem:[#allocation14_spill]] %s15939_s9  ;;  %s10618_s9 = smov 8  }
   0xd   :  { %s15985_s7 = sld [smem:[#allocation3_spill]] }
   0xe   :  { %s15986_s6 = sld [smem:[#allocation4_spill]] }
   0xf   :  { %s15987_s29 = sld [smem:[#allocation5_spill]] }
  0x10   :  { %s15989_s0 = sld [smem:[#allocation7_spill]] }
  0x11   :  { %s15995_s14 = sld [smem:[#allocation13_spill]] }
  0x13   :  { %v87_v1 = vld [vmem:[%s15985_s7 + $0x18] sm:$0x1]  ;;  %v86_v2 = vld [vmem:[%s15985_s7 + $0x10] sm:$0xff]  ;;  %v85_v3 = vld [vmem:[%s15985_s7 + $0x8] sm:$0xff] }
  0x14   :  { %10123 = vmatpush3.msk.msra.mxu0 %vm92_vm0, %v87_v1  ;;  %v84_v4 = vld [vmem:[%s15985_s7] sm:$0xff]  ;;  %s10623_s7 = smov 119   ;;  %vm3097_vm0 = vcmask 1041408  }
  0x15   :  { %10124 = vmatprep.subr.mxu0 %v10616_v0  ;;  %v83_v5 = vld [vmem:[%s15986_s6] sm:$0xff]  ;;  %v10830_v31 = vld [vmem:[%s15987_s29 + $0x8] ss:$0 sm:$0xff]  ;;  %s15994_s6 = sld [smem:[#allocation12_spill]] }
  0x16   :  { %10125 = vmatpush3.msra.mxu0 %v86_v2  ;;  %v186_v29 = vld [vmem:[%s15987_s29] sm:$0xff]  ;;  %s15988_s29 = sld [smem:[#allocation6_spill]] }
  0x17   :  { %10126 = vmatprep.subr.mxu0 %v10616_v0  ;;  %v10833_v32 = vrot.slane %v186_v29, %v10819_v28  ;;  %v10837_v36 = vrot.slane %v186_v29, %v10825_v30  ;;  %v10846_v41 = vrot.slane %v186_v29, %v10840_v37  ;;  %v10855_v45 = vrot.slane %v186_v29, %v10849_v42 }
  0x18   :  { %10127 = vmatpush3.msra.mxu0 %v85_v3  ;;  %v10863_v49 = vrot.slane %v186_v29, %v10858_v46  ;;  %v10871_v53 = vrot.slane %v186_v29, %v10866_v50  ;;  %v10882_v58 = vrot.slane %v186_v29, %v10874_v54  ;;  %v10885_v59 = vrot.slane %v186_v29, %v10877_v55 }
  0x19   :  { %10128 = vmatprep.subr.mxu0 %v10616_v0 }
  0x1a   :  { %10129 = vmatpush3.msra.mxu0 %v84_v4 }
  0x1b   :  { %10131 = vmatmul.mubr.msk.f32.vlgmr.msra.gmra.mxu0 %vm88_vm2, %v83_v5  ;;  %10154 = vmatprep.subr.mxu0 %v10616_v0 }
  0x1c   :  { %10172 = vmatprep.mubr.msk.f32.mxu0 %vm10617_vm1, %v10616_v0  ;;  %v188_v1 = vld [vmem:[%s15988_s29] sm:$0xff]  ;;  %s15991_s29 = sld [smem:[#allocation9_spill]] }
  0xdb   :  { %v162_v6 = vpop.f32.mrf.mxu0 }
  0xdc   :  { %v167_v7 = vsel %vm166_vm3, %v162_v6, 0.0  ;;  %v172_v8 = vmul.f32 %v162_v6, %v162_v6 }
  0xdd   :  { %168 = vadd.xlane.f32.xlu0 %v167_v7  ;;  %v10132_v9 = vpop.f32.mrf.mxu0 }
  0xde   :  { %v173_v10 = vsel %vm166_vm3, %v172_v8, 0.0 }
  0xe1   :  { %174 = vadd.xlane.f32.xlu0 %v173_v10 }
 0x166   :  { %v169_v11 = vpop.xlane.xlu0 %168 }
 0x167   :  { %v171_v12 = vmul.f32 0.009259259, %v169_v11 }
 0x169   :  { %v177_v14 = vmul.f32 %v171_v12, %v171_v12  ;;  %v179_v18 = vsub.f32 %v162_v6, %v171_v12 }
 0x16a   :  { %v175_v13 = vpop.xlane.xlu0 %174 }
 0x16b   :  { %v176_v15 = vmul.f32 0.009259259, %v175_v13 }
 0x16d   :  { %v178_v16 = vsub.f32 %v176_v15, %v177_v14 }
 0x16f   :  { %v180_v17 = vadd.f32 1e-05, %v178_v16 }
 0x171   :  { %10580 = vrsqrt.f32 %v180_v17 }
 0x17e   :  { %v10581_v19 = vpop.eup %10580 }
 0x17f   :  { %v182_v20 = vmul.f32 %v10581_v19, %v179_v18 }
 0x181   :  { %vm183_vm4 = vcmp.ge.f32.partialorder %v182_v20, 0.0  ;;  %v184_v21 = vmul.f32 0.01, %v182_v20 }
 0x183   :  { %v185_v22 = vsel %vm183_vm4, %v182_v20, %v184_v21 }
 0x184   :  { %190 = vrot.lane.b32.xlu1 %v185_v22, %s10618_s9 }
 0x1f6   :  { %v191_v23 = vpop.permute.xlu1 %190 }
 0x1f7   :  { %v194_v24 = vsel %vm193_vm5, 0.0, %v191_v23 }
 0x1f8   :  { %v196_v25 = vsel %vm195_vm6, %v194_v24, 0.0 }
 0x1f9   :  { %258 = vrot.lane.b32.xlu0 %v196_v25, %s15966_s2  ;;  %266 = vrot.lane.b32.xlu1 %v196_v25, %s15964_s3 }
 0x1fd   :  { %202 = vrot.lane.b32.xlu0 %v196_v25, %s10621_s8  ;;  %250 = vrot.lane.b32.xlu1 %v196_v25, %s15968_s5 }
 0x201   :  { %242 = vrot.lane.b32.xlu1 %v196_v25, %s10623_s7 }
 0x205   :  { %234 = vrot.lane.b32.xlu1 %v196_v25, %s10624_s30 }
 0x209   :  { %226 = vrot.lane.b32.xlu1 %v196_v25, %s10625_s10 }
 0x20d   :  { %218 = vrot.lane.b32.xlu1 %v196_v25, %s15970_s4 }
 0x211   :  { %210 = vrot.lane.b32.xlu1 %v196_v25, %s10627_s28 }
 0x26b   :  { %v259_v33 = vpop.permute.xlu0 %258  ;;  %v267_v34 = vpop.permute.xlu1 %266 }
 0x26c   :  { %v269_v35 = vmul.f32 %v10830_v31, %v267_v34  ;;  %v261_v38 = vmul.f32 %v259_v33, %v10833_v32 }
 0x26e   :  { %10134 = vmatpush3.msra.mxu1 %v269_v35 }
 0x26f   :  { %10135 = vmatprep.subr.mxu1 %v10616_v0  ;;  %v251_v39 = vpop.permute.xlu1 %250  ;;  %v203_v60 = vpop.permute.xlu0 %202 }
 0x270   :  { %v253_v40 = vmul.f32 %v251_v39, %v10837_v36  ;;  %10136 = vmatpush3.msra.mxu1 %v261_v38  ;;  %v205_v63 = vmul.f32 %v203_v60, %v10885_v59 }
 0x271   :  { %10137 = vmatprep.subr.mxu1 %v10616_v0 }
 0x272   :  { %10138 = vmatpush3.msra.mxu1 %v253_v40 }
 0x273   :  { %v243_v43 = vpop.permute.xlu1 %242  ;;  %10139 = vmatprep.subr.mxu1 %v10616_v0 }
 0x274   :  { %v245_v44 = vmul.f32 %v243_v43, %v10846_v41 }
 0x276   :  { %10140 = vmatpush3.msra.mxu1 %v245_v44 }
 0x277   :  { %v235_v47 = vpop.permute.xlu1 %234  ;;  %10141 = vmatprep.subr.mxu1 %v10616_v0 }
 0x278   :  { %v237_v48 = vmul.f32 %v235_v47, %v10855_v45 }
 0x27a   :  { %10142 = vmatpush3.msra.mxu1 %v237_v48 }
 0x27b   :  { %v227_v51 = vpop.permute.xlu1 %226  ;;  %10143 = vmatprep.subr.mxu1 %v10616_v0 }
 0x27c   :  { %v229_v52 = vmul.f32 %v227_v51, %v10863_v49 }
 0x27e   :  { %10144 = vmatpush3.msra.mxu1 %v229_v52 }
 0x27f   :  { %v219_v56 = vpop.permute.xlu1 %218  ;;  %10145 = vmatprep.subr.mxu1 %v10616_v0 }
 0x280   :  { %v221_v57 = vmul.f32 %v219_v56, %v10871_v53 }
 0x282   :  { %10146 = vmatpush3.msra.mxu1 %v221_v57  ;;  %v362_v57 = vld [vmem:[%s15989_s0] sm:$0xff]  ;;  %s15992_s0 = sld [smem:[#allocation10_spill]] }
 0x283   :  { %v211_v61 = vpop.permute.xlu1 %210  ;;  %10147 = vmatprep.subr.mxu1 %v10616_v0 }
 0x284   :  { %v213_v62 = vmul.f32 %v211_v61, %v10882_v58 }
 0x286   :  { %10148 = vmatpush3.msra.mxu1 %v213_v62 }
 0x287   :  { %10149 = vmatprep.subr.mxu1 %v10616_v0 }
 0x288   :  { %10150 = vmatpush3.msra.mxu1 %v205_v63 }
 0x289   :  { %10152 = vmatmul.mubr.msk.f32.vlgmr.msra.gmra.mxu1 %vm270_vm7, %v188_v1  ;;  %10175 = vmatprep.subr.mxu1 %v10616_v0 }
 0x28a   :  { %10193 = vmatprep.mubr.msk.f32.mxu1 %vm10617_vm1, %v10616_v0 }
 0x349   :  { %v340_v2 = vpop.f32.mrf.mxu1 }
 0x34a   :  { %v344_v3 = vsel %vm166_vm3, %v340_v2, 0.0  ;;  %v348_v4 = vmul.f32 %v340_v2, %v340_v2 }
 0x34b   :  { %345 = vadd.xlane.f32.xlu1 %v344_v3  ;;  %v10153_v5 = vpop.f32.mrf.mxu1 }
 0x34c   :  { %v349_v6 = vsel %vm166_vm3, %v348_v4, 0.0 }
 0x34d   :  { %350 = vadd.xlane.f32.xlu0 %v349_v6 }
 0x3d4   :  { %v346_v7 = vpop.xlane.xlu1 %345 }
 0x3d5   :  { %v347_v8 = vmul.f32 0.009259259, %v346_v7 }
 0x3d6   :  { %v351_v9 = vpop.xlane.xlu0 %350 }
 0x3d7   :  { %v353_v10 = vmul.f32 %v347_v8, %v347_v8  ;;  %v352_v11 = vmul.f32 0.009259259, %v351_v9  ;;  %v355_v14 = vsub.f32 %v340_v2, %v347_v8 }
 0x3d9   :  { %v354_v12 = vsub.f32 %v352_v11, %v353_v10 }
 0x3db   :  { %v356_v13 = vadd.f32 1e-05, %v354_v12 }
 0x3dd   :  { %10582 = vrsqrt.f32 %v356_v13 }
 0x3ea   :  { %v10583_v15 = vpop.eup %10582 }
 0x3eb   :  { %v358_v16 = vmul.f32 %v10583_v15, %v355_v14 }
 0x3ed   :  { %vm359_vm8 = vcmp.ge.f32.partialorder %v358_v16, 0.0  ;;  %v360_v17 = vmul.f32 0.01, %v358_v16 }
 0x3ef   :  { %v361_v18 = vsel %vm359_vm8, %v358_v16, %v360_v17  ;;  %vm7595_vm8 = vcmask 1039360  }
 0x3f0   :  { %364 = vrot.lane.b32.xlu0 %v361_v18, %s10618_s9 }
 0x462   :  { %v365_v19 = vpop.permute.xlu0 %364 }
 0x463   :  { %v367_v20 = vsel %vm193_vm5, 0.0, %v365_v19 }
 0x464   :  { %v368_v21 = vsel %vm195_vm6, %v367_v20, 0.0 }
 0x465   :  { %394 = vrot.lane.b32.xlu0 %v368_v21, %s15968_s5  ;;  %402 = vrot.lane.b32.xlu1 %v368_v21, %s15964_s3 }
 0x469   :  { %386 = vrot.lane.b32.xlu0 %v368_v21, %s10624_s30  ;;  %398 = vrot.lane.b32.xlu1 %v368_v21, %s15966_s2 }
 0x46d   :  { %378 = vrot.lane.b32.xlu0 %v368_v21, %s15970_s4  ;;  %390 = vrot.lane.b32.xlu1 %v368_v21, %s10623_s7 }
 0x471   :  { %370 = vrot.lane.b32.xlu0 %v368_v21, %s10621_s8  ;;  %382 = vrot.lane.b32.xlu1 %v368_v21, %s10625_s10 }
 0x475   :  { %374 = vrot.lane.b32.xlu1 %v368_v21, %s10627_s28 }
 0x4d7   :  { %v395_v22 = vpop.permute.xlu0 %394  ;;  %v403_v23 = vpop.permute.xlu1 %402 }
 0x4d8   :  { %v405_v24 = vmul.f32 %v10830_v31, %v403_v23  ;;  %v397_v34 = vmul.f32 %v395_v22, %v10837_v36 }
 0x4da   :  { %10155 = vmatpush3.msra.mxu0 %v405_v24 }
 0x4db   :  { %v387_v25 = vpop.permute.xlu0 %386  ;;  %v399_v29 = vpop.permute.xlu1 %398  ;;  %10156 = vmatprep.subr.mxu0 %v10616_v0 }
 0x4dc   :  { %v401_v33 = vmul.f32 %v399_v29, %v10833_v32  ;;  %v389_v40 = vmul.f32 %v387_v25, %v10855_v45 }
 0x4de   :  { %10157 = vmatpush3.msra.mxu0 %v401_v33 }
 0x4df   :  { %10158 = vmatprep.subr.mxu0 %v10616_v0  ;;  %v391_v35 = vpop.permute.xlu1 %390  ;;  %v379_v39 = vpop.permute.xlu0 %378 }
 0x4e0   :  { %v393_v38 = vmul.f32 %v391_v35, %v10846_v41  ;;  %10159 = vmatpush3.msra.mxu0 %v397_v34  ;;  %v381_v47 = vmul.f32 %v379_v39, %v10871_v53 }
 0x4e1   :  { %10160 = vmatprep.subr.mxu0 %v10616_v0 }
 0x4e2   :  { %10161 = vmatpush3.msra.mxu0 %v393_v38 }
 0x4e3   :  { %10162 = vmatprep.subr.mxu0 %v10616_v0  ;;  %v383_v43 = vpop.permute.xlu1 %382  ;;  %v371_v48 = vpop.permute.xlu0 %370 }
 0x4e4   :  { %v385_v44 = vmul.f32 %v383_v43, %v10863_v49  ;;  %10163 = vmatpush3.msra.mxu0 %v389_v40  ;;  %v373_v56 = vmul.f32 %v371_v48, %v10885_v59 }
 0x4e5   :  { %10164 = vmatprep.subr.mxu0 %v10616_v0 }
 0x4e6   :  { %10165 = vmatpush3.msra.mxu0 %v385_v44 }
 0x4e7   :  { %10166 = vmatprep.subr.mxu0 %v10616_v0  ;;  %v375_v51 = vpop.permute.xlu1 %374 }
 0x4e8   :  { %v377_v52 = vmul.f32 %v375_v51, %v10882_v58  ;;  %10167 = vmatpush3.msra.mxu0 %v381_v47 }
 0x4e9   :  { %10168 = vmatprep.subr.mxu0 %v10616_v0 }
 0x4ea   :  { %10169 = vmatpush3.msra.mxu0 %v377_v52 }
 0x4eb   :  { %10170 = vmatprep.subr.mxu0 %v10616_v0 }
 0x4ec   :  { %10171 = vmatpush3.msra.mxu0 %v373_v56 }
 0x4ed   :  { %10173 = vmatmul.mubr.msk.f32.vlgmr.msra.gmra.mxu0 %vm270_vm7, %v362_v57  ;;  %v1304_v57 = vld [vmem:[%s15992_s0 + $0x68] sm:$0xf] }
 0x5ad   :  { %v475_v60 = vpop.f32.mrf.mxu0 }
 0x5ae   :  { %v479_v61 = vsel %vm166_vm3, %v475_v60, 0.0  ;;  %v483_v62 = vmul.f32 %v475_v60, %v475_v60 }
 0x5af   :  { %480 = vadd.xlane.f32.xlu1 %v479_v61  ;;  %v10174_v63 = vpop.f32.mrf.mxu0  ;;  %v1302_v61 = vld [vmem:[%s15992_s0 + $0x58] sm:$0xff] }
 0x5b0   :  { %v484_v1 = vsel %vm166_vm3, %v483_v62, 0.0  ;;  %v1301_v62 = vld [vmem:[%s15992_s0 + $0x50] sm:$0xff]  ;;  %v1300_v63 = vld [vmem:[%s15992_s0 + $0x48] sm:$0xff] }
 0x5b1   :  { %485 = vadd.xlane.f32.xlu0 %v484_v1  ;;  %v1299_v1 = vld [vmem:[%s15992_s0 + $0x40] sm:$0xff] }
 0x638   :  { %v481_v2 = vpop.xlane.xlu1 %480 }
 0x639   :  { %v482_v3 = vmul.f32 0.009259259, %v481_v2  ;;  %v1298_v2 = vld [vmem:[%s15992_s0 + $0x38] sm:$0xff] }
 0x63a   :  { %v486_v4 = vpop.xlane.xlu0 %485 }
 0x63b   :  { %v488_v5 = vmul.f32 %v482_v3, %v482_v3  ;;  %v487_v6 = vmul.f32 0.009259259, %v486_v4  ;;  %v490_v9 = vsub.f32 %v475_v60, %v482_v3  ;;  %v1303_v60 = vld [vmem:[%s15992_s0 + $0x60] sm:$0xff]  ;;  %v1297_v3 = vld [vmem:[%s15992_s0 + $0x30] sm:$0xff] }
 0x63d   :  { %v489_v7 = vsub.f32 %v487_v6, %v488_v5  ;;  %v1296_v5 = vld [vmem:[%s15992_s0 + $0x28] sm:$0xff] }
 0x63f   :  { %v491_v8 = vadd.f32 1e-05, %v489_v7 }
 0x641   :  { %10584 = vrsqrt.f32 %v491_v8  ;;  %v1295_v8 = vld [vmem:[%s15992_s0 + $0x20] sm:$0xff] }
 0x64e   :  { %v10585_v10 = vpop.eup %10584 }
 0x64f   :  { %v493_v11 = vmul.f32 %v10585_v10, %v490_v9  ;;  %v1294_v10 = vld [vmem:[%s15992_s0 + $0x18] sm:$0xff] }
 0x651   :  { %vm494_vm9 = vcmp.ge.f32.partialorder %v493_v11, 0.0  ;;  %v495_v12 = vmul.f32 0.01, %v493_v11 }
 0x653   :  { %v496_v13 = vsel %vm494_vm9, %v493_v11, %v495_v12  ;;  %v633_v12 = vld [vmem:[%s15991_s29 + $0x8] sm:$0xff]  ;;  %vm7559_vm9 = vcmask 1031168  }
 0x654   :  { %499 = vrot.lane.b32.xlu0 %v496_v13, %s10618_s9  ;;  %v634_v13 = vld [vmem:[%s15991_s29 + $0x10] sm:$0xff] }
 0x6c6   :  { %v500_v14 = vpop.permute.xlu0 %499 }
 0x6c7   :  { %v502_v15 = vsel %vm193_vm5, 0.0, %v500_v14  ;;  %v635_v14 = vld [vmem:[%s15991_s29 + $0x18] sm:$0xff] }
 0x6c8   :  { %v503_v16 = vsel %vm195_vm6, %v502_v15, 0.0  ;;  %v636_v15 = vld [vmem:[%s15991_s29 + $0x20] sm:$0xff]  ;;  %vm7279_vm6 = vcmask 506880  }
 0x6c9   :  { %529 = vrot.lane.b32.xlu0 %v503_v16, %s15968_s5  ;;  %537 = vrot.lane.b32.xlu1 %v503_v16, %s15964_s3 }
 0x6cd   :  { %521 = vrot.lane.b32.xlu0 %v503_v16, %s10624_s30  ;;  %533 = vrot.lane.b32.xlu1 %v503_v16, %s15966_s2  ;;  %s15990_s30 = sld [smem:[#allocation8_spill]] }
 0x6d1   :  { %513 = vrot.lane.b32.xlu0 %v503_v16, %s15970_s4  ;;  %525 = vrot.lane.b32.xlu1 %v503_v16, %s10623_s7  ;;  %s15993_s7 = sld [smem:[#allocation11_spill]] }
 0x6d5   :  { %505 = vrot.lane.b32.xlu0 %v503_v16, %s10621_s8  ;;  %517 = vrot.lane.b32.xlu1 %v503_v16, %s10625_s10 }
 0x6d9   :  { %509 = vrot.lane.b32.xlu1 %v503_v16, %s10627_s28  ;;  %v637_v16 = vld [vmem:[%s15991_s29 + $0x28] sm:$0xff] }
 0x73b   :  { %v530_v17 = vpop.permute.xlu0 %529  ;;  %v538_v18 = vpop.permute.xlu1 %537 }
 0x73c   :  { %v540_v19 = vmul.f32 %v10830_v31, %v538_v18  ;;  %v532_v23 = vmul.f32 %v530_v17, %v10837_v36  ;;  %v638_v17 = vld [vmem:[%s15991_s29 + $0x30] sm:$0xff]  ;;  %v639_v18 = vld [vmem:[%s15991_s29 + $0x38] sm:$0xff] }
 0x73e   :  { %10176 = vmatpush3.msra.mxu1 %v540_v19  ;;  %v640_v19 = vld [vmem:[%s15991_s29 + $0x40] sm:$0xff] }
 0x73f   :  { %v522_v20 = vpop.permute.xlu0 %521  ;;  %v534_v21 = vpop.permute.xlu1 %533  ;;  %10177 = vmatprep.subr.mxu1 %v10616_v0 }
 0x740   :  { %v536_v22 = vmul.f32 %v534_v21, %v10833_v32  ;;  %v524_v31 = vmul.f32 %v522_v20, %v10855_v45  ;;  %v641_v20 = vld [vmem:[%s15991_s29 + $0x48] sm:$0xff]  ;;  %v642_v21 = vld [vmem:[%s15991_s29 + $0x50] sm:$0xff] }
 0x742   :  { %10178 = vmatpush3.msra.mxu1 %v536_v22  ;;  %v643_v22 = vld [vmem:[%s15991_s29 + $0x58] sm:$0xff] }
 0x743   :  { %10179 = vmatprep.subr.mxu1 %v10616_v0  ;;  %v526_v24 = vpop.permute.xlu1 %525  ;;  %v514_v29 = vpop.permute.xlu0 %513 }
 0x744   :  { %v528_v25 = vmul.f32 %v526_v24, %v10846_v41  ;;  %10180 = vmatpush3.msra.mxu1 %v532_v23  ;;  %v516_v36 = vmul.f32 %v514_v29, %v10871_v53  ;;  %v644_v23 = vld [vmem:[%s15991_s29 + $0x60] sm:$0xff]  ;;  %v645_v24 = vld [vmem:[%s15991_s29 + $0x68] sm:$0xff]  ;;  %v647_v29 = vld [vmem:[%s15991_s29 + $0x78] sm:$0xff] }
 0x745   :  { %10181 = vmatprep.subr.mxu1 %v10616_v0 }
 0x746   :  { %10182 = vmatpush3.msra.mxu1 %v528_v25  ;;  %v646_v25 = vld [vmem:[%s15991_s29 + $0x70] sm:$0xff] }
 0x747   :  { %10183 = vmatprep.subr.mxu1 %v10616_v0  ;;  %v518_v33 = vpop.permute.xlu1 %517  ;;  %v506_v34 = vpop.permute.xlu0 %505 }
 0x748   :  { %v520_v32 = vmul.f32 %v518_v33, %v10863_v49  ;;  %10184 = vmatpush3.msra.mxu1 %v524_v31  ;;  %v508_v45 = vmul.f32 %v506_v34, %v10885_v59  ;;  %v497_v49 = vld [vmem:[%s15990_s30] sm:$0xff]  ;;  %v649_v33 = vld [vmem:[%s15991_s29 + $0x88] sm:$0xff] }
 0x749   :  { %10185 = vmatprep.subr.mxu1 %v10616_v0  ;;  %v632_v59 = vld [vmem:[%s15991_s29] sm:$0xff] }
 0x74a   :  { %10186 = vmatpush3.msra.mxu1 %v520_v32  ;;  %10198 = vmatprep.mubr.msk.f32.mxu0 %vm193_vm5, %v632_v59  ;;  %v648_v31 = vld [vmem:[%s15991_s29 + $0x80] sm:$0xff]  ;;  %v650_v32 = vld [vmem:[%s15991_s29 + $0x90] sm:$0xff] }
 0x74b   :  { %10187 = vmatprep.subr.mxu1 %v10616_v0  ;;  %v510_v41 = vpop.permute.xlu1 %509  ;;  %v652_v34 = vld [vmem:[%s15991_s29 + $0xa0] sm:$0xff]  ;;  %v662_v59 = vld [vmem:[%s15991_s29 + $0xf0] sm:$0xff] }
 0x74c   :  { %v512_v35 = vmul.f32 %v510_v41, %v10882_v58  ;;  %10188 = vmatpush3.msra.mxu1 %v516_v36  ;;  %v651_v36 = vld [vmem:[%s15991_s29 + $0x98] sm:$0xff]  ;;  %v653_v41 = vld [vmem:[%s15991_s29 + $0xa8] sm:$0xff] }
 0x74d   :  { %10189 = vmatprep.subr.mxu1 %v10616_v0 }
 0x74e   :  { %10190 = vmatpush3.msra.mxu1 %v512_v35  ;;  %v654_v35 = vld [vmem:[%s15991_s29 + $0xb0] sm:$0xff] }
 0x74f   :  { %10191 = vmatprep.subr.mxu1 %v10616_v0 }
 0x750   :  { %10192 = vmatpush3.msra.mxu1 %v508_v45  ;;  %v655_v45 = vld [vmem:[%s15991_s29 + $0xb8] sm:$0xff] }
 0x751   :  { %10194 = vmatmul.mubr.msk.f32.vlgmr.msra.gmra.mxu1 %vm270_vm7, %v497_v49  ;;  %10279 = vmatprep.subr.msk.mxu1 %vm1467_vm10, %v1304_v57  ;;  %v656_v49 = vld [vmem:[%s15991_s29 + $0xc0] sm:$0xff] }
 0x752   :  { %10280 = vmatpush3.msk.msra.mxu1 %vm1467_vm10, %v1304_v57  ;;  %v668_v57 = vld [vmem:[%s15991_s29 + $0x120] sm:$0xff] }
 0x753   :  { %10281 = vmatprep.subr.mxu1 %v1303_v60 }
 0x754   :  { %10282 = vmatpush3.msra.mxu1 %v1303_v60  ;;  %v1291_v60 = vld [vmem:[%s15992_s0] sm:$0xff] }
 0x755   :  { %10283 = vmatprep.subr.mxu1 %v1302_v61 }
 0x756   :  { %10284 = vmatpush3.msra.mxu1 %v1302_v61  ;;  %v669_v61 = vld [vmem:[%s15991_s29 + $0x128] sm:$0xff] }
 0x757   :  { %10285 = vmatprep.subr.mxu1 %v1301_v62 }
 0x758   :  { %10286 = vmatpush3.msra.mxu1 %v1301_v62  ;;  %v670_v62 = vld [vmem:[%s15991_s29 + $0x130] sm:$0xff] }
 0x759   :  { %10287 = vmatprep.subr.mxu1 %v1300_v63 }
 0x75a   :  { %10288 = vmatpush3.msra.mxu1 %v1300_v63  ;;  %v671_v63 = vld [vmem:[%s15991_s29 + $0x138] sm:$0xff] }
 0x75b   :  { %10289 = vmatprep.subr.mxu1 %v1299_v1 }
 0x75c   :  { %10290 = vmatpush3.msra.mxu1 %v1299_v1  ;;  %v672_v1 = vld [vmem:[%s15991_s29 + $0x140] sm:$0xff] }
 0x75d   :  { %10291 = vmatprep.subr.mxu1 %v1298_v2 }
 0x75e   :  { %10292 = vmatpush3.msra.mxu1 %v1298_v2  ;;  %v673_v2 = vld [vmem:[%s15991_s29 + $0x148] sm:$0xff] }
 0x75f   :  { %10293 = vmatprep.subr.mxu1 %v1297_v3 }
 0x760   :  { %10294 = vmatpush3.msra.mxu1 %v1297_v3  ;;  %v674_v3 = vld [vmem:[%s15991_s29 + $0x150] sm:$0xff] }
 0x761   :  { %10295 = vmatprep.subr.mxu1 %v1296_v5 }
 0x762   :  { %10296 = vmatpush3.msra.mxu1 %v1296_v5  ;;  %v676_v5 = vld [vmem:[%s15991_s29 + $0x160] sm:$0xff] }
 0x763   :  { %10297 = vmatprep.subr.mxu1 %v1295_v8 }
 0x764   :  { %10298 = vmatpush3.msra.mxu1 %v1295_v8  ;;  %v679_v8 = vld [vmem:[%s15991_s29 + $0x178] sm:$0xff] }
 0x765   :  { %10299 = vmatprep.subr.mxu1 %v1294_v10 }
 0x766   :  { %10300 = vmatpush3.msra.mxu1 %v1294_v10  ;;  %v681_v10 = vld [vmem:[%s15991_s29 + $0x188] sm:$0xff] }
 0x811   :  { %v610_v53 = vpop.f32.mrf.mxu1 }
 0x812   :  { %v614_v38 = vsel %vm166_vm3, %v610_v53, 0.0  ;;  %v618_v39 = vmul.f32 %v610_v53, %v610_v53 }
 0x813   :  { %615 = vadd.xlane.f32.xlu1 %v614_v38  ;;  %v10195_v58 = vpop.f32.mrf.mxu1  ;;  %v658_v38 = vld [vmem:[%s15991_s29 + $0xd0] sm:$0xff] }
 0x814   :  { %v619_v40 = vsel %vm166_vm3, %v618_v39, 0.0  ;;  %v659_v39 = vld [vmem:[%s15991_s29 + $0xd8] sm:$0xff]  ;;  %v660_v58 = vld [vmem:[%s15991_s29 + $0xe0] sm:$0xff] }
 0x815   :  { %620 = vadd.xlane.f32.xlu0 %v619_v40  ;;  %v661_v40 = vld [vmem:[%s15991_s29 + $0xe8] sm:$0xff] }
 0x89c   :  { %v616_v43 = vpop.xlane.xlu1 %615 }
 0x89d   :  { %v617_v44 = vmul.f32 0.009259259, %v616_v43  ;;  %v663_v43 = vld [vmem:[%s15991_s29 + $0xf8] sm:$0xff] }
 0x89e   :  { %v621_v47 = vpop.xlane.xlu0 %620 }
 0x89f   :  { %v623_v48 = vmul.f32 %v617_v44, %v617_v44  ;;  %v622_v51 = vmul.f32 0.009259259, %v621_v47  ;;  %v625_v4 = vsub.f32 %v610_v53, %v617_v44  ;;  %v657_v53 = vld [vmem:[%s15991_s29 + $0xc8] sm:$0xff]  ;;  %v664_v44 = vld [vmem:[%s15991_s29 + $0x100] sm:$0xff] }
 0x8a0   :  { %v665_v47 = vld [vmem:[%s15991_s29 + $0x108] sm:$0xff] }
 0x8a1   :  { %v624_v52 = vsub.f32 %v622_v51, %v623_v48  ;;  %v666_v48 = vld [vmem:[%s15991_s29 + $0x110] sm:$0xff] }
 0x8a2   :  { %v1293_v51 = vld [vmem:[%s15992_s0 + $0x10] sm:$0xff] }
 0x8a3   :  { %v626_v56 = vadd.f32 1e-05, %v624_v52  ;;  %10301 = vmatprep.subr.mxu1 %v1293_v51  ;;  %v667_v52 = vld [vmem:[%s15991_s29 + $0x118] sm:$0xff] }
 0x8a4   :  { %10302 = vmatpush3.msra.mxu1 %v1293_v51  ;;  %v1193_v51 = vld [vmem:[%s15993_s7 + $0x50] sm:$0xff] }
 0x8a5   :  { %10586 = vrsqrt.f32 %v626_v56  ;;  %v1292_v56 = vld [vmem:[%s15992_s0 + $0x8] sm:$0xff] }
 0x8a6   :  { %10303 = vmatprep.subr.mxu1 %v1292_v56 }
 0x8a7   :  { %10304 = vmatpush3.msra.mxu1 %v1292_v56 }
 0x8a8   :  { %10305 = vmatprep.subr.mxu1 %v1291_v60 }
 0x8a9   :  { %10306 = vmatpush3.msra.mxu1 %v1291_v60 }
 0x8aa   :  { %1944 = vmatprep.subr.mxu1 %v10616_v0 }
 0x8b2   :  { %v10587_v6 = vpop.eup %10586 }
 0x8b3   :  { %v628_v7 = vmul.f32 %v10587_v6, %v625_v4  ;;  %v675_v4 = vld [vmem:[%s15991_s29 + $0x158] sm:$0xff]  ;;  %v677_v6 = vld [vmem:[%s15991_s29 + $0x168] sm:$0xff] }
 0x8b5   :  { %vm629_vm11 = vcmp.ge.f32.partialorder %v628_v7, 0.0  ;;  %v630_v9 = vmul.f32 0.01, %v628_v7 }
 0x8b7   :  { %v631_v11 = vsel %vm629_vm11, %v628_v7, %v630_v9  ;;  %v678_v7 = vld [vmem:[%s15991_s29 + $0x170] sm:$0xff]  ;;  %v680_v9 = vld [vmem:[%s15991_s29 + $0x180] sm:$0xff]  ;;  %vm7487_vm11 = vcmask 941056  }
 0x8b8   :  { %10196 = vmatprep.subr.mxu0 %v631_v11 }
 0x8b9   :  { %10197 = vmatpush3.msra.mxu0 %v631_v11  ;;  %v682_v11 = vld [vmem:[%s15991_s29 + $0x190] sm:$0xff] }
 0x8ba   :  { %10199 = vmatmul.mubr.msk.f32.vlgmr.msra.gmra.mxu0 %vm193_vm5, %v633_v12  ;;  %v683_v12 = vld [vmem:[%s15991_s29 + $0x198] sm:$0xff] }
 0x8bb   :  { %10201 = vmatprep.mubr.msk.f32.mxu0 %vm193_vm5, %v634_v13  ;;  %v684_v13 = vld [vmem:[%s15991_s29 + $0x1a0] sm:$0xff] }
 0x8be   :  { %10202 = vmatmul.mubr.msk.f32.gmra.mxu0 %vm193_vm5, %v635_v14  ;;  %v685_v14 = vld [vmem:[%s15991_s29 + $0x1a8] sm:$0xff]  ;;  %s15996_s29 = sld [smem:[#allocation14_spill]] }
 0x8bf   :  { %10204 = vmatprep.mubr.msk.f32.mxu0 %vm193_vm5, %v636_v15 }
 0x8c2   :  { %10205 = vmatmul.mubr.msk.f32.gmra.mxu0 %vm193_vm5, %v637_v16  ;;  %v1183_v16 = vld [vmem:[%s15993_s7] sm:$0xff] }
 0x8c3   :  { %10207 = vmatprep.mubr.msk.f32.mxu0 %vm193_vm5, %v638_v17  ;;  %v1184_v17 = vld [vmem:[%s15993_s7 + $0x8] sm:$0xff] }
 0x8c6   :  { %10208 = vmatmul.mubr.msk.f32.gmra.mxu0 %vm193_vm5, %v639_v18 }
 0x8c7   :  { %10210 = vmatprep.mubr.msk.f32.mxu0 %vm193_vm5, %v640_v19 }
 0x8ca   :  { %10211 = vmatmul.mubr.msk.f32.gmra.mxu0 %vm193_vm5, %v641_v20 }
 0x8cb   :  { %10213 = vmatprep.mubr.msk.f32.mxu0 %vm193_vm5, %v642_v21 }
 0x8ce   :  { %10214 = vmatmul.mubr.msk.f32.gmra.mxu0 %vm193_vm5, %v643_v22  ;;  %v1185_v22 = vld [vmem:[%s15993_s7 + $0x10] sm:$0xff] }
 0x8cf   :  { %10216 = vmatprep.mubr.msk.f32.mxu0 %vm193_vm5, %v644_v23  ;;  %v1186_v23 = vld [vmem:[%s15993_s7 + $0x18] sm:$0xff] }
 0x8d2   :  { %10217 = vmatmul.mubr.msk.f32.gmra.mxu0 %vm193_vm5, %v645_v24 }
 0x8d3   :  { %10219 = vmatprep.mubr.msk.f32.mxu0 %vm193_vm5, %v646_v25 }
 0x8d6   :  { %10220 = vmatmul.mubr.msk.f32.gmra.mxu0 %vm193_vm5, %v647_v29 }
 0x8d7   :  { %10222 = vmatprep.mubr.msk.f32.mxu0 %vm193_vm5, %v648_v31 }
 0x8da   :  { %10223 = vmatmul.mubr.msk.f32.gmra.mxu0 %vm193_vm5, %v649_v33  ;;  %v1187_v33 = vld [vmem:[%s15993_s7 + $0x20] sm:$0xff] }
 0x8db   :  { %10225 = vmatprep.mubr.msk.f32.mxu0 %vm193_vm5, %v650_v32  ;;  %v1188_v32 = vld [vmem:[%s15993_s7 + $0x28] sm:$0xff] }
 0x8de   :  { %10226 = vmatmul.mubr.msk.f32.gmra.mxu0 %vm193_vm5, %v651_v36 }
 0x8df   :  { %10228 = vmatprep.mubr.msk.f32.mxu0 %vm193_vm5, %v652_v34 }
 0x8e2   :  { %10229 = vmatmul.mubr.msk.f32.gmra.mxu0 %vm193_vm5, %v653_v41 }
 0x8e3   :  { %10231 = vmatprep.mubr.msk.f32.mxu0 %vm193_vm5, %v654_v35 }
 0x8e6   :  { %10232 = vmatmul.mubr.msk.f32.gmra.mxu0 %vm193_vm5, %v655_v45  ;;  %v1189_v45 = vld [vmem:[%s15993_s7 + $0x30] sm:$0xff] }
 0x8e7   :  { %10234 = vmatprep.mubr.msk.f32.mxu0 %vm193_vm5, %v656_v49  ;;  %v1190_v49 = vld [vmem:[%s15993_s7 + $0x38] sm:$0xff] }
 0x8ea   :  { %10235 = vmatmul.mubr.msk.f32.gmra.mxu0 %vm193_vm5, %v657_v53 }
 0x8eb   :  { %10237 = vmatprep.mubr.msk.f32.mxu0 %vm193_vm5, %v658_v38 }
 0x8ee   :  { %10238 = vmatmul.mubr.msk.f32.gmra.mxu0 %vm193_vm5, %v659_v39 }
 0x8ef   :  { %10240 = vmatprep.mubr.msk.f32.mxu0 %vm193_vm5, %v660_v58 }
 0x8f2   :  { %10241 = vmatmul.mubr.msk.f32.gmra.mxu0 %vm193_vm5, %v661_v40  ;;  %v1191_v40 = vld [vmem:[%s15993_s7 + $0x40] sm:$0xff] }
 0x8f3   :  { %10243 = vmatprep.mubr.msk.f32.mxu0 %vm193_vm5, %v662_v59  ;;  %v1192_v59 = vld [vmem:[%s15993_s7 + $0x48] sm:$0xff] }
 0x8f6   :  { %10244 = vmatmul.mubr.msk.f32.gmra.mxu0 %vm193_vm5, %v663_v43 }
 0x8f7   :  { %10246 = vmatprep.mubr.msk.f32.mxu0 %vm193_vm5, %v664_v44 }
 0x8fa   :  { %10247 = vmatmul.mubr.msk.f32.gmra.mxu0 %vm193_vm5, %v665_v47 }
 0x8fb   :  { %10249 = vmatprep.mubr.msk.f32.mxu0 %vm193_vm5, %v666_v48 }
 0x8fe   :  { %10250 = vmatmul.mubr.msk.f32.gmra.mxu0 %vm193_vm5, %v667_v52  ;;  %v1194_v52 = vld [vmem:[%s15993_s7 + $0x58] sm:$0xff] }
 0x8ff   :  { %10252 = vmatprep.mubr.msk.f32.mxu0 %vm193_vm5, %v668_v57 }
 0x902   :  { %10253 = vmatmul.mubr.msk.f32.gmra.mxu0 %vm193_vm5, %v669_v61 }
 0x903   :  { %10255 = vmatprep.mubr.msk.f32.mxu0 %vm193_vm5, %v670_v62  ;;  %v1195_v62 = vld [vmem:[%s15993_s7 + $0x60] sm:$0xff] }
 0x906   :  { %10256 = vmatmul.mubr.msk.f32.gmra.mxu0 %vm193_vm5, %v671_v63  ;;  %v1196_v63 = vld [vmem:[%s15993_s7 + $0x68] sm:$0xff] }
 0x907   :  { %10258 = vmatprep.mubr.msk.f32.mxu0 %vm193_vm5, %v672_v1 }
 0x90a   :  { %10259 = vmatmul.mubr.msk.f32.gmra.mxu0 %vm193_vm5, %v673_v2 }
 0x90b   :  { %10261 = vmatprep.mubr.msk.f32.mxu0 %vm193_vm5, %v674_v3 }
 0x90e   :  { %10262 = vmatmul.mubr.msk.f32.gmra.mxu0 %vm193_vm5, %v675_v4 }
 0x90f   :  { %10264 = vmatprep.mubr.msk.f32.mxu0 %vm193_vm5, %v676_v5  ;;  %v1197_v5 = vld [vmem:[%s15993_s7 + $0x70] sm:$0xff] }
 0x912   :  { %10265 = vmatmul.mubr.msk.f32.gmra.mxu0 %vm193_vm5, %v677_v6  ;;  %v1198_v6 = vld [vmem:[%s15993_s7 + $0x78] sm:$0xff] }
 0x913   :  { %10267 = vmatprep.mubr.msk.f32.mxu0 %vm193_vm5, %v678_v7 }
 0x916   :  { %10268 = vmatmul.mubr.msk.f32.gmra.mxu0 %vm193_vm5, %v679_v8 }
 0x917   :  { %10270 = vmatprep.mubr.msk.f32.mxu0 %vm193_vm5, %v680_v9 }
 0x91a   :  { %10271 = vmatmul.mubr.msk.f32.gmra.mxu0 %vm193_vm5, %v681_v10 }
 0x91b   :  { %10273 = vmatprep.mubr.msk.f32.mxu0 %vm193_vm5, %v682_v11  ;;  %v1199_v11 = vld [vmem:[%s15993_s7 + $0x80] sm:$0xff] }
 0x91e   :  { %10274 = vmatmul.mubr.msk.f32.gmra.mxu0 %vm193_vm5, %v683_v12  ;;  %v1200_v12 = vld [vmem:[%s15993_s7 + $0x88] sm:$0xff] }
 0x91f   :  { %10276 = vmatprep.mubr.msk.f32.mxu0 %vm193_vm5, %v684_v13 }
 0x922   :  { %10277 = vmatmul.mubr.msk.f32.gmra.mxu0 %vm193_vm5, %v685_v14  ;;  %vm7272_vm5 = vcmask 113664  }
 0x97a   :  { %v10200_v15 = vpop.f32.mrf.mxu0 }
 0x97b   :  { %v1238_v20 = vmul.f32 %v10200_v15, %v1184_v17  ;;  %v1201_v17 = vld [vmem:[%s15993_s7 + $0x90] sm:$0xff] }
 0x97c   :  { %v914_v18 = vpop.f32.mrf.mxu0 }
 0x97d   :  { %v1237_v19 = vmul.f32 %v1183_v16, %v914_v18  ;;  %v1202_v18 = vld [vmem:[%s15993_s7 + $0x98] sm:$0xff] }
 0x97e   :  { %v10203_v21 = vpop.f32.mrf.mxu0 }
 0x97f   :  { %10307 = vmatprep.mubr.msk.f32.mxu1 %vm166_vm3, %v1237_v19  ;;  %v1240_v29 = vmul.f32 %v10203_v21, %v1186_v23  ;;  %v1203_v23 = vld [vmem:[%s15993_s7 + $0xa0] sm:$0xff] }
 0x980   :  { %v924_v24 = vpop.f32.mrf.mxu0  ;;  %10308 = vmatmul.mubr.msk.f32.vlgmr.msra.gmra.mxu1 %vm166_vm3, %v1238_v20 }
 0x981   :  { %v1239_v25 = vmul.f32 %v1185_v22, %v924_v24  ;;  %v1204_v24 = vld [vmem:[%s15993_s7 + $0xa8] sm:$0xff] }
 0x982   :  { %v10206_v31 = vpop.f32.mrf.mxu0 }
 0x983   :  { %10310 = vmatprep.mubr.msk.f32.mxu1 %vm166_vm3, %v1239_v25  ;;  %v1242_v41 = vmul.f32 %v10206_v31, %v1188_v32  ;;  %v1205_v32 = vld [vmem:[%s15993_s7 + $0xb0] sm:$0xff] }
 0x984   :  { %v934_v36 = vpop.f32.mrf.mxu0  ;;  %10311 = vmatmul.mubr.msk.f32.gmra.mxu1 %vm166_vm3, %v1240_v29 }
 0x985   :  { %v1241_v34 = vmul.f32 %v1187_v33, %v934_v36  ;;  %v1206_v36 = vld [vmem:[%s15993_s7 + $0xb8] sm:$0xff] }
 0x986   :  { %v10209_v35 = vpop.f32.mrf.mxu0 }
 0x987   :  { %10313 = vmatprep.mubr.msk.f32.mxu1 %vm166_vm3, %v1241_v34  ;;  %v1244_v39 = vmul.f32 %v10209_v35, %v1190_v49  ;;  %v1207_v49 = vld [vmem:[%s15993_s7 + $0xc0] sm:$0xff] }
 0x988   :  { %v944_v53 = vpop.f32.mrf.mxu0  ;;  %10314 = vmatmul.mubr.msk.f32.gmra.mxu1 %vm166_vm3, %v1242_v41 }
 0x989   :  { %v1243_v38 = vmul.f32 %v1189_v45, %v944_v53  ;;  %v1208_v53 = vld [vmem:[%s15993_s7 + $0xc8] sm:$0xff] }
 0x98a   :  { %v10212_v58 = vpop.f32.mrf.mxu0 }
 0x98b   :  { %10316 = vmatprep.mubr.msk.f32.mxu1 %vm166_vm3, %v1243_v38  ;;  %v1246_v47 = vmul.f32 %v10212_v58, %v1192_v59  ;;  %v1209_v59 = vld [vmem:[%s15993_s7 + $0xd0] sm:$0xff] }
 0x98c   :  { %v954_v43 = vpop.f32.mrf.mxu0  ;;  %10317 = vmatmul.mubr.msk.f32.gmra.mxu1 %vm166_vm3, %v1244_v39 }
 0x98d   :  { %v1245_v44 = vmul.f32 %v1191_v40, %v954_v43  ;;  %v1210_v43 = vld [vmem:[%s15993_s7 + $0xd8] sm:$0xff] }
 0x98e   :  { %v10215_v48 = vpop.f32.mrf.mxu0 }
 0x98f   :  { %10319 = vmatprep.mubr.msk.f32.mxu1 %vm166_vm3, %v1245_v44  ;;  %v1248_v60 = vmul.f32 %v10215_v48, %v1194_v52  ;;  %v1211_v52 = vld [vmem:[%s15993_s7 + $0xe0] sm:$0xff] }
 0x990   :  { %v964_v56 = vpop.f32.mrf.mxu0  ;;  %10320 = vmatmul.mubr.msk.f32.gmra.mxu1 %vm166_vm3, %v1246_v47 }
 0x991   :  { %v1247_v57 = vmul.f32 %v1193_v51, %v964_v56  ;;  %v1212_v56 = vld [vmem:[%s15993_s7 + $0xe8] sm:$0xff] }
 0x992   :  { %v10218_v61 = vpop.f32.mrf.mxu0 }
 0x993   :  { %10322 = vmatprep.mubr.msk.f32.mxu1 %vm166_vm3, %v1247_v57  ;;  %v1250_v3 = vmul.f32 %v10218_v61, %v1196_v63  ;;  %v1213_v63 = vld [vmem:[%s15993_s7 + $0xf0] sm:$0xff] }
 0x994   :  { %v974_v1 = vpop.f32.mrf.mxu0  ;;  %10323 = vmatmul.mubr.msk.f32.gmra.mxu1 %vm166_vm3, %v1248_v60 }
 0x995   :  { %v1249_v2 = vmul.f32 %v1195_v62, %v974_v1  ;;  %v1214_v1 = vld [vmem:[%s15993_s7 + $0xf8] sm:$0xff] }
 0x996   :  { %v10221_v4 = vpop.f32.mrf.mxu0 }
 0x997   :  { %10325 = vmatprep.mubr.msk.f32.mxu1 %vm166_vm3, %v1249_v2  ;;  %v1252_v9 = vmul.f32 %v10221_v4, %v1198_v6  ;;  %v1215_v6 = vld [vmem:[%s15993_s7 + $0x100] sm:$0xff] }
 0x998   :  { %v984_v7 = vpop.f32.mrf.mxu0  ;;  %10326 = vmatmul.mubr.msk.f32.gmra.mxu1 %vm166_vm3, %v1250_v3 }
 0x999   :  { %v1251_v8 = vmul.f32 %v1197_v5, %v984_v7  ;;  %v1216_v7 = vld [vmem:[%s15993_s7 + $0x108] sm:$0xff] }
 0x99a   :  { %v10224_v10 = vpop.f32.mrf.mxu0 }
 0x99b   :  { %10328 = vmatprep.mubr.msk.f32.mxu1 %vm166_vm3, %v1251_v8  ;;  %v1254_v15 = vmul.f32 %v10224_v10, %v1200_v12  ;;  %v1217_v12 = vld [vmem:[%s15993_s7 + $0x110] sm:$0xff] }
 0x99c   :  { %v994_v13 = vpop.f32.mrf.mxu0  ;;  %10329 = vmatmul.mubr.msk.f32.gmra.mxu1 %vm166_vm3, %v1252_v9 }
 0x99d   :  { %v1253_v14 = vmul.f32 %v1199_v11, %v994_v13  ;;  %v1218_v13 = vld [vmem:[%s15993_s7 + $0x118] sm:$0xff] }
 0x99e   :  { %v10227_v16 = vpop.f32.mrf.mxu0 }
 0x99f   :  { %10331 = vmatprep.mubr.msk.f32.mxu1 %vm166_vm3, %v1253_v14  ;;  %v1256_v21 = vmul.f32 %v10227_v16, %v1202_v18  ;;  %v1219_v18 = vld [vmem:[%s15993_s7 + $0x120] sm:$0xff] }
 0x9a0   :  { %v1004_v19 = vpop.f32.mrf.mxu0  ;;  %10332 = vmatmul.mubr.msk.f32.gmra.mxu1 %vm166_vm3, %v1254_v15 }
 0x9a1   :  { %v1255_v20 = vmul.f32 %v1201_v17, %v1004_v19  ;;  %v1220_v19 = vld [vmem:[%s15993_s7 + $0x128] sm:$0xff] }
 0x9a2   :  { %v10230_v22 = vpop.f32.mrf.mxu0 }
 0x9a3   :  { %10334 = vmatprep.mubr.msk.f32.mxu1 %vm166_vm3, %v1255_v20  ;;  %v1258_v31 = vmul.f32 %v10230_v22, %v1204_v24  ;;  %v1221_v24 = vld [vmem:[%s15993_s7 + $0x130] sm:$0xff] }
 0x9a4   :  { %v1014_v25 = vpop.f32.mrf.mxu0  ;;  %10335 = vmatmul.mubr.msk.f32.gmra.mxu1 %vm166_vm3, %v1256_v21 }
 0x9a5   :  { %v1257_v29 = vmul.f32 %v1203_v23, %v1014_v25  ;;  %v1222_v25 = vld [vmem:[%s15993_s7 + $0x138] sm:$0xff] }
 0x9a6   :  { %v10233_v33 = vpop.f32.mrf.mxu0 }
 0x9a7   :  { %10337 = vmatprep.mubr.msk.f32.mxu1 %vm166_vm3, %v1257_v29  ;;  %v1260_v35 = vmul.f32 %v10233_v33, %v1206_v36  ;;  %v1223_v36 = vld [vmem:[%s15993_s7 + $0x140] sm:$0xff] }
 0x9a8   :  { %v1024_v34 = vpop.f32.mrf.mxu0  ;;  %10338 = vmatmul.mubr.msk.f32.gmra.mxu1 %vm166_vm3, %v1258_v31 }
 0x9a9   :  { %v1259_v41 = vmul.f32 %v1205_v32, %v1024_v34  ;;  %v1224_v34 = vld [vmem:[%s15993_s7 + $0x148] sm:$0xff] }
 0x9aa   :  { %v10236_v45 = vpop.f32.mrf.mxu0 }
 0x9ab   :  { %10340 = vmatprep.mubr.msk.f32.mxu1 %vm166_vm3, %v1259_v41  ;;  %v1262_v58 = vmul.f32 %v10236_v45, %v1208_v53  ;;  %v1225_v53 = vld [vmem:[%s15993_s7 + $0x150] sm:$0xff] }
 0x9ac   :  { %v1034_v38 = vpop.f32.mrf.mxu0  ;;  %10341 = vmatmul.mubr.msk.f32.gmra.mxu1 %vm166_vm3, %v1260_v35 }
 0x9ad   :  { %v1261_v39 = vmul.f32 %v1207_v49, %v1034_v38  ;;  %v1226_v38 = vld [vmem:[%s15993_s7 + $0x158] sm:$0xff] }
 0x9ae   :  { %v10239_v40 = vpop.f32.mrf.mxu0 }
 0x9af   :  { %10343 = vmatprep.mubr.msk.f32.mxu1 %vm166_vm3, %v1261_v39  ;;  %v1264_v48 = vmul.f32 %v10239_v40, %v1210_v43  ;;  %v1227_v43 = vld [vmem:[%s15993_s7 + $0x160] sm:$0xff] }
 0x9b0   :  { %v1044_v44 = vpop.f32.mrf.mxu0  ;;  %10344 = vmatmul.mubr.msk.f32.gmra.mxu1 %vm166_vm3, %v1262_v58 }
 0x9b1   :  { %v1263_v47 = vmul.f32 %v1209_v59, %v1044_v44  ;;  %v1228_v44 = vld [vmem:[%s15993_s7 + $0x168] sm:$0xff] }
 0x9b2   :  { %v10242_v51 = vpop.f32.mrf.mxu0 }
 0x9b3   :  { %10346 = vmatprep.mubr.msk.f32.mxu1 %vm166_vm3, %v1263_v47  ;;  %v1266_v61 = vmul.f32 %v10242_v51, %v1212_v56  ;;  %v1229_v56 = vld [vmem:[%s15993_s7 + $0x170] sm:$0xff] }
 0x9b4   :  { %v1054_v57 = vpop.f32.mrf.mxu0  ;;  %10347 = vmatmul.mubr.msk.f32.gmra.mxu1 %vm166_vm3, %v1264_v48 }
 0x9b5   :  { %v1265_v60 = vmul.f32 %v1211_v52, %v1054_v57  ;;  %v1230_v57 = vld [vmem:[%s15993_s7 + $0x178] sm:$0xff] }
 0x9b6   :  { %v10245_v62 = vpop.f32.mrf.mxu0 }
 0x9b7   :  { %10349 = vmatprep.mubr.msk.f32.mxu1 %vm166_vm3, %v1265_v60  ;;  %v1268_v4 = vmul.f32 %v10245_v62, %v1214_v1  ;;  %v1232_v62 = vld [vmem:[%s15993_s7 + $0x188] sm:$0xff] }
 0x9b8   :  { %v1064_v2 = vpop.f32.mrf.mxu0  ;;  %10350 = vmatmul.mubr.msk.f32.gmra.mxu1 %vm166_vm3, %v1266_v61 }
 0x9b9   :  { %v1267_v3 = vmul.f32 %v1213_v63, %v1064_v2  ;;  %v1231_v2 = vld [vmem:[%s15993_s7 + $0x180] sm:$0xff] }
 0x9ba   :  { %v10248_v5 = vpop.f32.mrf.mxu0 }
 0x9bb   :  { %10352 = vmatprep.mubr.msk.f32.mxu1 %vm166_vm3, %v1267_v3  ;;  %v1270_v10 = vmul.f32 %v10248_v5, %v1216_v7 }
 0x9bc   :  { %v1074_v8 = vpop.f32.mrf.mxu0  ;;  %10353 = vmatmul.mubr.msk.f32.gmra.mxu1 %vm166_vm3, %v1268_v4 }
 0x9bd   :  { %v1269_v9 = vmul.f32 %v1215_v6, %v1074_v8  ;;  %v1234_v6 = vld [vmem:[%s15993_s7 + $0x198] sm:$0xff]  ;;  %v1233_v8 = vld [vmem:[%s15993_s7 + $0x190] sm:$0xff] }
 0x9be   :  { %v10251_v11 = vpop.f32.mrf.mxu0 }
 0x9bf   :  { %10355 = vmatprep.mubr.msk.f32.mxu1 %vm166_vm3, %v1269_v9  ;;  %v1272_v16 = vmul.f32 %v10251_v11, %v1218_v13 }
 0x9c0   :  { %v1084_v14 = vpop.f32.mrf.mxu0  ;;  %10356 = vmatmul.mubr.msk.f32.gmra.mxu1 %vm166_vm3, %v1270_v10 }
 0x9c1   :  { %v1271_v15 = vmul.f32 %v1217_v12, %v1084_v14  ;;  %v1236_v12 = vld [vmem:[%s15993_s7 + $0x1a8] sm:$0xff]  ;;  %v1235_v14 = vld [vmem:[%s15993_s7 + $0x1a0] sm:$0xff] }
 0x9c2   :  { %v10254_v17 = vpop.f32.mrf.mxu0 }
 0x9c3   :  { %10358 = vmatprep.mubr.msk.f32.mxu1 %vm166_vm3, %v1271_v15  ;;  %v1274_v22 = vmul.f32 %v10254_v17, %v1220_v19  ;;  %v1824_v19 = vld [vmem:[%s15994_s6 + $0x10] sm:$0xff] }
 0x9c4   :  { %v1094_v20 = vpop.f32.mrf.mxu0  ;;  %10359 = vmatmul.mubr.msk.f32.gmra.mxu1 %vm166_vm3, %v1272_v16 }
 0x9c5   :  { %v1273_v21 = vmul.f32 %v1219_v18, %v1094_v20  ;;  %v10628_v18 = vmov 0   ;;  %v1823_v20 = vld [vmem:[%s15994_s6 + $0x8] sm:$0xff] }
 0x9c6   :  { %v10257_v23 = vpop.f32.mrf.mxu0  ;;  %10579 = vset.pattern.permute.xlu1 %v10628_v18  ;;  %10578 = vset.pattern.permute.xlu0 %v10628_v18 }
 0x9c7   :  { %10361 = vmatprep.mubr.msk.f32.mxu1 %vm166_vm3, %v1273_v21  ;;  %v1276_v33 = vmul.f32 %v10257_v23, %v1222_v25  ;;  %1838 = vperm.xlu1 %10579, %v1824_v19   ;;  %v1822_v21 = vld [vmem:[%s15994_s6] sm:$0xff]  ;;  %v2105_v23 = vld [vmem:[%s15995_s14 + $0x8] sm:$0xff]  ;;  %v1825_v25 = vld [vmem:[%s15994_s6 + $0x18] sm:$0xff]  ;;  %s10632_s6 = smov 101  }
 0x9c8   :  { %v1104_v29 = vpop.f32.mrf.mxu0  ;;  %10362 = vmatmul.mubr.msk.f32.gmra.mxu1 %vm166_vm3, %v1274_v22  ;;  %v2104_v22 = vld [vmem:[%s15995_s14] sm:$0xff]  ;;  %1843 = vperm.xlu0 %10578, %v1825_v25   ;;  %v2135_v25 = vld [vmem:[%s15995_s14 + $0xf8] sm:$0xff] }
 0x9c9   :  { %v1275_v31 = vmul.f32 %v1221_v24, %v1104_v29  ;;  %v2106_v24 = vld [vmem:[%s15995_s14 + $0x10] sm:$0xff]  ;;  %v2107_v29 = vld [vmem:[%s15995_s14 + $0x18] sm:$0xff]  ;;  %v2132_v19 = vld [vmem:[%s15995_s14 + $0xe0] sm:$0xff] }
 0x9ca   :  { %v10260_v32 = vpop.f32.mrf.mxu0 }
 0x9cb   :  { %10364 = vmatprep.mubr.msk.f32.mxu1 %vm166_vm3, %v1275_v31  ;;  %v1278_v45 = vmul.f32 %v10260_v32, %v1224_v34  ;;  %1833 = vperm.xlu1 %10579, %v1823_v20   ;;  %v2108_v31 = vld [vmem:[%s15995_s14 + $0x20] sm:$0xff]  ;;  %v2110_v32 = vld [vmem:[%s15995_s14 + $0x30] sm:$0xff] }
 0x9cc   :  { %v1114_v41 = vpop.f32.mrf.mxu0  ;;  %10365 = vmatmul.mubr.msk.f32.gmra.mxu1 %vm166_vm3, %v1276_v33  ;;  %2180 = vperm.xlu0 %10578, %v2108_v31   ;;  %v2109_v33 = vld [vmem:[%s15995_s14 + $0x28] sm:$0xff]  ;;  %v2112_v34 = vld [vmem:[%s15995_s14 + $0x40] sm:$0xff] }
 0x9cd   :  { %v1277_v35 = vmul.f32 %v1223_v36, %v1114_v41  ;;  %v2111_v36 = vld [vmem:[%s15995_s14 + $0x38] sm:$0xff]  ;;  %v1807_v41 = vld [vmem:[%s15996_s29 + $0x8] sm:$0xff]  ;;  %v2136_v31 = vld [vmem:[%s15995_s14 + $0x100] sm:$0xff] }
 0x9ce   :  { %v10263_v49 = vpop.f32.mrf.mxu0  ;;  %1923 = vmatprep.mubr.f32.mxu0 %v1807_v41 }
 0x9cf   :  { %10367 = vmatprep.mubr.msk.f32.mxu1 %vm166_vm3, %v1277_v35  ;;  %v1280_v40 = vmul.f32 %v10263_v49, %v1226_v38  ;;  %1828 = vperm.xlu1 %10579, %v1822_v21   ;;  %v2133_v21 = vld [vmem:[%s15995_s14 + $0xe8] sm:$0xff] }
 0x9d0   :  { %v1124_v39 = vpop.f32.mrf.mxu0  ;;  %10368 = vmatmul.mubr.msk.f32.gmra.mxu1 %vm166_vm3, %v1278_v45  ;;  %2190 = vperm.xlu0 %10578, %v2110_v32   ;;  %v2113_v45 = vld [vmem:[%s15995_s14 + $0x48] sm:$0xff] }
 0x9d1   :  { %v1279_v58 = vmul.f32 %v1225_v53, %v1124_v39  ;;  %v2114_v53 = vld [vmem:[%s15995_s14 + $0x50] sm:$0xff]  ;;  %v2115_v39 = vld [vmem:[%s15995_s14 + $0x58] sm:$0xff]  ;;  %v2137_v32 = vld [vmem:[%s15995_s14 + $0x108] sm:$0xff] }
 0x9d2   :  { %v10266_v59 = vpop.f32.mrf.mxu0 }
 0x9d3   :  { %10370 = vmatprep.mubr.msk.f32.mxu1 %vm166_vm3, %v1279_v58  ;;  %v1282_v51 = vmul.f32 %v10266_v59, %v1228_v44  ;;  %2160 = vperm.xlu1 %10579, %v2104_v22   ;;  %v1809_v59 = vld [vmem:[%s15996_s29 + $0x18] sm:$0xff]  ;;  %v2117_v44 = vld [vmem:[%s15995_s14 + $0x68] sm:$0xff] }
 0x9d4   :  { %v1134_v47 = vpop.f32.mrf.mxu0  ;;  %10371 = vmatmul.mubr.msk.f32.gmra.mxu1 %vm166_vm3, %v1280_v40  ;;  %2200 = vperm.xlu0 %10578, %v2112_v34   ;;  %v2116_v40 = vld [vmem:[%s15995_s14 + $0x60] sm:$0xff]  ;;  %v2138_v34 = vld [vmem:[%s15995_s14 + $0x110] sm:$0xff] }
 0x9d5   :  { %v1281_v48 = vmul.f32 %v1227_v43, %v1134_v47  ;;  %v2118_v47 = vld [vmem:[%s15995_s14 + $0x70] sm:$0xff] }
 0x9d6   :  { %v10269_v52 = vpop.f32.mrf.mxu0 }
 0x9d7   :  { %10373 = vmatprep.mubr.msk.f32.mxu1 %vm166_vm3, %v1281_v48  ;;  %v1284_v63 = vmul.f32 %v10269_v52, %v1230_v57  ;;  %2165 = vperm.xlu1 %10579, %v2105_v23   ;;  %v2119_v52 = vld [vmem:[%s15995_s14 + $0x78] sm:$0xff]  ;;  %v2134_v23 = vld [vmem:[%s15995_s14 + $0xf0] sm:$0xff] }
 0x9d8   :  { %v1144_v60 = vpop.f32.mrf.mxu0  ;;  %10374 = vmatmul.mubr.msk.f32.gmra.mxu1 %vm166_vm3, %v1282_v51  ;;  %2210 = vperm.xlu0 %10578, %v2114_v53  }
 0x9d9   :  { %v1283_v61 = vmul.f32 %v1229_v56, %v1144_v60  ;;  %v2120_v56 = vld [vmem:[%s15995_s14 + $0x80] sm:$0xff] }
 0x9da   :  { %v10272_v1 = vpop.f32.mrf.mxu0 }
 0x9db   :  { %10376 = vmatprep.mubr.msk.f32.mxu1 %vm166_vm3, %v1283_v61  ;;  %v1286_v3 = vmul.f32 %v10272_v1, %v1232_v62  ;;  %2170 = vperm.xlu1 %10579, %v2106_v24   ;;  %v2121_v61 = vld [vmem:[%s15995_s14 + $0x88] sm:$0xff]  ;;  %v2122_v62 = vld [vmem:[%s15995_s14 + $0x90] sm:$0xff] }
 0x9dc   :  { %10377 = vmatmul.mubr.msk.f32.gmra.mxu1 %vm166_vm3, %v1284_v63  ;;  %v1154_v4 = vpop.f32.mrf.mxu0  ;;  %2220 = vperm.xlu0 %10578, %v2116_v40  }
 0x9dd   :  { %v1285_v5 = vmul.f32 %v1231_v2, %v1154_v4  ;;  %v2123_v2 = vld [vmem:[%s15995_s14 + $0x98] sm:$0xff] }
 0x9de   :  { %v10275_v7 = vpop.f32.mrf.mxu0 }
 0x9df   :  { %10379 = vmatprep.mubr.msk.f32.mxu1 %vm166_vm3, %v1285_v5  ;;  %v1288_v9 = vmul.f32 %v10275_v7, %v1234_v6  ;;  %2175 = vperm.xlu1 %10579, %v2107_v29   ;;  %v2125_v5 = vld [vmem:[%s15995_s14 + $0xa8] sm:$0xff]  ;;  %v2126_v7 = vld [vmem:[%s15995_s14 + $0xb0] sm:$0xff] }
 0x9e0   :  { %v1164_v10 = vpop.f32.mrf.mxu0  ;;  %10380 = vmatmul.mubr.msk.f32.gmra.mxu1 %vm166_vm3, %v1286_v3  ;;  %2230 = vperm.xlu0 %10578, %v2118_v47   ;;  %v2124_v3 = vld [vmem:[%s15995_s14 + $0xa0] sm:$0xff]  ;;  %v2142_v47 = vld [vmem:[%s15995_s14 + $0x130] sm:$0xff] }
 0x9e1   :  { %v1287_v11 = vmul.f32 %v1233_v8, %v1164_v10 }
 0x9e2   :  { %v10278_v13 = vpop.f32.mrf.mxu0 }
 0x9e3   :  { %10382 = vmatprep.mubr.msk.f32.mxu1 %vm166_vm3, %v1287_v11  ;;  %v1290_v15 = vmul.f32 %v10278_v13, %v1236_v12  ;;  %2185 = vperm.xlu1 %10579, %v2109_v33   ;;  %v2128_v11 = vld [vmem:[%s15995_s14 + $0xc0] sm:$0xff]  ;;  %v2129_v13 = vld [vmem:[%s15995_s14 + $0xc8] sm:$0xff] }
 0x9e4   :  { %v1174_v16 = vpop.f32.mrf.mxu0  ;;  %10383 = vmatmul.mubr.msk.f32.gmra.mxu1 %vm166_vm3, %v1288_v9  ;;  %2240 = vperm.xlu0 %10578, %v2120_v56   ;;  %v2127_v9 = vld [vmem:[%s15995_s14 + $0xb8] sm:$0xff] }
 0x9e5   :  { %v1289_v17 = vmul.f32 %v1235_v14, %v1174_v16  ;;  %v2143_v56 = vld [vmem:[%s15995_s14 + $0x138] sm:$0xff] }
 0x9e7   :  { %10385 = vmatprep.mubr.msk.f32.mxu1 %vm166_vm3, %v1289_v17  ;;  %2195 = vperm.xlu1 %10579, %v2111_v36   ;;  %v2131_v17 = vld [vmem:[%s15995_s14 + $0xd8] sm:$0xff] }
 0x9e8   :  { %10386 = vmatmul.mubr.msk.f32.gmra.mxu1 %vm166_vm3, %v1290_v15  ;;  %2250 = vperm.xlu0 %10578, %v2122_v62   ;;  %v2130_v15 = vld [vmem:[%s15995_s14 + $0xd0] sm:$0xff]  ;;  %v2144_v62 = vld [vmem:[%s15995_s14 + $0x140] sm:$0xff] }
 0x9e9   :  { %8711 = vmatprep.mubr.msk.f32.mxu1 %vm15972_vm12, %v1809_v59  ;;  %v2141_v59 = vld [vmem:[%s15995_s14 + $0x128] sm:$0xff] }
 0x9eb   :  { %2205 = vperm.xlu1 %10579, %v2113_v45   ;;  %v2139_v45 = vld [vmem:[%s15995_s14 + $0x118] sm:$0xff] }
 0x9ec   :  { %2260 = vperm.xlu0 %10578, %v2124_v3   ;;  %v2145_v3 = vld [vmem:[%s15995_s14 + $0x148] sm:$0xff] }
 0x9ef   :  { %2215 = vperm.xlu1 %10579, %v2115_v39   ;;  %v2140_v39 = vld [vmem:[%s15995_s14 + $0x120] sm:$0xff] }
 0x9f0   :  { %2270 = vperm.xlu0 %10578, %v2126_v7   ;;  %v2146_v7 = vld [vmem:[%s15995_s14 + $0x150] sm:$0xff] }
 0x9f3   :  { %2225 = vperm.xlu1 %10579, %v2117_v44  }
 0x9f4   :  { %2280 = vperm.xlu0 %10578, %v2128_v11  }
 0x9f7   :  { %2235 = vperm.xlu1 %10579, %v2119_v52  }
 0x9f8   :  { %2290 = vperm.xlu0 %10578, %v2130_v15  }
 0x9fb   :  { %2245 = vperm.xlu1 %10579, %v2121_v61  }
 0x9fc   :  { %2300 = vperm.xlu0 %10578, %v2132_v19  }
 0x9ff   :  { %2255 = vperm.xlu1 %10579, %v2123_v2  }
 0xa00   :  { %2310 = vperm.xlu0 %10578, %v2134_v23  }
 0xa03   :  { %2265 = vperm.xlu1 %10579, %v2125_v5  }
 0xa04   :  { %2320 = vperm.xlu0 %10578, %v2136_v31   ;;  %v1818_v31 = vld [vmem:[%s15996_s29 + $0x60] sm:$0xff] }
 0xa07   :  { %2275 = vperm.xlu1 %10579, %v2127_v9  }
 0xa08   :  { %2330 = vperm.xlu0 %10578, %v2138_v34  }
 0xa0b   :  { %2285 = vperm.xlu1 %10579, %v2129_v13  }
 0xa0c   :  { %2340 = vperm.xlu0 %10578, %v2140_v39   ;;  %v1813_v39 = vld [vmem:[%s15996_s29 + $0x38] sm:$0xff] }
 0xa0f   :  { %2295 = vperm.xlu1 %10579, %v2131_v17  }
 0xa10   :  { %2350 = vperm.xlu0 %10578, %v2142_v47   ;;  %v1821_v47 = vld [vmem:[%s15996_s29 + $0x78] sm:$0xff] }
 0xa13   :  { %2305 = vperm.xlu1 %10579, %v2133_v21  }
 0xa14   :  { %2360 = vperm.xlu0 %10578, %v2144_v62   ;;  %v2050_v62 = vld [vmem:[%s15941_s13] sm:$0xff] }
 0xa17   :  { %2315 = vperm.xlu1 %10579, %v2135_v25  }
 0xa18   :  { %2370 = vperm.xlu0 %10578, %v2146_v7  }
 0xa1b   :  { %2325 = vperm.xlu1 %10579, %v2137_v32  }
 0xa1f   :  { %2335 = vperm.xlu1 %10579, %v2139_v45  }
 0xa23   :  { %2345 = vperm.xlu1 %10579, %v2141_v59   ;;  %v1817_v59 = vld [vmem:[%s15996_s29 + $0x58] sm:$0xff] }
 0xa27   :  { %2355 = vperm.xlu1 %10579, %v2143_v56   ;;  %v2049_v56 = vld [vmem:[%s15940_s12 + $0x8] sm:$0x3f] }
 0xa2b   :  { %2365 = vperm.xlu1 %10579, %v2145_v3  }
 0xa40   :  { %v11489_v35 = vpop.f32.mrf.mxu1 }
 0xa42   :  { %v11494_v49 = vpop.f32.mrf.mxu1  ;;  %v1839_v7 = vpop.permute.xlu1 %1838 }
 0xa44   :  { %v11499_v38 = vpop.f32.mrf.mxu1 }
 0xa46   :  { %v11504_v58 = vpop.f32.mrf.mxu1 }
 0xa48   :  { %v11513_v43 = vpop.f32.mrf.mxu1 }
 0xa4a   :  { %v11521_v48 = vpop.f32.mrf.mxu1 }
 0xa4c   :  { %v11523_v51 = vpop.f32.mrf.mxu1 }
 0xa4e   :  { %v11531_v57 = vpop.f32.mrf.mxu1 }
 0xa50   :  { %v11533_v60 = vpop.f32.mrf.mxu1 }
 0xa52   :  { %v11541_v63 = vpop.f32.mrf.mxu1 }
 0xa54   :  { %v11543_v1 = vpop.f32.mrf.mxu1 }
 0xa56   :  { %v11551_v4 = vpop.f32.mrf.mxu1 }
 0xa58   :  { %v11556_v6 = vpop.f32.mrf.mxu1 }
 0xa5a   :  { %v11561_v8 = vpop.f32.mrf.mxu1 }
 0xa5c   :  { %v10330_v10 = vpop.f32.mrf.mxu1 }
 0xa5e   :  { %v1607_v12 = vpop.f32.mrf.mxu1 }
 0xa60   :  { %v11572_v14 = vpop.f32.mrf.mxu1 }
 0xa62   :  { %v11577_v16 = vpop.f32.mrf.mxu1 }
 0xa64   :  { %v11582_v18 = vpop.f32.mrf.mxu1 }
 0xa66   :  { %v11587_v20 = vpop.f32.mrf.mxu1 }
 0xa68   :  { %v11592_v22 = vpop.f32.mrf.mxu1 }
 0xa6a   :  { %v11597_v24 = vpop.f32.mrf.mxu1 }
 0xa6c   :  { %v11602_v29 = vpop.f32.mrf.mxu1 }
 0xa6e   :  { %v11607_v33 = vpop.f32.mrf.mxu1 }
 0xa70   :  { %v10345_v36 = vpop.f32.mrf.mxu1 }
 0xa72   :  { %v1657_v41 = vpop.f32.mrf.mxu1 }
 0xa74   :  { %v10348_v53 = vpop.f32.mrf.mxu1 }
 0xa76   :  { %v1667_v40 = vpop.f32.mrf.mxu1 }
 0xa78   :  { %v10351_v44 = vpop.f32.mrf.mxu1 }
 0xa7a   :  { %v1677_v52 = vpop.f32.mrf.mxu1 }
 0xa7c   :  { %v10354_v61 = vpop.f32.mrf.mxu1 }
 0xa7d   :  { %9930 = vmatprep.subr.mxu0 %v10354_v61  ;;  %v2048_v61 = vld [vmem:[%s15940_s12] sm:$0xff]  ;;  %s15999_s12 = smov 114  }
 0xa7e   :  { %v1687_v2 = vpop.f32.mrf.mxu1  ;;  %9931 = vmatpush3.msra.mxu0 %v10330_v10  ;;  %v2147_v10 = vld [vmem:[%s15995_s14 + $0x158] sm:$0xff] }
 0xa7f   :  { %9932 = vmatprep.subr.mxu0 %v1687_v2  ;;  %2375 = vperm.xlu1 %10579, %v2147_v10   ;;  %v1834_v10 = vpop.permute.xlu1 %1833 }
 0xa80   :  { %v11636_v5 = vpop.f32.mrf.mxu1  ;;  %9933 = vmatpush3.msra.mxu0 %v1607_v12  ;;  %v2148_v12 = vld [vmem:[%s15995_s14 + $0x160] sm:$0xff] }
 0xa81   :  { %9934 = vmatprep.subr.mxu0 %v10351_v44  ;;  %2380 = vperm.xlu0 %10578, %v2148_v12   ;;  %v1816_v44 = vld [vmem:[%s15996_s29 + $0x50] sm:$0xff] }
 0xa82   :  { %v11641_v9 = vpop.f32.mrf.mxu1  ;;  %9935 = vmatpush3.msra.mxu0 %v11556_v6  ;;  %v2149_v6 = vld [vmem:[%s15995_s14 + $0x168] sm:$0xff] }
 0xa83   :  { %9936 = vmatprep.subr.mxu0 %v1677_v52  ;;  %2385 = vperm.xlu1 %10579, %v2149_v6   ;;  %v1820_v52 = vld [vmem:[%s15996_s29 + $0x70] sm:$0xff]  ;;  %v1829_v6 = vpop.permute.xlu1 %1828 }
 0xa84   :  { %v11647_v11 = vpop.f32.mrf.mxu1  ;;  %9937 = vmatpush3.msra.mxu0 %v11561_v8  ;;  %v2150_v8 = vld [vmem:[%s15995_s14 + $0x170] sm:$0xff] }
 0xa85   :  { %9938 = vmatprep.subr.mxu0 %v10348_v53  ;;  %2390 = vperm.xlu0 %10578, %v2150_v8   ;;  %v1808_v53 = vld [vmem:[%s15996_s29 + $0x10] sm:$0xff] }
 0xa86   :  { %v11653_v13 = vpop.f32.mrf.mxu1  ;;  %9939 = vmatpush3.msra.mxu0 %v11543_v1  ;;  %v2151_v1 = vld [vmem:[%s15995_s14 + $0x178] sm:$0xff] }
 0xa87   :  { %9940 = vmatprep.subr.mxu0 %v1667_v40  ;;  %2395 = vperm.xlu1 %10579, %v2151_v1   ;;  %v1812_v40 = vld [vmem:[%s15996_s29 + $0x30] sm:$0xff] }
 0xa88   :  { %v11659_v15 = vpop.f32.mrf.mxu1  ;;  %9941 = vmatpush3.msra.mxu0 %v11551_v4  ;;  %v2152_v4 = vld [vmem:[%s15995_s14 + $0x180] sm:$0xff] }
 0xa89   :  { %9942 = vmatprep.subr.mxu0 %v10345_v36  ;;  %2400 = vperm.xlu0 %10578, %v2152_v4  }
 0xa8a   :  { %v11665_v17 = vpop.f32.mrf.mxu1  ;;  %9943 = vmatpush3.msra.mxu0 %v11533_v60  ;;  %v2153_v60 = vld [vmem:[%s15995_s14 + $0x188] sm:$0xff] }
 0xa8b   :  { %9944 = vmatprep.subr.mxu0 %v1657_v41  ;;  %2405 = vperm.xlu1 %10579, %v2153_v60  }
 0xa8c   :  { %v11671_v19 = vpop.f32.mrf.mxu1  ;;  %9945 = vmatpush3.msra.mxu0 %v11541_v63  ;;  %v2154_v63 = vld [vmem:[%s15995_s14 + $0x190] sm:$0xff] }
 0xa8d   :  { %9946 = vmatprep.subr.mxu0 %v11602_v29  ;;  %2410 = vperm.xlu0 %10578, %v2154_v63  }
 0xa8e   :  { %v11678_v21 = vpop.f32.mrf.mxu1  ;;  %9947 = vmatpush3.msra.mxu0 %v11523_v51  ;;  %v2155_v51 = vld [vmem:[%s15995_s14 + $0x198] sm:$0xff] }
 0xa8f   :  { %9948 = vmatprep.subr.mxu0 %v11607_v33  ;;  %2415 = vperm.xlu1 %10579, %v2155_v51  }
 0xa90   :  { %v10369_v23 = vpop.f32.mrf.mxu1  ;;  %9949 = vmatpush3.msra.mxu0 %v11531_v57  ;;  %v2156_v57 = vld [vmem:[%s15995_s14 + $0x1a0] sm:$0xff] }
 0xa91   :  { %9950 = vmatprep.subr.mxu0 %v11592_v22  ;;  %2420 = vperm.xlu0 %10578, %v2156_v57  }
 0xa92   :  { %v1737_v25 = vpop.f32.mrf.mxu1  ;;  %9951 = vmatpush3.msra.mxu0 %v11513_v43  ;;  %v2157_v43 = vld [vmem:[%s15995_s14 + $0x1a8] sm:$0xff] }
 0xa93   :  { %9952 = vmatprep.subr.mxu0 %v11597_v24  ;;  %2425 = vperm.xlu1 %10579, %v2157_v43  }
 0xa94   :  { %v10372_v29 = vpop.f32.mrf.mxu1  ;;  %9953 = vmatpush3.msra.mxu0 %v11521_v48 }
 0xa95   :  { %9954 = vmatprep.subr.mxu0 %v11582_v18  ;;  %v1811_v18 = vld [vmem:[%s15996_s29 + $0x28] sm:$0xff] }
 0xa96   :  { %v1747_v22 = vpop.f32.mrf.mxu1  ;;  %9955 = vmatpush3.msra.mxu0 %v11499_v38  ;;  %v1806_v38 = vld [vmem:[%s15996_s29] sm:$0xff] }
 0xa97   :  { %9956 = vmatprep.subr.mxu0 %v11587_v20 }
 0xa98   :  { %v10375_v24 = vpop.f32.mrf.mxu1  ;;  %9957 = vmatpush3.msra.mxu0 %v11504_v58 }
 0xa99   :  { %9958 = vmatprep.subr.mxu0 %v11572_v14  ;;  %v1815_v14 = vld [vmem:[%s15996_s29 + $0x48] sm:$0xff] }
 0xa9a   :  { %v1757_v48 = vpop.f32.mrf.mxu1  ;;  %9959 = vmatpush3.msra.mxu0 %v11489_v35  ;;  %v1810_v35 = vld [vmem:[%s15996_s29 + $0x20] sm:$0xff] }
 0xa9b   :  { %9960 = vmatprep.subr.mxu0 %v11577_v16  ;;  %v1819_v16 = vld [vmem:[%s15996_s29 + $0x68] sm:$0xff] }
 0xa9c   :  { %v10378_v20 = vpop.f32.mrf.mxu1  ;;  %9961 = vmatpush3.msra.mxu0 %v11494_v49  ;;  %v1814_v49 = vld [vmem:[%s15996_s29 + $0x40] sm:$0xff]  ;;  %s16000_s29 = smov 113  }
 0xa9d   :  { %1945 = vmatpush1.msra.mxu1 %v10378_v20  ;;  %1924 = vmatmul.mubr.f32.vlgmr.msra.gmra.mxu0 %v1806_v38 }
 0xa9e   :  { %v1767_v58 = vpop.f32.mrf.mxu1  ;;  %1946 = vmatprep.subr.mxu1 %v10616_v0  ;;  %1928 = vmatprep.mubr.f32.mxu0 %v1811_v18 }
 0xa9f   :  { %1947 = vmatpush1.msra.mxu1 %v1767_v58  ;;  %10388 = vmatprep.subr.msk.mxu0 %vm2591_vm13, %v2049_v56 }
 0xaa0   :  { %1948 = vmatprep.subr.mxu1 %v10616_v0  ;;  %v10381_v33 = vpop.f32.mrf.mxu1  ;;  %10389 = vmatpush3.msk.msra.mxu0 %vm2591_vm13, %v2049_v56  ;;  %v2057_v56 = vld [vmem:[%s15941_s13 + $0x38] sm:$0xff]  ;;  %vm7451_vm13 = vcmask 932864  }
 0xaa1   :  { %1949 = vmatpush1.msra.mxu1 %v10375_v24  ;;  %1929 = vmatmul.mubr.f32.gmra.mxu0 %v1810_v35  ;;  %v1844_v24 = vpop.permute.xlu0 %1843 }
 0xaa2   :  { %1950 = vmatprep.subr.mxu1 %v10616_v0  ;;  %1933 = vmatprep.mubr.f32.mxu0 %v1815_v14  ;;  %v1777_v32 = vpop.f32.mrf.mxu1 }
 0xaa3   :  { %1951 = vmatpush1.msra.mxu1 %v1757_v48  ;;  %10390 = vmatprep.subr.mxu0 %v2048_v61 }
 0xaa4   :  { %1952 = vmatprep.subr.mxu1 %v10616_v0  ;;  %v10384_v36 = vpop.f32.mrf.mxu1  ;;  %10391 = vmatpush3.msra.mxu0 %v2048_v61  ;;  %v2058_v61 = vld [vmem:[%s15941_s13 + $0x40] sm:$0xff] }
 0xaa5   :  { %1953 = vmatpush1.msra.mxu1 %v10372_v29  ;;  %1934 = vmatmul.mubr.f32.gmra.mxu0 %v1814_v49 }
 0xaa6   :  { %1954 = vmatprep.subr.mxu1 %v10616_v0  ;;  %1938 = vmatprep.mubr.f32.mxu0 %v1819_v16  ;;  %v1787_v34 = vpop.f32.mrf.mxu1 }
 0xaa7   :  { %1955 = vmatpush1.msra.mxu1 %v1747_v22 }
 0xaa8   :  { %1956 = vmatprep.subr.mxu1 %v10616_v0  ;;  %v10387_v41 = vpop.f32.mrf.mxu1 }
 0xaa9   :  { %1957 = vmatpush1.msra.mxu1 %v10369_v23  ;;  %1939 = vmatmul.mubr.f32.gmra.mxu0 %v1818_v31  ;;  %v2035_v31 = vld [vmem:[%s15944_s11] sm:$0xff] }
 0xaaa   :  { %1958 = vmatprep.subr.mxu1 %v10616_v0  ;;  %v1797_v45 = vpop.f32.mrf.mxu1  ;;  %10396 = vmatprep.mubr.msk.f32.mxu0 %vm2428_vm14, %v2050_v62  ;;  %v2059_v62 = vld [vmem:[%s15941_s13 + $0x48] sm:$0xff] }
 0xaab   :  { %1959 = vmatpush1.msra.mxu1 %v1737_v25 }
 0xaac   :  { %1960 = vmatprep.subr.mxu1 %v10616_v0 }
 0xaad   :  { %1961 = vmatpush1.msra.mxu1 %v11671_v19 }
 0xaae   :  { %1962 = vmatprep.subr.mxu1 %v10616_v0 }
 0xaaf   :  { %1963 = vmatpush1.msra.mxu1 %v11678_v21 }
 0xab0   :  { %1964 = vmatprep.subr.mxu1 %v10616_v0 }
 0xab1   :  { %1965 = vmatpush1.msra.mxu1 %v11659_v15 }
 0xab2   :  { %1966 = vmatprep.subr.mxu1 %v10616_v0 }
 0xab3   :  { %1967 = vmatpush1.msra.mxu1 %v11665_v17 }
 0xab4   :  { %1968 = vmatprep.subr.mxu1 %v10616_v0 }
 0xab5   :  { %1969 = vmatpush1.msra.mxu1 %v11647_v11 }
 0xab6   :  { %1970 = vmatprep.subr.mxu1 %v10616_v0 }
 0xab7   :  { %1971 = vmatpush1.msra.mxu1 %v11653_v13 }
 0xab8   :  { %1972 = vmatprep.subr.mxu1 %v10616_v0 }
 0xab9   :  { %1973 = vmatpush1.msra.mxu1 %v11636_v5 }
 0xaba   :  { %1974 = vmatprep.subr.mxu1 %v10616_v0 }
 0xabb   :  { %1975 = vmatpush1.msra.mxu1 %v11641_v9 }
 0xabc   :  { %1996 = vmatprep.subr.mxu1 %v10616_v0 }
 0xabd   :  { %1997 = vmatpush2.msra.mxu1 %v10387_v41 }
 0xabe   :  { %1998 = vmatprep.subr.mxu1 %v10616_v0 }
 0xabf   :  { %1999 = vmatpush2.msra.mxu1 %v1797_v45 }
 0xac0   :  { %2000 = vmatprep.subr.mxu1 %v10616_v0 }
 0xac1   :  { %2001 = vmatpush2.msra.mxu1 %v10384_v36  ;;  %v2036_v36 = vld [vmem:[%s15944_s11 + $0x8] sm:$0xff]  ;;  %s10631_s11 = smov 102  }
 0xac2   :  { %2002 = vmatprep.subr.mxu1 %v10616_v0 }
 0xac3   :  { %2003 = vmatpush2.msra.mxu1 %v1787_v34 }
 0xac4   :  { %2004 = vmatprep.subr.mxu1 %v10616_v0 }
 0xac5   :  { %2005 = vmatpush2.msra.mxu1 %v10381_v33 }
 0xac6   :  { %2006 = vmatprep.subr.mxu1 %v10616_v0 }
 0xac7   :  { %2007 = vmatpush2.msra.mxu1 %v1777_v32 }
 0xac8   :  { %2009 = vmatmul.mubr.f32.vlgmr.msra.gmra.mxu1 %v1808_v53 }
 0xac9   :  { %8712 = vmatprep.mubr.msk.f32.mxu1 %vm15972_vm12, %v1813_v39  ;;  %v2051_v39 = vld [vmem:[%s15941_s13 + $0x8] sm:$0xff] }
 0xacc   :  { %2014 = vmatmul.mubr.f32.gmra.mxu1 %v1812_v40  ;;  %v2052_v40 = vld [vmem:[%s15941_s13 + $0x10] sm:$0xff] }
 0xacd   :  { %8713 = vmatprep.mubr.msk.f32.mxu1 %vm15972_vm12, %v1817_v59  ;;  %v2053_v59 = vld [vmem:[%s15941_s13 + $0x18] sm:$0xff] }
 0xad0   :  { %2019 = vmatmul.mubr.f32.gmra.mxu1 %v1816_v44  ;;  %v2054_v44 = vld [vmem:[%s15941_s13 + $0x20] sm:$0xff] }
 0xad1   :  { %8714 = vmatprep.mubr.msk.f32.mxu1 %vm15972_vm12, %v1821_v47  ;;  %v2055_v47 = vld [vmem:[%s15941_s13 + $0x28] sm:$0xff] }
 0xad4   :  { %2024 = vmatmul.mubr.f32.gmra.mxu1 %v1820_v52  ;;  %v2056_v52 = vld [vmem:[%s15941_s13 + $0x30] sm:$0xff] }
 0xb5d   :  { %v9962_v2 = vpop.f32.mrf.mxu0 }
 0xb5f   :  { %v9963_v3 = vpop.f32.mrf.mxu0 }
 0xb60   :  { %v9964_v12 = vadd.f32 %v9963_v3, %v9962_v2  ;;  %v2060_v2 = vld [vmem:[%s15941_s13 + $0x50] sm:$0xff]  ;;  %v2061_v3 = vld [vmem:[%s15941_s13 + $0x58] sm:$0xff] }
 0xb61   :  { %v9965_v5 = vpop.f32.mrf.mxu0 }
 0xb62   :  { %v1926_v8 = vadd.f32 %v9964_v12, %v1829_v6  ;;  %v2067_v12 = vld [vmem:[%s15941_s13 + $0x88] sm:$0xff]  ;;  %v2069_v6 = vld [vmem:[%s15941_s13 + $0x98] sm:$0xff] }
 0xb63   :  { %v9966_v9 = vpop.f32.mrf.mxu0 }
 0xb64   :  { %v9967_v15 = vadd.f32 %v9966_v9, %v9965_v5  ;;  %v2062_v5 = vld [vmem:[%s15941_s13 + $0x60] sm:$0xff]  ;;  %v2064_v9 = vld [vmem:[%s15941_s13 + $0x70] sm:$0xff] }
 0xb65   :  { %v9968_v11 = vpop.f32.mrf.mxu0 }
 0xb66   :  { %v1931_v60 = vadd.f32 %v9967_v15, %v1834_v10  ;;  %v2065_v10 = vld [vmem:[%s15941_s13 + $0x78] sm:$0xff]  ;;  %v2070_v15 = vld [vmem:[%s15941_s13 + $0xa0] sm:$0xff] }
 0xb67   :  { %v9969_v13 = vpop.f32.mrf.mxu0 }
 0xb68   :  { %v9970_v21 = vadd.f32 %v9969_v13, %v9968_v11  ;;  %v2066_v11 = vld [vmem:[%s15941_s13 + $0x80] sm:$0xff]  ;;  %v2068_v13 = vld [vmem:[%s15941_s13 + $0x90] sm:$0xff] }
 0xb69   :  { %v9971_v1 = vpop.f32.mrf.mxu0 }
 0xb6a   :  { %v1936_v57 = vadd.f32 %v9970_v21, %v1839_v7  ;;  %v2063_v7 = vld [vmem:[%s15941_s13 + $0x68] sm:$0xff]  ;;  %v2076_v21 = vld [vmem:[%s15941_s13 + $0xd0] sm:$0xff] }
 0xb6b   :  { %v9972_v63 = vpop.f32.mrf.mxu0 }
 0xb6c   :  { %v9973_v29 = vadd.f32 %v9972_v63, %v9971_v1  ;;  %v2073_v1 = vld [vmem:[%s15941_s13 + $0xb8] sm:$0xff]  ;;  %v2079_v63 = vld [vmem:[%s15941_s13 + $0xe8] sm:$0xff] }
 0xb6e   :  { %v1941_v18 = vadd.f32 %v9973_v29, %v1844_v24  ;;  %v2082_v29 = vld [vmem:[%s15941_s13 + $0x100] sm:$0xff] }
 0xb6f   :  { %v2086_v24 = vld [vmem:[%s15941_s13 + $0x120] sm:$0xff] }
 0xb88   :  { %v2010_v17 = vpop.f32.mrf.mxu1 }
 0xb89   :  { %v2011_v19 = vadd.f32 %v2010_v17, %v1926_v8  ;;  %v2071_v8 = vld [vmem:[%s15941_s13 + $0xa8] sm:$0xff]  ;;  %v2072_v17 = vld [vmem:[%s15941_s13 + $0xb0] sm:$0xff] }
 0xb8a   :  { %v2012_v4 = vpop.f32.mrf.mxu1 }
 0xb8b   :  { %2042 = vst.msk [vmem:[%s15942_s25] sm:$0xff] %vm2041_vm15, %v2011_v19  ;;  %v2075_v4 = vld [vmem:[%s15941_s13 + $0xc8] sm:$0xff] }
 0xb8c   :  { %v2015_v23 = vpop.f32.mrf.mxu1 }
 0xb8d   :  { %v2016_v25 = vadd.f32 %v2015_v23, %v1931_v60  ;;  %v2077_v60 = vld [vmem:[%s15941_s13 + $0xd8] sm:$0xff]  ;;  %v2078_v23 = vld [vmem:[%s15941_s13 + $0xe0] sm:$0xff] }
 0xb8e   :  { %v2017_v51 = vpop.f32.mrf.mxu1 }
 0xb8f   :  { %2043 = vst.msk [vmem:[%s15942_s25 + $0x8] sm:$0xff] %vm2041_vm15, %v2016_v25  ;;  %v2081_v51 = vld [vmem:[%s15941_s13 + $0xf8] sm:$0xff] }
 0xb90   :  { %v2020_v22 = vpop.f32.mrf.mxu1 }
 0xb91   :  { %v2021_v43 = vadd.f32 %v2020_v22, %v1936_v57  ;;  %v2083_v57 = vld [vmem:[%s15941_s13 + $0x108] sm:$0xff]  ;;  %v2084_v22 = vld [vmem:[%s15941_s13 + $0x110] sm:$0xff] }
 0xb92   :  { %v2022_v48 = vpop.f32.mrf.mxu1 }
 0xb93   :  { %v2029_v38 = vmul.f32 0.5, %v2021_v43  ;;  %2044 = vst.msk [vmem:[%s15943_s26] sm:$0xff] %vm2041_vm15, %v2021_v43  ;;  %v2085_v43 = vld [vmem:[%s15941_s13 + $0x118] sm:$0xff]  ;;  %v2934_v48 = vld [vmem:[%s15946_s16] sm:$0x3] }
 0xb94   :  { %v2025_v20 = vpop.f32.mrf.mxu1  ;;  %10477 = vmatprep.subr.msk.mxu1 %vm3097_vm0, %v2934_v48 }
 0xb95   :  { %v2031_v58 = vmul.f32 1.442695, %v2029_v38  ;;  %v2026_v35 = vadd.f32 %v2025_v20, %v1941_v18  ;;  %v2087_v38 = vld [vmem:[%s15941_s13 + $0x128] sm:$0xff]  ;;  %10478 = vmatpush3.msk.msra.mxu1 %vm3097_vm0, %v2934_v48  ;;  %v2088_v18 = vld [vmem:[%s15941_s13 + $0x130] sm:$0xff]  ;;  %v2089_v20 = vld [vmem:[%s15941_s13 + $0x138] sm:$0xff]  ;;  %vm7343_vm0 = vcmask 834560  }
 0xb96   :  { %v2027_v14 = vpop.f32.mrf.mxu1  ;;  %3617 = vmatprep.subr.mxu1 %v10616_v0 }
 0xb97   :  { %10588 = vpow2.f32 %v2031_v58  ;;  %v2030_v49 = vmul.f32 0.5, %v2026_v35  ;;  %2045 = vst.msk [vmem:[%s15943_s26 + $0x8] sm:$0xff] %vm2041_vm15, %v2026_v35  ;;  %v2090_v58 = vld [vmem:[%s15941_s13 + $0x140] sm:$0xff]  ;;  %v2091_v35 = vld [vmem:[%s15941_s13 + $0x148] sm:$0xff]  ;;  %v2092_v14 = vld [vmem:[%s15941_s13 + $0x150] sm:$0xff]  ;;  %s15997_s26 = smov 125  }
 0xb99   :  { %v2033_v16 = vmul.f32 1.442695, %v2030_v49  ;;  %v2093_v49 = vld [vmem:[%s15941_s13 + $0x158] sm:$0xff] }
 0xb9b   :  { %10590 = vpow2.f32 %v2033_v16  ;;  %v2094_v16 = vld [vmem:[%s15941_s13 + $0x160] sm:$0xff] }
 0xba4   :  { %v10589_v33 = vpop.eup %10588 }
 0xba5   :  { %v2037_v32 = vmul.f32 %v10589_v33, %v2035_v31  ;;  %v2095_v31 = vld [vmem:[%s15941_s13 + $0x168] sm:$0xff]  ;;  %v2096_v33 = vld [vmem:[%s15941_s13 + $0x170] sm:$0xff] }
 0xba7   :  { %v2039_v34 = vadd.f32 %v2037_v32, %v2011_v19  ;;  %v2074_v19 = vld [vmem:[%s15941_s13 + $0xc0] sm:$0xff]  ;;  %v2097_v32 = vld [vmem:[%s15941_s13 + $0x178] sm:$0xff] }
 0xba8   :  { %v10591_v41 = vpop.eup %10590 }
 0xba9   :  { %v2038_v45 = vmul.f32 %v10591_v41, %v2036_v36  ;;  %2046 = vst.msk [vmem:[%s15945_s24] sm:$0xff] %vm2041_vm15, %v2039_v34  ;;  %v2098_v36 = vld [vmem:[%s15941_s13 + $0x180] sm:$0xff]  ;;  %v2100_v41 = vld [vmem:[%s15941_s13 + $0x190] sm:$0xff] }
 0xbab   :  { %v2040_v53 = vadd.f32 %v2038_v45, %v2016_v25  ;;  %v2080_v25 = vld [vmem:[%s15941_s13 + $0xf0] sm:$0xff]  ;;  %v2101_v45 = vld [vmem:[%s15941_s13 + $0x198] sm:$0xff] }
 0xbad   :  { %2047 = vst.msk [vmem:[%s15945_s24 + $0x8] sm:$0xff] %vm2041_vm15, %v2040_v53  ;;  %10392 = vmatprep.subr.mxu0 %v2040_v53 }
 0xbae   :  { %10393 = vmatpush3.msra.mxu0 %v2040_v53  ;;  %v2102_v53 = vld [vmem:[%s15941_s13 + $0x1a0] sm:$0xff] }
 0xbaf   :  { %10394 = vmatprep.subr.mxu0 %v2039_v34 }
 0xbb0   :  { %10395 = vmatpush3.msra.mxu0 %v2039_v34  ;;  %v2099_v34 = vld [vmem:[%s15941_s13 + $0x188] sm:$0xff] }
 0xbb1   :  { %10397 = vmatmul.mubr.msk.f32.vlgmr.msra.gmra.mxu0 %vm2428_vm14, %v2051_v39  ;;  %v2103_v39 = vld [vmem:[%s15941_s13 + $0x1a8] sm:$0xff] }
 0xbb2   :  { %10399 = vmatprep.mubr.msk.f32.mxu0 %vm2428_vm14, %v2052_v40  ;;  %v2161_v40 = vpop.permute.xlu1 %2160 }
 0xbb5   :  { %10400 = vmatmul.mubr.msk.f32.gmra.mxu0 %vm2428_vm14, %v2053_v59 }
 0xbb6   :  { %10402 = vmatprep.mubr.msk.f32.mxu0 %vm2428_vm14, %v2054_v44  ;;  %v2166_v59 = vpop.permute.xlu1 %2165 }
 0xbb9   :  { %10403 = vmatmul.mubr.msk.f32.gmra.mxu0 %vm2428_vm14, %v2055_v47 }
 0xbba   :  { %10405 = vmatprep.mubr.msk.f32.mxu0 %vm2428_vm14, %v2056_v52  ;;  %v2171_v44 = vpop.permute.xlu1 %2170  ;;  %v2181_v52 = vpop.permute.xlu0 %2180 }
 0xbbd   :  { %10406 = vmatmul.mubr.msk.f32.gmra.mxu0 %vm2428_vm14, %v2057_v56 }
 0xbbe   :  { %10408 = vmatprep.mubr.msk.f32.mxu0 %vm2428_vm14, %v2058_v61  ;;  %v2176_v47 = vpop.permute.xlu1 %2175  ;;  %v2191_v61 = vpop.permute.xlu0 %2190 }
 0xbc1   :  { %10409 = vmatmul.mubr.msk.f32.gmra.mxu0 %vm2428_vm14, %v2059_v62 }
 0xbc2   :  { %10411 = vmatprep.mubr.msk.f32.mxu0 %vm2428_vm14, %v2060_v2  ;;  %v2186_v56 = vpop.permute.xlu1 %2185  ;;  %v2201_v2 = vpop.permute.xlu0 %2200 }
 0xbc5   :  { %10412 = vmatmul.mubr.msk.f32.gmra.mxu0 %vm2428_vm14, %v2061_v3 }
 0xbc6   :  { %10414 = vmatprep.mubr.msk.f32.mxu0 %vm2428_vm14, %v2062_v5  ;;  %v2196_v62 = vpop.permute.xlu1 %2195  ;;  %v2211_v5 = vpop.permute.xlu0 %2210 }
 0xbc9   :  { %10415 = vmatmul.mubr.msk.f32.gmra.mxu0 %vm2428_vm14, %v2063_v7 }
 0xbca   :  { %10417 = vmatprep.mubr.msk.f32.mxu0 %vm2428_vm14, %v2064_v9  ;;  %v2206_v3 = vpop.permute.xlu1 %2205  ;;  %v2221_v9 = vpop.permute.xlu0 %2220 }
 0xbcd   :  { %10418 = vmatmul.mubr.msk.f32.gmra.mxu0 %vm2428_vm14, %v2065_v10 }
 0xbce   :  { %10420 = vmatprep.mubr.msk.f32.mxu0 %vm2428_vm14, %v2066_v11  ;;  %v2216_v7 = vpop.permute.xlu1 %2215  ;;  %v2231_v11 = vpop.permute.xlu0 %2230 }
 0xbd1   :  { %10421 = vmatmul.mubr.msk.f32.gmra.mxu0 %vm2428_vm14, %v2067_v12 }
 0xbd2   :  { %10423 = vmatprep.mubr.msk.f32.mxu0 %vm2428_vm14, %v2068_v13  ;;  %v2226_v10 = vpop.permute.xlu1 %2225  ;;  %v12040_v13 = vpop.permute.xlu0 %2240 }
 0xbd5   :  { %10424 = vmatmul.mubr.msk.f32.gmra.mxu0 %vm2428_vm14, %v2069_v6 }
 0xbd6   :  { %10426 = vmatprep.mubr.msk.f32.mxu0 %vm2428_vm14, %v2070_v15  ;;  %v2236_v12 = vpop.permute.xlu1 %2235 }
 0xbd9   :  { %10427 = vmatmul.mubr.msk.f32.gmra.mxu0 %vm2428_vm14, %v2071_v8 }
 0xbda   :  { %10429 = vmatprep.mubr.msk.f32.mxu0 %vm2428_vm14, %v2072_v17  ;;  %v12042_v6 = vpop.permute.xlu1 %2245 }
 0xbdd   :  { %10430 = vmatmul.mubr.msk.f32.gmra.mxu0 %vm2428_vm14, %v2073_v1  ;;  %v12044_v1 = vpop.permute.xlu0 %2250 }
 0xbde   :  { %10432 = vmatprep.mubr.msk.f32.mxu0 %vm2428_vm14, %v2074_v19 }
 0xbe1   :  { %10433 = vmatmul.mubr.msk.f32.gmra.mxu0 %vm2428_vm14, %v2075_v4 }
 0xbe2   :  { %10435 = vmatprep.mubr.msk.f32.mxu0 %vm2428_vm14, %v2076_v21  ;;  %v12046_v21 = vpop.permute.xlu1 %2255 }
 0xbe5   :  { %10436 = vmatmul.mubr.msk.f32.gmra.mxu0 %vm2428_vm14, %v2077_v60 }
 0xbe6   :  { %10438 = vmatprep.mubr.msk.f32.mxu0 %vm2428_vm14, %v2078_v23 }
 0xbe9   :  { %10439 = vmatmul.mubr.msk.f32.gmra.mxu0 %vm2428_vm14, %v2079_v63 }
 0xbea   :  { %10441 = vmatprep.mubr.msk.f32.mxu0 %vm2428_vm14, %v2080_v25 }
 0xbed   :  { %10442 = vmatmul.mubr.msk.f32.gmra.mxu0 %vm2428_vm14, %v2081_v51  ;;  %v2261_v51 = vpop.permute.xlu0 %2260 }
 0xbee   :  { %10444 = vmatprep.mubr.msk.f32.mxu0 %vm2428_vm14, %v2082_v29 }
 0xbf1   :  { %10445 = vmatmul.mubr.msk.f32.gmra.mxu0 %vm2428_vm14, %v2083_v57  ;;  %v2266_v57 = vpop.permute.xlu1 %2265 }
 0xbf2   :  { %10447 = vmatprep.mubr.msk.f32.mxu0 %vm2428_vm14, %v2084_v22 }
 0xbf5   :  { %10448 = vmatmul.mubr.msk.f32.gmra.mxu0 %vm2428_vm14, %v2085_v43 }
 0xbf6   :  { %10450 = vmatprep.mubr.msk.f32.mxu0 %vm2428_vm14, %v2086_v24 }
 0xbf9   :  { %10451 = vmatmul.mubr.msk.f32.gmra.mxu0 %vm2428_vm14, %v2087_v38 }
 0xbfa   :  { %10453 = vmatprep.mubr.msk.f32.mxu0 %vm2428_vm14, %v2088_v18  ;;  %v2271_v18 = vpop.permute.xlu0 %2270 }
 0xbfd   :  { %10454 = vmatmul.mubr.msk.f32.gmra.mxu0 %vm2428_vm14, %v2089_v20 }
 0xbfe   :  { %10456 = vmatprep.mubr.msk.f32.mxu0 %vm2428_vm14, %v2090_v58 }
 0xc01   :  { %10457 = vmatmul.mubr.msk.f32.gmra.mxu0 %vm2428_vm14, %v2091_v35  ;;  %v2276_v35 = vpop.permute.xlu1 %2275 }
 0xc02   :  { %10459 = vmatprep.mubr.msk.f32.mxu0 %vm2428_vm14, %v2092_v14 }
 0xc05   :  { %10460 = vmatmul.mubr.msk.f32.gmra.mxu0 %vm2428_vm14, %v2093_v49 }
 0xc06   :  { %10462 = vmatprep.mubr.msk.f32.mxu0 %vm2428_vm14, %v2094_v16 }
 0xc09   :  { %10463 = vmatmul.mubr.msk.f32.gmra.mxu0 %vm2428_vm14, %v2095_v31 }
 0xc0a   :  { %10465 = vmatprep.mubr.msk.f32.mxu0 %vm2428_vm14, %v2096_v33  ;;  %v2281_v33 = vpop.permute.xlu0 %2280 }
 0xc0d   :  { %10466 = vmatmul.mubr.msk.f32.gmra.mxu0 %vm2428_vm14, %v2097_v32 }
 0xc0e   :  { %10468 = vmatprep.mubr.msk.f32.mxu0 %vm2428_vm14, %v2098_v36  ;;  %v2286_v36 = vpop.permute.xlu1 %2285 }
 0xc11   :  { %10469 = vmatmul.mubr.msk.f32.gmra.mxu0 %vm2428_vm14, %v2099_v34 }
 0xc12   :  { %10471 = vmatprep.mubr.msk.f32.mxu0 %vm2428_vm14, %v2100_v41 }
 0xc15   :  { %10472 = vmatmul.mubr.msk.f32.gmra.mxu0 %vm2428_vm14, %v2101_v45 }
 0xc16   :  { %10474 = vmatprep.mubr.msk.f32.mxu0 %vm2428_vm14, %v2102_v53 }
 0xc19   :  { %10475 = vmatmul.mubr.msk.f32.gmra.mxu0 %vm2428_vm14, %v2103_v39  ;;  %vm7415_vm14 = vcmask 924672  }
 0xc71   :  { %v10398_v15 = vpop.f32.mrf.mxu0 }
 0xc72   :  { %v2667_v19 = vadd.f32 %v10398_v15, %v2166_v59 }
 0xc73   :  { %v2661_v8 = vpop.f32.mrf.mxu0 }
 0xc74   :  { %v2662_v17 = vadd.f32 %v2661_v8, %v2161_v40  ;;  %v2291_v40 = vpop.permute.xlu0 %2290 }
 0xc75   :  { %v10401_v4 = vpop.f32.mrf.mxu0 }
 0xc76   :  { %10479 = vmatprep.mubr.msk.f32.mxu1 %vm2041_vm15, %v2662_v17  ;;  %v2677_v63 = vadd.f32 %v10401_v4, %v2176_v47  ;;  %v2296_v47 = vpop.permute.xlu1 %2295 }
 0xc77   :  { %v2671_v60 = vpop.f32.mrf.mxu0  ;;  %10480 = vmatmul.mubr.msk.f32.vlgmr.msra.gmra.mxu1 %vm2041_vm15, %v2667_v19 }
 0xc78   :  { %v2672_v23 = vadd.f32 %v2671_v60, %v2171_v44 }
 0xc79   :  { %v10404_v25 = vpop.f32.mrf.mxu0 }
 0xc7a   :  { %10482 = vmatprep.mubr.msk.f32.mxu1 %vm2041_vm15, %v2672_v23  ;;  %v2687_v43 = vadd.f32 %v10404_v25, %v2186_v56 }
 0xc7b   :  { %v2681_v29 = vpop.f32.mrf.mxu0  ;;  %10483 = vmatmul.mubr.msk.f32.gmra.mxu1 %vm2041_vm15, %v2677_v63 }
 0xc7c   :  { %v2682_v22 = vadd.f32 %v2681_v29, %v2181_v52 }
 0xc7d   :  { %v10407_v24 = vpop.f32.mrf.mxu0 }
 0xc7e   :  { %10485 = vmatprep.mubr.msk.f32.mxu1 %vm2041_vm15, %v2682_v22  ;;  %v2697_v20 = vadd.f32 %v10407_v24, %v2196_v62 }
 0xc7f   :  { %v2691_v48 = vpop.f32.mrf.mxu0  ;;  %10486 = vmatmul.mubr.msk.f32.gmra.mxu1 %vm2041_vm15, %v2687_v43 }
 0xc80   :  { %v2692_v38 = vadd.f32 %v2691_v48, %v2191_v61 }
 0xc81   :  { %v10410_v58 = vpop.f32.mrf.mxu0 }
 0xc82   :  { %10488 = vmatprep.mubr.msk.f32.mxu1 %vm2041_vm15, %v2692_v38  ;;  %v2707_v16 = vadd.f32 %v10410_v58, %v2206_v3 }
 0xc83   :  { %v2701_v14 = vpop.f32.mrf.mxu0  ;;  %10489 = vmatmul.mubr.msk.f32.gmra.mxu1 %vm2041_vm15, %v2697_v20 }
 0xc84   :  { %v2702_v49 = vadd.f32 %v2701_v14, %v2201_v2  ;;  %v2301_v2 = vpop.permute.xlu0 %2300 }
 0xc85   :  { %v10413_v31 = vpop.f32.mrf.mxu0 }
 0xc86   :  { %10491 = vmatprep.mubr.msk.f32.mxu1 %vm2041_vm15, %v2702_v49  ;;  %v2717_v41 = vadd.f32 %v10413_v31, %v2216_v7 }
 0xc87   :  { %v2711_v32 = vpop.f32.mrf.mxu0  ;;  %10492 = vmatmul.mubr.msk.f32.gmra.mxu1 %vm2041_vm15, %v2707_v16 }
 0xc88   :  { %v2712_v34 = vadd.f32 %v2711_v32, %v2211_v5  ;;  %v2306_v5 = vpop.permute.xlu1 %2305 }
 0xc89   :  { %v10416_v45 = vpop.f32.mrf.mxu0 }
 0xc8a   :  { %10494 = vmatprep.mubr.msk.f32.mxu1 %vm2041_vm15, %v2712_v34  ;;  %v2727_v59 = vadd.f32 %v10416_v45, %v2226_v10 }
 0xc8b   :  { %v2721_v53 = vpop.f32.mrf.mxu0  ;;  %10495 = vmatmul.mubr.msk.f32.gmra.mxu1 %vm2041_vm15, %v2717_v41 }
 0xc8c   :  { %v2722_v39 = vadd.f32 %v2721_v53, %v2221_v9  ;;  %v2316_v19 = vpop.permute.xlu1 %2315 }
 0xc8d   :  { %v10419_v44 = vpop.f32.mrf.mxu0 }
 0xc8e   :  { %10497 = vmatprep.mubr.msk.f32.mxu1 %vm2041_vm15, %v2722_v39  ;;  %v2737_v61 = vadd.f32 %v10419_v44, %v2236_v12  ;;  %v2311_v12 = vpop.permute.xlu0 %2310 }
 0xc8f   :  { %v2731_v52 = vpop.f32.mrf.mxu0  ;;  %10498 = vmatmul.mubr.msk.f32.gmra.mxu1 %vm2041_vm15, %v2727_v59 }
 0xc90   :  { %v2732_v56 = vadd.f32 %v2731_v52, %v2231_v11 }
 0xc91   :  { %v10422_v62 = vpop.f32.mrf.mxu0 }
 0xc92   :  { %10500 = vmatprep.mubr.msk.f32.mxu1 %vm2041_vm15, %v2732_v56  ;;  %v2747_v9 = vadd.f32 %v10422_v62, %v12042_v6  ;;  %v2321_v23 = vpop.permute.xlu0 %2320 }
 0xc93   :  { %v2741_v3 = vpop.f32.mrf.mxu0  ;;  %10501 = vmatmul.mubr.msk.f32.gmra.mxu1 %vm2041_vm15, %v2737_v61 }
 0xc94   :  { %v2742_v7 = vadd.f32 %v2741_v3, %v12040_v13 }
 0xc95   :  { %v10425_v10 = vpop.f32.mrf.mxu0 }
 0xc96   :  { %10503 = vmatprep.mubr.msk.f32.mxu1 %vm2041_vm15, %v2742_v7  ;;  %v2757_v8 = vadd.f32 %v10425_v10, %v12046_v21  ;;  %v2331_v24 = vpop.permute.xlu0 %2330 }
 0xc97   :  { %v2751_v15 = vpop.f32.mrf.mxu0  ;;  %10504 = vmatmul.mubr.msk.f32.gmra.mxu1 %vm2041_vm15, %v2747_v9 }
 0xc98   :  { %v2752_v11 = vadd.f32 %v2751_v15, %v12044_v1  ;;  %v2326_v1 = vpop.permute.xlu1 %2325 }
 0xc99   :  { %v10428_v17 = vpop.f32.mrf.mxu0 }
 0xc9a   :  { %10506 = vmatprep.mubr.msk.f32.mxu1 %vm2041_vm15, %v2752_v11  ;;  %v2767_v6 = vadd.f32 %v10428_v17, %v2266_v57 }
 0xc9b   :  { %v2761_v4 = vpop.f32.mrf.mxu0  ;;  %10507 = vmatmul.mubr.msk.f32.gmra.mxu1 %vm2041_vm15, %v2757_v8 }
 0xc9c   :  { %v2762_v13 = vadd.f32 %v2761_v4, %v2261_v51  ;;  %v2336_v48 = vpop.permute.xlu1 %2335 }
 0xc9d   :  { %v10431_v60 = vpop.f32.mrf.mxu0 }
 0xc9e   :  { %10509 = vmatprep.mubr.msk.f32.mxu1 %vm2041_vm15, %v2762_v13  ;;  %v2777_v29 = vadd.f32 %v10431_v60, %v2276_v35  ;;  %v2341_v35 = vpop.permute.xlu0 %2340 }
 0xc9f   :  { %v2771_v63 = vpop.f32.mrf.mxu0  ;;  %10510 = vmatmul.mubr.msk.f32.gmra.mxu1 %vm2041_vm15, %v2767_v6 }
 0xca0   :  { %v2772_v25 = vadd.f32 %v2771_v63, %v2271_v18  ;;  %v2346_v49 = vpop.permute.xlu1 %2345 }
 0xca1   :  { %v10434_v21 = vpop.f32.mrf.mxu0 }
 0xca2   :  { %10512 = vmatprep.mubr.msk.f32.mxu1 %vm2041_vm15, %v2772_v25  ;;  %v2787_v51 = vadd.f32 %v10434_v21, %v2286_v36  ;;  %v2351_v34 = vpop.permute.xlu0 %2350 }
 0xca3   :  { %v2781_v22 = vpop.f32.mrf.mxu0  ;;  %10513 = vmatmul.mubr.msk.f32.gmra.mxu1 %vm2041_vm15, %v2777_v29 }
 0xca4   :  { %v2782_v43 = vadd.f32 %v2781_v22, %v2281_v33  ;;  %v2356_v53 = vpop.permute.xlu1 %2355 }
 0xca5   :  { %v10437_v57 = vpop.f32.mrf.mxu0 }
 0xca6   :  { %10515 = vmatprep.mubr.msk.f32.mxu1 %vm2041_vm15, %v2782_v43  ;;  %v2797_v58 = vadd.f32 %v10437_v57, %v2296_v47  ;;  %v2361_v47 = vpop.permute.xlu0 %2360 }
 0xca7   :  { %v2791_v38 = vpop.f32.mrf.mxu0  ;;  %10516 = vmatmul.mubr.msk.f32.gmra.mxu1 %vm2041_vm15, %v2787_v51 }
 0xca8   :  { %v2792_v20 = vadd.f32 %v2791_v38, %v2291_v40  ;;  %v2366_v56 = vpop.permute.xlu1 %2365 }
 0xca9   :  { %v10440_v18 = vpop.f32.mrf.mxu0 }
 0xcaa   :  { %10518 = vmatprep.mubr.msk.f32.mxu1 %vm2041_vm15, %v2792_v20  ;;  %v2807_v31 = vadd.f32 %v10440_v18, %v2306_v5  ;;  %v2371_v7 = vpop.permute.xlu0 %2370 }
 0xcab   :  { %v2801_v14 = vpop.f32.mrf.mxu0  ;;  %10519 = vmatmul.mubr.msk.f32.gmra.mxu1 %vm2041_vm15, %v2797_v58 }
 0xcac   :  { %v2802_v16 = vadd.f32 %v2801_v14, %v2301_v2  ;;  %v2376_v15 = vpop.permute.xlu1 %2375 }
 0xcad   :  { %v10443_v33 = vpop.f32.mrf.mxu0 }
 0xcae   :  { %10521 = vmatprep.mubr.msk.f32.mxu1 %vm2041_vm15, %v2802_v16  ;;  %v2817_v41 = vadd.f32 %v10443_v33, %v2316_v19  ;;  %v2381_v19 = vpop.permute.xlu0 %2380 }
 0xcaf   :  { %v2811_v32 = vpop.f32.mrf.mxu0  ;;  %10522 = vmatmul.mubr.msk.f32.gmra.mxu1 %vm2041_vm15, %v2807_v31 }
 0xcb0   :  { %v2812_v36 = vadd.f32 %v2811_v32, %v2311_v12  ;;  %v2386_v13 = vpop.permute.xlu1 %2385 }
 0xcb1   :  { %v10446_v45 = vpop.f32.mrf.mxu0 }
 0xcb2   :  { %10524 = vmatprep.mubr.msk.f32.mxu1 %vm2041_vm15, %v2812_v36  ;;  %v2827_v59 = vadd.f32 %v10446_v45, %v2326_v1  ;;  %v2391_v25 = vpop.permute.xlu0 %2390 }
 0xcb3   :  { %v2821_v39 = vpop.f32.mrf.mxu0  ;;  %10525 = vmatmul.mubr.msk.f32.gmra.mxu1 %vm2041_vm15, %v2817_v41 }
 0xcb4   :  { %v2822_v40 = vadd.f32 %v2821_v39, %v2321_v23  ;;  %v2396_v22 = vpop.permute.xlu1 %2395 }
 0xcb5   :  { %v10449_v44 = vpop.f32.mrf.mxu0 }
 0xcb6   :  { %10527 = vmatprep.mubr.msk.f32.mxu1 %vm2041_vm15, %v2822_v40  ;;  %v2837_v62 = vadd.f32 %v10449_v44, %v2336_v48  ;;  %v2401_v48 = vpop.permute.xlu0 %2400 }
 0xcb7   :  { %v2831_v52 = vpop.f32.mrf.mxu0  ;;  %10528 = vmatmul.mubr.msk.f32.gmra.mxu1 %vm2041_vm15, %v2827_v59 }
 0xcb8   :  { %v2832_v61 = vadd.f32 %v2831_v52, %v2331_v24  ;;  %v2406_v20 = vpop.permute.xlu1 %2405 }
 0xcb9   :  { %v10452_v2 = vpop.f32.mrf.mxu0 }
 0xcba   :  { %10530 = vmatprep.mubr.msk.f32.mxu1 %vm2041_vm15, %v2832_v61  ;;  %v2847_v9 = vadd.f32 %v10452_v2, %v2346_v49  ;;  %v2411_v16 = vpop.permute.xlu0 %2410 }
 0xcbb   :  { %v2841_v3 = vpop.f32.mrf.mxu0  ;;  %10531 = vmatmul.mubr.msk.f32.gmra.mxu1 %vm2041_vm15, %v2837_v62 }
 0xcbc   :  { %v2842_v5 = vadd.f32 %v2841_v3, %v2341_v35  ;;  %v2416_v32 = vpop.permute.xlu1 %2415  ;;  %v2933_v3 = vld [vmem:[%s15947_s15 + $0x18] sm:$0xff] }
 0xcbd   :  { %v10455_v10 = vpop.f32.mrf.mxu0 }
 0xcbe   :  { %10533 = vmatprep.mubr.msk.f32.mxu1 %vm2041_vm15, %v2842_v5  ;;  %v2857_v8 = vadd.f32 %v10455_v10, %v2356_v53  ;;  %v2421_v53 = vpop.permute.xlu0 %2420 }
 0xcbf   :  { %v2851_v11 = vpop.f32.mrf.mxu0  ;;  %10534 = vmatmul.mubr.msk.f32.gmra.mxu1 %vm2041_vm15, %v2847_v9 }
 0xcc0   :  { %v2852_v12 = vadd.f32 %v2851_v11, %v2351_v34  ;;  %v2426_v40 = vpop.permute.xlu1 %2425 }
 0xcc1   :  { %v10458_v17 = vpop.f32.mrf.mxu0 }
 0xcc2   :  { %10536 = vmatprep.mubr.msk.f32.mxu1 %vm2041_vm15, %v2852_v12  ;;  %v2867_v60 = vadd.f32 %v10458_v17, %v2366_v56  ;;  %v2931_v56 = vld [vmem:[%s15947_s15 + $0x8] sm:$0xff] }
 0xcc3   :  { %v2861_v4 = vpop.f32.mrf.mxu0  ;;  %10537 = vmatmul.mubr.msk.f32.gmra.mxu1 %vm2041_vm15, %v2857_v8  ;;  %3611 = vmatprep.mubr.f32.mxu0 %v2931_v56 }
 0xcc4   :  { %v2862_v6 = vadd.f32 %v2861_v4, %v2361_v47 }
 0xcc5   :  { %v10461_v23 = vpop.f32.mrf.mxu0 }
 0xcc6   :  { %10539 = vmatprep.mubr.msk.f32.mxu1 %vm2041_vm15, %v2862_v6  ;;  %v2877_v29 = vadd.f32 %v10461_v23, %v2376_v15 }
 0xcc7   :  { %v2871_v63 = vpop.f32.mrf.mxu0  ;;  %10540 = vmatmul.mubr.msk.f32.gmra.mxu1 %vm2041_vm15, %v2867_v60 }
 0xcc8   :  { %v2872_v1 = vadd.f32 %v2871_v63, %v2371_v7 }
 0xcc9   :  { %v10464_v21 = vpop.f32.mrf.mxu0 }
 0xcca   :  { %10542 = vmatprep.mubr.msk.f32.mxu1 %vm2041_vm15, %v2872_v1  ;;  %v2887_v51 = vadd.f32 %v10464_v21, %v2386_v13 }
 0xccb   :  { %v2881_v43 = vpop.f32.mrf.mxu0  ;;  %10543 = vmatmul.mubr.msk.f32.gmra.mxu1 %vm2041_vm15, %v2877_v29 }
 0xccc   :  { %v2882_v24 = vadd.f32 %v2881_v43, %v2381_v19 }
 0xccd   :  { %v10467_v57 = vpop.f32.mrf.mxu0 }
 0xcce   :  { %10545 = vmatprep.mubr.msk.f32.mxu1 %vm2041_vm15, %v2882_v24  ;;  %v2897_v18 = vadd.f32 %v10467_v57, %v2396_v22 }
 0xccf   :  { %v2891_v38 = vpop.f32.mrf.mxu0  ;;  %10546 = vmatmul.mubr.msk.f32.gmra.mxu1 %vm2041_vm15, %v2887_v51 }
 0xcd0   :  { %v2892_v58 = vadd.f32 %v2891_v38, %v2391_v25  ;;  %v3451_v38 = vld [vmem:[%s15993_s7 + $0x78] sm:$0xff] }
 0xcd1   :  { %v10470_v35 = vpop.f32.mrf.mxu0 }
 0xcd2   :  { %10548 = vmatprep.mubr.msk.f32.mxu1 %vm2041_vm15, %v2892_v58  ;;  %v2907_v31 = vadd.f32 %v10470_v35, %v2406_v20  ;;  %v3466_v58 = vld [vmem:[%s15993_s7 + $0xf0] sm:$0xff] }
 0xcd3   :  { %v2901_v14 = vpop.f32.mrf.mxu0  ;;  %10549 = vmatmul.mubr.msk.f32.gmra.mxu1 %vm2041_vm15, %v2897_v18  ;;  %v3450_v18 = vld [vmem:[%s15993_s7 + $0x70] sm:$0xff] }
 0xcd4   :  { %v2902_v49 = vadd.f32 %v2901_v14, %v2401_v48  ;;  %v3467_v48 = vld [vmem:[%s15993_s7 + $0xf8] sm:$0xff] }
 0xcd5   :  { %v10473_v33 = vpop.f32.mrf.mxu0 }
 0xcd6   :  { %10551 = vmatprep.mubr.msk.f32.mxu1 %vm2041_vm15, %v2902_v49  ;;  %v2917_v41 = vadd.f32 %v10473_v33, %v2416_v32  ;;  %v3465_v49 = vld [vmem:[%s15993_s7 + $0xe8] sm:$0xff] }
 0xcd7   :  { %v2911_v36 = vpop.f32.mrf.mxu0  ;;  %10552 = vmatmul.mubr.msk.f32.gmra.mxu1 %vm2041_vm15, %v2907_v31  ;;  %v3449_v31 = vld [vmem:[%s15993_s7 + $0x68] sm:$0xff] }
 0xcd8   :  { %v2912_v34 = vadd.f32 %v2911_v36, %v2411_v16  ;;  %v3464_v36 = vld [vmem:[%s15993_s7 + $0xe0] sm:$0xff] }
 0xcd9   :  { %v10476_v45 = vpop.f32.mrf.mxu0 }
 0xcda   :  { %10554 = vmatprep.mubr.msk.f32.mxu1 %vm2041_vm15, %v2912_v34  ;;  %v2927_v44 = vadd.f32 %v10476_v45, %v2426_v40 }
 0xcdb   :  { %v2921_v39 = vpop.f32.mrf.mxu0  ;;  %10555 = vmatmul.mubr.msk.f32.gmra.mxu1 %vm2041_vm15, %v2917_v41  ;;  %v3448_v41 = vld [vmem:[%s15993_s7 + $0x60] sm:$0xff] }
 0xcdc   :  { %v2922_v59 = vadd.f32 %v2921_v39, %v2421_v53  ;;  %v3463_v39 = vld [vmem:[%s15993_s7 + $0xd8] sm:$0xff] }
 0xcde   :  { %10557 = vmatprep.mubr.msk.f32.mxu1 %vm2041_vm15, %v2922_v59  ;;  %v3447_v59 = vld [vmem:[%s15993_s7 + $0x58] sm:$0xff] }
 0xcdf   :  { %10558 = vmatmul.mubr.msk.f32.gmra.mxu1 %vm2041_vm15, %v2927_v44  ;;  %vm7379_vm15 = vcmask 842752  }
 0xce0   :  { %8825 = vmatprep.mubr.msk.f32.mxu1 %vm15972_vm12, %v2933_v3  ;;  %v3462_v3 = vld [vmem:[%s15993_s7 + $0xd0] sm:$0xff] }
 0xd37   :  { %v12106_v47 = vpop.f32.mrf.mxu1 }
 0xd39   :  { %v12108_v52 = vpop.f32.mrf.mxu1 }
 0xd3b   :  { %v12113_v61 = vpop.f32.mrf.mxu1 }
 0xd3d   :  { %v12115_v62 = vpop.f32.mrf.mxu1 }
 0xd3f   :  { %v12117_v2 = vpop.f32.mrf.mxu1 }
 0xd41   :  { %v12123_v5 = vpop.f32.mrf.mxu1 }
 0xd43   :  { %v12125_v7 = vpop.f32.mrf.mxu1 }
 0xd45   :  { %v12127_v9 = vpop.f32.mrf.mxu1 }
 0xd47   :  { %v12129_v10 = vpop.f32.mrf.mxu1 }
 0xd49   :  { %v12131_v15 = vpop.f32.mrf.mxu1 }
 0xd4b   :  { %v10496_v11 = vpop.f32.mrf.mxu1 }
 0xd4d   :  { %v3217_v12 = vpop.f32.mrf.mxu1 }
 0xd4f   :  { %v10499_v8 = vpop.f32.mrf.mxu1 }
 0xd50   :  { %v3503_v53 = vmul.f32 %v10499_v8, %v3449_v31  ;;  %v3446_v8 = vld [vmem:[%s15993_s7 + $0x50] sm:$0xff] }
 0xd51   :  { %v3227_v17 = vpop.f32.mrf.mxu1  ;;  %v3442_v31 = vld [vmem:[%s15993_s7 + $0x30] sm:$0xff] }
 0xd52   :  { %v3502_v56 = vmul.f32 %v3448_v41, %v3227_v17  ;;  %v3445_v17 = vld [vmem:[%s15993_s7 + $0x48] sm:$0xff] }
 0xd53   :  { %v10502_v19 = vpop.f32.mrf.mxu1 }
 0xd54   :  { %v3505_v14 = vmul.f32 %v10502_v19, %v3451_v38 }
 0xd55   :  { %v3237_v4 = vpop.f32.mrf.mxu1 }
 0xd56   :  { %v3504_v32 = vmul.f32 %v3450_v18, %v3237_v4 }
 0xd57   :  { %v12133_v13 = vpop.f32.mrf.mxu1 }
 0xd59   :  { %v12135_v6 = vpop.f32.mrf.mxu1 }
 0xd5b   :  { %v12137_v60 = vpop.f32.mrf.mxu1 }
 0xd5d   :  { %v12139_v23 = vpop.f32.mrf.mxu1 }
 0xd5f   :  { %v12141_v63 = vpop.f32.mrf.mxu1 }
 0xd61   :  { %v12143_v1 = vpop.f32.mrf.mxu1 }
 0xd63   :  { %v12145_v25 = vpop.f32.mrf.mxu1 }
 0xd65   :  { %v12147_v29 = vpop.f32.mrf.mxu1 }
 0xd67   :  { %v10517_v21 = vpop.f32.mrf.mxu1 }
 0xd69   :  { %v3287_v22 = vpop.f32.mrf.mxu1 }
 0xd6b   :  { %v10520_v43 = vpop.f32.mrf.mxu1 }
 0xd6c   :  { %v3517_v4 = vmul.f32 %v10520_v43, %v3463_v39  ;;  %v3460_v43 = vld [vmem:[%s15993_s7 + $0xc0] sm:$0xff] }
 0xd6d   :  { %v3297_v24 = vpop.f32.mrf.mxu1 }
 0xd6e   :  { %v3516_v38 = vmul.f32 %v3462_v3, %v3297_v24  ;;  %v3459_v24 = vld [vmem:[%s15993_s7 + $0xb8] sm:$0xff] }
 0xd6f   :  { %v10523_v51 = vpop.f32.mrf.mxu1 }
 0xd70   :  { %v3519_v45 = vmul.f32 %v10523_v51, %v3465_v49  ;;  %v3501_v51 = vmul.f32 %v10496_v11, %v3447_v59  ;;  %v3444_v11 = vld [vmem:[%s15993_s7 + $0x40] sm:$0xff]  ;;  %v3514_v49 = vmul.f32 %v3460_v43, %v3287_v22 }
 0xd71   :  { %v3307_v57 = vpop.f32.mrf.mxu1 }
 0xd72   :  { %v3518_v44 = vmul.f32 %v3464_v36, %v3307_v57  ;;  %v3461_v57 = vld [vmem:[%s15993_s7 + $0xc8] sm:$0xff] }
 0xd73   :  { %v10526_v20 = vpop.f32.mrf.mxu1  ;;  %v3515_v18 = vmul.f32 %v10517_v21, %v3461_v57  ;;  %v3458_v21 = vld [vmem:[%s15993_s7 + $0xb0] sm:$0xff]  ;;  %v3441_v36 = vld [vmem:[%s15993_s7 + $0x28] sm:$0xff] }
 0xd74   :  { %v3521_v35 = vmul.f32 %v10526_v20, %v3467_v48  ;;  %v3500_v20 = vmul.f32 %v3446_v8, %v3217_v12  ;;  %v3512_v41 = vmul.f32 %v3458_v21, %v12147_v29  ;;  %v3495_v59 = vmul.f32 %v12117_v2, %v3441_v36  ;;  %v3454_v2 = vld [vmem:[%s15993_s7 + $0x90] sm:$0xff]  ;;  %v3437_v57 = vld [vmem:[%s15993_s7 + $0x8] sm:$0xff] }
 0xd75   :  { %v3317_v16 = vpop.f32.mrf.mxu1  ;;  %v3438_v8 = vld [vmem:[%s15993_s7 + $0x10] sm:$0xff]  ;;  %v3732_v36 = vld [vmem:[%s15948_s17 + $0x168] sm:$0xff] }
 0xd76   :  { %v3520_v33 = vmul.f32 %v3466_v58, %v3317_v16  ;;  %10087 = vmatprep.subr.mxu0 %v3521_v35  ;;  %v3499_v35 = vmul.f32 %v12129_v10, %v3445_v17  ;;  %v3498_v16 = vmul.f32 %v3444_v11, %v12131_v15  ;;  %v3457_v15 = vld [vmem:[%s15993_s7 + $0xa8] sm:$0xff]  ;;  %v3508_v17 = vmul.f32 %v3454_v2, %v12139_v23 }
 0xd77   :  { %v12170_v34 = vpop.f32.mrf.mxu1  ;;  %10088 = vmatpush3.msra.mxu0 %v3505_v14  ;;  %v3443_v14 = vld [vmem:[%s15993_s7 + $0x38] sm:$0xff]  ;;  %v3511_v39 = vmul.f32 %v12141_v63, %v3457_v15  ;;  %v3491_v11 = vmul.f32 %v12106_v47, %v3437_v57  ;;  %v2930_v47 = vld [vmem:[%s15947_s15] sm:$0xff] }
 0xd78   :  { %10089 = vmatprep.subr.mxu0 %v3520_v33  ;;  %v3513_v33 = vmul.f32 %v12145_v25, %v3459_v24  ;;  %v3475_v57 = vld [vmem:[%s15993_s7 + $0x138] sm:$0xff] }
 0xd79   :  { %v12178_v40 = vpop.f32.mrf.mxu1  ;;  %10090 = vmatpush3.msra.mxu0 %v3504_v32  ;;  %v3497_v32 = vmul.f32 %v12125_v7, %v3443_v14  ;;  %v3456_v7 = vld [vmem:[%s15993_s7 + $0xa0] sm:$0xff] }
 0xd7a   :  { %10091 = vmatprep.subr.mxu0 %v3519_v45  ;;  %v3496_v45 = vmul.f32 %v3442_v31, %v12127_v9  ;;  %v3455_v9 = vld [vmem:[%s15993_s7 + $0x98] sm:$0xff]  ;;  %v3736_v31 = vld [vmem:[%s15948_s17 + $0x188] sm:$0xff] }
 0xd7b   :  { %v12186_v19 = vpop.f32.mrf.mxu1  ;;  %10092 = vmatpush3.msra.mxu0 %v3503_v53  ;;  %v3440_v53 = vld [vmem:[%s15993_s7 + $0x20] sm:$0xff] }
 0xd7c   :  { %10093 = vmatprep.subr.mxu0 %v3518_v44  ;;  %v3439_v44 = vld [vmem:[%s15993_s7 + $0x18] sm:$0xff]  ;;  %v3494_v3 = vmul.f32 %v3440_v53, %v12123_v5  ;;  %v3728_v53 = vld [vmem:[%s15948_s17 + $0x148] sm:$0xff] }
 0xd7d   :  { %v12194_v48 = vpop.f32.mrf.mxu1  ;;  %10094 = vmatpush3.msra.mxu0 %v3502_v56  ;;  %v3510_v56 = vmul.f32 %v3456_v7, %v12143_v1  ;;  %v3453_v1 = vld [vmem:[%s15993_s7 + $0x88] sm:$0xff] }
 0xd7e   :  { %10095 = vmatprep.subr.mxu0 %v3517_v4  ;;  %v3509_v4 = vmul.f32 %v12137_v60, %v3455_v9  ;;  %v3507_v43 = vmul.f32 %v12133_v13, %v3453_v1  ;;  %v3482_v13 = vld [vmem:[%s15993_s7 + $0x170] sm:$0xff] }
 0xd7f   :  { %v12202_v58 = vpop.f32.mrf.mxu1  ;;  %10096 = vmatpush3.msra.mxu0 %v3501_v51  ;;  %v3493_v51 = vmul.f32 %v12113_v61, %v3439_v44  ;;  %v3452_v61 = vld [vmem:[%s15993_s7 + $0x80] sm:$0xff]  ;;  %v3724_v44 = vld [vmem:[%s15948_s17 + $0x128] sm:$0xff] }
 0xd80   :  { %10097 = vmatprep.subr.mxu0 %v3516_v38  ;;  %v3492_v38 = vmul.f32 %v3438_v8, %v12115_v62  ;;  %v3483_v62 = vld [vmem:[%s15993_s7 + $0x178] sm:$0xff]  ;;  %v3506_v23 = vmul.f32 %v3452_v61, %v12135_v6  ;;  %v3476_v8 = vld [vmem:[%s15993_s7 + $0x140] sm:$0xff]  ;;  %v3474_v61 = vld [vmem:[%s15993_s7 + $0x130] sm:$0xff] }
 0xd81   :  { %v12211_v12 = vpop.f32.mrf.mxu1  ;;  %10098 = vmatpush3.msra.mxu0 %v3500_v20  ;;  %v3436_v20 = vld [vmem:[%s15993_s7] sm:$0xff] }
 0xd82   :  { %10099 = vmatprep.subr.mxu0 %v3515_v18 }
 0xd83   :  { %v12220_v10 = vpop.f32.mrf.mxu1  ;;  %10100 = vmatpush3.msra.mxu0 %v3499_v35  ;;  %v3490_v35 = vmul.f32 %v3436_v20, %v12108_v52  ;;  %v3481_v52 = vld [vmem:[%s15993_s7 + $0x168] sm:$0xff]  ;;  %v3711_v20 = vld [vmem:[%s15948_s17 + $0xc0] sm:$0xff] }
 0xd84   :  { %10101 = vmatprep.subr.mxu0 %v3514_v49  ;;  %v3740_v49 = vld [vmem:[%s15948_s17 + $0x1a8] sm:$0xf] }
 0xd85   :  { %v12230_v22 = vpop.f32.mrf.mxu1  ;;  %10102 = vmatpush3.msra.mxu0 %v3498_v16  ;;  %v3739_v16 = vld [vmem:[%s15948_s17 + $0x1a0] sm:$0xf] }
 0xd86   :  { %10103 = vmatprep.subr.mxu0 %v3513_v33  ;;  %v3480_v33 = vld [vmem:[%s15993_s7 + $0x160] sm:$0xff] }
 0xd87   :  { %v12240_v25 = vpop.f32.mrf.mxu1  ;;  %10104 = vmatpush3.msra.mxu0 %v3497_v32  ;;  %v3735_v32 = vld [vmem:[%s15948_s17 + $0x180] sm:$0xff] }
 0xd88   :  { %10105 = vmatprep.subr.mxu0 %v3512_v41  ;;  %v3479_v41 = vld [vmem:[%s15993_s7 + $0x158] sm:$0xff] }
 0xd89   :  { %v12250_v29 = vpop.f32.mrf.mxu1  ;;  %10106 = vmatpush3.msra.mxu0 %v3496_v45  ;;  %v3731_v45 = vld [vmem:[%s15948_s17 + $0x160] sm:$0xff] }
 0xd8a   :  { %10107 = vmatprep.subr.mxu0 %v3511_v39  ;;  %v3478_v39 = vld [vmem:[%s15993_s7 + $0x150] sm:$0xff] }
 0xd8b   :  { %v10544_v63 = vpop.f32.mrf.mxu1  ;;  %10108 = vmatpush3.msra.mxu0 %v3495_v59  ;;  %v3727_v59 = vld [vmem:[%s15948_s17 + $0x140] sm:$0xff] }
 0xd8c   :  { %10109 = vmatprep.subr.mxu0 %v3510_v56  ;;  %v3533_v9 = vmul.f32 %v10544_v63, %v3479_v41  ;;  %v3477_v56 = vld [vmem:[%s15993_s7 + $0x148] sm:$0xff] }
 0xd8d   :  { %v12268_v5 = vpop.f32.mrf.mxu1  ;;  %10110 = vmatpush3.msra.mxu0 %v3494_v3  ;;  %v3723_v3 = vld [vmem:[%s15948_s17 + $0x120] sm:$0xff]  ;;  %v3720_v63 = vld [vmem:[%s15948_s17 + $0x108] sm:$0xff]  ;;  %v3531_v1 = vmul.f32 %v12240_v25, %v3477_v56 }
 0xd8e   :  { %10111 = vmatprep.subr.mxu0 %v3509_v4  ;;  %v3532_v2 = vmul.f32 %v3478_v39, %v12268_v5  ;;  %v3716_v5 = vld [vmem:[%s15948_s17 + $0xe8] sm:$0xff]  ;;  %v3484_v39 = vld [vmem:[%s15993_s7 + $0x180] sm:$0xff] }
 0xd8f   :  { %v10547_v60 = vpop.f32.mrf.mxu1  ;;  %10112 = vmatpush3.msra.mxu0 %v3493_v51  ;;  %v3719_v51 = vld [vmem:[%s15948_s17 + $0x100] sm:$0xff]  ;;  %v3712_v25 = vld [vmem:[%s15948_s17 + $0xc8] sm:$0xff] }
 0xd90   :  { %10113 = vmatprep.subr.mxu0 %v3508_v17  ;;  %v3535_v15 = vmul.f32 %v10547_v60, %v3481_v52  ;;  %v3715_v17 = vld [vmem:[%s15948_s17 + $0xe0] sm:$0xff]  ;;  %v8885_v56 = vld [vmem:[%s15948_s17 + $0x368] sm:$0xf] }
 0xd91   :  { %v3387_v18 = vpop.f32.mrf.mxu1  ;;  %10114 = vmatpush3.msra.mxu0 %v3492_v38  ;;  %v3530_v38 = vmul.f32 %v3476_v8, %v12250_v29  ;;  %v3529_v29 = vmul.f32 %v12220_v10, %v3475_v57  ;;  %v3704_v10 = vld [vmem:[%s15948_s17 + $0x88] sm:$0xff]  ;;  %v8868_v57 = vld [vmem:[%s15948_s17 + $0x2e0] sm:$0xff] }
 0xd92   :  { %10115 = vmatprep.subr.mxu0 %v3507_v43  ;;  %v3534_v7 = vmul.f32 %v3480_v33, %v3387_v18  ;;  %v3708_v43 = vld [vmem:[%s15948_s17 + $0xa8] sm:$0xff]  ;;  %v3707_v18 = vld [vmem:[%s15948_s17 + $0xa0] sm:$0xff] }
 0xd93   :  { %v10550_v24 = vpop.f32.mrf.mxu1  ;;  %10116 = vmatpush3.msra.mxu0 %v3491_v11  ;;  %v3473_v11 = vld [vmem:[%s15993_s7 + $0x128] sm:$0xff] }
 0xd94   :  { %v3537_v14 = vmul.f32 %v10550_v24, %v3483_v62  ;;  %10117 = vmatprep.subr.mxu0 %v3506_v23  ;;  %v3528_v62 = vmul.f32 %v3474_v61, %v12230_v22  ;;  %v3472_v23 = vld [vmem:[%s15993_s7 + $0x120] sm:$0xff]  ;;  %v3527_v22 = vmul.f32 %v12202_v58, %v3473_v11  ;;  %v3470_v58 = vld [vmem:[%s15993_s7 + $0x110] sm:$0xff]  ;;  %v3489_v33 = vld [vmem:[%s15993_s7 + $0x1a8] sm:$0xff] }
 0xd95   :  { %v3397_v6 = vpop.f32.mrf.mxu1  ;;  %10118 = vmatpush3.msra.mxu0 %v3490_v35  ;;  %v3703_v24 = vld [vmem:[%s15948_s17 + $0x80] sm:$0xff]  ;;  %v8877_v8 = vld [vmem:[%s15948_s17 + $0x328] sm:$0xff] }
 0xd96   :  { %v3536_v21 = vmul.f32 %v3482_v13, %v3397_v6  ;;  %3618 = vmatpush1.msra.mxu1 %v3537_v14  ;;  %3612 = vmatmul.mubr.f32.vlgmr.msra.gmra.mxu0 %v2930_v47  ;;  %v3700_v13 = vld [vmem:[%s15948_s17 + $0x68] sm:$0xff]  ;;  %v3471_v47 = vld [vmem:[%s15993_s7 + $0x118] sm:$0xff]  ;;  %v3699_v14 = vld [vmem:[%s15948_s17 + $0x60] sm:$0xff] }
 0xd97   :  { %3619 = vmatprep.subr.mxu1 %v10616_v0  ;;  %8826 = vmatprep.subr.msk.mxu0 %vm1467_vm10, %v3740_v49  ;;  %v12352_v4 = vpop.f32.mrf.mxu1  ;;  %v3526_v49 = vmul.f32 %v3472_v23, %v12211_v12  ;;  %v3525_v6 = vmul.f32 %v12186_v19, %v3471_v47  ;;  %v3524_v12 = vmul.f32 %v3470_v58, %v12194_v48  ;;  %v8860_v61 = vld [vmem:[%s15948_s17 + $0x2a0] sm:$0xff]  ;;  %v8849_v11 = vld [vmem:[%s15948_s17 + $0x248] sm:$0xff] }
 0xd98   :  { %3620 = vmatpush1.msra.mxu1 %v3536_v21  ;;  %8827 = vmatpush1.msk.msra.mxu0 %vm1467_vm10, %v3739_v16  ;;  %v3469_v16 = vld [vmem:[%s15993_s7 + $0x108] sm:$0xff]  ;;  %v3468_v21 = vld [vmem:[%s15993_s7 + $0x100] sm:$0xff] }
 0xd99   :  { %3621 = vmatprep.subr.mxu1 %v10616_v0  ;;  %3764 = vmatprep.subr.mxu0 %v3736_v31  ;;  %v12376_v60 = vpop.f32.mrf.mxu1  ;;  %v3523_v19 = vmul.f32 %v12170_v34, %v3469_v16  ;;  %v3487_v34 = vld [vmem:[%s15993_s7 + $0x198] sm:$0xff]  ;;  %v3696_v23 = vld [vmem:[%s15948_s17 + $0x48] sm:$0xff]  ;;  %v8832_v16 = vld [vmem:[%s15948_s17 + $0x1c0] sm:$0xff] }
 0xd9a   :  { %3622 = vmatpush1.msra.mxu1 %v3535_v15  ;;  %3765 = vmatpush1.msra.mxu0 %v3735_v32  ;;  %v3522_v32 = vmul.f32 %v3468_v21, %v12178_v40  ;;  %v3488_v15 = vld [vmem:[%s15993_s7 + $0x1a0] sm:$0xff]  ;;  %v3486_v40 = vld [vmem:[%s15993_s7 + $0x190] sm:$0xff]  ;;  %v8837_v47 = vld [vmem:[%s15948_s17 + $0x1e8] sm:$0xff] }
 0xd9b   :  { %3623 = vmatprep.subr.mxu1 %v10616_v0  ;;  %3766 = vmatprep.subr.mxu0 %v3732_v36  ;;  %v10556_v35 = vpop.f32.mrf.mxu1  ;;  %v3688_v58 = vld [vmem:[%s15948_s17 + $0x8] sm:$0xff] }
 0xd9c   :  { %3624 = vmatpush1.msra.mxu1 %v3534_v7  ;;  %3767 = vmatpush1.msra.mxu0 %v3731_v45  ;;  %v3541_v45 = vmul.f32 %v10556_v35, %v3487_v34  ;;  %v3485_v7 = vld [vmem:[%s15993_s7 + $0x188] sm:$0xff]  ;;  %v3738_v34 = vld [vmem:[%s15948_s17 + $0x198] sm:$0xff] }
 0xd9d   :  { %3625 = vmatprep.subr.mxu1 %v10616_v0  ;;  %3768 = vmatprep.subr.mxu0 %v3728_v53  ;;  %v3417_v52 = vpop.f32.mrf.mxu1  ;;  %v8841_v35 = vld [vmem:[%s15948_s17 + $0x208] sm:$0xff] }
 0xd9e   :  { %3626 = vmatpush1.msra.mxu1 %v3533_v9  ;;  %3769 = vmatpush1.msra.mxu0 %v3727_v59  ;;  %v3540_v53 = vmul.f32 %v3486_v40, %v3417_v52  ;;  %v3539_v59 = vmul.f32 %v12352_v4, %v3485_v7  ;;  %v3538_v9 = vmul.f32 %v3484_v39, %v12376_v60  ;;  %v8876_v4 = vld [vmem:[%s15948_s17 + $0x320] sm:$0xff]  ;;  %v8857_v60 = vld [vmem:[%s15948_s17 + $0x288] sm:$0xff] }
 0xd9f   :  { %3627 = vmatprep.subr.mxu1 %v10616_v0  ;;  %3770 = vmatprep.subr.mxu0 %v3724_v44  ;;  %v10559_v31 = vpop.f32.mrf.mxu1  ;;  %v2932_v44 = vld [vmem:[%s15947_s15 + $0x10] sm:$0xff]  ;;  %v8833_v52 = vld [vmem:[%s15948_s17 + $0x1c8] sm:$0xff]  ;;  %v8942_v7 = vld [vmem:[%s15948_s17 + $0x500] sm:$0xff]  ;;  %s15998_s15 = smov 115  }
 0xda0   :  { %3628 = vmatpush1.msra.mxu1 %v3532_v2  ;;  %3771 = vmatpush1.msra.mxu0 %v3723_v3  ;;  %v3543_v36 = vmul.f32 %v10559_v31, %v3489_v33  ;;  %v8884_v3 = vld [vmem:[%s15948_s17 + $0x360] sm:$0xf]  ;;  %v8881_v2 = vld [vmem:[%s15948_s17 + $0x348] sm:$0xff] }
 0xda1   :  { %3629 = vmatprep.subr.mxu1 %v10616_v0  ;;  %3772 = vmatprep.subr.mxu0 %v3720_v63  ;;  %v3427_v48 = vpop.f32.mrf.mxu1  ;;  %v8880_v63 = vld [vmem:[%s15948_s17 + $0x340] sm:$0xff]  ;;  %v8947_v21 = vld [vmem:[%s15948_s17 + $0x528] sm:$0xf] }
 0xda2   :  { %3630 = vmatpush1.msra.mxu1 %v3531_v1  ;;  %3773 = vmatpush1.msra.mxu0 %v3719_v51  ;;  %v3542_v41 = vmul.f32 %v3488_v15, %v3427_v48  ;;  %v8873_v51 = vld [vmem:[%s15948_s17 + $0x308] sm:$0xff]  ;;  %v8872_v1 = vld [vmem:[%s15948_s17 + $0x300] sm:$0xff]  ;;  %v3741_v15 = vld [vmem:[%s15948_s17 + $0x1b0] sm:$0xf] }
 0xda3   :  { %3631 = vmatprep.subr.mxu1 %v10616_v0  ;;  %3774 = vmatprep.subr.mxu0 %v3716_v5  ;;  %v8869_v5 = vld [vmem:[%s15948_s17 + $0x2e8] sm:$0xff] }
 0xda4   :  { %3632 = vmatpush1.msra.mxu1 %v3530_v38  ;;  %3775 = vmatpush1.msra.mxu0 %v3715_v17  ;;  %v8865_v17 = vld [vmem:[%s15948_s17 + $0x2c8] sm:$0xff]  ;;  %v8864_v38 = vld [vmem:[%s15948_s17 + $0x2c0] sm:$0xff] }
 0xda5   :  { %3633 = vmatprep.subr.mxu1 %v10616_v0  ;;  %3776 = vmatprep.subr.mxu0 %v3712_v25  ;;  %v8861_v25 = vld [vmem:[%s15948_s17 + $0x2a8] sm:$0xff] }
 0xda6   :  { %3634 = vmatpush1.msra.mxu1 %v3529_v29  ;;  %3777 = vmatpush1.msra.mxu0 %v3711_v20  ;;  %v8856_v20 = vld [vmem:[%s15948_s17 + $0x280] sm:$0xff]  ;;  %v8853_v29 = vld [vmem:[%s15948_s17 + $0x268] sm:$0xff] }
 0xda7   :  { %3635 = vmatprep.subr.mxu1 %v10616_v0  ;;  %3778 = vmatprep.subr.mxu0 %v3708_v43  ;;  %v8852_v43 = vld [vmem:[%s15948_s17 + $0x260] sm:$0xff]  ;;  %v8939_v39 = vld [vmem:[%s15948_s17 + $0x4e8] sm:$0xff] }
 0xda8   :  { %3636 = vmatpush1.msra.mxu1 %v3528_v62  ;;  %3779 = vmatpush1.msra.mxu0 %v3707_v18  ;;  %v8848_v18 = vld [vmem:[%s15948_s17 + $0x240] sm:$0xff]  ;;  %v8845_v62 = vld [vmem:[%s15948_s17 + $0x228] sm:$0xff] }
 0xda9   :  { %3637 = vmatprep.subr.mxu1 %v10616_v0  ;;  %3780 = vmatprep.subr.mxu0 %v3704_v10  ;;  %v8844_v10 = vld [vmem:[%s15948_s17 + $0x220] sm:$0xff] }
 0xdaa   :  { %3638 = vmatpush1.msra.mxu1 %v3527_v22  ;;  %3781 = vmatpush1.msra.mxu0 %v3703_v24  ;;  %v3695_v24 = vld [vmem:[%s15948_s17 + $0x40] sm:$0xff] }
 0xdab   :  { %3639 = vmatprep.subr.mxu1 %v10616_v0  ;;  %3782 = vmatprep.subr.mxu0 %v3700_v13  ;;  %v8840_v22 = vld [vmem:[%s15948_s17 + $0x200] sm:$0xff]  ;;  %v3692_v13 = vld [vmem:[%s15948_s17 + $0x28] sm:$0xff] }
 0xdac   :  { %3640 = vmatpush1.msra.mxu1 %v3526_v49  ;;  %3783 = vmatpush1.msra.mxu0 %v3699_v14  ;;  %v3691_v14 = vld [vmem:[%s15948_s17 + $0x20] sm:$0xff] }
 0xdad   :  { %3641 = vmatprep.subr.mxu1 %v10616_v0  ;;  %3822 = vmatprep.mubr.f32.mxu0 %v10616_v0  ;;  %v8836_v49 = vld [vmem:[%s15948_s17 + $0x1e0] sm:$0xff] }
 0xdae   :  { %3642 = vmatpush1.msra.mxu1 %v3525_v6  ;;  %3784 = vmatprep.subr.mxu0 %v3696_v23  ;;  %v3687_v6 = vld [vmem:[%s15948_s17] sm:$0xff] }
 0xdaf   :  { %3643 = vmatprep.subr.mxu1 %v10616_v0  ;;  %3785 = vmatpush1.msra.mxu0 %v3695_v24  ;;  %v8914_v23 = vld [vmem:[%s15948_s17 + $0x420] sm:$0xff]  ;;  %v8911_v24 = vld [vmem:[%s15948_s17 + $0x408] sm:$0xff] }
 0xdb0   :  { %3644 = vmatpush1.msra.mxu1 %v3524_v12  ;;  %3786 = vmatprep.subr.mxu0 %v3692_v13  ;;  %v3742_v12 = vld [vmem:[%s15948_s17 + $0x1b8] sm:$0xf]  ;;  %v8910_v13 = vld [vmem:[%s15948_s17 + $0x400] sm:$0xff] }
 0xdb1   :  { %3645 = vmatprep.subr.mxu1 %v10616_v0  ;;  %3787 = vmatpush1.msra.mxu0 %v3691_v14  ;;  %v8907_v14 = vld [vmem:[%s15948_s17 + $0x3e8] sm:$0xff] }
 0xdb2   :  { %3646 = vmatpush1.msra.mxu1 %v3523_v19  ;;  %3788 = vmatprep.subr.mxu0 %v3688_v58  ;;  %v8906_v58 = vld [vmem:[%s15948_s17 + $0x3e0] sm:$0xff] }
 0xdb3   :  { %3647 = vmatprep.subr.mxu1 %v10616_v0  ;;  %3789 = vmatpush1.msra.mxu0 %v3687_v6  ;;  %v8903_v6 = vld [vmem:[%s15948_s17 + $0x3c8] sm:$0xff] }
 0xdb4   :  { %3648 = vmatpush1.msra.mxu1 %v3522_v32  ;;  %8829 = vmatprep.subr.msk.mxu0 %vm1467_vm10, %v3742_v12  ;;  %v8902_v12 = vld [vmem:[%s15948_s17 + $0x3c0] sm:$0xff] }
 0xdb5   :  { %3669 = vmatprep.subr.mxu1 %v10616_v0 }
 0xdb6   :  { %3670 = vmatpush2.msra.mxu1 %v3543_v36  ;;  %v8946_v36 = vld [vmem:[%s15948_s17 + $0x520] sm:$0xf] }
 0xdb7   :  { %3671 = vmatprep.subr.mxu1 %v10616_v0 }
 0xdb8   :  { %3672 = vmatpush2.msra.mxu1 %v3542_v41  ;;  %v8943_v41 = vld [vmem:[%s15948_s17 + $0x508] sm:$0xff] }
 0xdb9   :  { %3673 = vmatprep.subr.mxu1 %v10616_v0 }
 0xdba   :  { %3674 = vmatpush2.msra.mxu1 %v3541_v45  ;;  %v3737_v45 = vld [vmem:[%s15948_s17 + $0x190] sm:$0xff] }
 0xdbb   :  { %3675 = vmatprep.subr.mxu1 %v10616_v0 }
 0xdbc   :  { %3676 = vmatpush2.msra.mxu1 %v3540_v53  ;;  %v3734_v53 = vld [vmem:[%s15948_s17 + $0x178] sm:$0xff] }
 0xdbd   :  { %3677 = vmatprep.subr.mxu1 %v10616_v0 }
 0xdbe   :  { %3678 = vmatpush2.msra.mxu1 %v3539_v59  ;;  %v3733_v59 = vld [vmem:[%s15948_s17 + $0x170] sm:$0xff] }
 0xdbf   :  { %3679 = vmatprep.subr.mxu1 %v10616_v0 }
 0xdc0   :  { %3680 = vmatpush2.msra.mxu1 %v3538_v9  ;;  %v8938_v9 = vld [vmem:[%s15948_s17 + $0x4e0] sm:$0xff] }
 0xdc1   :  { %3682 = vmatmul.mubr.f32.vlgmr.msra.gmra.mxu1 %v2932_v44  ;;  %8888 = vmatprep.subr.msk.mxu1 %vm1467_vm10, %v8885_v56  ;;  %v3730_v44 = vld [vmem:[%s15948_s17 + $0x158] sm:$0xff]  ;;  %v8935_v56 = vld [vmem:[%s15948_s17 + $0x4c8] sm:$0xff] }
 0xdc2   :  { %8889 = vmatpush1.msk.msra.mxu1 %vm1467_vm10, %v8884_v3  ;;  %4033 = vmatprep.mubr.f32.mxu1 %v10616_v0  ;;  %v3729_v3 = vld [vmem:[%s15948_s17 + $0x150] sm:$0xff] }
 0xdc3   :  { %3975 = vmatprep.subr.mxu1 %v8881_v2  ;;  %v8934_v2 = vld [vmem:[%s15948_s17 + $0x4c0] sm:$0xff] }
 0xdc4   :  { %3976 = vmatpush1.msra.mxu1 %v8880_v63  ;;  %v3726_v63 = vld [vmem:[%s15948_s17 + $0x138] sm:$0xff] }
 0xdc5   :  { %3977 = vmatprep.subr.mxu1 %v8877_v8  ;;  %v8931_v8 = vld [vmem:[%s15948_s17 + $0x4a8] sm:$0xff] }
 0xdc6   :  { %3978 = vmatpush1.msra.mxu1 %v8876_v4  ;;  %v3725_v4 = vld [vmem:[%s15948_s17 + $0x130] sm:$0xff] }
 0xdc7   :  { %3979 = vmatprep.subr.mxu1 %v8873_v51  ;;  %v8930_v51 = vld [vmem:[%s15948_s17 + $0x4a0] sm:$0xff] }
 0xdc8   :  { %3980 = vmatpush1.msra.mxu1 %v8872_v1  ;;  %v3722_v1 = vld [vmem:[%s15948_s17 + $0x118] sm:$0xff] }
 0xdc9   :  { %3981 = vmatprep.subr.mxu1 %v8869_v5  ;;  %v8927_v5 = vld [vmem:[%s15948_s17 + $0x488] sm:$0xff] }
 0xdca   :  { %3982 = vmatpush1.msra.mxu1 %v8868_v57  ;;  %v3721_v57 = vld [vmem:[%s15948_s17 + $0x110] sm:$0xff] }
 0xdcb   :  { %3983 = vmatprep.subr.mxu1 %v8865_v17  ;;  %v8926_v17 = vld [vmem:[%s15948_s17 + $0x480] sm:$0xff] }
 0xdcc   :  { %3984 = vmatpush1.msra.mxu1 %v8864_v38  ;;  %v3718_v38 = vld [vmem:[%s15948_s17 + $0xf8] sm:$0xff] }
 0xdcd   :  { %3985 = vmatprep.subr.mxu1 %v8861_v25  ;;  %v8923_v25 = vld [vmem:[%s15948_s17 + $0x468] sm:$0xff] }
 0xdce   :  { %3986 = vmatpush1.msra.mxu1 %v8860_v61  ;;  %v3717_v61 = vld [vmem:[%s15948_s17 + $0xf0] sm:$0xff] }
 0xdcf   :  { %3987 = vmatprep.subr.mxu1 %v8857_v60  ;;  %v8922_v60 = vld [vmem:[%s15948_s17 + $0x460] sm:$0xff] }
 0xdd0   :  { %3988 = vmatpush1.msra.mxu1 %v8856_v20  ;;  %v3714_v20 = vld [vmem:[%s15948_s17 + $0xd8] sm:$0xff] }
 0xdd1   :  { %3989 = vmatprep.subr.mxu1 %v8853_v29  ;;  %v8919_v29 = vld [vmem:[%s15948_s17 + $0x448] sm:$0xff] }
 0xdd2   :  { %3990 = vmatpush1.msra.mxu1 %v8852_v43  ;;  %v3713_v43 = vld [vmem:[%s15948_s17 + $0xd0] sm:$0xff] }
 0xdd3   :  { %3991 = vmatprep.subr.mxu1 %v8849_v11  ;;  %v8918_v11 = vld [vmem:[%s15948_s17 + $0x440] sm:$0xff] }
 0xdd4   :  { %3992 = vmatpush1.msra.mxu1 %v8848_v18  ;;  %v3710_v18 = vld [vmem:[%s15948_s17 + $0xb8] sm:$0xff] }
 0xdd5   :  { %3993 = vmatprep.subr.mxu1 %v8845_v62  ;;  %v8915_v62 = vld [vmem:[%s15948_s17 + $0x428] sm:$0xff] }
 0xdd6   :  { %3994 = vmatpush1.msra.mxu1 %v8844_v10  ;;  %v3709_v10 = vld [vmem:[%s15948_s17 + $0xb0] sm:$0xff] }
 0xdd7   :  { %3995 = vmatprep.subr.mxu1 %v8841_v35  ;;  %v3706_v35 = vld [vmem:[%s15948_s17 + $0x98] sm:$0xff] }
 0xdd8   :  { %3996 = vmatpush1.msra.mxu1 %v8840_v22  ;;  %v3705_v22 = vld [vmem:[%s15948_s17 + $0x90] sm:$0xff] }
 0xdd9   :  { %3997 = vmatprep.subr.mxu1 %v8837_v47  ;;  %v3702_v47 = vld [vmem:[%s15948_s17 + $0x78] sm:$0xff] }
 0xdda   :  { %3998 = vmatpush1.msra.mxu1 %v8836_v49  ;;  %v3701_v49 = vld [vmem:[%s15948_s17 + $0x70] sm:$0xff] }
 0xddb   :  { %3999 = vmatprep.subr.mxu1 %v8833_v52  ;;  %v3698_v52 = vld [vmem:[%s15948_s17 + $0x58] sm:$0xff] }
 0xddc   :  { %4000 = vmatpush1.msra.mxu1 %v8832_v16  ;;  %v3697_v16 = vld [vmem:[%s15948_s17 + $0x50] sm:$0xff] }
 0xddd   :  { %8950 = vmatprep.subr.msk.mxu1 %vm1467_vm10, %v8947_v21  ;;  %v3694_v21 = vld [vmem:[%s15948_s17 + $0x38] sm:$0xff] }
 0xe56   :  { %v10119_v31 = vpop.f32.mrf.mxu0 }
 0xe58   :  { %v10120_v19 = vpop.f32.mrf.mxu0 }
 0xe59   :  { %v10121_v33 = vadd.f32 %v10120_v19, %v10119_v31  ;;  %v8899_v31 = vld [vmem:[%s15948_s17 + $0x3a8] sm:$0xff]  ;;  %v3693_v19 = vld [vmem:[%s15948_s17 + $0x30] sm:$0xff] }
 0xe81   :  { %v3683_v32 = vpop.f32.mrf.mxu1 }
 0xe82   :  { %v12577_v48 = vadd.f32 %v10121_v33, %v3683_v32  ;;  %v8898_v33 = vld [vmem:[%s15948_s17 + $0x3a0] sm:$0xff]  ;;  %v3690_v32 = vld [vmem:[%s15948_s17 + $0x18] sm:$0xff] }
 0xe83   :  { %v3685_v40 = vpop.f32.mrf.mxu1 }
 0xe84   :  { %8828 = vmatmul.mubr.msk.f32.vlgmr.msra.gmra.mxu0 %vm166_vm3, %v12577_v48  ;;  %8890 = vmatmul.mubr.msk.f32.vlgmr.msra.gmra.mxu1 %vm166_vm3, %v12577_v48  ;;  %v9009_v40 = vld [vmem:[%s15948_s17 + $0x6e8] sm:$0xf] }
 0xe85   :  { %8830 = vmatpush1.msk.msra.mxu0 %vm1467_vm10, %v3741_v15  ;;  %8951 = vmatpush1.msk.msra.mxu1 %vm1467_vm10, %v8946_v36  ;;  %v8895_v15 = vld [vmem:[%s15948_s17 + $0x388] sm:$0xff]  ;;  %v3689_v36 = vld [vmem:[%s15948_s17 + $0x10] sm:$0xff] }
 0xe86   :  { %3835 = vmatprep.subr.mxu0 %v3738_v34  ;;  %4186 = vmatprep.subr.mxu1 %v8943_v41  ;;  %v8894_v34 = vld [vmem:[%s15948_s17 + $0x380] sm:$0xff]  ;;  %v8887_v41 = vld [vmem:[%s15948_s17 + $0x378] sm:$0xf] }
 0xe87   :  { %3836 = vmatpush1.msra.mxu0 %v3737_v45  ;;  %4187 = vmatpush1.msra.mxu1 %v8942_v7  ;;  %v8886_v45 = vld [vmem:[%s15948_s17 + $0x370] sm:$0xf]  ;;  %v9008_v7 = vld [vmem:[%s15948_s17 + $0x6e0] sm:$0xf] }
 0xe88   :  { %3837 = vmatprep.subr.mxu0 %v3734_v53  ;;  %4188 = vmatprep.subr.mxu1 %v8939_v39  ;;  %v8883_v53 = vld [vmem:[%s15948_s17 + $0x358] sm:$0xff]  ;;  %v9005_v39 = vld [vmem:[%s15948_s17 + $0x6c8] sm:$0xff] }
 0xe89   :  { %3838 = vmatpush1.msra.mxu0 %v3733_v59  ;;  %4189 = vmatpush1.msra.mxu1 %v8938_v9  ;;  %v8882_v59 = vld [vmem:[%s15948_s17 + $0x350] sm:$0xff]  ;;  %v9004_v9 = vld [vmem:[%s15948_s17 + $0x6c0] sm:$0xff] }
 0xe8a   :  { %3839 = vmatprep.subr.mxu0 %v3730_v44  ;;  %4190 = vmatprep.subr.mxu1 %v8935_v56  ;;  %v8879_v44 = vld [vmem:[%s15948_s17 + $0x338] sm:$0xff]  ;;  %v9001_v56 = vld [vmem:[%s15948_s17 + $0x6a8] sm:$0xff] }
 0xe8b   :  { %3840 = vmatpush1.msra.mxu0 %v3729_v3  ;;  %4191 = vmatpush1.msra.mxu1 %v8934_v2  ;;  %v8878_v3 = vld [vmem:[%s15948_s17 + $0x330] sm:$0xff]  ;;  %v9000_v2 = vld [vmem:[%s15948_s17 + $0x6a0] sm:$0xff] }
 0xe8c   :  { %3841 = vmatprep.subr.mxu0 %v3726_v63  ;;  %4192 = vmatprep.subr.mxu1 %v8931_v8  ;;  %v8875_v63 = vld [vmem:[%s15948_s17 + $0x318] sm:$0xff]  ;;  %v8997_v8 = vld [vmem:[%s15948_s17 + $0x688] sm:$0xff] }
 0xe8d   :  { %3842 = vmatpush1.msra.mxu0 %v3725_v4  ;;  %4193 = vmatpush1.msra.mxu1 %v8930_v51  ;;  %v8874_v4 = vld [vmem:[%s15948_s17 + $0x310] sm:$0xff]  ;;  %v8996_v51 = vld [vmem:[%s15948_s17 + $0x680] sm:$0xff] }
 0xe8e   :  { %3843 = vmatprep.subr.mxu0 %v3722_v1  ;;  %4194 = vmatprep.subr.mxu1 %v8927_v5  ;;  %v8871_v1 = vld [vmem:[%s15948_s17 + $0x2f8] sm:$0xff]  ;;  %v8993_v5 = vld [vmem:[%s15948_s17 + $0x668] sm:$0xff] }
 0xe8f   :  { %3844 = vmatpush1.msra.mxu0 %v3721_v57  ;;  %4195 = vmatpush1.msra.mxu1 %v8926_v17  ;;  %v8870_v57 = vld [vmem:[%s15948_s17 + $0x2f0] sm:$0xff]  ;;  %v8992_v17 = vld [vmem:[%s15948_s17 + $0x660] sm:$0xff] }
 0xe90   :  { %3845 = vmatprep.subr.mxu0 %v3718_v38  ;;  %4196 = vmatprep.subr.mxu1 %v8923_v25  ;;  %v8867_v38 = vld [vmem:[%s15948_s17 + $0x2d8] sm:$0xff]  ;;  %v8989_v25 = vld [vmem:[%s15948_s17 + $0x648] sm:$0xff] }
 0xe91   :  { %3846 = vmatpush1.msra.mxu0 %v3717_v61  ;;  %4197 = vmatpush1.msra.mxu1 %v8922_v60  ;;  %v8866_v61 = vld [vmem:[%s15948_s17 + $0x2d0] sm:$0xff]  ;;  %v8988_v60 = vld [vmem:[%s15948_s17 + $0x640] sm:$0xff] }
 0xe92   :  { %3847 = vmatprep.subr.mxu0 %v3714_v20  ;;  %4198 = vmatprep.subr.mxu1 %v8919_v29  ;;  %v8863_v20 = vld [vmem:[%s15948_s17 + $0x2b8] sm:$0xff]  ;;  %v8985_v29 = vld [vmem:[%s15948_s17 + $0x628] sm:$0xff] }
 0xe93   :  { %3848 = vmatpush1.msra.mxu0 %v3713_v43  ;;  %4199 = vmatpush1.msra.mxu1 %v8918_v11  ;;  %v8862_v43 = vld [vmem:[%s15948_s17 + $0x2b0] sm:$0xff]  ;;  %v8984_v11 = vld [vmem:[%s15948_s17 + $0x620] sm:$0xff] }
 0xe94   :  { %3849 = vmatprep.subr.mxu0 %v3710_v18  ;;  %4200 = vmatprep.subr.mxu1 %v8915_v62  ;;  %v8859_v18 = vld [vmem:[%s15948_s17 + $0x298] sm:$0xff]  ;;  %v8981_v62 = vld [vmem:[%s15948_s17 + $0x608] sm:$0xff] }
 0xe95   :  { %3850 = vmatpush1.msra.mxu0 %v3709_v10  ;;  %4201 = vmatpush1.msra.mxu1 %v8914_v23  ;;  %v8858_v10 = vld [vmem:[%s15948_s17 + $0x290] sm:$0xff]  ;;  %v8980_v23 = vld [vmem:[%s15948_s17 + $0x600] sm:$0xff] }
 0xe96   :  { %3851 = vmatprep.subr.mxu0 %v3706_v35  ;;  %4202 = vmatprep.subr.mxu1 %v8911_v24  ;;  %v8855_v35 = vld [vmem:[%s15948_s17 + $0x278] sm:$0xff]  ;;  %v8977_v24 = vld [vmem:[%s15948_s17 + $0x5e8] sm:$0xff] }
 0xe97   :  { %3852 = vmatpush1.msra.mxu0 %v3705_v22  ;;  %4203 = vmatpush1.msra.mxu1 %v8910_v13  ;;  %v8854_v22 = vld [vmem:[%s15948_s17 + $0x270] sm:$0xff]  ;;  %v8976_v13 = vld [vmem:[%s15948_s17 + $0x5e0] sm:$0xff] }
 0xe98   :  { %3853 = vmatprep.subr.mxu0 %v3702_v47  ;;  %4204 = vmatprep.subr.mxu1 %v8907_v14  ;;  %v8851_v47 = vld [vmem:[%s15948_s17 + $0x258] sm:$0xff]  ;;  %v8973_v14 = vld [vmem:[%s15948_s17 + $0x5c8] sm:$0xff] }
 0xe99   :  { %3854 = vmatpush1.msra.mxu0 %v3701_v49  ;;  %4205 = vmatpush1.msra.mxu1 %v8906_v58  ;;  %v8850_v49 = vld [vmem:[%s15948_s17 + $0x250] sm:$0xff]  ;;  %v8972_v58 = vld [vmem:[%s15948_s17 + $0x5c0] sm:$0xff] }
 0xe9a   :  { %3855 = vmatprep.subr.mxu0 %v3698_v52  ;;  %4206 = vmatprep.subr.mxu1 %v8903_v6  ;;  %v8847_v52 = vld [vmem:[%s15948_s17 + $0x238] sm:$0xff]  ;;  %v8969_v6 = vld [vmem:[%s15948_s17 + $0x5a8] sm:$0xff] }
 0xe9b   :  { %3856 = vmatpush1.msra.mxu0 %v3697_v16  ;;  %4207 = vmatpush1.msra.mxu1 %v8902_v12  ;;  %v8846_v16 = vld [vmem:[%s15948_s17 + $0x230] sm:$0xff]  ;;  %v8968_v12 = vld [vmem:[%s15948_s17 + $0x5a0] sm:$0xff] }
 0xe9c   :  { %3857 = vmatprep.subr.mxu0 %v3694_v21  ;;  %4208 = vmatprep.subr.mxu1 %v8899_v31  ;;  %v8843_v21 = vld [vmem:[%s15948_s17 + $0x218] sm:$0xff]  ;;  %v8965_v31 = vld [vmem:[%s15948_s17 + $0x588] sm:$0xff] }
 0xe9d   :  { %3858 = vmatpush1.msra.mxu0 %v3693_v19  ;;  %4209 = vmatpush1.msra.mxu1 %v8898_v33  ;;  %v8842_v19 = vld [vmem:[%s15948_s17 + $0x210] sm:$0xff]  ;;  %v8964_v33 = vld [vmem:[%s15948_s17 + $0x580] sm:$0xff] }
 0xe9e   :  { %3859 = vmatprep.subr.mxu0 %v3690_v32  ;;  %4210 = vmatprep.subr.mxu1 %v8895_v15  ;;  %v8839_v32 = vld [vmem:[%s15948_s17 + $0x1f8] sm:$0xff]  ;;  %v8961_v15 = vld [vmem:[%s15948_s17 + $0x568] sm:$0xff] }
 0xe9f   :  { %3860 = vmatpush1.msra.mxu0 %v3689_v36  ;;  %4211 = vmatpush1.msra.mxu1 %v8894_v34  ;;  %v8838_v36 = vld [vmem:[%s15948_s17 + $0x1f0] sm:$0xff]  ;;  %v8960_v34 = vld [vmem:[%s15948_s17 + $0x560] sm:$0xff] }
 0xea0   :  { %3893 = vmatprep.mubr.f32.mxu0 %v10616_v0  ;;  %8891 = vmatprep.subr.msk.mxu0 %vm1467_vm10, %v8887_v41  ;;  %v8835_v41 = vld [vmem:[%s15948_s17 + $0x1d8] sm:$0xff] }
 0xea1   :  { %4244 = vmatprep.mubr.f32.mxu1 %v10616_v0  ;;  %9012 = vmatprep.subr.msk.mxu1 %vm1467_vm10, %v9009_v40  ;;  %v8957_v40 = vld [vmem:[%s15948_s17 + $0x548] sm:$0xff] }
 0xea2   :  { %8831 = vmatmul.mubr.msk.f32.vlgmr.msra.gmra.mxu0 %vm166_vm3, %v12577_v48  ;;  %8952 = vmatmul.mubr.msk.f32.vlgmr.msra.gmra.mxu1 %vm166_vm3, %v12577_v48 }
 0xea3   :  { %8892 = vmatpush1.msk.msra.mxu0 %vm1467_vm10, %v8886_v45  ;;  %9013 = vmatpush1.msk.msra.mxu1 %vm1467_vm10, %v9008_v7  ;;  %v8834_v45 = vld [vmem:[%s15948_s17 + $0x1d0] sm:$0xff]  ;;  %v8956_v7 = vld [vmem:[%s15948_s17 + $0x540] sm:$0xff] }
 0xea4   :  { %4046 = vmatprep.subr.mxu0 %v8883_v53  ;;  %4397 = vmatprep.subr.mxu1 %v9005_v39  ;;  %v8949_v53 = vld [vmem:[%s15948_s17 + $0x538] sm:$0xf]  ;;  %v9071_v39 = vld [vmem:[%s15948_s17 + $0x8a8] sm:$0xf] }
 0xea5   :  { %4047 = vmatpush1.msra.mxu0 %v8882_v59  ;;  %4398 = vmatpush1.msra.mxu1 %v9004_v9  ;;  %v8948_v59 = vld [vmem:[%s15948_s17 + $0x530] sm:$0xf]  ;;  %v9070_v9 = vld [vmem:[%s15948_s17 + $0x8a0] sm:$0xf] }
 0xea6   :  { %4048 = vmatprep.subr.mxu0 %v8879_v44  ;;  %4399 = vmatprep.subr.mxu1 %v9001_v56  ;;  %v8945_v44 = vld [vmem:[%s15948_s17 + $0x518] sm:$0xff]  ;;  %v9067_v56 = vld [vmem:[%s15948_s17 + $0x888] sm:$0xff] }
 0xea7   :  { %4049 = vmatpush1.msra.mxu0 %v8878_v3  ;;  %4400 = vmatpush1.msra.mxu1 %v9000_v2  ;;  %v8944_v3 = vld [vmem:[%s15948_s17 + $0x510] sm:$0xff]  ;;  %v9066_v2 = vld [vmem:[%s15948_s17 + $0x880] sm:$0xff] }
 0xea8   :  { %4050 = vmatprep.subr.mxu0 %v8875_v63  ;;  %4401 = vmatprep.subr.mxu1 %v8997_v8  ;;  %v8941_v63 = vld [vmem:[%s15948_s17 + $0x4f8] sm:$0xff]  ;;  %v9063_v8 = vld [vmem:[%s15948_s17 + $0x868] sm:$0xff] }
 0xea9   :  { %4051 = vmatpush1.msra.mxu0 %v8874_v4  ;;  %4402 = vmatpush1.msra.mxu1 %v8996_v51  ;;  %v8940_v4 = vld [vmem:[%s15948_s17 + $0x4f0] sm:$0xff]  ;;  %v9062_v51 = vld [vmem:[%s15948_s17 + $0x860] sm:$0xff] }
 0xeaa   :  { %4052 = vmatprep.subr.mxu0 %v8871_v1  ;;  %4403 = vmatprep.subr.mxu1 %v8993_v5  ;;  %v8937_v1 = vld [vmem:[%s15948_s17 + $0x4d8] sm:$0xff]  ;;  %v9059_v5 = vld [vmem:[%s15948_s17 + $0x848] sm:$0xff] }
 0xeab   :  { %4053 = vmatpush1.msra.mxu0 %v8870_v57  ;;  %4404 = vmatpush1.msra.mxu1 %v8992_v17  ;;  %v8936_v57 = vld [vmem:[%s15948_s17 + $0x4d0] sm:$0xff]  ;;  %v9058_v17 = vld [vmem:[%s15948_s17 + $0x840] sm:$0xff] }
 0xeac   :  { %4054 = vmatprep.subr.mxu0 %v8867_v38  ;;  %4405 = vmatprep.subr.mxu1 %v8989_v25  ;;  %v8933_v38 = vld [vmem:[%s15948_s17 + $0x4b8] sm:$0xff]  ;;  %v9055_v25 = vld [vmem:[%s15948_s17 + $0x828] sm:$0xff] }
 0xead   :  { %4055 = vmatpush1.msra.mxu0 %v8866_v61  ;;  %4406 = vmatpush1.msra.mxu1 %v8988_v60  ;;  %v8932_v61 = vld [vmem:[%s15948_s17 + $0x4b0] sm:$0xff]  ;;  %v9054_v60 = vld [vmem:[%s15948_s17 + $0x820] sm:$0xff] }
 0xeae   :  { %4056 = vmatprep.subr.mxu0 %v8863_v20  ;;  %4407 = vmatprep.subr.mxu1 %v8985_v29  ;;  %v8929_v20 = vld [vmem:[%s15948_s17 + $0x498] sm:$0xff]  ;;  %v9051_v29 = vld [vmem:[%s15948_s17 + $0x808] sm:$0xff] }
 0xeaf   :  { %4057 = vmatpush1.msra.mxu0 %v8862_v43  ;;  %4408 = vmatpush1.msra.mxu1 %v8984_v11  ;;  %v8928_v43 = vld [vmem:[%s15948_s17 + $0x490] sm:$0xff]  ;;  %v9050_v11 = vld [vmem:[%s15948_s17 + $0x800] sm:$0xff] }
 0xeb0   :  { %4058 = vmatprep.subr.mxu0 %v8859_v18  ;;  %4409 = vmatprep.subr.mxu1 %v8981_v62  ;;  %v8925_v18 = vld [vmem:[%s15948_s17 + $0x478] sm:$0xff]  ;;  %v9047_v62 = vld [vmem:[%s15948_s17 + $0x7e8] sm:$0xff] }
 0xeb1   :  { %4059 = vmatpush1.msra.mxu0 %v8858_v10  ;;  %4410 = vmatpush1.msra.mxu1 %v8980_v23  ;;  %v8924_v10 = vld [vmem:[%s15948_s17 + $0x470] sm:$0xff]  ;;  %v9046_v23 = vld [vmem:[%s15948_s17 + $0x7e0] sm:$0xff] }
 0xeb2   :  { %4060 = vmatprep.subr.mxu0 %v8855_v35  ;;  %4411 = vmatprep.subr.mxu1 %v8977_v24  ;;  %v8921_v35 = vld [vmem:[%s15948_s17 + $0x458] sm:$0xff]  ;;  %v9043_v24 = vld [vmem:[%s15948_s17 + $0x7c8] sm:$0xff] }
 0xeb3   :  { %4061 = vmatpush1.msra.mxu0 %v8854_v22  ;;  %4412 = vmatpush1.msra.mxu1 %v8976_v13  ;;  %v8920_v22 = vld [vmem:[%s15948_s17 + $0x450] sm:$0xff]  ;;  %v9042_v13 = vld [vmem:[%s15948_s17 + $0x7c0] sm:$0xff] }
 0xeb4   :  { %4062 = vmatprep.subr.mxu0 %v8851_v47  ;;  %4413 = vmatprep.subr.mxu1 %v8973_v14  ;;  %v8917_v47 = vld [vmem:[%s15948_s17 + $0x438] sm:$0xff]  ;;  %v9039_v14 = vld [vmem:[%s15948_s17 + $0x7a8] sm:$0xff] }
 0xeb5   :  { %4063 = vmatpush1.msra.mxu0 %v8850_v49  ;;  %4414 = vmatpush1.msra.mxu1 %v8972_v58  ;;  %v8916_v49 = vld [vmem:[%s15948_s17 + $0x430] sm:$0xff]  ;;  %v9038_v58 = vld [vmem:[%s15948_s17 + $0x7a0] sm:$0xff] }
 0xeb6   :  { %4064 = vmatprep.subr.mxu0 %v8847_v52  ;;  %4415 = vmatprep.subr.mxu1 %v8969_v6  ;;  %v8913_v52 = vld [vmem:[%s15948_s17 + $0x418] sm:$0xff]  ;;  %v9035_v6 = vld [vmem:[%s15948_s17 + $0x788] sm:$0xff] }
 0xeb7   :  { %4065 = vmatpush1.msra.mxu0 %v8846_v16  ;;  %4416 = vmatpush1.msra.mxu1 %v8968_v12  ;;  %v8912_v16 = vld [vmem:[%s15948_s17 + $0x410] sm:$0xff]  ;;  %v9034_v12 = vld [vmem:[%s15948_s17 + $0x780] sm:$0xff] }
 0xeb8   :  { %4066 = vmatprep.subr.mxu0 %v8843_v21  ;;  %4417 = vmatprep.subr.mxu1 %v8965_v31  ;;  %v8909_v21 = vld [vmem:[%s15948_s17 + $0x3f8] sm:$0xff]  ;;  %v9031_v31 = vld [vmem:[%s15948_s17 + $0x768] sm:$0xff] }
 0xeb9   :  { %4067 = vmatpush1.msra.mxu0 %v8842_v19  ;;  %4418 = vmatpush1.msra.mxu1 %v8964_v33  ;;  %v8908_v19 = vld [vmem:[%s15948_s17 + $0x3f0] sm:$0xff]  ;;  %v9030_v33 = vld [vmem:[%s15948_s17 + $0x760] sm:$0xff] }
 0xeba   :  { %4068 = vmatprep.subr.mxu0 %v8839_v32  ;;  %4419 = vmatprep.subr.mxu1 %v8961_v15  ;;  %v8905_v32 = vld [vmem:[%s15948_s17 + $0x3d8] sm:$0xff]  ;;  %v9027_v15 = vld [vmem:[%s15948_s17 + $0x748] sm:$0xff] }
 0xebb   :  { %4069 = vmatpush1.msra.mxu0 %v8838_v36  ;;  %4420 = vmatpush1.msra.mxu1 %v8960_v34  ;;  %v8904_v36 = vld [vmem:[%s15948_s17 + $0x3d0] sm:$0xff]  ;;  %v9026_v34 = vld [vmem:[%s15948_s17 + $0x740] sm:$0xff] }
 0xebc   :  { %4070 = vmatprep.subr.mxu0 %v8835_v41  ;;  %4421 = vmatprep.subr.mxu1 %v8957_v40  ;;  %v8901_v41 = vld [vmem:[%s15948_s17 + $0x3b8] sm:$0xff]  ;;  %v9023_v40 = vld [vmem:[%s15948_s17 + $0x728] sm:$0xff] }
 0xebd   :  { %4071 = vmatpush1.msra.mxu0 %v8834_v45  ;;  %4422 = vmatpush1.msra.mxu1 %v8956_v7  ;;  %v8900_v45 = vld [vmem:[%s15948_s17 + $0x3b0] sm:$0xff]  ;;  %v9022_v7 = vld [vmem:[%s15948_s17 + $0x720] sm:$0xff] }
 0xebe   :  { %4104 = vmatprep.mubr.f32.mxu0 %v10616_v0  ;;  %8953 = vmatprep.subr.msk.mxu0 %vm1467_vm10, %v8949_v53  ;;  %v8897_v53 = vld [vmem:[%s15948_s17 + $0x398] sm:$0xff] }
 0xebf   :  { %4455 = vmatprep.mubr.f32.mxu1 %v10616_v0  ;;  %9074 = vmatprep.subr.msk.mxu1 %vm1467_vm10, %v9071_v39  ;;  %v9019_v39 = vld [vmem:[%s15948_s17 + $0x708] sm:$0xff] }
 0xec0   :  { %8893 = vmatmul.mubr.msk.f32.vlgmr.msra.gmra.mxu0 %vm166_vm3, %v12577_v48  ;;  %9014 = vmatmul.mubr.msk.f32.vlgmr.msra.gmra.mxu1 %vm166_vm3, %v12577_v48 }
 0xec1   :  { %8954 = vmatpush1.msk.msra.mxu0 %vm1467_vm10, %v8948_v59  ;;  %9075 = vmatpush1.msk.msra.mxu1 %vm1467_vm10, %v9070_v9  ;;  %v8896_v59 = vld [vmem:[%s15948_s17 + $0x390] sm:$0xff]  ;;  %v9018_v9 = vld [vmem:[%s15948_s17 + $0x700] sm:$0xff] }
 0xec2   :  { %4257 = vmatprep.subr.mxu0 %v8945_v44  ;;  %4608 = vmatprep.subr.mxu1 %v9067_v56  ;;  %v9011_v44 = vld [vmem:[%s15948_s17 + $0x6f8] sm:$0xf]  ;;  %v9133_v56 = vld [vmem:[%s15948_s17 + $0xa68] sm:$0xf] }
 0xec3   :  { %4258 = vmatpush1.msra.mxu0 %v8944_v3  ;;  %4609 = vmatpush1.msra.mxu1 %v9066_v2  ;;  %v9010_v3 = vld [vmem:[%s15948_s17 + $0x6f0] sm:$0xf]  ;;  %v9132_v2 = vld [vmem:[%s15948_s17 + $0xa60] sm:$0xf] }
 0xec4   :  { %4259 = vmatprep.subr.mxu0 %v8941_v63  ;;  %4610 = vmatprep.subr.mxu1 %v9063_v8  ;;  %v9007_v63 = vld [vmem:[%s15948_s17 + $0x6d8] sm:$0xff]  ;;  %v9129_v8 = vld [vmem:[%s15948_s17 + $0xa48] sm:$0xff] }
 0xec5   :  { %4260 = vmatpush1.msra.mxu0 %v8940_v4  ;;  %4611 = vmatpush1.msra.mxu1 %v9062_v51  ;;  %v9006_v4 = vld [vmem:[%s15948_s17 + $0x6d0] sm:$0xff]  ;;  %v9128_v51 = vld [vmem:[%s15948_s17 + $0xa40] sm:$0xff] }
 0xec6   :  { %4261 = vmatprep.subr.mxu0 %v8937_v1  ;;  %4612 = vmatprep.subr.mxu1 %v9059_v5  ;;  %v9003_v1 = vld [vmem:[%s15948_s17 + $0x6b8] sm:$0xff]  ;;  %v9125_v5 = vld [vmem:[%s15948_s17 + $0xa28] sm:$0xff] }
 0xec7   :  { %4262 = vmatpush1.msra.mxu0 %v8936_v57  ;;  %4613 = vmatpush1.msra.mxu1 %v9058_v17  ;;  %v9002_v57 = vld [vmem:[%s15948_s17 + $0x6b0] sm:$0xff]  ;;  %v9124_v17 = vld [vmem:[%s15948_s17 + $0xa20] sm:$0xff] }
 0xec8   :  { %4263 = vmatprep.subr.mxu0 %v8933_v38  ;;  %4614 = vmatprep.subr.mxu1 %v9055_v25  ;;  %v8999_v38 = vld [vmem:[%s15948_s17 + $0x698] sm:$0xff]  ;;  %v9121_v25 = vld [vmem:[%s15948_s17 + $0xa08] sm:$0xff] }
 0xec9   :  { %4264 = vmatpush1.msra.mxu0 %v8932_v61  ;;  %4615 = vmatpush1.msra.mxu1 %v9054_v60  ;;  %v8998_v61 = vld [vmem:[%s15948_s17 + $0x690] sm:$0xff]  ;;  %v9120_v60 = vld [vmem:[%s15948_s17 + $0xa00] sm:$0xff] }
 0xeca   :  { %4265 = vmatprep.subr.mxu0 %v8929_v20  ;;  %4616 = vmatprep.subr.mxu1 %v9051_v29  ;;  %v8995_v20 = vld [vmem:[%s15948_s17 + $0x678] sm:$0xff]  ;;  %v9117_v29 = vld [vmem:[%s15948_s17 + $0x9e8] sm:$0xff] }
 0xecb   :  { %4266 = vmatpush1.msra.mxu0 %v8928_v43  ;;  %4617 = vmatpush1.msra.mxu1 %v9050_v11  ;;  %v8994_v43 = vld [vmem:[%s15948_s17 + $0x670] sm:$0xff]  ;;  %v9116_v11 = vld [vmem:[%s15948_s17 + $0x9e0] sm:$0xff] }
 0xecc   :  { %4267 = vmatprep.subr.mxu0 %v8925_v18  ;;  %4618 = vmatprep.subr.mxu1 %v9047_v62  ;;  %v8991_v18 = vld [vmem:[%s15948_s17 + $0x658] sm:$0xff]  ;;  %v9113_v62 = vld [vmem:[%s15948_s17 + $0x9c8] sm:$0xff] }
 0xecd   :  { %4268 = vmatpush1.msra.mxu0 %v8924_v10  ;;  %4619 = vmatpush1.msra.mxu1 %v9046_v23  ;;  %v8990_v10 = vld [vmem:[%s15948_s17 + $0x650] sm:$0xff]  ;;  %v9112_v23 = vld [vmem:[%s15948_s17 + $0x9c0] sm:$0xff] }
 0xece   :  { %4269 = vmatprep.subr.mxu0 %v8921_v35  ;;  %4620 = vmatprep.subr.mxu1 %v9043_v24  ;;  %v8987_v35 = vld [vmem:[%s15948_s17 + $0x638] sm:$0xff]  ;;  %v9109_v24 = vld [vmem:[%s15948_s17 + $0x9a8] sm:$0xff] }
 0xecf   :  { %4270 = vmatpush1.msra.mxu0 %v8920_v22  ;;  %4621 = vmatpush1.msra.mxu1 %v9042_v13  ;;  %v8986_v22 = vld [vmem:[%s15948_s17 + $0x630] sm:$0xff]  ;;  %v9108_v13 = vld [vmem:[%s15948_s17 + $0x9a0] sm:$0xff] }
 0xed0   :  { %4271 = vmatprep.subr.mxu0 %v8917_v47  ;;  %4622 = vmatprep.subr.mxu1 %v9039_v14  ;;  %v8983_v47 = vld [vmem:[%s15948_s17 + $0x618] sm:$0xff]  ;;  %v9105_v14 = vld [vmem:[%s15948_s17 + $0x988] sm:$0xff] }
 0xed1   :  { %4272 = vmatpush1.msra.mxu0 %v8916_v49  ;;  %4623 = vmatpush1.msra.mxu1 %v9038_v58  ;;  %v8982_v49 = vld [vmem:[%s15948_s17 + $0x610] sm:$0xff]  ;;  %v9104_v58 = vld [vmem:[%s15948_s17 + $0x980] sm:$0xff] }
 0xed2   :  { %4273 = vmatprep.subr.mxu0 %v8913_v52  ;;  %4624 = vmatprep.subr.mxu1 %v9035_v6  ;;  %v8979_v52 = vld [vmem:[%s15948_s17 + $0x5f8] sm:$0xff]  ;;  %v9101_v6 = vld [vmem:[%s15948_s17 + $0x968] sm:$0xff] }
 0xed3   :  { %4274 = vmatpush1.msra.mxu0 %v8912_v16  ;;  %4625 = vmatpush1.msra.mxu1 %v9034_v12  ;;  %v8978_v16 = vld [vmem:[%s15948_s17 + $0x5f0] sm:$0xff]  ;;  %v9100_v12 = vld [vmem:[%s15948_s17 + $0x960] sm:$0xff] }
 0xed4   :  { %4275 = vmatprep.subr.mxu0 %v8909_v21  ;;  %4626 = vmatprep.subr.mxu1 %v9031_v31  ;;  %v8975_v21 = vld [vmem:[%s15948_s17 + $0x5d8] sm:$0xff]  ;;  %v9097_v31 = vld [vmem:[%s15948_s17 + $0x948] sm:$0xff] }
 0xed5   :  { %4276 = vmatpush1.msra.mxu0 %v8908_v19  ;;  %4627 = vmatpush1.msra.mxu1 %v9030_v33  ;;  %v8974_v19 = vld [vmem:[%s15948_s17 + $0x5d0] sm:$0xff]  ;;  %v9096_v33 = vld [vmem:[%s15948_s17 + $0x940] sm:$0xff] }
 0xed6   :  { %4277 = vmatprep.subr.mxu0 %v8905_v32  ;;  %4628 = vmatprep.subr.mxu1 %v9027_v15  ;;  %v8971_v32 = vld [vmem:[%s15948_s17 + $0x5b8] sm:$0xff]  ;;  %v9093_v15 = vld [vmem:[%s15948_s17 + $0x928] sm:$0xff] }
 0xed7   :  { %4278 = vmatpush1.msra.mxu0 %v8904_v36  ;;  %4629 = vmatpush1.msra.mxu1 %v9026_v34  ;;  %v8970_v36 = vld [vmem:[%s15948_s17 + $0x5b0] sm:$0xff]  ;;  %v9092_v34 = vld [vmem:[%s15948_s17 + $0x920] sm:$0xff] }
 0xed8   :  { %4279 = vmatprep.subr.mxu0 %v8901_v41  ;;  %4630 = vmatprep.subr.mxu1 %v9023_v40  ;;  %v8967_v41 = vld [vmem:[%s15948_s17 + $0x598] sm:$0xff]  ;;  %v9089_v40 = vld [vmem:[%s15948_s17 + $0x908] sm:$0xff] }
 0xed9   :  { %4280 = vmatpush1.msra.mxu0 %v8900_v45  ;;  %4631 = vmatpush1.msra.mxu1 %v9022_v7  ;;  %v8966_v45 = vld [vmem:[%s15948_s17 + $0x590] sm:$0xff]  ;;  %v9088_v7 = vld [vmem:[%s15948_s17 + $0x900] sm:$0xff] }
 0xeda   :  { %4281 = vmatprep.subr.mxu0 %v8897_v53  ;;  %4632 = vmatprep.subr.mxu1 %v9019_v39  ;;  %v8963_v53 = vld [vmem:[%s15948_s17 + $0x578] sm:$0xff]  ;;  %v9085_v39 = vld [vmem:[%s15948_s17 + $0x8e8] sm:$0xff] }
 0xedb   :  { %4282 = vmatpush1.msra.mxu0 %v8896_v59  ;;  %4315 = vmatprep.mubr.f32.mxu0 %v10616_v0  ;;  %v8962_v59 = vld [vmem:[%s15948_s17 + $0x570] sm:$0xff] }
 0xedc   :  { %4633 = vmatpush1.msra.mxu1 %v9018_v9  ;;  %4666 = vmatprep.mubr.f32.mxu1 %v10616_v0  ;;  %v9084_v9 = vld [vmem:[%s15948_s17 + $0x8e0] sm:$0xff] }
 0xedd   :  { %8955 = vmatmul.mubr.msk.f32.vlgmr.msra.gmra.mxu0 %vm166_vm3, %v12577_v48  ;;  %9015 = vmatprep.subr.msk.mxu0 %vm1467_vm10, %v9011_v44  ;;  %v8959_v44 = vld [vmem:[%s15948_s17 + $0x558] sm:$0xff] }
 0xede   :  { %9076 = vmatmul.mubr.msk.f32.vlgmr.msra.gmra.mxu1 %vm166_vm3, %v12577_v48  ;;  %9136 = vmatprep.subr.msk.mxu1 %vm1467_vm10, %v9133_v56  ;;  %v9081_v56 = vld [vmem:[%s15948_s17 + $0x8c8] sm:$0xff] }
 0xedf   :  { %9016 = vmatpush1.msk.msra.mxu0 %vm1467_vm10, %v9010_v3  ;;  %9137 = vmatpush1.msk.msra.mxu1 %vm1467_vm10, %v9132_v2  ;;  %v8958_v3 = vld [vmem:[%s15948_s17 + $0x550] sm:$0xff]  ;;  %v9080_v2 = vld [vmem:[%s15948_s17 + $0x8c0] sm:$0xff] }
 0xee0   :  { %4468 = vmatprep.subr.mxu0 %v9007_v63  ;;  %4819 = vmatprep.subr.mxu1 %v9129_v8  ;;  %v9073_v63 = vld [vmem:[%s15948_s17 + $0x8b8] sm:$0xf]  ;;  %v9195_v8 = vld [vmem:[%s15948_s17 + $0xc28] sm:$0xf] }
 0xee1   :  { %4469 = vmatpush1.msra.mxu0 %v9006_v4  ;;  %4820 = vmatpush1.msra.mxu1 %v9128_v51  ;;  %v9072_v4 = vld [vmem:[%s15948_s17 + $0x8b0] sm:$0xf]  ;;  %v9194_v51 = vld [vmem:[%s15948_s17 + $0xc20] sm:$0xf] }
 0xee2   :  { %4470 = vmatprep.subr.mxu0 %v9003_v1  ;;  %4821 = vmatprep.subr.mxu1 %v9125_v5  ;;  %v9069_v1 = vld [vmem:[%s15948_s17 + $0x898] sm:$0xff]  ;;  %v9191_v5 = vld [vmem:[%s15948_s17 + $0xc08] sm:$0xff] }
 0xee3   :  { %4471 = vmatpush1.msra.mxu0 %v9002_v57  ;;  %4822 = vmatpush1.msra.mxu1 %v9124_v17  ;;  %v9068_v57 = vld [vmem:[%s15948_s17 + $0x890] sm:$0xff]  ;;  %v9190_v17 = vld [vmem:[%s15948_s17 + $0xc00] sm:$0xff] }
 0xee4   :  { %4472 = vmatprep.subr.mxu0 %v8999_v38  ;;  %4823 = vmatprep.subr.mxu1 %v9121_v25  ;;  %v9065_v38 = vld [vmem:[%s15948_s17 + $0x878] sm:$0xff]  ;;  %v9187_v25 = vld [vmem:[%s15948_s17 + $0xbe8] sm:$0xff] }
 0xee5   :  { %4473 = vmatpush1.msra.mxu0 %v8998_v61  ;;  %4824 = vmatpush1.msra.mxu1 %v9120_v60  ;;  %v9064_v61 = vld [vmem:[%s15948_s17 + $0x870] sm:$0xff]  ;;  %v9186_v60 = vld [vmem:[%s15948_s17 + $0xbe0] sm:$0xff] }
 0xee6   :  { %4474 = vmatprep.subr.mxu0 %v8995_v20  ;;  %4825 = vmatprep.subr.mxu1 %v9117_v29  ;;  %v9061_v20 = vld [vmem:[%s15948_s17 + $0x858] sm:$0xff]  ;;  %v9183_v29 = vld [vmem:[%s15948_s17 + $0xbc8] sm:$0xff] }
 0xee7   :  { %4475 = vmatpush1.msra.mxu0 %v8994_v43  ;;  %4826 = vmatpush1.msra.mxu1 %v9116_v11  ;;  %v9060_v43 = vld [vmem:[%s15948_s17 + $0x850] sm:$0xff]  ;;  %v9182_v11 = vld [vmem:[%s15948_s17 + $0xbc0] sm:$0xff] }
 0xee8   :  { %4476 = vmatprep.subr.mxu0 %v8991_v18  ;;  %4827 = vmatprep.subr.mxu1 %v9113_v62  ;;  %v9057_v18 = vld [vmem:[%s15948_s17 + $0x838] sm:$0xff]  ;;  %v9179_v62 = vld [vmem:[%s15948_s17 + $0xba8] sm:$0xff] }
 0xee9   :  { %4477 = vmatpush1.msra.mxu0 %v8990_v10  ;;  %4828 = vmatpush1.msra.mxu1 %v9112_v23  ;;  %v9056_v10 = vld [vmem:[%s15948_s17 + $0x830] sm:$0xff]  ;;  %v9178_v23 = vld [vmem:[%s15948_s17 + $0xba0] sm:$0xff] }
 0xeea   :  { %4478 = vmatprep.subr.mxu0 %v8987_v35  ;;  %4829 = vmatprep.subr.mxu1 %v9109_v24  ;;  %v9053_v35 = vld [vmem:[%s15948_s17 + $0x818] sm:$0xff]  ;;  %v9175_v24 = vld [vmem:[%s15948_s17 + $0xb88] sm:$0xff] }
 0xeeb   :  { %4479 = vmatpush1.msra.mxu0 %v8986_v22  ;;  %4830 = vmatpush1.msra.mxu1 %v9108_v13  ;;  %v9052_v22 = vld [vmem:[%s15948_s17 + $0x810] sm:$0xff]  ;;  %v9174_v13 = vld [vmem:[%s15948_s17 + $0xb80] sm:$0xff] }
 0xeec   :  { %4480 = vmatprep.subr.mxu0 %v8983_v47  ;;  %4831 = vmatprep.subr.mxu1 %v9105_v14  ;;  %v9049_v47 = vld [vmem:[%s15948_s17 + $0x7f8] sm:$0xff]  ;;  %v9171_v14 = vld [vmem:[%s15948_s17 + $0xb68] sm:$0xff] }
 0xeed   :  { %4481 = vmatpush1.msra.mxu0 %v8982_v49  ;;  %4832 = vmatpush1.msra.mxu1 %v9104_v58  ;;  %v9048_v49 = vld [vmem:[%s15948_s17 + $0x7f0] sm:$0xff]  ;;  %v9170_v58 = vld [vmem:[%s15948_s17 + $0xb60] sm:$0xff] }
 0xeee   :  { %4482 = vmatprep.subr.mxu0 %v8979_v52  ;;  %4833 = vmatprep.subr.mxu1 %v9101_v6  ;;  %v9045_v52 = vld [vmem:[%s15948_s17 + $0x7d8] sm:$0xff]  ;;  %v9167_v6 = vld [vmem:[%s15948_s17 + $0xb48] sm:$0xff] }
 0xeef   :  { %4483 = vmatpush1.msra.mxu0 %v8978_v16  ;;  %4834 = vmatpush1.msra.mxu1 %v9100_v12  ;;  %v9044_v16 = vld [vmem:[%s15948_s17 + $0x7d0] sm:$0xff]  ;;  %v9166_v12 = vld [vmem:[%s15948_s17 + $0xb40] sm:$0xff] }
 0xef0   :  { %4484 = vmatprep.subr.mxu0 %v8975_v21  ;;  %4835 = vmatprep.subr.mxu1 %v9097_v31  ;;  %v9041_v21 = vld [vmem:[%s15948_s17 + $0x7b8] sm:$0xff]  ;;  %v9163_v31 = vld [vmem:[%s15948_s17 + $0xb28] sm:$0xff] }
 0xef1   :  { %4485 = vmatpush1.msra.mxu0 %v8974_v19  ;;  %4836 = vmatpush1.msra.mxu1 %v9096_v33  ;;  %v9040_v19 = vld [vmem:[%s15948_s17 + $0x7b0] sm:$0xff]  ;;  %v9162_v33 = vld [vmem:[%s15948_s17 + $0xb20] sm:$0xff] }
 0xef2   :  { %4486 = vmatprep.subr.mxu0 %v8971_v32  ;;  %4837 = vmatprep.subr.mxu1 %v9093_v15  ;;  %v9037_v32 = vld [vmem:[%s15948_s17 + $0x798] sm:$0xff]  ;;  %v9159_v15 = vld [vmem:[%s15948_s17 + $0xb08] sm:$0xff] }
 0xef3   :  { %4487 = vmatpush1.msra.mxu0 %v8970_v36  ;;  %4838 = vmatpush1.msra.mxu1 %v9092_v34  ;;  %v9036_v36 = vld [vmem:[%s15948_s17 + $0x790] sm:$0xff]  ;;  %v9158_v34 = vld [vmem:[%s15948_s17 + $0xb00] sm:$0xff] }
 0xef4   :  { %4488 = vmatprep.subr.mxu0 %v8967_v41  ;;  %4839 = vmatprep.subr.mxu1 %v9089_v40  ;;  %v9033_v41 = vld [vmem:[%s15948_s17 + $0x778] sm:$0xff]  ;;  %v9155_v40 = vld [vmem:[%s15948_s17 + $0xae8] sm:$0xff] }
 0xef5   :  { %4489 = vmatpush1.msra.mxu0 %v8966_v45  ;;  %4840 = vmatpush1.msra.mxu1 %v9088_v7  ;;  %v9032_v45 = vld [vmem:[%s15948_s17 + $0x770] sm:$0xff]  ;;  %v9154_v7 = vld [vmem:[%s15948_s17 + $0xae0] sm:$0xff] }
 0xef6   :  { %4490 = vmatprep.subr.mxu0 %v8963_v53  ;;  %4841 = vmatprep.subr.mxu1 %v9085_v39  ;;  %v9029_v53 = vld [vmem:[%s15948_s17 + $0x758] sm:$0xff]  ;;  %v9151_v39 = vld [vmem:[%s15948_s17 + $0xac8] sm:$0xff] }
 0xef7   :  { %4491 = vmatpush1.msra.mxu0 %v8962_v59  ;;  %4842 = vmatpush1.msra.mxu1 %v9084_v9  ;;  %v9028_v59 = vld [vmem:[%s15948_s17 + $0x750] sm:$0xff]  ;;  %v9150_v9 = vld [vmem:[%s15948_s17 + $0xac0] sm:$0xff] }
 0xef8   :  { %4492 = vmatprep.subr.mxu0 %v8959_v44  ;;  %4843 = vmatprep.subr.mxu1 %v9081_v56  ;;  %v9025_v44 = vld [vmem:[%s15948_s17 + $0x738] sm:$0xff]  ;;  %v9147_v56 = vld [vmem:[%s15948_s17 + $0xaa8] sm:$0xff] }
 0xef9   :  { %4493 = vmatpush1.msra.mxu0 %v8958_v3  ;;  %4526 = vmatprep.mubr.f32.mxu0 %v10616_v0  ;;  %v9024_v3 = vld [vmem:[%s15948_s17 + $0x730] sm:$0xff] }
 0xefa   :  { %4844 = vmatpush1.msra.mxu1 %v9080_v2  ;;  %4877 = vmatprep.mubr.f32.mxu1 %v10616_v0  ;;  %v9146_v2 = vld [vmem:[%s15948_s17 + $0xaa0] sm:$0xff] }
 0xefb   :  { %9017 = vmatmul.mubr.msk.f32.vlgmr.msra.gmra.mxu0 %vm166_vm3, %v12577_v48  ;;  %9077 = vmatprep.subr.msk.mxu0 %vm1467_vm10, %v9073_v63  ;;  %v9021_v63 = vld [vmem:[%s15948_s17 + $0x718] sm:$0xff] }
 0xefc   :  { %9138 = vmatmul.mubr.msk.f32.vlgmr.msra.gmra.mxu1 %vm166_vm3, %v12577_v48  ;;  %9198 = vmatprep.subr.msk.mxu1 %vm1467_vm10, %v9195_v8  ;;  %v9143_v8 = vld [vmem:[%s15948_s17 + $0xa88] sm:$0xff] }
 0xefd   :  { %9078 = vmatpush1.msk.msra.mxu0 %vm1467_vm10, %v9072_v4  ;;  %9199 = vmatpush1.msk.msra.mxu1 %vm1467_vm10, %v9194_v51  ;;  %v9020_v4 = vld [vmem:[%s15948_s17 + $0x710] sm:$0xff]  ;;  %v9142_v51 = vld [vmem:[%s15948_s17 + $0xa80] sm:$0xff] }
 0xefe   :  { %4679 = vmatprep.subr.mxu0 %v9069_v1  ;;  %5030 = vmatprep.subr.mxu1 %v9191_v5  ;;  %v9135_v1 = vld [vmem:[%s15948_s17 + $0xa78] sm:$0xf]  ;;  %v9257_v5 = vld [vmem:[%s15948_s17 + $0xde8] sm:$0xf] }
 0xeff   :  { %4680 = vmatpush1.msra.mxu0 %v9068_v57  ;;  %5031 = vmatpush1.msra.mxu1 %v9190_v17  ;;  %v9134_v57 = vld [vmem:[%s15948_s17 + $0xa70] sm:$0xf]  ;;  %v9256_v17 = vld [vmem:[%s15948_s17 + $0xde0] sm:$0xf] }
 0xf00   :  { %4681 = vmatprep.subr.mxu0 %v9065_v38  ;;  %5032 = vmatprep.subr.mxu1 %v9187_v25  ;;  %v9131_v38 = vld [vmem:[%s15948_s17 + $0xa58] sm:$0xff]  ;;  %v9253_v25 = vld [vmem:[%s15948_s17 + $0xdc8] sm:$0xff] }
 0xf01   :  { %4682 = vmatpush1.msra.mxu0 %v9064_v61  ;;  %5033 = vmatpush1.msra.mxu1 %v9186_v60  ;;  %v9130_v61 = vld [vmem:[%s15948_s17 + $0xa50] sm:$0xff]  ;;  %v9252_v60 = vld [vmem:[%s15948_s17 + $0xdc0] sm:$0xff] }
 0xf02   :  { %4683 = vmatprep.subr.mxu0 %v9061_v20  ;;  %5034 = vmatprep.subr.mxu1 %v9183_v29  ;;  %v9127_v20 = vld [vmem:[%s15948_s17 + $0xa38] sm:$0xff]  ;;  %v9249_v29 = vld [vmem:[%s15948_s17 + $0xda8] sm:$0xff] }
 0xf03   :  { %4684 = vmatpush1.msra.mxu0 %v9060_v43  ;;  %5035 = vmatpush1.msra.mxu1 %v9182_v11  ;;  %v9126_v43 = vld [vmem:[%s15948_s17 + $0xa30] sm:$0xff]  ;;  %v9248_v11 = vld [vmem:[%s15948_s17 + $0xda0] sm:$0xff] }
 0xf04   :  { %4685 = vmatprep.subr.mxu0 %v9057_v18  ;;  %5036 = vmatprep.subr.mxu1 %v9179_v62  ;;  %v9123_v18 = vld [vmem:[%s15948_s17 + $0xa18] sm:$0xff]  ;;  %v9245_v62 = vld [vmem:[%s15948_s17 + $0xd88] sm:$0xff] }
 0xf05   :  { %4686 = vmatpush1.msra.mxu0 %v9056_v10  ;;  %5037 = vmatpush1.msra.mxu1 %v9178_v23  ;;  %v9122_v10 = vld [vmem:[%s15948_s17 + $0xa10] sm:$0xff]  ;;  %v9244_v23 = vld [vmem:[%s15948_s17 + $0xd80] sm:$0xff] }
 0xf06   :  { %4687 = vmatprep.subr.mxu0 %v9053_v35  ;;  %5038 = vmatprep.subr.mxu1 %v9175_v24  ;;  %v9119_v35 = vld [vmem:[%s15948_s17 + $0x9f8] sm:$0xff]  ;;  %v9241_v24 = vld [vmem:[%s15948_s17 + $0xd68] sm:$0xff] }
 0xf07   :  { %4688 = vmatpush1.msra.mxu0 %v9052_v22  ;;  %5039 = vmatpush1.msra.mxu1 %v9174_v13  ;;  %v9118_v22 = vld [vmem:[%s15948_s17 + $0x9f0] sm:$0xff]  ;;  %v9240_v13 = vld [vmem:[%s15948_s17 + $0xd60] sm:$0xff] }
 0xf08   :  { %4689 = vmatprep.subr.mxu0 %v9049_v47  ;;  %5040 = vmatprep.subr.mxu1 %v9171_v14  ;;  %v9115_v47 = vld [vmem:[%s15948_s17 + $0x9d8] sm:$0xff]  ;;  %v9237_v14 = vld [vmem:[%s15948_s17 + $0xd48] sm:$0xff] }
 0xf09   :  { %4690 = vmatpush1.msra.mxu0 %v9048_v49  ;;  %5041 = vmatpush1.msra.mxu1 %v9170_v58  ;;  %v9114_v49 = vld [vmem:[%s15948_s17 + $0x9d0] sm:$0xff]  ;;  %v9236_v58 = vld [vmem:[%s15948_s17 + $0xd40] sm:$0xff] }
 0xf0a   :  { %4691 = vmatprep.subr.mxu0 %v9045_v52  ;;  %5042 = vmatprep.subr.mxu1 %v9167_v6  ;;  %v9111_v52 = vld [vmem:[%s15948_s17 + $0x9b8] sm:$0xff]  ;;  %v9233_v6 = vld [vmem:[%s15948_s17 + $0xd28] sm:$0xff] }
 0xf0b   :  { %4692 = vmatpush1.msra.mxu0 %v9044_v16  ;;  %5043 = vmatpush1.msra.mxu1 %v9166_v12  ;;  %v9110_v16 = vld [vmem:[%s15948_s17 + $0x9b0] sm:$0xff]  ;;  %v9232_v12 = vld [vmem:[%s15948_s17 + $0xd20] sm:$0xff] }
 0xf0c   :  { %4693 = vmatprep.subr.mxu0 %v9041_v21  ;;  %5044 = vmatprep.subr.mxu1 %v9163_v31  ;;  %v9107_v21 = vld [vmem:[%s15948_s17 + $0x998] sm:$0xff]  ;;  %v9229_v31 = vld [vmem:[%s15948_s17 + $0xd08] sm:$0xff] }
 0xf0d   :  { %4694 = vmatpush1.msra.mxu0 %v9040_v19  ;;  %5045 = vmatpush1.msra.mxu1 %v9162_v33  ;;  %v9106_v19 = vld [vmem:[%s15948_s17 + $0x990] sm:$0xff]  ;;  %v9228_v33 = vld [vmem:[%s15948_s17 + $0xd00] sm:$0xff] }
 0xf0e   :  { %4695 = vmatprep.subr.mxu0 %v9037_v32  ;;  %5046 = vmatprep.subr.mxu1 %v9159_v15  ;;  %v9103_v32 = vld [vmem:[%s15948_s17 + $0x978] sm:$0xff]  ;;  %v9225_v15 = vld [vmem:[%s15948_s17 + $0xce8] sm:$0xff] }
 0xf0f   :  { %4696 = vmatpush1.msra.mxu0 %v9036_v36  ;;  %5047 = vmatpush1.msra.mxu1 %v9158_v34  ;;  %v9102_v36 = vld [vmem:[%s15948_s17 + $0x970] sm:$0xff]  ;;  %v9224_v34 = vld [vmem:[%s15948_s17 + $0xce0] sm:$0xff] }
 0xf10   :  { %4697 = vmatprep.subr.mxu0 %v9033_v41  ;;  %5048 = vmatprep.subr.mxu1 %v9155_v40  ;;  %v9099_v41 = vld [vmem:[%s15948_s17 + $0x958] sm:$0xff]  ;;  %v9221_v40 = vld [vmem:[%s15948_s17 + $0xcc8] sm:$0xff] }
 0xf11   :  { %4698 = vmatpush1.msra.mxu0 %v9032_v45  ;;  %5049 = vmatpush1.msra.mxu1 %v9154_v7  ;;  %v9098_v45 = vld [vmem:[%s15948_s17 + $0x950] sm:$0xff]  ;;  %v9220_v7 = vld [vmem:[%s15948_s17 + $0xcc0] sm:$0xff] }
 0xf12   :  { %4699 = vmatprep.subr.mxu0 %v9029_v53  ;;  %5050 = vmatprep.subr.mxu1 %v9151_v39  ;;  %v9095_v53 = vld [vmem:[%s15948_s17 + $0x938] sm:$0xff]  ;;  %v9217_v39 = vld [vmem:[%s15948_s17 + $0xca8] sm:$0xff] }
 0xf13   :  { %4700 = vmatpush1.msra.mxu0 %v9028_v59  ;;  %5051 = vmatpush1.msra.mxu1 %v9150_v9  ;;  %v9094_v59 = vld [vmem:[%s15948_s17 + $0x930] sm:$0xff]  ;;  %v9216_v9 = vld [vmem:[%s15948_s17 + $0xca0] sm:$0xff] }
 0xf14   :  { %4701 = vmatprep.subr.mxu0 %v9025_v44  ;;  %5052 = vmatprep.subr.mxu1 %v9147_v56  ;;  %v9091_v44 = vld [vmem:[%s15948_s17 + $0x918] sm:$0xff]  ;;  %v9213_v56 = vld [vmem:[%s15948_s17 + $0xc88] sm:$0xff] }
 0xf15   :  { %4702 = vmatpush1.msra.mxu0 %v9024_v3  ;;  %5053 = vmatpush1.msra.mxu1 %v9146_v2  ;;  %v9090_v3 = vld [vmem:[%s15948_s17 + $0x910] sm:$0xff]  ;;  %v9212_v2 = vld [vmem:[%s15948_s17 + $0xc80] sm:$0xff] }
 0xf16   :  { %4703 = vmatprep.subr.mxu0 %v9021_v63  ;;  %5054 = vmatprep.subr.mxu1 %v9143_v8  ;;  %v9087_v63 = vld [vmem:[%s15948_s17 + $0x8f8] sm:$0xff]  ;;  %v9209_v8 = vld [vmem:[%s15948_s17 + $0xc68] sm:$0xff] }
 0xf17   :  { %4704 = vmatpush1.msra.mxu0 %v9020_v4  ;;  %4737 = vmatprep.mubr.f32.mxu0 %v10616_v0  ;;  %v9086_v4 = vld [vmem:[%s15948_s17 + $0x8f0] sm:$0xff] }
 0xf18   :  { %5055 = vmatpush1.msra.mxu1 %v9142_v51  ;;  %5088 = vmatprep.mubr.f32.mxu1 %v10616_v0  ;;  %v9208_v51 = vld [vmem:[%s15948_s17 + $0xc60] sm:$0xff] }
 0xf19   :  { %9079 = vmatmul.mubr.msk.f32.vlgmr.msra.gmra.mxu0 %vm166_vm3, %v12577_v48  ;;  %9139 = vmatprep.subr.msk.mxu0 %vm1467_vm10, %v9135_v1  ;;  %v9083_v1 = vld [vmem:[%s15948_s17 + $0x8d8] sm:$0xff] }
 0xf1a   :  { %9200 = vmatmul.mubr.msk.f32.vlgmr.msra.gmra.mxu1 %vm166_vm3, %v12577_v48  ;;  %9260 = vmatprep.subr.msk.mxu1 %vm1467_vm10, %v9257_v5  ;;  %v9205_v5 = vld [vmem:[%s15948_s17 + $0xc48] sm:$0xff] }
 0xf1b   :  { %9140 = vmatpush1.msk.msra.mxu0 %vm1467_vm10, %v9134_v57  ;;  %9261 = vmatpush1.msk.msra.mxu1 %vm1467_vm10, %v9256_v17  ;;  %v9082_v57 = vld [vmem:[%s15948_s17 + $0x8d0] sm:$0xff]  ;;  %v9204_v17 = vld [vmem:[%s15948_s17 + $0xc40] sm:$0xff] }
 0xf1c   :  { %4890 = vmatprep.subr.mxu0 %v9131_v38  ;;  %5241 = vmatprep.subr.mxu1 %v9253_v25  ;;  %v9197_v38 = vld [vmem:[%s15948_s17 + $0xc38] sm:$0xf]  ;;  %v9319_v25 = vld [vmem:[%s15948_s17 + $0xfa8] sm:$0xf] }
 0xf1d   :  { %4891 = vmatpush1.msra.mxu0 %v9130_v61  ;;  %5242 = vmatpush1.msra.mxu1 %v9252_v60  ;;  %v9196_v61 = vld [vmem:[%s15948_s17 + $0xc30] sm:$0xf]  ;;  %v9318_v60 = vld [vmem:[%s15948_s17 + $0xfa0] sm:$0xf] }
 0xf1e   :  { %4892 = vmatprep.subr.mxu0 %v9127_v20  ;;  %5243 = vmatprep.subr.mxu1 %v9249_v29  ;;  %v9193_v20 = vld [vmem:[%s15948_s17 + $0xc18] sm:$0xff]  ;;  %v9315_v29 = vld [vmem:[%s15948_s17 + $0xf88] sm:$0xff] }
 0xf1f   :  { %4893 = vmatpush1.msra.mxu0 %v9126_v43  ;;  %5244 = vmatpush1.msra.mxu1 %v9248_v11  ;;  %v9192_v43 = vld [vmem:[%s15948_s17 + $0xc10] sm:$0xff]  ;;  %v9314_v11 = vld [vmem:[%s15948_s17 + $0xf80] sm:$0xff] }
 0xf20   :  { %4894 = vmatprep.subr.mxu0 %v9123_v18  ;;  %5245 = vmatprep.subr.mxu1 %v9245_v62  ;;  %v9189_v18 = vld [vmem:[%s15948_s17 + $0xbf8] sm:$0xff]  ;;  %v9311_v62 = vld [vmem:[%s15948_s17 + $0xf68] sm:$0xff] }
 0xf21   :  { %4895 = vmatpush1.msra.mxu0 %v9122_v10  ;;  %5246 = vmatpush1.msra.mxu1 %v9244_v23  ;;  %v9188_v10 = vld [vmem:[%s15948_s17 + $0xbf0] sm:$0xff]  ;;  %v9310_v23 = vld [vmem:[%s15948_s17 + $0xf60] sm:$0xff] }
 0xf22   :  { %4896 = vmatprep.subr.mxu0 %v9119_v35  ;;  %5247 = vmatprep.subr.mxu1 %v9241_v24  ;;  %v9185_v35 = vld [vmem:[%s15948_s17 + $0xbd8] sm:$0xff]  ;;  %v9307_v24 = vld [vmem:[%s15948_s17 + $0xf48] sm:$0xff] }
 0xf23   :  { %4897 = vmatpush1.msra.mxu0 %v9118_v22  ;;  %5248 = vmatpush1.msra.mxu1 %v9240_v13  ;;  %v9184_v22 = vld [vmem:[%s15948_s17 + $0xbd0] sm:$0xff]  ;;  %v9306_v13 = vld [vmem:[%s15948_s17 + $0xf40] sm:$0xff] }
 0xf24   :  { %4898 = vmatprep.subr.mxu0 %v9115_v47  ;;  %5249 = vmatprep.subr.mxu1 %v9237_v14  ;;  %v9181_v47 = vld [vmem:[%s15948_s17 + $0xbb8] sm:$0xff]  ;;  %v9303_v14 = vld [vmem:[%s15948_s17 + $0xf28] sm:$0xff] }
 0xf25   :  { %4899 = vmatpush1.msra.mxu0 %v9114_v49  ;;  %5250 = vmatpush1.msra.mxu1 %v9236_v58  ;;  %v9180_v49 = vld [vmem:[%s15948_s17 + $0xbb0] sm:$0xff]  ;;  %v9302_v58 = vld [vmem:[%s15948_s17 + $0xf20] sm:$0xff] }
 0xf26   :  { %4900 = vmatprep.subr.mxu0 %v9111_v52  ;;  %5251 = vmatprep.subr.mxu1 %v9233_v6  ;;  %v9177_v52 = vld [vmem:[%s15948_s17 + $0xb98] sm:$0xff]  ;;  %v9299_v6 = vld [vmem:[%s15948_s17 + $0xf08] sm:$0xff] }
 0xf27   :  { %4901 = vmatpush1.msra.mxu0 %v9110_v16  ;;  %5252 = vmatpush1.msra.mxu1 %v9232_v12  ;;  %v9176_v16 = vld [vmem:[%s15948_s17 + $0xb90] sm:$0xff]  ;;  %v9298_v12 = vld [vmem:[%s15948_s17 + $0xf00] sm:$0xff] }
 0xf28   :  { %4902 = vmatprep.subr.mxu0 %v9107_v21  ;;  %5253 = vmatprep.subr.mxu1 %v9229_v31  ;;  %v9173_v21 = vld [vmem:[%s15948_s17 + $0xb78] sm:$0xff]  ;;  %v9295_v31 = vld [vmem:[%s15948_s17 + $0xee8] sm:$0xff] }
 0xf29   :  { %4903 = vmatpush1.msra.mxu0 %v9106_v19  ;;  %5254 = vmatpush1.msra.mxu1 %v9228_v33  ;;  %v9172_v19 = vld [vmem:[%s15948_s17 + $0xb70] sm:$0xff]  ;;  %v9294_v33 = vld [vmem:[%s15948_s17 + $0xee0] sm:$0xff] }
 0xf2a   :  { %4904 = vmatprep.subr.mxu0 %v9103_v32  ;;  %5255 = vmatprep.subr.mxu1 %v9225_v15  ;;  %v9169_v32 = vld [vmem:[%s15948_s17 + $0xb58] sm:$0xff]  ;;  %v9291_v15 = vld [vmem:[%s15948_s17 + $0xec8] sm:$0xff] }
 0xf2b   :  { %4905 = vmatpush1.msra.mxu0 %v9102_v36  ;;  %5256 = vmatpush1.msra.mxu1 %v9224_v34  ;;  %v9168_v36 = vld [vmem:[%s15948_s17 + $0xb50] sm:$0xff]  ;;  %v9290_v34 = vld [vmem:[%s15948_s17 + $0xec0] sm:$0xff] }
 0xf2c   :  { %4906 = vmatprep.subr.mxu0 %v9099_v41  ;;  %5257 = vmatprep.subr.mxu1 %v9221_v40  ;;  %v9165_v41 = vld [vmem:[%s15948_s17 + $0xb38] sm:$0xff]  ;;  %v9287_v40 = vld [vmem:[%s15948_s17 + $0xea8] sm:$0xff] }
 0xf2d   :  { %4907 = vmatpush1.msra.mxu0 %v9098_v45  ;;  %5258 = vmatpush1.msra.mxu1 %v9220_v7  ;;  %v9164_v45 = vld [vmem:[%s15948_s17 + $0xb30] sm:$0xff]  ;;  %v9286_v7 = vld [vmem:[%s15948_s17 + $0xea0] sm:$0xff] }
 0xf2e   :  { %4908 = vmatprep.subr.mxu0 %v9095_v53  ;;  %5259 = vmatprep.subr.mxu1 %v9217_v39  ;;  %v9161_v53 = vld [vmem:[%s15948_s17 + $0xb18] sm:$0xff]  ;;  %v9283_v39 = vld [vmem:[%s15948_s17 + $0xe88] sm:$0xff] }
 0xf2f   :  { %4909 = vmatpush1.msra.mxu0 %v9094_v59  ;;  %5260 = vmatpush1.msra.mxu1 %v9216_v9  ;;  %v9160_v59 = vld [vmem:[%s15948_s17 + $0xb10] sm:$0xff]  ;;  %v9282_v9 = vld [vmem:[%s15948_s17 + $0xe80] sm:$0xff] }
 0xf30   :  { %4910 = vmatprep.subr.mxu0 %v9091_v44  ;;  %5261 = vmatprep.subr.mxu1 %v9213_v56  ;;  %v9157_v44 = vld [vmem:[%s15948_s17 + $0xaf8] sm:$0xff]  ;;  %v9279_v56 = vld [vmem:[%s15948_s17 + $0xe68] sm:$0xff] }
 0xf31   :  { %4911 = vmatpush1.msra.mxu0 %v9090_v3  ;;  %5262 = vmatpush1.msra.mxu1 %v9212_v2  ;;  %v9156_v3 = vld [vmem:[%s15948_s17 + $0xaf0] sm:$0xff]  ;;  %v9278_v2 = vld [vmem:[%s15948_s17 + $0xe60] sm:$0xff] }
 0xf32   :  { %4912 = vmatprep.subr.mxu0 %v9087_v63  ;;  %5263 = vmatprep.subr.mxu1 %v9209_v8  ;;  %v9153_v63 = vld [vmem:[%s15948_s17 + $0xad8] sm:$0xff]  ;;  %v9275_v8 = vld [vmem:[%s15948_s17 + $0xe48] sm:$0xff] }
 0xf33   :  { %4913 = vmatpush1.msra.mxu0 %v9086_v4  ;;  %5264 = vmatpush1.msra.mxu1 %v9208_v51  ;;  %v9152_v4 = vld [vmem:[%s15948_s17 + $0xad0] sm:$0xff]  ;;  %v9274_v51 = vld [vmem:[%s15948_s17 + $0xe40] sm:$0xff] }
 0xf34   :  { %4914 = vmatprep.subr.mxu0 %v9083_v1  ;;  %5265 = vmatprep.subr.mxu1 %v9205_v5  ;;  %v9149_v1 = vld [vmem:[%s15948_s17 + $0xab8] sm:$0xff]  ;;  %v9271_v5 = vld [vmem:[%s15948_s17 + $0xe28] sm:$0xff] }
 0xf35   :  { %4915 = vmatpush1.msra.mxu0 %v9082_v57  ;;  %4948 = vmatprep.mubr.f32.mxu0 %v10616_v0  ;;  %v9148_v57 = vld [vmem:[%s15948_s17 + $0xab0] sm:$0xff] }
 0xf36   :  { %5266 = vmatpush1.msra.mxu1 %v9204_v17  ;;  %5299 = vmatprep.mubr.f32.mxu1 %v10616_v0  ;;  %v9270_v17 = vld [vmem:[%s15948_s17 + $0xe20] sm:$0xff] }
 0xf37   :  { %9141 = vmatmul.mubr.msk.f32.vlgmr.msra.gmra.mxu0 %vm166_vm3, %v12577_v48  ;;  %9201 = vmatprep.subr.msk.mxu0 %vm1467_vm10, %v9197_v38  ;;  %v9145_v38 = vld [vmem:[%s15948_s17 + $0xa98] sm:$0xff] }
 0xf38   :  { %9262 = vmatmul.mubr.msk.f32.vlgmr.msra.gmra.mxu1 %vm166_vm3, %v12577_v48  ;;  %9322 = vmatprep.subr.msk.mxu1 %vm1467_vm10, %v9319_v25  ;;  %v9267_v25 = vld [vmem:[%s15948_s17 + $0xe08] sm:$0xff] }
 0xf39   :  { %9202 = vmatpush1.msk.msra.mxu0 %vm1467_vm10, %v9196_v61  ;;  %9323 = vmatpush1.msk.msra.mxu1 %vm1467_vm10, %v9318_v60  ;;  %v9144_v61 = vld [vmem:[%s15948_s17 + $0xa90] sm:$0xff]  ;;  %v9266_v60 = vld [vmem:[%s15948_s17 + $0xe00] sm:$0xff] }
 0xf3a   :  { %5101 = vmatprep.subr.mxu0 %v9193_v20  ;;  %5452 = vmatprep.subr.mxu1 %v9315_v29  ;;  %v9259_v20 = vld [vmem:[%s15948_s17 + $0xdf8] sm:$0xf]  ;;  %v9381_v29 = vld [vmem:[%s15948_s17 + $0x1168] sm:$0xf] }
 0xf3b   :  { %5102 = vmatpush1.msra.mxu0 %v9192_v43  ;;  %5453 = vmatpush1.msra.mxu1 %v9314_v11  ;;  %v9258_v43 = vld [vmem:[%s15948_s17 + $0xdf0] sm:$0xf]  ;;  %v9380_v11 = vld [vmem:[%s15948_s17 + $0x1160] sm:$0xf] }
 0xf3c   :  { %5103 = vmatprep.subr.mxu0 %v9189_v18  ;;  %5454 = vmatprep.subr.mxu1 %v9311_v62  ;;  %v9255_v18 = vld [vmem:[%s15948_s17 + $0xdd8] sm:$0xff]  ;;  %v9377_v62 = vld [vmem:[%s15948_s17 + $0x1148] sm:$0xff] }
 0xf3d   :  { %5104 = vmatpush1.msra.mxu0 %v9188_v10  ;;  %5455 = vmatpush1.msra.mxu1 %v9310_v23  ;;  %v9254_v10 = vld [vmem:[%s15948_s17 + $0xdd0] sm:$0xff]  ;;  %v9376_v23 = vld [vmem:[%s15948_s17 + $0x1140] sm:$0xff] }
 0xf3e   :  { %5105 = vmatprep.subr.mxu0 %v9185_v35  ;;  %5456 = vmatprep.subr.mxu1 %v9307_v24  ;;  %v9251_v35 = vld [vmem:[%s15948_s17 + $0xdb8] sm:$0xff]  ;;  %v9373_v24 = vld [vmem:[%s15948_s17 + $0x1128] sm:$0xff] }
 0xf3f   :  { %5106 = vmatpush1.msra.mxu0 %v9184_v22  ;;  %5457 = vmatpush1.msra.mxu1 %v9306_v13  ;;  %v9250_v22 = vld [vmem:[%s15948_s17 + $0xdb0] sm:$0xff]  ;;  %v9372_v13 = vld [vmem:[%s15948_s17 + $0x1120] sm:$0xff] }
 0xf40   :  { %5107 = vmatprep.subr.mxu0 %v9181_v47  ;;  %5458 = vmatprep.subr.mxu1 %v9303_v14  ;;  %v9247_v47 = vld [vmem:[%s15948_s17 + $0xd98] sm:$0xff]  ;;  %v9369_v14 = vld [vmem:[%s15948_s17 + $0x1108] sm:$0xff] }
 0xf41   :  { %5108 = vmatpush1.msra.mxu0 %v9180_v49  ;;  %5459 = vmatpush1.msra.mxu1 %v9302_v58  ;;  %v9246_v49 = vld [vmem:[%s15948_s17 + $0xd90] sm:$0xff]  ;;  %v9368_v58 = vld [vmem:[%s15948_s17 + $0x1100] sm:$0xff] }
 0xf42   :  { %5109 = vmatprep.subr.mxu0 %v9177_v52  ;;  %5460 = vmatprep.subr.mxu1 %v9299_v6  ;;  %v9243_v52 = vld [vmem:[%s15948_s17 + $0xd78] sm:$0xff]  ;;  %v9365_v6 = vld [vmem:[%s15948_s17 + $0x10e8] sm:$0xff] }
 0xf43   :  { %5110 = vmatpush1.msra.mxu0 %v9176_v16  ;;  %5461 = vmatpush1.msra.mxu1 %v9298_v12  ;;  %v9242_v16 = vld [vmem:[%s15948_s17 + $0xd70] sm:$0xff]  ;;  %v9364_v12 = vld [vmem:[%s15948_s17 + $0x10e0] sm:$0xff] }
 0xf44   :  { %5111 = vmatprep.subr.mxu0 %v9173_v21  ;;  %5462 = vmatprep.subr.mxu1 %v9295_v31  ;;  %v9239_v21 = vld [vmem:[%s15948_s17 + $0xd58] sm:$0xff]  ;;  %v9361_v31 = vld [vmem:[%s15948_s17 + $0x10c8] sm:$0xff] }
 0xf45   :  { %5112 = vmatpush1.msra.mxu0 %v9172_v19  ;;  %5463 = vmatpush1.msra.mxu1 %v9294_v33  ;;  %v9238_v19 = vld [vmem:[%s15948_s17 + $0xd50] sm:$0xff]  ;;  %v9360_v33 = vld [vmem:[%s15948_s17 + $0x10c0] sm:$0xff] }
 0xf46   :  { %5113 = vmatprep.subr.mxu0 %v9169_v32  ;;  %5464 = vmatprep.subr.mxu1 %v9291_v15  ;;  %v9235_v32 = vld [vmem:[%s15948_s17 + $0xd38] sm:$0xff]  ;;  %v9357_v15 = vld [vmem:[%s15948_s17 + $0x10a8] sm:$0xff] }
 0xf47   :  { %5114 = vmatpush1.msra.mxu0 %v9168_v36  ;;  %5465 = vmatpush1.msra.mxu1 %v9290_v34  ;;  %v9234_v36 = vld [vmem:[%s15948_s17 + $0xd30] sm:$0xff]  ;;  %v9356_v34 = vld [vmem:[%s15948_s17 + $0x10a0] sm:$0xff] }
 0xf48   :  { %5115 = vmatprep.subr.mxu0 %v9165_v41  ;;  %5466 = vmatprep.subr.mxu1 %v9287_v40  ;;  %v9231_v41 = vld [vmem:[%s15948_s17 + $0xd18] sm:$0xff]  ;;  %v9353_v40 = vld [vmem:[%s15948_s17 + $0x1088] sm:$0xff] }
 0xf49   :  { %5116 = vmatpush1.msra.mxu0 %v9164_v45  ;;  %5467 = vmatpush1.msra.mxu1 %v9286_v7  ;;  %v9230_v45 = vld [vmem:[%s15948_s17 + $0xd10] sm:$0xff]  ;;  %v9352_v7 = vld [vmem:[%s15948_s17 + $0x1080] sm:$0xff] }
 0xf4a   :  { %5117 = vmatprep.subr.mxu0 %v9161_v53  ;;  %5468 = vmatprep.subr.mxu1 %v9283_v39  ;;  %v9227_v53 = vld [vmem:[%s15948_s17 + $0xcf8] sm:$0xff]  ;;  %v9349_v39 = vld [vmem:[%s15948_s17 + $0x1068] sm:$0xff] }
 0xf4b   :  { %5118 = vmatpush1.msra.mxu0 %v9160_v59  ;;  %5469 = vmatpush1.msra.mxu1 %v9282_v9  ;;  %v9226_v59 = vld [vmem:[%s15948_s17 + $0xcf0] sm:$0xff]  ;;  %v9348_v9 = vld [vmem:[%s15948_s17 + $0x1060] sm:$0xff] }
 0xf4c   :  { %5119 = vmatprep.subr.mxu0 %v9157_v44  ;;  %5470 = vmatprep.subr.mxu1 %v9279_v56  ;;  %v9223_v44 = vld [vmem:[%s15948_s17 + $0xcd8] sm:$0xff]  ;;  %v9345_v56 = vld [vmem:[%s15948_s17 + $0x1048] sm:$0xff] }
 0xf4d   :  { %5120 = vmatpush1.msra.mxu0 %v9156_v3  ;;  %5471 = vmatpush1.msra.mxu1 %v9278_v2  ;;  %v9222_v3 = vld [vmem:[%s15948_s17 + $0xcd0] sm:$0xff]  ;;  %v9344_v2 = vld [vmem:[%s15948_s17 + $0x1040] sm:$0xff] }
 0xf4e   :  { %5121 = vmatprep.subr.mxu0 %v9153_v63  ;;  %5472 = vmatprep.subr.mxu1 %v9275_v8  ;;  %v9219_v63 = vld [vmem:[%s15948_s17 + $0xcb8] sm:$0xff]  ;;  %v9341_v8 = vld [vmem:[%s15948_s17 + $0x1028] sm:$0xff] }
 0xf4f   :  { %5122 = vmatpush1.msra.mxu0 %v9152_v4  ;;  %5473 = vmatpush1.msra.mxu1 %v9274_v51  ;;  %v9218_v4 = vld [vmem:[%s15948_s17 + $0xcb0] sm:$0xff]  ;;  %v9340_v51 = vld [vmem:[%s15948_s17 + $0x1020] sm:$0xff] }
 0xf50   :  { %5123 = vmatprep.subr.mxu0 %v9149_v1  ;;  %5474 = vmatprep.subr.mxu1 %v9271_v5  ;;  %v9215_v1 = vld [vmem:[%s15948_s17 + $0xc98] sm:$0xff]  ;;  %v9337_v5 = vld [vmem:[%s15948_s17 + $0x1008] sm:$0xff] }
 0xf51   :  { %5124 = vmatpush1.msra.mxu0 %v9148_v57  ;;  %5475 = vmatpush1.msra.mxu1 %v9270_v17  ;;  %v9214_v57 = vld [vmem:[%s15948_s17 + $0xc90] sm:$0xff]  ;;  %v9336_v17 = vld [vmem:[%s15948_s17 + $0x1000] sm:$0xff] }
 0xf52   :  { %5125 = vmatprep.subr.mxu0 %v9145_v38  ;;  %5476 = vmatprep.subr.mxu1 %v9267_v25  ;;  %v9211_v38 = vld [vmem:[%s15948_s17 + $0xc78] sm:$0xff]  ;;  %v9333_v25 = vld [vmem:[%s15948_s17 + $0xfe8] sm:$0xff] }
 0xf53   :  { %5126 = vmatpush1.msra.mxu0 %v9144_v61  ;;  %5159 = vmatprep.mubr.f32.mxu0 %v10616_v0  ;;  %v9210_v61 = vld [vmem:[%s15948_s17 + $0xc70] sm:$0xff] }
 0xf54   :  { %5477 = vmatpush1.msra.mxu1 %v9266_v60  ;;  %5510 = vmatprep.mubr.f32.mxu1 %v10616_v0  ;;  %v9332_v60 = vld [vmem:[%s15948_s17 + $0xfe0] sm:$0xff] }
 0xf55   :  { %9203 = vmatmul.mubr.msk.f32.vlgmr.msra.gmra.mxu0 %vm166_vm3, %v12577_v48  ;;  %9263 = vmatprep.subr.msk.mxu0 %vm1467_vm10, %v9259_v20  ;;  %v9207_v20 = vld [vmem:[%s15948_s17 + $0xc58] sm:$0xff] }
 0xf56   :  { %9324 = vmatmul.mubr.msk.f32.vlgmr.msra.gmra.mxu1 %vm166_vm3, %v12577_v48  ;;  %9384 = vmatprep.subr.msk.mxu1 %vm1467_vm10, %v9381_v29  ;;  %v9329_v29 = vld [vmem:[%s15948_s17 + $0xfc8] sm:$0xff] }
 0xf57   :  { %9264 = vmatpush1.msk.msra.mxu0 %vm1467_vm10, %v9258_v43  ;;  %9385 = vmatpush1.msk.msra.mxu1 %vm1467_vm10, %v9380_v11  ;;  %v9206_v43 = vld [vmem:[%s15948_s17 + $0xc50] sm:$0xff]  ;;  %v9328_v11 = vld [vmem:[%s15948_s17 + $0xfc0] sm:$0xff] }
 0xf58   :  { %5312 = vmatprep.subr.mxu0 %v9255_v18  ;;  %5663 = vmatprep.subr.mxu1 %v9377_v62  ;;  %v9321_v18 = vld [vmem:[%s15948_s17 + $0xfb8] sm:$0xf]  ;;  %v9443_v62 = vld [vmem:[%s15948_s17 + $0x1328] sm:$0xf] }
 0xf59   :  { %5313 = vmatpush1.msra.mxu0 %v9254_v10  ;;  %5664 = vmatpush1.msra.mxu1 %v9376_v23  ;;  %v9320_v10 = vld [vmem:[%s15948_s17 + $0xfb0] sm:$0xf]  ;;  %v9442_v23 = vld [vmem:[%s15948_s17 + $0x1320] sm:$0xf] }
 0xf5a   :  { %5314 = vmatprep.subr.mxu0 %v9251_v35  ;;  %5665 = vmatprep.subr.mxu1 %v9373_v24  ;;  %v9317_v35 = vld [vmem:[%s15948_s17 + $0xf98] sm:$0xff]  ;;  %v9439_v24 = vld [vmem:[%s15948_s17 + $0x1308] sm:$0xff] }
 0xf5b   :  { %5315 = vmatpush1.msra.mxu0 %v9250_v22  ;;  %5666 = vmatpush1.msra.mxu1 %v9372_v13  ;;  %v9316_v22 = vld [vmem:[%s15948_s17 + $0xf90] sm:$0xff]  ;;  %v9438_v13 = vld [vmem:[%s15948_s17 + $0x1300] sm:$0xff] }
 0xf5c   :  { %5316 = vmatprep.subr.mxu0 %v9247_v47  ;;  %5667 = vmatprep.subr.mxu1 %v9369_v14  ;;  %v9313_v47 = vld [vmem:[%s15948_s17 + $0xf78] sm:$0xff]  ;;  %v9435_v14 = vld [vmem:[%s15948_s17 + $0x12e8] sm:$0xff] }
 0xf5d   :  { %5317 = vmatpush1.msra.mxu0 %v9246_v49  ;;  %5668 = vmatpush1.msra.mxu1 %v9368_v58  ;;  %v9312_v49 = vld [vmem:[%s15948_s17 + $0xf70] sm:$0xff]  ;;  %v9434_v58 = vld [vmem:[%s15948_s17 + $0x12e0] sm:$0xff] }
 0xf5e   :  { %5318 = vmatprep.subr.mxu0 %v9243_v52  ;;  %5669 = vmatprep.subr.mxu1 %v9365_v6  ;;  %v9309_v52 = vld [vmem:[%s15948_s17 + $0xf58] sm:$0xff]  ;;  %v9431_v6 = vld [vmem:[%s15948_s17 + $0x12c8] sm:$0xff] }
 0xf5f   :  { %5319 = vmatpush1.msra.mxu0 %v9242_v16  ;;  %5670 = vmatpush1.msra.mxu1 %v9364_v12  ;;  %v9308_v16 = vld [vmem:[%s15948_s17 + $0xf50] sm:$0xff]  ;;  %v9430_v12 = vld [vmem:[%s15948_s17 + $0x12c0] sm:$0xff] }
 0xf60   :  { %5320 = vmatprep.subr.mxu0 %v9239_v21  ;;  %5671 = vmatprep.subr.mxu1 %v9361_v31  ;;  %v9305_v21 = vld [vmem:[%s15948_s17 + $0xf38] sm:$0xff]  ;;  %v9427_v31 = vld [vmem:[%s15948_s17 + $0x12a8] sm:$0xff] }
 0xf61   :  { %5321 = vmatpush1.msra.mxu0 %v9238_v19  ;;  %5672 = vmatpush1.msra.mxu1 %v9360_v33  ;;  %v9304_v19 = vld [vmem:[%s15948_s17 + $0xf30] sm:$0xff]  ;;  %v9426_v33 = vld [vmem:[%s15948_s17 + $0x12a0] sm:$0xff] }
 0xf62   :  { %5322 = vmatprep.subr.mxu0 %v9235_v32  ;;  %5673 = vmatprep.subr.mxu1 %v9357_v15  ;;  %v9301_v32 = vld [vmem:[%s15948_s17 + $0xf18] sm:$0xff]  ;;  %v9423_v15 = vld [vmem:[%s15948_s17 + $0x1288] sm:$0xff] }
 0xf63   :  { %5323 = vmatpush1.msra.mxu0 %v9234_v36  ;;  %5674 = vmatpush1.msra.mxu1 %v9356_v34  ;;  %v9300_v36 = vld [vmem:[%s15948_s17 + $0xf10] sm:$0xff]  ;;  %v9422_v34 = vld [vmem:[%s15948_s17 + $0x1280] sm:$0xff] }
 0xf64   :  { %5324 = vmatprep.subr.mxu0 %v9231_v41  ;;  %5675 = vmatprep.subr.mxu1 %v9353_v40  ;;  %v9297_v41 = vld [vmem:[%s15948_s17 + $0xef8] sm:$0xff]  ;;  %v9419_v40 = vld [vmem:[%s15948_s17 + $0x1268] sm:$0xff] }
 0xf65   :  { %5325 = vmatpush1.msra.mxu0 %v9230_v45  ;;  %5676 = vmatpush1.msra.mxu1 %v9352_v7  ;;  %v9296_v45 = vld [vmem:[%s15948_s17 + $0xef0] sm:$0xff]  ;;  %v9418_v7 = vld [vmem:[%s15948_s17 + $0x1260] sm:$0xff] }
 0xf66   :  { %5326 = vmatprep.subr.mxu0 %v9227_v53  ;;  %5677 = vmatprep.subr.mxu1 %v9349_v39  ;;  %v9293_v53 = vld [vmem:[%s15948_s17 + $0xed8] sm:$0xff]  ;;  %v9415_v39 = vld [vmem:[%s15948_s17 + $0x1248] sm:$0xff] }
 0xf67   :  { %5327 = vmatpush1.msra.mxu0 %v9226_v59  ;;  %5678 = vmatpush1.msra.mxu1 %v9348_v9  ;;  %v9292_v59 = vld [vmem:[%s15948_s17 + $0xed0] sm:$0xff]  ;;  %v9414_v9 = vld [vmem:[%s15948_s17 + $0x1240] sm:$0xff] }
 0xf68   :  { %5328 = vmatprep.subr.mxu0 %v9223_v44  ;;  %5679 = vmatprep.subr.mxu1 %v9345_v56  ;;  %v9289_v44 = vld [vmem:[%s15948_s17 + $0xeb8] sm:$0xff]  ;;  %v9411_v56 = vld [vmem:[%s15948_s17 + $0x1228] sm:$0xff] }
 0xf69   :  { %5329 = vmatpush1.msra.mxu0 %v9222_v3  ;;  %5680 = vmatpush1.msra.mxu1 %v9344_v2  ;;  %v9288_v3 = vld [vmem:[%s15948_s17 + $0xeb0] sm:$0xff]  ;;  %v9410_v2 = vld [vmem:[%s15948_s17 + $0x1220] sm:$0xff] }
 0xf6a   :  { %5330 = vmatprep.subr.mxu0 %v9219_v63  ;;  %5681 = vmatprep.subr.mxu1 %v9341_v8  ;;  %v9285_v63 = vld [vmem:[%s15948_s17 + $0xe98] sm:$0xff]  ;;  %v9407_v8 = vld [vmem:[%s15948_s17 + $0x1208] sm:$0xff] }
 0xf6b   :  { %5331 = vmatpush1.msra.mxu0 %v9218_v4  ;;  %5682 = vmatpush1.msra.mxu1 %v9340_v51  ;;  %v9284_v4 = vld [vmem:[%s15948_s17 + $0xe90] sm:$0xff]  ;;  %v9406_v51 = vld [vmem:[%s15948_s17 + $0x1200] sm:$0xff] }
 0xf6c   :  { %5332 = vmatprep.subr.mxu0 %v9215_v1  ;;  %5683 = vmatprep.subr.mxu1 %v9337_v5  ;;  %v9281_v1 = vld [vmem:[%s15948_s17 + $0xe78] sm:$0xff]  ;;  %v9403_v5 = vld [vmem:[%s15948_s17 + $0x11e8] sm:$0xff] }
 0xf6d   :  { %5333 = vmatpush1.msra.mxu0 %v9214_v57  ;;  %5684 = vmatpush1.msra.mxu1 %v9336_v17  ;;  %v9280_v57 = vld [vmem:[%s15948_s17 + $0xe70] sm:$0xff]  ;;  %v9402_v17 = vld [vmem:[%s15948_s17 + $0x11e0] sm:$0xff] }
 0xf6e   :  { %5334 = vmatprep.subr.mxu0 %v9211_v38  ;;  %5685 = vmatprep.subr.mxu1 %v9333_v25  ;;  %v9277_v38 = vld [vmem:[%s15948_s17 + $0xe58] sm:$0xff]  ;;  %v9399_v25 = vld [vmem:[%s15948_s17 + $0x11c8] sm:$0xff] }
 0xf6f   :  { %5335 = vmatpush1.msra.mxu0 %v9210_v61  ;;  %5686 = vmatpush1.msra.mxu1 %v9332_v60  ;;  %v9276_v61 = vld [vmem:[%s15948_s17 + $0xe50] sm:$0xff]  ;;  %v9398_v60 = vld [vmem:[%s15948_s17 + $0x11c0] sm:$0xff] }
 0xf70   :  { %5336 = vmatprep.subr.mxu0 %v9207_v20  ;;  %5687 = vmatprep.subr.mxu1 %v9329_v29  ;;  %v9273_v20 = vld [vmem:[%s15948_s17 + $0xe38] sm:$0xff]  ;;  %v9395_v29 = vld [vmem:[%s15948_s17 + $0x11a8] sm:$0xff] }
 0xf71   :  { %5337 = vmatpush1.msra.mxu0 %v9206_v43  ;;  %5370 = vmatprep.mubr.f32.mxu0 %v10616_v0  ;;  %v9272_v43 = vld [vmem:[%s15948_s17 + $0xe30] sm:$0xff] }
 0xf72   :  { %5688 = vmatpush1.msra.mxu1 %v9328_v11  ;;  %5721 = vmatprep.mubr.f32.mxu1 %v10616_v0  ;;  %v9394_v11 = vld [vmem:[%s15948_s17 + $0x11a0] sm:$0xff] }
 0xf73   :  { %9265 = vmatmul.mubr.msk.f32.vlgmr.msra.gmra.mxu0 %vm166_vm3, %v12577_v48  ;;  %9325 = vmatprep.subr.msk.mxu0 %vm1467_vm10, %v9321_v18  ;;  %v9269_v18 = vld [vmem:[%s15948_s17 + $0xe18] sm:$0xff] }
 0xf74   :  { %9386 = vmatmul.mubr.msk.f32.vlgmr.msra.gmra.mxu1 %vm166_vm3, %v12577_v48  ;;  %9446 = vmatprep.subr.msk.mxu1 %vm1467_vm10, %v9443_v62  ;;  %v9391_v62 = vld [vmem:[%s15948_s17 + $0x1188] sm:$0xff] }
 0xf75   :  { %9326 = vmatpush1.msk.msra.mxu0 %vm1467_vm10, %v9320_v10  ;;  %9447 = vmatpush1.msk.msra.mxu1 %vm1467_vm10, %v9442_v23  ;;  %v9268_v10 = vld [vmem:[%s15948_s17 + $0xe10] sm:$0xff]  ;;  %v9390_v23 = vld [vmem:[%s15948_s17 + $0x1180] sm:$0xff] }
 0xf76   :  { %5523 = vmatprep.subr.mxu0 %v9317_v35  ;;  %5874 = vmatprep.subr.mxu1 %v9439_v24  ;;  %v9383_v35 = vld [vmem:[%s15948_s17 + $0x1178] sm:$0xf]  ;;  %v9505_v24 = vld [vmem:[%s15948_s17 + $0x14e8] sm:$0xf] }
 0xf77   :  { %5524 = vmatpush1.msra.mxu0 %v9316_v22  ;;  %5875 = vmatpush1.msra.mxu1 %v9438_v13  ;;  %v9382_v22 = vld [vmem:[%s15948_s17 + $0x1170] sm:$0xf]  ;;  %v9504_v13 = vld [vmem:[%s15948_s17 + $0x14e0] sm:$0xf] }
 0xf78   :  { %5525 = vmatprep.subr.mxu0 %v9313_v47  ;;  %5876 = vmatprep.subr.mxu1 %v9435_v14  ;;  %v9379_v47 = vld [vmem:[%s15948_s17 + $0x1158] sm:$0xff]  ;;  %v9501_v14 = vld [vmem:[%s15948_s17 + $0x14c8] sm:$0xff] }
 0xf79   :  { %5526 = vmatpush1.msra.mxu0 %v9312_v49  ;;  %5877 = vmatpush1.msra.mxu1 %v9434_v58  ;;  %v9378_v49 = vld [vmem:[%s15948_s17 + $0x1150] sm:$0xff]  ;;  %v9500_v58 = vld [vmem:[%s15948_s17 + $0x14c0] sm:$0xff] }
 0xf7a   :  { %5527 = vmatprep.subr.mxu0 %v9309_v52  ;;  %5878 = vmatprep.subr.mxu1 %v9431_v6  ;;  %v9375_v52 = vld [vmem:[%s15948_s17 + $0x1138] sm:$0xff]  ;;  %v9497_v6 = vld [vmem:[%s15948_s17 + $0x14a8] sm:$0xff] }
 0xf7b   :  { %5528 = vmatpush1.msra.mxu0 %v9308_v16  ;;  %5879 = vmatpush1.msra.mxu1 %v9430_v12  ;;  %v9374_v16 = vld [vmem:[%s15948_s17 + $0x1130] sm:$0xff]  ;;  %v9496_v12 = vld [vmem:[%s15948_s17 + $0x14a0] sm:$0xff] }
 0xf7c   :  { %5529 = vmatprep.subr.mxu0 %v9305_v21  ;;  %5880 = vmatprep.subr.mxu1 %v9427_v31  ;;  %v9371_v21 = vld [vmem:[%s15948_s17 + $0x1118] sm:$0xff]  ;;  %v9493_v31 = vld [vmem:[%s15948_s17 + $0x1488] sm:$0xff] }
 0xf7d   :  { %5530 = vmatpush1.msra.mxu0 %v9304_v19  ;;  %5881 = vmatpush1.msra.mxu1 %v9426_v33  ;;  %v9370_v19 = vld [vmem:[%s15948_s17 + $0x1110] sm:$0xff]  ;;  %v9492_v33 = vld [vmem:[%s15948_s17 + $0x1480] sm:$0xff] }
 0xf7e   :  { %5531 = vmatprep.subr.mxu0 %v9301_v32  ;;  %5882 = vmatprep.subr.mxu1 %v9423_v15  ;;  %v9367_v32 = vld [vmem:[%s15948_s17 + $0x10f8] sm:$0xff]  ;;  %v9489_v15 = vld [vmem:[%s15948_s17 + $0x1468] sm:$0xff] }
 0xf7f   :  { %5532 = vmatpush1.msra.mxu0 %v9300_v36  ;;  %5883 = vmatpush1.msra.mxu1 %v9422_v34  ;;  %v9366_v36 = vld [vmem:[%s15948_s17 + $0x10f0] sm:$0xff]  ;;  %v9488_v34 = vld [vmem:[%s15948_s17 + $0x1460] sm:$0xff] }
 0xf80   :  { %5533 = vmatprep.subr.mxu0 %v9297_v41  ;;  %5884 = vmatprep.subr.mxu1 %v9419_v40  ;;  %v9363_v41 = vld [vmem:[%s15948_s17 + $0x10d8] sm:$0xff]  ;;  %v9485_v40 = vld [vmem:[%s15948_s17 + $0x1448] sm:$0xff] }
 0xf81   :  { %5534 = vmatpush1.msra.mxu0 %v9296_v45  ;;  %5885 = vmatpush1.msra.mxu1 %v9418_v7  ;;  %v9362_v45 = vld [vmem:[%s15948_s17 + $0x10d0] sm:$0xff]  ;;  %v9484_v7 = vld [vmem:[%s15948_s17 + $0x1440] sm:$0xff] }
 0xf82   :  { %5535 = vmatprep.subr.mxu0 %v9293_v53  ;;  %5886 = vmatprep.subr.mxu1 %v9415_v39  ;;  %v9359_v53 = vld [vmem:[%s15948_s17 + $0x10b8] sm:$0xff]  ;;  %v9481_v39 = vld [vmem:[%s15948_s17 + $0x1428] sm:$0xff] }
 0xf83   :  { %5536 = vmatpush1.msra.mxu0 %v9292_v59  ;;  %5887 = vmatpush1.msra.mxu1 %v9414_v9  ;;  %v9358_v59 = vld [vmem:[%s15948_s17 + $0x10b0] sm:$0xff]  ;;  %v9480_v9 = vld [vmem:[%s15948_s17 + $0x1420] sm:$0xff] }
 0xf84   :  { %5537 = vmatprep.subr.mxu0 %v9289_v44  ;;  %5888 = vmatprep.subr.mxu1 %v9411_v56  ;;  %v9355_v44 = vld [vmem:[%s15948_s17 + $0x1098] sm:$0xff]  ;;  %v9477_v56 = vld [vmem:[%s15948_s17 + $0x1408] sm:$0xff] }
 0xf85   :  { %5538 = vmatpush1.msra.mxu0 %v9288_v3  ;;  %5889 = vmatpush1.msra.mxu1 %v9410_v2  ;;  %v9354_v3 = vld [vmem:[%s15948_s17 + $0x1090] sm:$0xff]  ;;  %v9476_v2 = vld [vmem:[%s15948_s17 + $0x1400] sm:$0xff] }
 0xf86   :  { %5539 = vmatprep.subr.mxu0 %v9285_v63  ;;  %5890 = vmatprep.subr.mxu1 %v9407_v8  ;;  %v9351_v63 = vld [vmem:[%s15948_s17 + $0x1078] sm:$0xff]  ;;  %v9473_v8 = vld [vmem:[%s15948_s17 + $0x13e8] sm:$0xff] }
 0xf87   :  { %5540 = vmatpush1.msra.mxu0 %v9284_v4  ;;  %5891 = vmatpush1.msra.mxu1 %v9406_v51  ;;  %v9350_v4 = vld [vmem:[%s15948_s17 + $0x1070] sm:$0xff]  ;;  %v9472_v51 = vld [vmem:[%s15948_s17 + $0x13e0] sm:$0xff] }
 0xf88   :  { %5541 = vmatprep.subr.mxu0 %v9281_v1  ;;  %5892 = vmatprep.subr.mxu1 %v9403_v5  ;;  %v9347_v1 = vld [vmem:[%s15948_s17 + $0x1058] sm:$0xff]  ;;  %v9469_v5 = vld [vmem:[%s15948_s17 + $0x13c8] sm:$0xff] }
 0xf89   :  { %5542 = vmatpush1.msra.mxu0 %v9280_v57  ;;  %5893 = vmatpush1.msra.mxu1 %v9402_v17  ;;  %v9346_v57 = vld [vmem:[%s15948_s17 + $0x1050] sm:$0xff]  ;;  %v9468_v17 = vld [vmem:[%s15948_s17 + $0x13c0] sm:$0xff] }
 0xf8a   :  { %5543 = vmatprep.subr.mxu0 %v9277_v38  ;;  %5894 = vmatprep.subr.mxu1 %v9399_v25  ;;  %v9343_v38 = vld [vmem:[%s15948_s17 + $0x1038] sm:$0xff]  ;;  %v9465_v25 = vld [vmem:[%s15948_s17 + $0x13a8] sm:$0xff] }
 0xf8b   :  { %5544 = vmatpush1.msra.mxu0 %v9276_v61  ;;  %5895 = vmatpush1.msra.mxu1 %v9398_v60  ;;  %v9342_v61 = vld [vmem:[%s15948_s17 + $0x1030] sm:$0xff]  ;;  %v9464_v60 = vld [vmem:[%s15948_s17 + $0x13a0] sm:$0xff] }
 0xf8c   :  { %5545 = vmatprep.subr.mxu0 %v9273_v20  ;;  %5896 = vmatprep.subr.mxu1 %v9395_v29  ;;  %v9339_v20 = vld [vmem:[%s15948_s17 + $0x1018] sm:$0xff]  ;;  %v9461_v29 = vld [vmem:[%s15948_s17 + $0x1388] sm:$0xff] }
 0xf8d   :  { %5546 = vmatpush1.msra.mxu0 %v9272_v43  ;;  %5897 = vmatpush1.msra.mxu1 %v9394_v11  ;;  %v9338_v43 = vld [vmem:[%s15948_s17 + $0x1010] sm:$0xff]  ;;  %v9460_v11 = vld [vmem:[%s15948_s17 + $0x1380] sm:$0xff] }
 0xf8e   :  { %5547 = vmatprep.subr.mxu0 %v9269_v18  ;;  %5898 = vmatprep.subr.mxu1 %v9391_v62  ;;  %v9335_v18 = vld [vmem:[%s15948_s17 + $0xff8] sm:$0xff]  ;;  %v9457_v62 = vld [vmem:[%s15948_s17 + $0x1368] sm:$0xff] }
 0xf8f   :  { %5548 = vmatpush1.msra.mxu0 %v9268_v10  ;;  %5581 = vmatprep.mubr.f32.mxu0 %v10616_v0  ;;  %v9334_v10 = vld [vmem:[%s15948_s17 + $0xff0] sm:$0xff] }
 0xf90   :  { %5899 = vmatpush1.msra.mxu1 %v9390_v23  ;;  %5932 = vmatprep.mubr.f32.mxu1 %v10616_v0  ;;  %v9456_v23 = vld [vmem:[%s15948_s17 + $0x1360] sm:$0xff] }
 0xf91   :  { %9327 = vmatmul.mubr.msk.f32.vlgmr.msra.gmra.mxu0 %vm166_vm3, %v12577_v48  ;;  %9387 = vmatprep.subr.msk.mxu0 %vm1467_vm10, %v9383_v35  ;;  %v9331_v35 = vld [vmem:[%s15948_s17 + $0xfd8] sm:$0xff] }
 0xf92   :  { %9448 = vmatmul.mubr.msk.f32.vlgmr.msra.gmra.mxu1 %vm166_vm3, %v12577_v48  ;;  %9508 = vmatprep.subr.msk.mxu1 %vm1467_vm10, %v9505_v24  ;;  %v9453_v24 = vld [vmem:[%s15948_s17 + $0x1348] sm:$0xff] }
 0xf93   :  { %9388 = vmatpush1.msk.msra.mxu0 %vm1467_vm10, %v9382_v22  ;;  %9509 = vmatpush1.msk.msra.mxu1 %vm1467_vm10, %v9504_v13  ;;  %v9330_v22 = vld [vmem:[%s15948_s17 + $0xfd0] sm:$0xff]  ;;  %v9452_v13 = vld [vmem:[%s15948_s17 + $0x1340] sm:$0xff] }
 0xf94   :  { %5734 = vmatprep.subr.mxu0 %v9379_v47  ;;  %6085 = vmatprep.subr.mxu1 %v9501_v14  ;;  %v9445_v47 = vld [vmem:[%s15948_s17 + $0x1338] sm:$0xf]  ;;  %v9567_v14 = vld [vmem:[%s15948_s17 + $0x16a8] sm:$0xf] }
 0xf95   :  { %5735 = vmatpush1.msra.mxu0 %v9378_v49  ;;  %6086 = vmatpush1.msra.mxu1 %v9500_v58  ;;  %v9444_v49 = vld [vmem:[%s15948_s17 + $0x1330] sm:$0xf]  ;;  %v9566_v58 = vld [vmem:[%s15948_s17 + $0x16a0] sm:$0xf] }
 0xf96   :  { %5736 = vmatprep.subr.mxu0 %v9375_v52  ;;  %6087 = vmatprep.subr.mxu1 %v9497_v6  ;;  %v9441_v52 = vld [vmem:[%s15948_s17 + $0x1318] sm:$0xff]  ;;  %v9563_v6 = vld [vmem:[%s15948_s17 + $0x1688] sm:$0xff] }
 0xf97   :  { %5737 = vmatpush1.msra.mxu0 %v9374_v16  ;;  %6088 = vmatpush1.msra.mxu1 %v9496_v12  ;;  %v9440_v16 = vld [vmem:[%s15948_s17 + $0x1310] sm:$0xff]  ;;  %v9562_v12 = vld [vmem:[%s15948_s17 + $0x1680] sm:$0xff] }
 0xf98   :  { %5738 = vmatprep.subr.mxu0 %v9371_v21  ;;  %6089 = vmatprep.subr.mxu1 %v9493_v31  ;;  %v9437_v21 = vld [vmem:[%s15948_s17 + $0x12f8] sm:$0xff]  ;;  %v9559_v31 = vld [vmem:[%s15948_s17 + $0x1668] sm:$0xff] }
 0xf99   :  { %5739 = vmatpush1.msra.mxu0 %v9370_v19  ;;  %6090 = vmatpush1.msra.mxu1 %v9492_v33  ;;  %v9436_v19 = vld [vmem:[%s15948_s17 + $0x12f0] sm:$0xff]  ;;  %v9558_v33 = vld [vmem:[%s15948_s17 + $0x1660] sm:$0xff] }
 0xf9a   :  { %5740 = vmatprep.subr.mxu0 %v9367_v32  ;;  %6091 = vmatprep.subr.mxu1 %v9489_v15  ;;  %v9433_v32 = vld [vmem:[%s15948_s17 + $0x12d8] sm:$0xff]  ;;  %v9555_v15 = vld [vmem:[%s15948_s17 + $0x1648] sm:$0xff] }
 0xf9b   :  { %5741 = vmatpush1.msra.mxu0 %v9366_v36  ;;  %6092 = vmatpush1.msra.mxu1 %v9488_v34  ;;  %v9432_v36 = vld [vmem:[%s15948_s17 + $0x12d0] sm:$0xff]  ;;  %v9554_v34 = vld [vmem:[%s15948_s17 + $0x1640] sm:$0xff] }
 0xf9c   :  { %5742 = vmatprep.subr.mxu0 %v9363_v41  ;;  %6093 = vmatprep.subr.mxu1 %v9485_v40  ;;  %v9429_v41 = vld [vmem:[%s15948_s17 + $0x12b8] sm:$0xff]  ;;  %v9551_v40 = vld [vmem:[%s15948_s17 + $0x1628] sm:$0xff] }
 0xf9d   :  { %5743 = vmatpush1.msra.mxu0 %v9362_v45  ;;  %6094 = vmatpush1.msra.mxu1 %v9484_v7  ;;  %v9428_v45 = vld [vmem:[%s15948_s17 + $0x12b0] sm:$0xff]  ;;  %v9550_v7 = vld [vmem:[%s15948_s17 + $0x1620] sm:$0xff] }
 0xf9e   :  { %5744 = vmatprep.subr.mxu0 %v9359_v53  ;;  %6095 = vmatprep.subr.mxu1 %v9481_v39  ;;  %v9425_v53 = vld [vmem:[%s15948_s17 + $0x1298] sm:$0xff]  ;;  %v9547_v39 = vld [vmem:[%s15948_s17 + $0x1608] sm:$0xff] }
 0xf9f   :  { %5745 = vmatpush1.msra.mxu0 %v9358_v59  ;;  %6096 = vmatpush1.msra.mxu1 %v9480_v9  ;;  %v9424_v59 = vld [vmem:[%s15948_s17 + $0x1290] sm:$0xff]  ;;  %v9546_v9 = vld [vmem:[%s15948_s17 + $0x1600] sm:$0xff] }
 0xfa0   :  { %5746 = vmatprep.subr.mxu0 %v9355_v44  ;;  %6097 = vmatprep.subr.mxu1 %v9477_v56  ;;  %v9421_v44 = vld [vmem:[%s15948_s17 + $0x1278] sm:$0xff]  ;;  %v9543_v56 = vld [vmem:[%s15948_s17 + $0x15e8] sm:$0xff] }
 0xfa1   :  { %5747 = vmatpush1.msra.mxu0 %v9354_v3  ;;  %6098 = vmatpush1.msra.mxu1 %v9476_v2  ;;  %v9420_v3 = vld [vmem:[%s15948_s17 + $0x1270] sm:$0xff]  ;;  %v9542_v2 = vld [vmem:[%s15948_s17 + $0x15e0] sm:$0xff] }
 0xfa2   :  { %5748 = vmatprep.subr.mxu0 %v9351_v63  ;;  %6099 = vmatprep.subr.mxu1 %v9473_v8  ;;  %v9417_v63 = vld [vmem:[%s15948_s17 + $0x1258] sm:$0xff]  ;;  %v9539_v8 = vld [vmem:[%s15948_s17 + $0x15c8] sm:$0xff] }
 0xfa3   :  { %5749 = vmatpush1.msra.mxu0 %v9350_v4  ;;  %6100 = vmatpush1.msra.mxu1 %v9472_v51  ;;  %v9416_v4 = vld [vmem:[%s15948_s17 + $0x1250] sm:$0xff]  ;;  %v9538_v51 = vld [vmem:[%s15948_s17 + $0x15c0] sm:$0xff] }
 0xfa4   :  { %5750 = vmatprep.subr.mxu0 %v9347_v1  ;;  %6101 = vmatprep.subr.mxu1 %v9469_v5  ;;  %v9413_v1 = vld [vmem:[%s15948_s17 + $0x1238] sm:$0xff]  ;;  %v9535_v5 = vld [vmem:[%s15948_s17 + $0x15a8] sm:$0xff] }
 0xfa5   :  { %5751 = vmatpush1.msra.mxu0 %v9346_v57  ;;  %6102 = vmatpush1.msra.mxu1 %v9468_v17  ;;  %v9412_v57 = vld [vmem:[%s15948_s17 + $0x1230] sm:$0xff]  ;;  %v9534_v17 = vld [vmem:[%s15948_s17 + $0x15a0] sm:$0xff] }
 0xfa6   :  { %5752 = vmatprep.subr.mxu0 %v9343_v38  ;;  %6103 = vmatprep.subr.mxu1 %v9465_v25  ;;  %v9409_v38 = vld [vmem:[%s15948_s17 + $0x1218] sm:$0xff]  ;;  %v9531_v25 = vld [vmem:[%s15948_s17 + $0x1588] sm:$0xff] }
 0xfa7   :  { %5753 = vmatpush1.msra.mxu0 %v9342_v61  ;;  %6104 = vmatpush1.msra.mxu1 %v9464_v60  ;;  %v9408_v61 = vld [vmem:[%s15948_s17 + $0x1210] sm:$0xff]  ;;  %v9530_v60 = vld [vmem:[%s15948_s17 + $0x1580] sm:$0xff] }
 0xfa8   :  { %5754 = vmatprep.subr.mxu0 %v9339_v20  ;;  %6105 = vmatprep.subr.mxu1 %v9461_v29  ;;  %v9405_v20 = vld [vmem:[%s15948_s17 + $0x11f8] sm:$0xff]  ;;  %v9527_v29 = vld [vmem:[%s15948_s17 + $0x1568] sm:$0xff] }
 0xfa9   :  { %5755 = vmatpush1.msra.mxu0 %v9338_v43  ;;  %6106 = vmatpush1.msra.mxu1 %v9460_v11  ;;  %v9404_v43 = vld [vmem:[%s15948_s17 + $0x11f0] sm:$0xff]  ;;  %v9526_v11 = vld [vmem:[%s15948_s17 + $0x1560] sm:$0xff] }
 0xfaa   :  { %5756 = vmatprep.subr.mxu0 %v9335_v18  ;;  %6107 = vmatprep.subr.mxu1 %v9457_v62  ;;  %v9401_v18 = vld [vmem:[%s15948_s17 + $0x11d8] sm:$0xff]  ;;  %v9523_v62 = vld [vmem:[%s15948_s17 + $0x1548] sm:$0xff] }
 0xfab   :  { %5757 = vmatpush1.msra.mxu0 %v9334_v10  ;;  %6108 = vmatpush1.msra.mxu1 %v9456_v23  ;;  %v9400_v10 = vld [vmem:[%s15948_s17 + $0x11d0] sm:$0xff]  ;;  %v9522_v23 = vld [vmem:[%s15948_s17 + $0x1540] sm:$0xff] }
 0xfac   :  { %5758 = vmatprep.subr.mxu0 %v9331_v35  ;;  %6109 = vmatprep.subr.mxu1 %v9453_v24  ;;  %v9397_v35 = vld [vmem:[%s15948_s17 + $0x11b8] sm:$0xff]  ;;  %v9519_v24 = vld [vmem:[%s15948_s17 + $0x1528] sm:$0xff] }
 0xfad   :  { %5759 = vmatpush1.msra.mxu0 %v9330_v22  ;;  %5792 = vmatprep.mubr.f32.mxu0 %v10616_v0  ;;  %v9396_v22 = vld [vmem:[%s15948_s17 + $0x11b0] sm:$0xff] }
 0xfae   :  { %6110 = vmatpush1.msra.mxu1 %v9452_v13  ;;  %6143 = vmatprep.mubr.f32.mxu1 %v10616_v0  ;;  %v9518_v13 = vld [vmem:[%s15948_s17 + $0x1520] sm:$0xff] }
 0xfaf   :  { %9389 = vmatmul.mubr.msk.f32.vlgmr.msra.gmra.mxu0 %vm166_vm3, %v12577_v48  ;;  %9449 = vmatprep.subr.msk.mxu0 %vm1467_vm10, %v9445_v47  ;;  %v9393_v47 = vld [vmem:[%s15948_s17 + $0x1198] sm:$0xff] }
 0xfb0   :  { %9510 = vmatmul.mubr.msk.f32.vlgmr.msra.gmra.mxu1 %vm166_vm3, %v12577_v48  ;;  %9570 = vmatprep.subr.msk.mxu1 %vm1467_vm10, %v9567_v14  ;;  %v9515_v14 = vld [vmem:[%s15948_s17 + $0x1508] sm:$0xff] }
 0xfb1   :  { %9450 = vmatpush1.msk.msra.mxu0 %vm1467_vm10, %v9444_v49  ;;  %9571 = vmatpush1.msk.msra.mxu1 %vm1467_vm10, %v9566_v58  ;;  %v9392_v49 = vld [vmem:[%s15948_s17 + $0x1190] sm:$0xff]  ;;  %v9514_v58 = vld [vmem:[%s15948_s17 + $0x1500] sm:$0xff] }
 0xfb2   :  { %5945 = vmatprep.subr.mxu0 %v9441_v52  ;;  %6296 = vmatprep.subr.mxu1 %v9563_v6  ;;  %v9507_v52 = vld [vmem:[%s15948_s17 + $0x14f8] sm:$0xf]  ;;  %v9629_v6 = vld [vmem:[%s15948_s17 + $0x1868] sm:$0xf] }
 0xfb3   :  { %5946 = vmatpush1.msra.mxu0 %v9440_v16  ;;  %6297 = vmatpush1.msra.mxu1 %v9562_v12  ;;  %v9506_v16 = vld [vmem:[%s15948_s17 + $0x14f0] sm:$0xf]  ;;  %v9628_v12 = vld [vmem:[%s15948_s17 + $0x1860] sm:$0xf] }
 0xfb4   :  { %5947 = vmatprep.subr.mxu0 %v9437_v21  ;;  %6298 = vmatprep.subr.mxu1 %v9559_v31  ;;  %v9503_v21 = vld [vmem:[%s15948_s17 + $0x14d8] sm:$0xff]  ;;  %v9625_v31 = vld [vmem:[%s15948_s17 + $0x1848] sm:$0xff] }
 0xfb5   :  { %5948 = vmatpush1.msra.mxu0 %v9436_v19  ;;  %6299 = vmatpush1.msra.mxu1 %v9558_v33  ;;  %v9502_v19 = vld [vmem:[%s15948_s17 + $0x14d0] sm:$0xff]  ;;  %v9624_v33 = vld [vmem:[%s15948_s17 + $0x1840] sm:$0xff] }
 0xfb6   :  { %5949 = vmatprep.subr.mxu0 %v9433_v32  ;;  %6300 = vmatprep.subr.mxu1 %v9555_v15  ;;  %v9499_v32 = vld [vmem:[%s15948_s17 + $0x14b8] sm:$0xff]  ;;  %v9621_v15 = vld [vmem:[%s15948_s17 + $0x1828] sm:$0xff] }
 0xfb7   :  { %5950 = vmatpush1.msra.mxu0 %v9432_v36  ;;  %6301 = vmatpush1.msra.mxu1 %v9554_v34  ;;  %v9498_v36 = vld [vmem:[%s15948_s17 + $0x14b0] sm:$0xff]  ;;  %v9620_v34 = vld [vmem:[%s15948_s17 + $0x1820] sm:$0xff] }
 0xfb8   :  { %5951 = vmatprep.subr.mxu0 %v9429_v41  ;;  %6302 = vmatprep.subr.mxu1 %v9551_v40  ;;  %v9495_v41 = vld [vmem:[%s15948_s17 + $0x1498] sm:$0xff]  ;;  %v9617_v40 = vld [vmem:[%s15948_s17 + $0x1808] sm:$0xff] }
 0xfb9   :  { %5952 = vmatpush1.msra.mxu0 %v9428_v45  ;;  %6303 = vmatpush1.msra.mxu1 %v9550_v7  ;;  %v9494_v45 = vld [vmem:[%s15948_s17 + $0x1490] sm:$0xff]  ;;  %v9616_v7 = vld [vmem:[%s15948_s17 + $0x1800] sm:$0xff] }
 0xfba   :  { %5953 = vmatprep.subr.mxu0 %v9425_v53  ;;  %6304 = vmatprep.subr.mxu1 %v9547_v39  ;;  %v9491_v53 = vld [vmem:[%s15948_s17 + $0x1478] sm:$0xff]  ;;  %v9613_v39 = vld [vmem:[%s15948_s17 + $0x17e8] sm:$0xff] }
 0xfbb   :  { %5954 = vmatpush1.msra.mxu0 %v9424_v59  ;;  %6305 = vmatpush1.msra.mxu1 %v9546_v9  ;;  %v9490_v59 = vld [vmem:[%s15948_s17 + $0x1470] sm:$0xff]  ;;  %v9612_v9 = vld [vmem:[%s15948_s17 + $0x17e0] sm:$0xff] }
 0xfbc   :  { %5955 = vmatprep.subr.mxu0 %v9421_v44  ;;  %6306 = vmatprep.subr.mxu1 %v9543_v56  ;;  %v9487_v44 = vld [vmem:[%s15948_s17 + $0x1458] sm:$0xff]  ;;  %v9609_v56 = vld [vmem:[%s15948_s17 + $0x17c8] sm:$0xff] }
 0xfbd   :  { %5956 = vmatpush1.msra.mxu0 %v9420_v3  ;;  %6307 = vmatpush1.msra.mxu1 %v9542_v2  ;;  %v9486_v3 = vld [vmem:[%s15948_s17 + $0x1450] sm:$0xff]  ;;  %v9608_v2 = vld [vmem:[%s15948_s17 + $0x17c0] sm:$0xff] }
 0xfbe   :  { %5957 = vmatprep.subr.mxu0 %v9417_v63  ;;  %6308 = vmatprep.subr.mxu1 %v9539_v8  ;;  %v9483_v63 = vld [vmem:[%s15948_s17 + $0x1438] sm:$0xff]  ;;  %v9605_v8 = vld [vmem:[%s15948_s17 + $0x17a8] sm:$0xff] }
 0xfbf   :  { %5958 = vmatpush1.msra.mxu0 %v9416_v4  ;;  %6309 = vmatpush1.msra.mxu1 %v9538_v51  ;;  %v9482_v4 = vld [vmem:[%s15948_s17 + $0x1430] sm:$0xff]  ;;  %v9604_v51 = vld [vmem:[%s15948_s17 + $0x17a0] sm:$0xff] }
 0xfc0   :  { %5959 = vmatprep.subr.mxu0 %v9413_v1  ;;  %6310 = vmatprep.subr.mxu1 %v9535_v5  ;;  %v9479_v1 = vld [vmem:[%s15948_s17 + $0x1418] sm:$0xff]  ;;  %v9601_v5 = vld [vmem:[%s15948_s17 + $0x1788] sm:$0xff] }
 0xfc1   :  { %5960 = vmatpush1.msra.mxu0 %v9412_v57  ;;  %6311 = vmatpush1.msra.mxu1 %v9534_v17  ;;  %v9478_v57 = vld [vmem:[%s15948_s17 + $0x1410] sm:$0xff]  ;;  %v9600_v17 = vld [vmem:[%s15948_s17 + $0x1780] sm:$0xff] }
 0xfc2   :  { %5961 = vmatprep.subr.mxu0 %v9409_v38  ;;  %6312 = vmatprep.subr.mxu1 %v9531_v25  ;;  %v9475_v38 = vld [vmem:[%s15948_s17 + $0x13f8] sm:$0xff]  ;;  %v9597_v25 = vld [vmem:[%s15948_s17 + $0x1768] sm:$0xff] }
 0xfc3   :  { %5962 = vmatpush1.msra.mxu0 %v9408_v61  ;;  %6313 = vmatpush1.msra.mxu1 %v9530_v60  ;;  %v9474_v61 = vld [vmem:[%s15948_s17 + $0x13f0] sm:$0xff]  ;;  %v9596_v60 = vld [vmem:[%s15948_s17 + $0x1760] sm:$0xff] }
 0xfc4   :  { %5963 = vmatprep.subr.mxu0 %v9405_v20  ;;  %6314 = vmatprep.subr.mxu1 %v9527_v29  ;;  %v9471_v20 = vld [vmem:[%s15948_s17 + $0x13d8] sm:$0xff]  ;;  %v9593_v29 = vld [vmem:[%s15948_s17 + $0x1748] sm:$0xff] }
 0xfc5   :  { %5964 = vmatpush1.msra.mxu0 %v9404_v43  ;;  %6315 = vmatpush1.msra.mxu1 %v9526_v11  ;;  %v9470_v43 = vld [vmem:[%s15948_s17 + $0x13d0] sm:$0xff]  ;;  %v9592_v11 = vld [vmem:[%s15948_s17 + $0x1740] sm:$0xff] }
 0xfc6   :  { %5965 = vmatprep.subr.mxu0 %v9401_v18  ;;  %6316 = vmatprep.subr.mxu1 %v9523_v62  ;;  %v9467_v18 = vld [vmem:[%s15948_s17 + $0x13b8] sm:$0xff]  ;;  %v9589_v62 = vld [vmem:[%s15948_s17 + $0x1728] sm:$0xff] }
 0xfc7   :  { %5966 = vmatpush1.msra.mxu0 %v9400_v10  ;;  %6317 = vmatpush1.msra.mxu1 %v9522_v23  ;;  %v9466_v10 = vld [vmem:[%s15948_s17 + $0x13b0] sm:$0xff]  ;;  %v9588_v23 = vld [vmem:[%s15948_s17 + $0x1720] sm:$0xff] }
 0xfc8   :  { %5967 = vmatprep.subr.mxu0 %v9397_v35  ;;  %6318 = vmatprep.subr.mxu1 %v9519_v24  ;;  %v9463_v35 = vld [vmem:[%s15948_s17 + $0x1398] sm:$0xff]  ;;  %v9585_v24 = vld [vmem:[%s15948_s17 + $0x1708] sm:$0xff] }
 0xfc9   :  { %5968 = vmatpush1.msra.mxu0 %v9396_v22  ;;  %6319 = vmatpush1.msra.mxu1 %v9518_v13  ;;  %v9462_v22 = vld [vmem:[%s15948_s17 + $0x1390] sm:$0xff]  ;;  %v9584_v13 = vld [vmem:[%s15948_s17 + $0x1700] sm:$0xff] }
 0xfca   :  { %5969 = vmatprep.subr.mxu0 %v9393_v47  ;;  %6320 = vmatprep.subr.mxu1 %v9515_v14  ;;  %v9459_v47 = vld [vmem:[%s15948_s17 + $0x1378] sm:$0xff]  ;;  %v9581_v14 = vld [vmem:[%s15948_s17 + $0x16e8] sm:$0xff] }
 0xfcb   :  { %5970 = vmatpush1.msra.mxu0 %v9392_v49  ;;  %6003 = vmatprep.mubr.f32.mxu0 %v10616_v0  ;;  %v9458_v49 = vld [vmem:[%s15948_s17 + $0x1370] sm:$0xff] }
 0xfcc   :  { %6321 = vmatpush1.msra.mxu1 %v9514_v58  ;;  %6354 = vmatprep.mubr.f32.mxu1 %v10616_v0  ;;  %v9580_v58 = vld [vmem:[%s15948_s17 + $0x16e0] sm:$0xff] }
 0xfcd   :  { %9451 = vmatmul.mubr.msk.f32.vlgmr.msra.gmra.mxu0 %vm166_vm3, %v12577_v48  ;;  %9511 = vmatprep.subr.msk.mxu0 %vm1467_vm10, %v9507_v52  ;;  %v9455_v52 = vld [vmem:[%s15948_s17 + $0x1358] sm:$0xff] }
 0xfce   :  { %9572 = vmatmul.mubr.msk.f32.vlgmr.msra.gmra.mxu1 %vm166_vm3, %v12577_v48  ;;  %9632 = vmatprep.subr.msk.mxu1 %vm1467_vm10, %v9629_v6  ;;  %v9577_v6 = vld [vmem:[%s15948_s17 + $0x16c8] sm:$0xff] }
 0xfcf   :  { %9512 = vmatpush1.msk.msra.mxu0 %vm1467_vm10, %v9506_v16  ;;  %9633 = vmatpush1.msk.msra.mxu1 %vm1467_vm10, %v9628_v12  ;;  %v9454_v16 = vld [vmem:[%s15948_s17 + $0x1350] sm:$0xff]  ;;  %v9576_v12 = vld [vmem:[%s15948_s17 + $0x16c0] sm:$0xff] }
 0xfd0   :  { %6156 = vmatprep.subr.mxu0 %v9503_v21  ;;  %6507 = vmatprep.subr.mxu1 %v9625_v31  ;;  %v9569_v21 = vld [vmem:[%s15948_s17 + $0x16b8] sm:$0xf]  ;;  %v9691_v31 = vld [vmem:[%s15948_s17 + $0x1a28] sm:$0xf] }
 0xfd1   :  { %6157 = vmatpush1.msra.mxu0 %v9502_v19  ;;  %6508 = vmatpush1.msra.mxu1 %v9624_v33  ;;  %v9568_v19 = vld [vmem:[%s15948_s17 + $0x16b0] sm:$0xf]  ;;  %v9690_v33 = vld [vmem:[%s15948_s17 + $0x1a20] sm:$0xf] }
 0xfd2   :  { %6158 = vmatprep.subr.mxu0 %v9499_v32  ;;  %6509 = vmatprep.subr.mxu1 %v9621_v15  ;;  %v9565_v32 = vld [vmem:[%s15948_s17 + $0x1698] sm:$0xff]  ;;  %v9687_v15 = vld [vmem:[%s15948_s17 + $0x1a08] sm:$0xff] }
 0xfd3   :  { %6159 = vmatpush1.msra.mxu0 %v9498_v36  ;;  %6510 = vmatpush1.msra.mxu1 %v9620_v34  ;;  %v9564_v36 = vld [vmem:[%s15948_s17 + $0x1690] sm:$0xff]  ;;  %v9686_v34 = vld [vmem:[%s15948_s17 + $0x1a00] sm:$0xff] }
 0xfd4   :  { %6160 = vmatprep.subr.mxu0 %v9495_v41  ;;  %6511 = vmatprep.subr.mxu1 %v9617_v40  ;;  %v9561_v41 = vld [vmem:[%s15948_s17 + $0x1678] sm:$0xff]  ;;  %v9683_v40 = vld [vmem:[%s15948_s17 + $0x19e8] sm:$0xff] }
 0xfd5   :  { %6161 = vmatpush1.msra.mxu0 %v9494_v45  ;;  %6512 = vmatpush1.msra.mxu1 %v9616_v7  ;;  %v9560_v45 = vld [vmem:[%s15948_s17 + $0x1670] sm:$0xff]  ;;  %v9682_v7 = vld [vmem:[%s15948_s17 + $0x19e0] sm:$0xff] }
 0xfd6   :  { %6162 = vmatprep.subr.mxu0 %v9491_v53  ;;  %6513 = vmatprep.subr.mxu1 %v9613_v39  ;;  %v9557_v53 = vld [vmem:[%s15948_s17 + $0x1658] sm:$0xff]  ;;  %v9679_v39 = vld [vmem:[%s15948_s17 + $0x19c8] sm:$0xff] }
 0xfd7   :  { %6163 = vmatpush1.msra.mxu0 %v9490_v59  ;;  %6514 = vmatpush1.msra.mxu1 %v9612_v9  ;;  %v9556_v59 = vld [vmem:[%s15948_s17 + $0x1650] sm:$0xff]  ;;  %v9678_v9 = vld [vmem:[%s15948_s17 + $0x19c0] sm:$0xff] }
 0xfd8   :  { %6164 = vmatprep.subr.mxu0 %v9487_v44  ;;  %6515 = vmatprep.subr.mxu1 %v9609_v56  ;;  %v9553_v44 = vld [vmem:[%s15948_s17 + $0x1638] sm:$0xff]  ;;  %v9675_v56 = vld [vmem:[%s15948_s17 + $0x19a8] sm:$0xff] }
 0xfd9   :  { %6165 = vmatpush1.msra.mxu0 %v9486_v3  ;;  %6516 = vmatpush1.msra.mxu1 %v9608_v2  ;;  %v9552_v3 = vld [vmem:[%s15948_s17 + $0x1630] sm:$0xff]  ;;  %v9674_v2 = vld [vmem:[%s15948_s17 + $0x19a0] sm:$0xff] }
 0xfda   :  { %6166 = vmatprep.subr.mxu0 %v9483_v63  ;;  %6517 = vmatprep.subr.mxu1 %v9605_v8  ;;  %v9549_v63 = vld [vmem:[%s15948_s17 + $0x1618] sm:$0xff]  ;;  %v9671_v8 = vld [vmem:[%s15948_s17 + $0x1988] sm:$0xff] }
 0xfdb   :  { %6167 = vmatpush1.msra.mxu0 %v9482_v4  ;;  %6518 = vmatpush1.msra.mxu1 %v9604_v51  ;;  %v9548_v4 = vld [vmem:[%s15948_s17 + $0x1610] sm:$0xff]  ;;  %v9670_v51 = vld [vmem:[%s15948_s17 + $0x1980] sm:$0xff] }
 0xfdc   :  { %6168 = vmatprep.subr.mxu0 %v9479_v1  ;;  %6519 = vmatprep.subr.mxu1 %v9601_v5  ;;  %v9545_v1 = vld [vmem:[%s15948_s17 + $0x15f8] sm:$0xff]  ;;  %v9667_v5 = vld [vmem:[%s15948_s17 + $0x1968] sm:$0xff] }
 0xfdd   :  { %6169 = vmatpush1.msra.mxu0 %v9478_v57  ;;  %6520 = vmatpush1.msra.mxu1 %v9600_v17  ;;  %v9544_v57 = vld [vmem:[%s15948_s17 + $0x15f0] sm:$0xff]  ;;  %v9666_v17 = vld [vmem:[%s15948_s17 + $0x1960] sm:$0xff] }
 0xfde   :  { %6170 = vmatprep.subr.mxu0 %v9475_v38  ;;  %6521 = vmatprep.subr.mxu1 %v9597_v25  ;;  %v9541_v38 = vld [vmem:[%s15948_s17 + $0x15d8] sm:$0xff]  ;;  %v9663_v25 = vld [vmem:[%s15948_s17 + $0x1948] sm:$0xff] }
 0xfdf   :  { %6171 = vmatpush1.msra.mxu0 %v9474_v61  ;;  %6522 = vmatpush1.msra.mxu1 %v9596_v60  ;;  %v9540_v61 = vld [vmem:[%s15948_s17 + $0x15d0] sm:$0xff]  ;;  %v9662_v60 = vld [vmem:[%s15948_s17 + $0x1940] sm:$0xff] }
 0xfe0   :  { %6172 = vmatprep.subr.mxu0 %v9471_v20  ;;  %6523 = vmatprep.subr.mxu1 %v9593_v29  ;;  %v9537_v20 = vld [vmem:[%s15948_s17 + $0x15b8] sm:$0xff]  ;;  %v9659_v29 = vld [vmem:[%s15948_s17 + $0x1928] sm:$0xff] }
 0xfe1   :  { %6173 = vmatpush1.msra.mxu0 %v9470_v43  ;;  %6524 = vmatpush1.msra.mxu1 %v9592_v11  ;;  %v9536_v43 = vld [vmem:[%s15948_s17 + $0x15b0] sm:$0xff]  ;;  %v9658_v11 = vld [vmem:[%s15948_s17 + $0x1920] sm:$0xff] }
 0xfe2   :  { %6174 = vmatprep.subr.mxu0 %v9467_v18  ;;  %6525 = vmatprep.subr.mxu1 %v9589_v62  ;;  %v9533_v18 = vld [vmem:[%s15948_s17 + $0x1598] sm:$0xff]  ;;  %v9655_v62 = vld [vmem:[%s15948_s17 + $0x1908] sm:$0xff] }
 0xfe3   :  { %6175 = vmatpush1.msra.mxu0 %v9466_v10  ;;  %6526 = vmatpush1.msra.mxu1 %v9588_v23  ;;  %v9532_v10 = vld [vmem:[%s15948_s17 + $0x1590] sm:$0xff]  ;;  %v9654_v23 = vld [vmem:[%s15948_s17 + $0x1900] sm:$0xff] }
 0xfe4   :  { %6176 = vmatprep.subr.mxu0 %v9463_v35  ;;  %6527 = vmatprep.subr.mxu1 %v9585_v24  ;;  %v9529_v35 = vld [vmem:[%s15948_s17 + $0x1578] sm:$0xff]  ;;  %v9651_v24 = vld [vmem:[%s15948_s17 + $0x18e8] sm:$0xff] }
 0xfe5   :  { %6177 = vmatpush1.msra.mxu0 %v9462_v22  ;;  %6528 = vmatpush1.msra.mxu1 %v9584_v13  ;;  %v9528_v22 = vld [vmem:[%s15948_s17 + $0x1570] sm:$0xff]  ;;  %v9650_v13 = vld [vmem:[%s15948_s17 + $0x18e0] sm:$0xff] }
 0xfe6   :  { %6178 = vmatprep.subr.mxu0 %v9459_v47  ;;  %6529 = vmatprep.subr.mxu1 %v9581_v14  ;;  %v9525_v47 = vld [vmem:[%s15948_s17 + $0x1558] sm:$0xff]  ;;  %v9647_v14 = vld [vmem:[%s15948_s17 + $0x18c8] sm:$0xff] }
 0xfe7   :  { %6179 = vmatpush1.msra.mxu0 %v9458_v49  ;;  %6530 = vmatpush1.msra.mxu1 %v9580_v58  ;;  %v9524_v49 = vld [vmem:[%s15948_s17 + $0x1550] sm:$0xff]  ;;  %v9646_v58 = vld [vmem:[%s15948_s17 + $0x18c0] sm:$0xff] }
 0xfe8   :  { %6180 = vmatprep.subr.mxu0 %v9455_v52  ;;  %6531 = vmatprep.subr.mxu1 %v9577_v6  ;;  %v9521_v52 = vld [vmem:[%s15948_s17 + $0x1538] sm:$0xff]  ;;  %v9643_v6 = vld [vmem:[%s15948_s17 + $0x18a8] sm:$0xff] }
 0xfe9   :  { %6181 = vmatpush1.msra.mxu0 %v9454_v16  ;;  %6214 = vmatprep.mubr.f32.mxu0 %v10616_v0  ;;  %v9520_v16 = vld [vmem:[%s15948_s17 + $0x1530] sm:$0xff] }
 0xfea   :  { %6532 = vmatpush1.msra.mxu1 %v9576_v12  ;;  %6565 = vmatprep.mubr.f32.mxu1 %v10616_v0  ;;  %v9642_v12 = vld [vmem:[%s15948_s17 + $0x18a0] sm:$0xff] }
 0xfeb   :  { %9513 = vmatmul.mubr.msk.f32.vlgmr.msra.gmra.mxu0 %vm166_vm3, %v12577_v48  ;;  %9573 = vmatprep.subr.msk.mxu0 %vm1467_vm10, %v9569_v21  ;;  %v9517_v21 = vld [vmem:[%s15948_s17 + $0x1518] sm:$0xff] }
 0xfec   :  { %9634 = vmatmul.mubr.msk.f32.vlgmr.msra.gmra.mxu1 %vm166_vm3, %v12577_v48  ;;  %9694 = vmatprep.subr.msk.mxu1 %vm1467_vm10, %v9691_v31  ;;  %v9639_v31 = vld [vmem:[%s15948_s17 + $0x1888] sm:$0xff] }
 0xfed   :  { %9574 = vmatpush1.msk.msra.mxu0 %vm1467_vm10, %v9568_v19  ;;  %9695 = vmatpush1.msk.msra.mxu1 %vm1467_vm10, %v9690_v33  ;;  %v9516_v19 = vld [vmem:[%s15948_s17 + $0x1510] sm:$0xff]  ;;  %v9638_v33 = vld [vmem:[%s15948_s17 + $0x1880] sm:$0xff] }
 0xfee   :  { %6367 = vmatprep.subr.mxu0 %v9565_v32  ;;  %6718 = vmatprep.subr.mxu1 %v9687_v15  ;;  %v9631_v32 = vld [vmem:[%s15948_s17 + $0x1878] sm:$0xf]  ;;  %v9753_v15 = vld [vmem:[%s15948_s17 + $0x1be8] sm:$0xf] }
 0xfef   :  { %6368 = vmatpush1.msra.mxu0 %v9564_v36  ;;  %6719 = vmatpush1.msra.mxu1 %v9686_v34  ;;  %v9630_v36 = vld [vmem:[%s15948_s17 + $0x1870] sm:$0xf]  ;;  %v9752_v34 = vld [vmem:[%s15948_s17 + $0x1be0] sm:$0xf] }
 0xff0   :  { %6369 = vmatprep.subr.mxu0 %v9561_v41  ;;  %6720 = vmatprep.subr.mxu1 %v9683_v40  ;;  %v9627_v41 = vld [vmem:[%s15948_s17 + $0x1858] sm:$0xff]  ;;  %v9749_v40 = vld [vmem:[%s15948_s17 + $0x1bc8] sm:$0xff] }
 0xff1   :  { %6370 = vmatpush1.msra.mxu0 %v9560_v45  ;;  %6721 = vmatpush1.msra.mxu1 %v9682_v7  ;;  %v9626_v45 = vld [vmem:[%s15948_s17 + $0x1850] sm:$0xff]  ;;  %v9748_v7 = vld [vmem:[%s15948_s17 + $0x1bc0] sm:$0xff] }
 0xff2   :  { %6371 = vmatprep.subr.mxu0 %v9557_v53  ;;  %6722 = vmatprep.subr.mxu1 %v9679_v39  ;;  %v9623_v53 = vld [vmem:[%s15948_s17 + $0x1838] sm:$0xff]  ;;  %v9745_v39 = vld [vmem:[%s15948_s17 + $0x1ba8] sm:$0xff] }
 0xff3   :  { %6372 = vmatpush1.msra.mxu0 %v9556_v59  ;;  %6723 = vmatpush1.msra.mxu1 %v9678_v9  ;;  %v9622_v59 = vld [vmem:[%s15948_s17 + $0x1830] sm:$0xff]  ;;  %v9744_v9 = vld [vmem:[%s15948_s17 + $0x1ba0] sm:$0xff] }
 0xff4   :  { %6373 = vmatprep.subr.mxu0 %v9553_v44  ;;  %6724 = vmatprep.subr.mxu1 %v9675_v56  ;;  %v9619_v44 = vld [vmem:[%s15948_s17 + $0x1818] sm:$0xff]  ;;  %v9741_v56 = vld [vmem:[%s15948_s17 + $0x1b88] sm:$0xff] }
 0xff5   :  { %6374 = vmatpush1.msra.mxu0 %v9552_v3  ;;  %6725 = vmatpush1.msra.mxu1 %v9674_v2  ;;  %v9618_v3 = vld [vmem:[%s15948_s17 + $0x1810] sm:$0xff]  ;;  %v9740_v2 = vld [vmem:[%s15948_s17 + $0x1b80] sm:$0xff] }
 0xff6   :  { %6375 = vmatprep.subr.mxu0 %v9549_v63  ;;  %6726 = vmatprep.subr.mxu1 %v9671_v8  ;;  %v9615_v63 = vld [vmem:[%s15948_s17 + $0x17f8] sm:$0xff]  ;;  %v9737_v8 = vld [vmem:[%s15948_s17 + $0x1b68] sm:$0xff] }
 0xff7   :  { %6376 = vmatpush1.msra.mxu0 %v9548_v4  ;;  %6727 = vmatpush1.msra.mxu1 %v9670_v51  ;;  %v9614_v4 = vld [vmem:[%s15948_s17 + $0x17f0] sm:$0xff]  ;;  %v9736_v51 = vld [vmem:[%s15948_s17 + $0x1b60] sm:$0xff] }
 0xff8   :  { %6377 = vmatprep.subr.mxu0 %v9545_v1  ;;  %6728 = vmatprep.subr.mxu1 %v9667_v5  ;;  %v9611_v1 = vld [vmem:[%s15948_s17 + $0x17d8] sm:$0xff]  ;;  %v9733_v5 = vld [vmem:[%s15948_s17 + $0x1b48] sm:$0xff] }
 0xff9   :  { %6378 = vmatpush1.msra.mxu0 %v9544_v57  ;;  %6729 = vmatpush1.msra.mxu1 %v9666_v17  ;;  %v9610_v57 = vld [vmem:[%s15948_s17 + $0x17d0] sm:$0xff]  ;;  %v9732_v17 = vld [vmem:[%s15948_s17 + $0x1b40] sm:$0xff] }
 0xffa   :  { %6379 = vmatprep.subr.mxu0 %v9541_v38  ;;  %6730 = vmatprep.subr.mxu1 %v9663_v25  ;;  %v9607_v38 = vld [vmem:[%s15948_s17 + $0x17b8] sm:$0xff]  ;;  %v9729_v25 = vld [vmem:[%s15948_s17 + $0x1b28] sm:$0xff] }
 0xffb   :  { %6380 = vmatpush1.msra.mxu0 %v9540_v61  ;;  %6731 = vmatpush1.msra.mxu1 %v9662_v60  ;;  %v9606_v61 = vld [vmem:[%s15948_s17 + $0x17b0] sm:$0xff]  ;;  %v9728_v60 = vld [vmem:[%s15948_s17 + $0x1b20] sm:$0xff] }
 0xffc   :  { %6381 = vmatprep.subr.mxu0 %v9537_v20  ;;  %6732 = vmatprep.subr.mxu1 %v9659_v29  ;;  %v9603_v20 = vld [vmem:[%s15948_s17 + $0x1798] sm:$0xff]  ;;  %v9725_v29 = vld [vmem:[%s15948_s17 + $0x1b08] sm:$0xff] }
 0xffd   :  { %6382 = vmatpush1.msra.mxu0 %v9536_v43  ;;  %6733 = vmatpush1.msra.mxu1 %v9658_v11  ;;  %v9602_v43 = vld [vmem:[%s15948_s17 + $0x1790] sm:$0xff]  ;;  %v9724_v11 = vld [vmem:[%s15948_s17 + $0x1b00] sm:$0xff] }
 0xffe   :  { %6383 = vmatprep.subr.mxu0 %v9533_v18  ;;  %6734 = vmatprep.subr.mxu1 %v9655_v62  ;;  %v9599_v18 = vld [vmem:[%s15948_s17 + $0x1778] sm:$0xff]  ;;  %v9721_v62 = vld [vmem:[%s15948_s17 + $0x1ae8] sm:$0xff] }
 0xfff   :  { %6384 = vmatpush1.msra.mxu0 %v9532_v10  ;;  %6735 = vmatpush1.msra.mxu1 %v9654_v23  ;;  %v9598_v10 = vld [vmem:[%s15948_s17 + $0x1770] sm:$0xff]  ;;  %v9720_v23 = vld [vmem:[%s15948_s17 + $0x1ae0] sm:$0xff] }
0x1000   :  { %6385 = vmatprep.subr.mxu0 %v9529_v35  ;;  %6736 = vmatprep.subr.mxu1 %v9651_v24  ;;  %v9595_v35 = vld [vmem:[%s15948_s17 + $0x1758] sm:$0xff]  ;;  %v9717_v24 = vld [vmem:[%s15948_s17 + $0x1ac8] sm:$0xff] }
0x1001   :  { %6386 = vmatpush1.msra.mxu0 %v9528_v22  ;;  %6737 = vmatpush1.msra.mxu1 %v9650_v13  ;;  %v9594_v22 = vld [vmem:[%s15948_s17 + $0x1750] sm:$0xff]  ;;  %v9716_v13 = vld [vmem:[%s15948_s17 + $0x1ac0] sm:$0xff] }
0x1002   :  { %6387 = vmatprep.subr.mxu0 %v9525_v47  ;;  %6738 = vmatprep.subr.mxu1 %v9647_v14  ;;  %v9591_v47 = vld [vmem:[%s15948_s17 + $0x1738] sm:$0xff]  ;;  %v9713_v14 = vld [vmem:[%s15948_s17 + $0x1aa8] sm:$0xff] }
0x1003   :  { %6388 = vmatpush1.msra.mxu0 %v9524_v49  ;;  %6739 = vmatpush1.msra.mxu1 %v9646_v58  ;;  %v9590_v49 = vld [vmem:[%s15948_s17 + $0x1730] sm:$0xff]  ;;  %v9712_v58 = vld [vmem:[%s15948_s17 + $0x1aa0] sm:$0xff] }
0x1004   :  { %6389 = vmatprep.subr.mxu0 %v9521_v52  ;;  %6740 = vmatprep.subr.mxu1 %v9643_v6  ;;  %v9587_v52 = vld [vmem:[%s15948_s17 + $0x1718] sm:$0xff]  ;;  %v9709_v6 = vld [vmem:[%s15948_s17 + $0x1a88] sm:$0xff] }
0x1005   :  { %6390 = vmatpush1.msra.mxu0 %v9520_v16  ;;  %6741 = vmatpush1.msra.mxu1 %v9642_v12  ;;  %v9586_v16 = vld [vmem:[%s15948_s17 + $0x1710] sm:$0xff]  ;;  %v9708_v12 = vld [vmem:[%s15948_s17 + $0x1a80] sm:$0xff] }
0x1006   :  { %6391 = vmatprep.subr.mxu0 %v9517_v21  ;;  %6742 = vmatprep.subr.mxu1 %v9639_v31  ;;  %v9583_v21 = vld [vmem:[%s15948_s17 + $0x16f8] sm:$0xff]  ;;  %v9705_v31 = vld [vmem:[%s15948_s17 + $0x1a68] sm:$0xff] }
0x1007   :  { %6392 = vmatpush1.msra.mxu0 %v9516_v19  ;;  %6425 = vmatprep.mubr.f32.mxu0 %v10616_v0  ;;  %v9582_v19 = vld [vmem:[%s15948_s17 + $0x16f0] sm:$0xff] }
0x1008   :  { %6743 = vmatpush1.msra.mxu1 %v9638_v33  ;;  %6776 = vmatprep.mubr.f32.mxu1 %v10616_v0  ;;  %v9704_v33 = vld [vmem:[%s15948_s17 + $0x1a60] sm:$0xff] }
0x1009   :  { %9575 = vmatmul.mubr.msk.f32.vlgmr.msra.gmra.mxu0 %vm166_vm3, %v12577_v48  ;;  %9635 = vmatprep.subr.msk.mxu0 %vm1467_vm10, %v9631_v32  ;;  %v9579_v32 = vld [vmem:[%s15948_s17 + $0x16d8] sm:$0xff] }
0x100a   :  { %9696 = vmatmul.mubr.msk.f32.vlgmr.msra.gmra.mxu1 %vm166_vm3, %v12577_v48  ;;  %9756 = vmatprep.subr.msk.mxu1 %vm1467_vm10, %v9753_v15  ;;  %v9701_v15 = vld [vmem:[%s15948_s17 + $0x1a48] sm:$0xff] }
0x100b   :  { %9636 = vmatpush1.msk.msra.mxu0 %vm1467_vm10, %v9630_v36  ;;  %9757 = vmatpush1.msk.msra.mxu1 %vm1467_vm10, %v9752_v34  ;;  %v9578_v36 = vld [vmem:[%s15948_s17 + $0x16d0] sm:$0xff]  ;;  %v9700_v34 = vld [vmem:[%s15948_s17 + $0x1a40] sm:$0xff] }
0x100c   :  { %6578 = vmatprep.subr.mxu0 %v9627_v41  ;;  %6929 = vmatprep.subr.mxu1 %v9749_v40  ;;  %v9693_v41 = vld [vmem:[%s15948_s17 + $0x1a38] sm:$0xf]  ;;  %v9692_v40 = vld [vmem:[%s15948_s17 + $0x1a30] sm:$0xf] }
0x100d   :  { %6579 = vmatpush1.msra.mxu0 %v9626_v45  ;;  %6930 = vmatpush1.msra.mxu1 %v9748_v7  ;;  %v9689_v45 = vld [vmem:[%s15948_s17 + $0x1a18] sm:$0xff]  ;;  %v9688_v7 = vld [vmem:[%s15948_s17 + $0x1a10] sm:$0xff] }
0x100e   :  { %6580 = vmatprep.subr.mxu0 %v9623_v53  ;;  %6931 = vmatprep.subr.mxu1 %v9745_v39  ;;  %v9685_v53 = vld [vmem:[%s15948_s17 + $0x19f8] sm:$0xff]  ;;  %v9684_v39 = vld [vmem:[%s15948_s17 + $0x19f0] sm:$0xff] }
0x100f   :  { %6581 = vmatpush1.msra.mxu0 %v9622_v59  ;;  %6932 = vmatpush1.msra.mxu1 %v9744_v9  ;;  %v9681_v59 = vld [vmem:[%s15948_s17 + $0x19d8] sm:$0xff]  ;;  %v9680_v9 = vld [vmem:[%s15948_s17 + $0x19d0] sm:$0xff] }
0x1010   :  { %6582 = vmatprep.subr.mxu0 %v9619_v44  ;;  %6933 = vmatprep.subr.mxu1 %v9741_v56  ;;  %v9677_v44 = vld [vmem:[%s15948_s17 + $0x19b8] sm:$0xff]  ;;  %v9676_v56 = vld [vmem:[%s15948_s17 + $0x19b0] sm:$0xff] }
0x1011   :  { %6583 = vmatpush1.msra.mxu0 %v9618_v3  ;;  %6934 = vmatpush1.msra.mxu1 %v9740_v2  ;;  %v9673_v3 = vld [vmem:[%s15948_s17 + $0x1998] sm:$0xff]  ;;  %v9672_v2 = vld [vmem:[%s15948_s17 + $0x1990] sm:$0xff] }
0x1012   :  { %6584 = vmatprep.subr.mxu0 %v9615_v63  ;;  %6935 = vmatprep.subr.mxu1 %v9737_v8  ;;  %v9669_v63 = vld [vmem:[%s15948_s17 + $0x1978] sm:$0xff]  ;;  %v9668_v8 = vld [vmem:[%s15948_s17 + $0x1970] sm:$0xff] }
0x1013   :  { %6585 = vmatpush1.msra.mxu0 %v9614_v4  ;;  %6936 = vmatpush1.msra.mxu1 %v9736_v51  ;;  %v9665_v4 = vld [vmem:[%s15948_s17 + $0x1958] sm:$0xff]  ;;  %v9664_v51 = vld [vmem:[%s15948_s17 + $0x1950] sm:$0xff] }
0x1014   :  { %6586 = vmatprep.subr.mxu0 %v9611_v1  ;;  %6937 = vmatprep.subr.mxu1 %v9733_v5  ;;  %v9661_v1 = vld [vmem:[%s15948_s17 + $0x1938] sm:$0xff]  ;;  %v9660_v5 = vld [vmem:[%s15948_s17 + $0x1930] sm:$0xff] }
0x1015   :  { %6587 = vmatpush1.msra.mxu0 %v9610_v57  ;;  %6938 = vmatpush1.msra.mxu1 %v9732_v17  ;;  %v9657_v57 = vld [vmem:[%s15948_s17 + $0x1918] sm:$0xff]  ;;  %v9656_v17 = vld [vmem:[%s15948_s17 + $0x1910] sm:$0xff] }
0x1016   :  { %6588 = vmatprep.subr.mxu0 %v9607_v38  ;;  %6939 = vmatprep.subr.mxu1 %v9729_v25  ;;  %v9653_v38 = vld [vmem:[%s15948_s17 + $0x18f8] sm:$0xff]  ;;  %v9652_v25 = vld [vmem:[%s15948_s17 + $0x18f0] sm:$0xff] }
0x1017   :  { %6589 = vmatpush1.msra.mxu0 %v9606_v61  ;;  %6940 = vmatpush1.msra.mxu1 %v9728_v60  ;;  %v9649_v61 = vld [vmem:[%s15948_s17 + $0x18d8] sm:$0xff]  ;;  %v9648_v60 = vld [vmem:[%s15948_s17 + $0x18d0] sm:$0xff] }
0x1018   :  { %6590 = vmatprep.subr.mxu0 %v9603_v20  ;;  %6941 = vmatprep.subr.mxu1 %v9725_v29  ;;  %v9645_v20 = vld [vmem:[%s15948_s17 + $0x18b8] sm:$0xff]  ;;  %v9644_v29 = vld [vmem:[%s15948_s17 + $0x18b0] sm:$0xff] }
0x1019   :  { %6591 = vmatpush1.msra.mxu0 %v9602_v43  ;;  %6942 = vmatpush1.msra.mxu1 %v9724_v11  ;;  %v9641_v43 = vld [vmem:[%s15948_s17 + $0x1898] sm:$0xff]  ;;  %v9640_v11 = vld [vmem:[%s15948_s17 + $0x1890] sm:$0xff] }
0x101a   :  { %6592 = vmatprep.subr.mxu0 %v9599_v18  ;;  %6943 = vmatprep.subr.mxu1 %v9721_v62  ;;  %v9755_v18 = vld [vmem:[%s15948_s17 + $0x1bf8] sm:$0xf]  ;;  %v9754_v62 = vld [vmem:[%s15948_s17 + $0x1bf0] sm:$0xf] }
0x101b   :  { %6593 = vmatpush1.msra.mxu0 %v9598_v10  ;;  %6944 = vmatpush1.msra.mxu1 %v9720_v23  ;;  %v9751_v10 = vld [vmem:[%s15948_s17 + $0x1bd8] sm:$0xff]  ;;  %v9750_v23 = vld [vmem:[%s15948_s17 + $0x1bd0] sm:$0xff] }
0x101c   :  { %6594 = vmatprep.subr.mxu0 %v9595_v35  ;;  %6945 = vmatprep.subr.mxu1 %v9717_v24  ;;  %v9747_v35 = vld [vmem:[%s15948_s17 + $0x1bb8] sm:$0xff]  ;;  %v9746_v24 = vld [vmem:[%s15948_s17 + $0x1bb0] sm:$0xff] }
0x101d   :  { %6595 = vmatpush1.msra.mxu0 %v9594_v22  ;;  %6946 = vmatpush1.msra.mxu1 %v9716_v13  ;;  %v9743_v22 = vld [vmem:[%s15948_s17 + $0x1b98] sm:$0xff]  ;;  %v9742_v13 = vld [vmem:[%s15948_s17 + $0x1b90] sm:$0xff] }
0x101e   :  { %6596 = vmatprep.subr.mxu0 %v9591_v47  ;;  %6947 = vmatprep.subr.mxu1 %v9713_v14  ;;  %v9739_v47 = vld [vmem:[%s15948_s17 + $0x1b78] sm:$0xff]  ;;  %v9738_v14 = vld [vmem:[%s15948_s17 + $0x1b70] sm:$0xff] }
0x101f   :  { %6597 = vmatpush1.msra.mxu0 %v9590_v49  ;;  %6948 = vmatpush1.msra.mxu1 %v9712_v58  ;;  %v9735_v49 = vld [vmem:[%s15948_s17 + $0x1b58] sm:$0xff]  ;;  %v9734_v58 = vld [vmem:[%s15948_s17 + $0x1b50] sm:$0xff] }
0x1020   :  { %6598 = vmatprep.subr.mxu0 %v9587_v52  ;;  %6949 = vmatprep.subr.mxu1 %v9709_v6  ;;  %v9731_v52 = vld [vmem:[%s15948_s17 + $0x1b38] sm:$0xff]  ;;  %v9730_v6 = vld [vmem:[%s15948_s17 + $0x1b30] sm:$0xff] }
0x1021   :  { %6599 = vmatpush1.msra.mxu0 %v9586_v16  ;;  %6950 = vmatpush1.msra.mxu1 %v9708_v12  ;;  %v9727_v16 = vld [vmem:[%s15948_s17 + $0x1b18] sm:$0xff]  ;;  %v9726_v12 = vld [vmem:[%s15948_s17 + $0x1b10] sm:$0xff] }
0x1022   :  { %6600 = vmatprep.subr.mxu0 %v9583_v21  ;;  %6951 = vmatprep.subr.mxu1 %v9705_v31  ;;  %v9723_v21 = vld [vmem:[%s15948_s17 + $0x1af8] sm:$0xff]  ;;  %v9722_v31 = vld [vmem:[%s15948_s17 + $0x1af0] sm:$0xff] }
0x1023   :  { %6601 = vmatpush1.msra.mxu0 %v9582_v19  ;;  %6952 = vmatpush1.msra.mxu1 %v9704_v33  ;;  %v9719_v19 = vld [vmem:[%s15948_s17 + $0x1ad8] sm:$0xff]  ;;  %v9718_v33 = vld [vmem:[%s15948_s17 + $0x1ad0] sm:$0xff] }
0x1024   :  { %6602 = vmatprep.subr.mxu0 %v9579_v32  ;;  %6953 = vmatprep.subr.mxu1 %v9701_v15  ;;  %v9715_v32 = vld [vmem:[%s15948_s17 + $0x1ab8] sm:$0xff]  ;;  %v9714_v15 = vld [vmem:[%s15948_s17 + $0x1ab0] sm:$0xff] }
0x1025   :  { %6603 = vmatpush1.msra.mxu0 %v9578_v36  ;;  %6636 = vmatprep.mubr.f32.mxu0 %v10616_v0  ;;  %v9711_v36 = vld [vmem:[%s15948_s17 + $0x1a98] sm:$0xff] }
0x1026   :  { %6954 = vmatpush1.msra.mxu1 %v9700_v34  ;;  %6987 = vmatprep.mubr.f32.mxu1 %v10616_v0  ;;  %v9710_v34 = vld [vmem:[%s15948_s17 + $0x1a90] sm:$0xff] }
0x1027   :  { %9637 = vmatmul.mubr.msk.f32.vlgmr.msra.gmra.mxu0 %vm166_vm3, %v12577_v48  ;;  %9697 = vmatprep.subr.msk.mxu0 %vm1467_vm10, %v9693_v41  ;;  %v9707_v41 = vld [vmem:[%s15948_s17 + $0x1a78] sm:$0xff] }
0x1028   :  { %9758 = vmatmul.mubr.msk.f32.vlgmr.msra.gmra.mxu1 %vm166_vm3, %v12577_v48  ;;  %9698 = vmatpush1.msk.msra.mxu0 %vm1467_vm10, %v9692_v40  ;;  %v9706_v40 = vld [vmem:[%s15948_s17 + $0x1a70] sm:$0xff] }
0x1029   :  { %6789 = vmatprep.subr.mxu0 %v9689_v45  ;;  %6847 = vmatprep.mubr.f32.mxu0 %v10616_v0  ;;  %v9703_v45 = vld [vmem:[%s15948_s17 + $0x1a58] sm:$0xff] }
0x102a   :  { %6790 = vmatpush1.msra.mxu0 %v9688_v7  ;;  %7130 = vmatprep.mubr.f32.mxu1 %v10616_v0  ;;  %v9702_v7 = vld [vmem:[%s15948_s17 + $0x1a50] sm:$0xff] }
0x102b   :  { %6791 = vmatprep.subr.mxu0 %v9685_v53  ;;  %v15247_v53 = vpop.f32.mrf.mxu1 }
0x102c   :  { %6792 = vmatpush1.msra.mxu0 %v9684_v39 }
0x102d   :  { %6793 = vmatprep.subr.mxu0 %v9681_v59  ;;  %v15249_v39 = vpop.f32.mrf.mxu1 }
0x102e   :  { %6794 = vmatpush1.msra.mxu0 %v9680_v9 }
0x102f   :  { %6795 = vmatprep.subr.mxu0 %v9677_v44  ;;  %v15251_v59 = vpop.f32.mrf.mxu1 }
0x1030   :  { %6796 = vmatpush1.msra.mxu0 %v9676_v56 }
0x1031   :  { %6797 = vmatprep.subr.mxu0 %v9673_v3  ;;  %v15253_v9 = vpop.f32.mrf.mxu1 }
0x1032   :  { %6798 = vmatpush1.msra.mxu0 %v9672_v2 }
0x1033   :  { %6799 = vmatprep.subr.mxu0 %v9669_v63  ;;  %v15255_v44 = vpop.f32.mrf.mxu1 }
0x1034   :  { %6800 = vmatpush1.msra.mxu0 %v9668_v8 }
0x1035   :  { %6801 = vmatprep.subr.mxu0 %v9665_v4  ;;  %v15257_v56 = vpop.f32.mrf.mxu1 }
0x1036   :  { %6802 = vmatpush1.msra.mxu0 %v9664_v51 }
0x1037   :  { %6803 = vmatprep.subr.mxu0 %v9661_v1  ;;  %v15259_v3 = vpop.f32.mrf.mxu1 }
0x1038   :  { %6804 = vmatpush1.msra.mxu0 %v9660_v5 }
0x1039   :  { %6805 = vmatprep.subr.mxu0 %v9657_v57  ;;  %v15261_v2 = vpop.f32.mrf.mxu1  ;;  %v15265_v57 = vpop.f32.mrf.mxu0 }
0x103a   :  { %6806 = vmatpush1.msra.mxu0 %v9656_v17 }
0x103b   :  { %6807 = vmatprep.subr.mxu0 %v9653_v38  ;;  %v15263_v63 = vpop.f32.mrf.mxu1  ;;  %v15267_v38 = vpop.f32.mrf.mxu0 }
0x103c   :  { %6808 = vmatpush1.msra.mxu0 %v9652_v25 }
0x103d   :  { %6809 = vmatprep.subr.mxu0 %v9649_v61  ;;  %v15269_v61 = vpop.f32.mrf.mxu0 }
0x103e   :  { %6810 = vmatpush1.msra.mxu0 %v9648_v60 }
0x103f   :  { %6811 = vmatprep.subr.mxu0 %v9645_v20  ;;  %v15271_v20 = vpop.f32.mrf.mxu0 }
0x1040   :  { %6812 = vmatpush1.msra.mxu0 %v9644_v29 }
0x1041   :  { %6813 = vmatprep.subr.mxu0 %v9641_v43  ;;  %v15273_v43 = vpop.f32.mrf.mxu0 }
0x1042   :  { %6814 = vmatpush1.msra.mxu0 %v9640_v11 }
0x1043   :  { %9699 = vmatmul.mubr.msk.f32.vlgmr.msra.gmra.mxu0 %vm166_vm3, %v12577_v48  ;;  %9759 = vmatprep.subr.msk.mxu0 %vm1467_vm10, %v9755_v18  ;;  %v15275_v18 = vpop.f32.mrf.mxu0 }
0x1044   :  { %9760 = vmatpush1.msk.msra.mxu0 %vm1467_vm10, %v9754_v62  ;;  %7058 = vmatprep.mubr.f32.mxu0 %v10616_v0  ;;  %vm7523_vm10 = vcmask 1022976  }
0x1045   :  { %7000 = vmatprep.subr.mxu0 %v9751_v10  ;;  %v15277_v10 = vpop.f32.mrf.mxu0 }
0x1046   :  { %7001 = vmatpush1.msra.mxu0 %v9750_v23 }
0x1047   :  { %7002 = vmatprep.subr.mxu0 %v9747_v35  ;;  %v15279_v35 = vpop.f32.mrf.mxu0 }
0x1048   :  { %7003 = vmatpush1.msra.mxu0 %v9746_v24 }
0x1049   :  { %7004 = vmatprep.subr.mxu0 %v9743_v22  ;;  %v15281_v22 = vpop.f32.mrf.mxu0 }
0x104a   :  { %7005 = vmatpush1.msra.mxu0 %v9742_v13 }
0x104b   :  { %7006 = vmatprep.subr.mxu0 %v9739_v47  ;;  %v15283_v47 = vpop.f32.mrf.mxu0 }
0x104c   :  { %7007 = vmatpush1.msra.mxu0 %v9738_v14 }
0x104d   :  { %7008 = vmatprep.subr.mxu0 %v9735_v49  ;;  %v15285_v49 = vpop.f32.mrf.mxu0 }
0x104e   :  { %7009 = vmatpush1.msra.mxu0 %v9734_v58 }
0x104f   :  { %7010 = vmatprep.subr.mxu0 %v9731_v52  ;;  %v15287_v52 = vpop.f32.mrf.mxu0 }
0x1050   :  { %7011 = vmatpush1.msra.mxu0 %v9730_v6 }
0x1051   :  { %7012 = vmatprep.subr.mxu0 %v9727_v16  ;;  %v15289_v16 = vpop.f32.mrf.mxu0 }
0x1052   :  { %7013 = vmatpush1.msra.mxu0 %v9726_v12 }
0x1053   :  { %7014 = vmatprep.subr.mxu0 %v9723_v21  ;;  %v15291_v21 = vpop.f32.mrf.mxu0 }
0x1054   :  { %7015 = vmatpush1.msra.mxu0 %v9722_v31 }
0x1055   :  { %7016 = vmatprep.subr.mxu0 %v9719_v19  ;;  %v15293_v19 = vpop.f32.mrf.mxu0 }
0x1056   :  { %7017 = vmatpush1.msra.mxu0 %v9718_v33 }
0x1057   :  { %7018 = vmatprep.subr.mxu0 %v9715_v32  ;;  %v15295_v32 = vpop.f32.mrf.mxu0 }
0x1058   :  { %7019 = vmatpush1.msra.mxu0 %v9714_v15 }
0x1059   :  { %7020 = vmatprep.subr.mxu0 %v9711_v36  ;;  %v15297_v15 = vpop.f32.mrf.mxu0 }
0x105a   :  { %7021 = vmatpush1.msra.mxu0 %v9710_v34 }
0x105b   :  { %7022 = vmatprep.subr.mxu0 %v9707_v41  ;;  %v5374_v36 = vpop.f32.mrf.mxu0 }
0x105c   :  { %7023 = vmatpush1.msra.mxu0 %v9706_v40 }
0x105d   :  { %7024 = vmatprep.subr.mxu0 %v9703_v45  ;;  %v5583_v34 = vpop.f32.mrf.mxu0 }
0x105e   :  { %7025 = vmatpush1.msra.mxu0 %v9702_v7 }
0x105f   :  { %9761 = vmatmul.mubr.msk.f32.vlgmr.msra.gmra.mxu0 %vm166_vm3, %v12577_v48  ;;  %v4881_v48 = vpop.f32.mrf.mxu1  ;;  %v5585_v41 = vpop.f32.mrf.mxu0 }
0x1060   :  { %7201 = vmatprep.mubr.f32.mxu0 %v10616_v0 }
0x1061   :  { %v5090_v8 = vpop.f32.mrf.mxu1 }
0x1063   :  { %v5092_v4 = vpop.f32.mrf.mxu1 }
0x1065   :  { %v5301_v51 = vpop.f32.mrf.mxu1 }
0x1067   :  { %v5303_v1 = vpop.f32.mrf.mxu1 }
0x1069   :  { %v5512_v5 = vpop.f32.mrf.mxu1 }
0x106b   :  { %v5514_v17 = vpop.f32.mrf.mxu1 }
0x106d   :  { %v5723_v25 = vpop.f32.mrf.mxu1 }
0x106f   :  { %v5725_v60 = vpop.f32.mrf.mxu1  ;;  %v5794_v40 = vpop.f32.mrf.mxu0 }
0x1071   :  { %v5934_v29 = vpop.f32.mrf.mxu1  ;;  %v5796_v45 = vpop.f32.mrf.mxu0 }
0x1073   :  { %v5936_v11 = vpop.f32.mrf.mxu1 }
0x1075   :  { %v6145_v62 = vpop.f32.mrf.mxu1 }
0x1077   :  { %v6147_v23 = vpop.f32.mrf.mxu1 }
0x108d   :  { %v6005_v7 = vpop.f32.mrf.mxu0 }
0x108e   :  { %v6356_v24 = vpop.f32.mrf.mxu1 }
0x1090   :  { %v6358_v13 = vpop.f32.mrf.mxu1 }
0x10ac   :  { %v6567_v14 = vpop.f32.mrf.mxu1 }
0x10ae   :  { %v6569_v58 = vpop.f32.mrf.mxu1 }
0x10ca   :  { %v6778_v6 = vpop.f32.mrf.mxu1 }
0x10cc   :  { %v6780_v12 = vpop.f32.mrf.mxu1 }
0x10e8   :  { %v6989_v31 = vpop.f32.mrf.mxu1 }
0x10ea   :  { %v6991_v33 = vpop.f32.mrf.mxu1 }
0x10eb   :  { %7066 = vmatprep.subr.mxu1 %v6991_v33 }
0x10ec   :  { %7067 = vmatpush1.msra.mxu1 %v6989_v31 }
0x10ed   :  { %7068 = vmatprep.subr.mxu1 %v6780_v12 }
0x10ee   :  { %7069 = vmatpush1.msra.mxu1 %v6778_v6 }
0x10ef   :  { %7070 = vmatprep.subr.mxu1 %v6569_v58 }
0x10f0   :  { %7071 = vmatpush1.msra.mxu1 %v6567_v14 }
0x10f1   :  { %7072 = vmatprep.subr.mxu1 %v6358_v13 }
0x10f2   :  { %7073 = vmatpush1.msra.mxu1 %v6356_v24 }
0x10f3   :  { %7074 = vmatprep.subr.mxu1 %v6147_v23 }
0x10f4   :  { %7075 = vmatpush1.msra.mxu1 %v6145_v62 }
0x10f5   :  { %7076 = vmatprep.subr.mxu1 %v5936_v11 }
0x10f6   :  { %7077 = vmatpush1.msra.mxu1 %v5934_v29 }
0x10f7   :  { %7078 = vmatprep.subr.mxu1 %v5725_v60 }
0x10f8   :  { %7079 = vmatpush1.msra.mxu1 %v5723_v25 }
0x10f9   :  { %7080 = vmatprep.subr.mxu1 %v5514_v17  ;;  %v6007_v17 = vpop.f32.mrf.mxu0 }
0x10fa   :  { %7081 = vmatpush1.msra.mxu1 %v5512_v5 }
0x10fb   :  { %7082 = vmatprep.subr.mxu1 %v5303_v1 }
0x10fc   :  { %7083 = vmatpush1.msra.mxu1 %v5301_v51 }
0x10fd   :  { %7084 = vmatprep.subr.mxu1 %v5092_v4  ;;  %v6216_v4 = vpop.f32.mrf.mxu0 }
0x10fe   :  { %7085 = vmatpush1.msra.mxu1 %v5090_v8 }
0x10ff   :  { %7086 = vmatprep.subr.mxu1 %v4881_v48 }
0x1100   :  { %7087 = vmatpush1.msra.mxu1 %v15263_v63 }
0x1101   :  { %7088 = vmatprep.subr.mxu1 %v15261_v2  ;;  %v7065_v2 = vld [vmem:[%s15949_s18] sm:$0xff]  ;;  %s10629_s18 = smov 14  }
0x1102   :  { %7089 = vmatpush1.msra.mxu1 %v15259_v3 }
0x1103   :  { %7090 = vmatprep.subr.mxu1 %v15257_v56  ;;  %v6218_v56 = vpop.f32.mrf.mxu0 }
0x1104   :  { %7091 = vmatpush1.msra.mxu1 %v15255_v44 }
0x1105   :  { %7092 = vmatprep.subr.mxu1 %v15253_v9  ;;  %v6427_v9 = vpop.f32.mrf.mxu0 }
0x1106   :  { %7093 = vmatpush1.msra.mxu1 %v15251_v59 }
0x1107   :  { %7094 = vmatprep.subr.mxu1 %v15249_v39  ;;  %v6429_v44 = vpop.f32.mrf.mxu0 }
0x1108   :  { %7095 = vmatpush1.msra.mxu1 %v15247_v53 }
0x1109   :  { %7096 = vmatprep.subr.mxu1 %v15267_v38  ;;  %v6638_v59 = vpop.f32.mrf.mxu0 }
0x110a   :  { %7097 = vmatpush1.msra.mxu1 %v15265_v57 }
0x110b   :  { %7131 = vmatmul.mubr.f32.vlgmr.msra.gmra.mxu1 %v7065_v2  ;;  %v6640_v3 = vpop.f32.mrf.mxu0 }
0x110c   :  { %7674 = vmatprep.mubr.f32.mxu1 %v10616_v0 }
0x110d   :  { %v6849_v63 = vpop.f32.mrf.mxu0 }
0x110f   :  { %v6851_v39 = vpop.f32.mrf.mxu0 }
0x111f   :  { %v7060_v48 = vpop.f32.mrf.mxu0 }
0x1121   :  { %v7062_v53 = vpop.f32.mrf.mxu0 }
0x1122   :  { %7137 = vmatprep.subr.mxu0 %v7062_v53  ;;  %v15390_v53 = vld [vmem:[%s15950_s23 + $0x8] sm:$0xff] }
0x1123   :  { %7138 = vmatpush1.msra.mxu0 %v7060_v48  ;;  %v15385_v48 = vld [vmem:[%s15950_s23 + $0x28] ss:$0 sm:$0xff] }
0x1124   :  { %7139 = vmatprep.subr.mxu0 %v6851_v39  ;;  %v15380_v39 = vld [vmem:[%s15950_s23 + $0x20] ss:$0 sm:$0xff] }
0x1125   :  { %7140 = vmatpush1.msra.mxu0 %v6849_v63 }
0x1126   :  { %7141 = vmatprep.subr.mxu0 %v6640_v3 }
0x1127   :  { %7142 = vmatpush1.msra.mxu0 %v6638_v59 }
0x1128   :  { %7143 = vmatprep.subr.mxu0 %v6429_v44 }
0x1129   :  { %7144 = vmatpush1.msra.mxu0 %v6427_v9 }
0x112a   :  { %7145 = vmatprep.subr.mxu0 %v6218_v56 }
0x112b   :  { %7146 = vmatpush1.msra.mxu0 %v6216_v4 }
0x112c   :  { %7147 = vmatprep.subr.mxu0 %v6007_v17 }
0x112d   :  { %7148 = vmatpush1.msra.mxu0 %v6005_v7 }
0x112e   :  { %7149 = vmatprep.subr.mxu0 %v5796_v45 }
0x112f   :  { %7150 = vmatpush1.msra.mxu0 %v5794_v40 }
0x1130   :  { %7151 = vmatprep.subr.mxu0 %v5585_v41 }
0x1131   :  { %7152 = vmatpush1.msra.mxu0 %v5583_v34 }
0x1132   :  { %7153 = vmatprep.subr.mxu0 %v5374_v36 }
0x1133   :  { %7154 = vmatpush1.msra.mxu0 %v15297_v15 }
0x1134   :  { %7155 = vmatprep.subr.mxu0 %v15295_v32 }
0x1135   :  { %7156 = vmatpush1.msra.mxu0 %v15293_v19 }
0x1136   :  { %7157 = vmatprep.subr.mxu0 %v15291_v21 }
0x1137   :  { %7158 = vmatpush1.msra.mxu0 %v15289_v16 }
0x1138   :  { %7159 = vmatprep.subr.mxu0 %v15287_v52 }
0x1139   :  { %7160 = vmatpush1.msra.mxu0 %v15285_v49 }
0x113a   :  { %7161 = vmatprep.subr.mxu0 %v15283_v47 }
0x113b   :  { %7162 = vmatpush1.msra.mxu0 %v15281_v22 }
0x113c   :  { %7163 = vmatprep.subr.mxu0 %v15279_v35 }
0x113d   :  { %7164 = vmatpush1.msra.mxu0 %v15277_v10 }
0x113e   :  { %7165 = vmatprep.subr.mxu0 %v15275_v18 }
0x113f   :  { %7166 = vmatpush1.msra.mxu0 %v15273_v43 }
0x1140   :  { %7167 = vmatprep.subr.mxu0 %v15271_v20 }
0x1141   :  { %7168 = vmatpush1.msra.mxu0 %v15269_v61 }
0x1142   :  { %7202 = vmatmul.mubr.f32.vlgmr.msra.gmra.mxu0 %v7065_v2 }
0x1143   :  { %8054 = vmatprep.mubr.f32.mxu0 %v10616_v0 }
0x11cb   :  { %v7132_v8 = vpop.f32.mrf.mxu1 }
0x11cc   :  { %v7216_v1 = vmul.f32 %v7132_v8, %v7132_v8 }
0x11cd   :  { %v7134_v51 = vpop.f32.mrf.mxu1 }
0x11ce   :  { %v7217_v5 = vmul.f32 %v7134_v51, %v7134_v51  ;;  %v7208_v57 = vadd.f32 %v7134_v51, %v7132_v8 }
0x11d0   :  { %v7220_v38 = vadd.f32 %v7217_v5, %v7216_v1 }
0x1202   :  { %v7203_v25 = vpop.f32.mrf.mxu0 }
0x1203   :  { %v7218_v60 = vmul.f32 %v7203_v25, %v7203_v25  ;;  %v7209_v29 = vadd.f32 %v7208_v57, %v7203_v25 }
0x1204   :  { %v7205_v11 = vpop.f32.mrf.mxu0 }
0x1205   :  { %v7221_v18 = vadd.f32 %v7220_v38, %v7218_v60  ;;  %v7219_v62 = vmul.f32 %v7205_v11, %v7205_v11  ;;  %v7210_v43 = vsel %vm15972_vm12, %v7205_v11, 0.0  ;;  %v15406_v60 = vld [vmem:[%s15950_s23] sm:$0xff] }
0x1206   :  { %v7211_v20 = vadd.f32 %v7210_v43, %v7209_v29 }
0x1207   :  { %v7222_v61 = vsel %vm15972_vm12, %v7219_v62, 0.0  ;;  %v15414_v62 = vrot.slane %v15406_v60, %v10819_v28 }
0x1208   :  { %7212 = vadd.xlane.f32.xlu0 %v7211_v20  ;;  %v7223_v10 = vadd.f32 %v7222_v61, %v7221_v18 }
0x120a   :  { %7224 = vadd.xlane.f32.xlu1 %v7223_v10 }
0x1291   :  { %v7213_v23 = vpop.xlane.xlu0 %7212 }
0x1292   :  { %v7215_v35 = vmul.f32 0.0023148148, %v7213_v23 }
0x1293   :  { %v7225_v24 = vpop.xlane.xlu1 %7224 }
0x1294   :  { %v7226_v22 = vmul.f32 0.0023148148, %v7225_v24  ;;  %v7227_v13 = vmul.f32 %v7215_v35, %v7215_v35  ;;  %v7230_v49 = vsub.f32 %v7134_v51, %v7215_v35  ;;  %v7229_v58 = vsub.f32 %v7132_v8, %v7215_v35 }
0x1295   :  { %v7232_v52 = vsub.f32 %v7205_v11, %v7215_v35  ;;  %v7231_v6 = vsub.f32 %v7203_v25, %v7215_v35  ;;  %v15401_v25 = vrot.slane %v15390_v53, %v10819_v28  ;;  %v15421_v35 = vrot.slane %v15406_v60, %v10825_v30 }
0x1296   :  { %v7228_v47 = vsub.f32 %v7226_v22, %v7227_v13  ;;  %v15425_v24 = vrot.slane %v15390_v53, %v10825_v30 }
0x1298   :  { %v7233_v14 = vadd.f32 1e-05, %v7228_v47 }
0x129a   :  { %10592 = vrsqrt.f32 %v7233_v14 }
0x12a7   :  { %v10593_v16 = vpop.eup %10592 }
0x12a8   :  { %v7236_v12 = vmul.f32 %v10593_v16, %v7230_v49  ;;  %v7235_v21 = vmul.f32 %v10593_v16, %v7229_v58  ;;  %v7238_v31 = vmul.f32 %v10593_v16, %v7232_v52  ;;  %v7237_v19 = vmul.f32 %v10593_v16, %v7231_v6 }
0x12a9   :  { %v15436_v52 = vrot.slane %v15390_v53, %v10840_v37 }
0x12aa   :  { %vm7240_vm1 = vcmp.ge.f32.partialorder %v7236_v12, 0.0  ;;  %v7244_v33 = vmul.f32 0.01, %v7236_v12  ;;  %vm7239_vm2 = vcmp.ge.f32.partialorder %v7235_v21, 0.0  ;;  %v7243_v32 = vmul.f32 0.01, %v7235_v21 }
0x12ab   :  { %v7246_v34 = vmul.f32 0.01, %v7238_v31  ;;  %v7245_v41 = vmul.f32 0.01, %v7237_v19  ;;  %vm7242_vm3 = vcmp.ge.f32.partialorder %v7238_v31, 0.0  ;;  %vm7241_vm4 = vcmp.ge.f32.partialorder %v7237_v19, 0.0 }
0x12ac   :  { %v7248_v15 = vsel %vm7240_vm1, %v7236_v12, %v7244_v33  ;;  %v7247_v36 = vsel %vm7239_vm2, %v7235_v21, %v7243_v32  ;;  %v15444_v21 = vrot.slane %v15406_v60, %v10840_v37  ;;  %vm7307_vm1 = vcmask 826368  }
0x12ad   :  { %7266 = vrot.lane.b32.xlu1 %v7248_v15, %s10629_s18  ;;  %7264 = vrot.lane.b32.xlu0 %v7247_v36, %s10629_s18  ;;  %v7250_v40 = vsel %vm7242_vm3, %v7238_v31, %v7246_v34  ;;  %v7249_v45 = vsel %vm7241_vm4, %v7237_v19, %v7245_v41  ;;  %v15451_v36 = vrot.slane %v15406_v60, %v10849_v42 }
0x12ae   :  { %v15455_v34 = vrot.slane %v15390_v53, %v10849_v42 }
0x12b1   :  { %7270 = vrot.lane.b32.xlu1 %v7250_v40, %s10629_s18  ;;  %7268 = vrot.lane.b32.xlu0 %v7249_v45, %s10629_s18 }
0x131f   :  { %v7267_v7 = vpop.permute.xlu1 %7266  ;;  %v7265_v17 = vpop.permute.xlu0 %7264 }
0x1320   :  { %v7273_v4 = vsel %vm7272_vm5, %v7265_v17, %v7267_v7  ;;  %v7278_v56 = vsel %vm7272_vm5, 0.0, %v7265_v17 }
0x1321   :  { %7589 = vrot.lane.b32.xlu0 %v7273_v4, %s10621_s8 }
0x1323   :  { %v7269_v2 = vpop.permute.xlu0 %7268  ;;  %v7271_v44 = vpop.permute.xlu1 %7270 }
0x1324   :  { %v7274_v9 = vsel %vm7272_vm5, %v7267_v7, %v7269_v2  ;;  %v7275_v59 = vsel %vm7272_vm5, %v7269_v2, %v7271_v44  ;;  %v15466_v2 = vrot.slane %v15390_v53, %v10858_v46 }
0x1325   :  { %7587 = vrot.lane.b32.xlu0 %v7278_v56, %s10621_s8  ;;  %7591 = vrot.lane.b32.xlu1 %v7274_v9, %s10621_s8  ;;  %v7280_v3 = vsel %vm7279_vm6, %v7275_v59, 0.0  ;;  %v15474_v59 = vrot.slane %v15406_v60, %v10858_v46 }
0x1329   :  { %7555 = vrot.lane.b32.xlu0 %v7274_v9, %s10627_s28  ;;  %7553 = vrot.lane.b32.xlu1 %v7273_v4, %s10627_s28 }
0x132d   :  { %7517 = vrot.lane.b32.xlu0 %v7273_v4, %s15997_s26  ;;  %7551 = vrot.lane.b32.xlu1 %v7278_v56, %s10627_s28 }
0x1331   :  { %7515 = vrot.lane.b32.xlu0 %v7278_v56, %s15997_s26  ;;  %7519 = vrot.lane.b32.xlu1 %v7274_v9, %s15997_s26 }
0x1335   :  { %7483 = vrot.lane.b32.xlu0 %v7274_v9, %s15998_s15  ;;  %7481 = vrot.lane.b32.xlu1 %v7273_v4, %s15998_s15 }
0x1339   :  { %7445 = vrot.lane.b32.xlu0 %v7273_v4, %s15999_s12  ;;  %7479 = vrot.lane.b32.xlu1 %v7278_v56, %s15998_s15 }
0x133d   :  { %7443 = vrot.lane.b32.xlu0 %v7278_v56, %s15999_s12  ;;  %7447 = vrot.lane.b32.xlu1 %v7274_v9, %s15999_s12 }
0x1341   :  { %7411 = vrot.lane.b32.xlu0 %v7274_v9, %s16000_s29  ;;  %7409 = vrot.lane.b32.xlu1 %v7273_v4, %s16000_s29 }
0x1345   :  { %7373 = vrot.lane.b32.xlu0 %v7273_v4, %s10630_s1  ;;  %7407 = vrot.lane.b32.xlu1 %v7278_v56, %s16000_s29 }
0x1349   :  { %7371 = vrot.lane.b32.xlu0 %v7278_v56, %s10630_s1  ;;  %7375 = vrot.lane.b32.xlu1 %v7274_v9, %s10630_s1 }
0x134d   :  { %7339 = vrot.lane.b32.xlu0 %v7274_v9, %s10631_s11  ;;  %7337 = vrot.lane.b32.xlu1 %v7273_v4, %s10631_s11 }
0x1351   :  { %7301 = vrot.lane.b32.xlu0 %v7273_v4, %s10632_s6  ;;  %7335 = vrot.lane.b32.xlu1 %v7278_v56, %s10631_s11 }
0x1355   :  { %7299 = vrot.lane.b32.xlu0 %v7278_v56, %s10632_s6  ;;  %7303 = vrot.lane.b32.xlu1 %v7274_v9, %s10632_s6 }
0x1359   :  { %7557 = vrot.lane.b32.xlu0 %v7280_v3, %s10627_s28  ;;  %7593 = vrot.lane.b32.xlu1 %v7280_v3, %s10621_s8 }
0x135d   :  { %7485 = vrot.lane.b32.xlu0 %v7280_v3, %s15998_s15  ;;  %7521 = vrot.lane.b32.xlu1 %v7280_v3, %s15997_s26 }
0x1361   :  { %7413 = vrot.lane.b32.xlu0 %v7280_v3, %s16000_s29  ;;  %7449 = vrot.lane.b32.xlu1 %v7280_v3, %s15999_s12 }
0x1365   :  { %7341 = vrot.lane.b32.xlu0 %v7280_v3, %s10631_s11  ;;  %7377 = vrot.lane.b32.xlu1 %v7280_v3, %s10630_s1 }
0x1369   :  { %7305 = vrot.lane.b32.xlu1 %v7280_v3, %s10632_s6 }
0x1393   :  { %v7590_v63 = vpop.permute.xlu0 %7589 }
0x1397   :  { %v15392_v8 = vpop.permute.xlu1 %7591  ;;  %v7588_v51 = vpop.permute.xlu0 %7587 }
0x1398   :  { %v7597_v1 = vsel %vm7595_vm8, %v7590_v63, %v15392_v8  ;;  %v7596_v5 = vsel %vm7595_vm8, %v7588_v51, %v7590_v63 }
0x1399   :  { %v7603_v57 = vmul.f32 %v15380_v39, %v7596_v5  ;;  %v7604_v38 = vmul.f32 %v15385_v48, %v7597_v1 }
0x139b   :  { %v7554_v29 = vpop.permute.xlu1 %7553  ;;  %7624 = vmatprep.subr.mxu1 %v7604_v38  ;;  %v15408_v11 = vpop.permute.xlu0 %7555  ;;  %v15485_v38 = vrot.slane %v15390_v53, %v10866_v50 }
0x139c   :  { %v7561_v18 = vsel %vm7559_vm9, %v7554_v29, %v15408_v11  ;;  %7625 = vmatpush1.msra.mxu1 %v7603_v57  ;;  %v15481_v57 = vrot.slane %v15406_v60, %v10866_v50 }
0x139d   :  { %v7568_v43 = vmul.f32 %v7561_v18, %v15401_v25 }
0x139f   :  { %v7552_v20 = vpop.permute.xlu1 %7551  ;;  %7626 = vmatprep.subr.mxu1 %v7568_v43  ;;  %v7518_v61 = vpop.permute.xlu0 %7517 }
0x13a0   :  { %v7560_v10 = vsel %vm7559_vm9, %v7552_v20, %v7554_v29 }
0x13a1   :  { %v7567_v23 = vmul.f32 %v7560_v10, %v15414_v62 }
0x13a3   :  { %v15427_v22 = vpop.permute.xlu1 %7519  ;;  %7627 = vmatpush1.msra.mxu1 %v7567_v23  ;;  %v7516_v13 = vpop.permute.xlu0 %7515  ;;  %v15496_v23 = vrot.slane %v15390_v53, %v10874_v54 }
0x13a4   :  { %v7525_v47 = vsel %vm7523_vm10, %v7518_v61, %v15427_v22  ;;  %v7524_v14 = vsel %vm7523_vm10, %v7516_v13, %v7518_v61 }
0x13a5   :  { %v7531_v49 = vmul.f32 %v7524_v14, %v15421_v35  ;;  %v7532_v58 = vmul.f32 %v7525_v47, %v15425_v24 }
0x13a7   :  { %v7482_v6 = vpop.permute.xlu1 %7481  ;;  %7628 = vmatprep.subr.mxu1 %v7532_v58  ;;  %v15438_v16 = vpop.permute.xlu0 %7483 }
0x13a8   :  { %v7489_v12 = vsel %vm7487_vm11, %v7482_v6, %v15438_v16  ;;  %7629 = vmatpush1.msra.mxu1 %v7531_v49  ;;  %v15504_v49 = vrot.slane %v15406_v60, %v10874_v54 }
0x13a9   :  { %v7496_v31 = vmul.f32 %v7489_v12, %v15436_v52 }
0x13ab   :  { %v7480_v19 = vpop.permute.xlu1 %7479  ;;  %7630 = vmatprep.subr.mxu1 %v7496_v31  ;;  %v7446_v33 = vpop.permute.xlu0 %7445 }
0x13ac   :  { %v7488_v32 = vsel %vm7487_vm11, %v7480_v19, %v7482_v6 }
0x13ad   :  { %v7495_v15 = vmul.f32 %v7488_v32, %v15444_v21  ;;  %v15515_v32 = vrot.slane %v15406_v60, %v10877_v55 }
0x13af   :  { %v15457_v41 = vpop.permute.xlu1 %7447  ;;  %7631 = vmatpush1.msra.mxu1 %v7495_v15  ;;  %v7444_v40 = vpop.permute.xlu0 %7443 }
0x13b0   :  { %v7453_v45 = vsel %vm7451_vm13, %v7446_v33, %v15457_v41  ;;  %v7452_v7 = vsel %vm7451_vm13, %v7444_v40, %v7446_v33  ;;  %v15511_v33 = vrot.slane %v15390_v53, %v10877_v55 }
0x13b1   :  { %v7459_v17 = vmul.f32 %v7452_v7, %v15451_v36  ;;  %v7460_v4 = vmul.f32 %v7453_v45, %v15455_v34  ;;  %v15522_v45 = vld [vmem:[%s15950_s23 + $0x18] sm:$0xff] }
0x13b3   :  { %v7410_v56 = vpop.permute.xlu1 %7409  ;;  %7632 = vmatprep.subr.mxu1 %v7460_v4  ;;  %v15468_v9 = vpop.permute.xlu0 %7411 }
0x13b4   :  { %v7417_v44 = vsel %vm7415_vm14, %v7410_v56, %v15468_v9  ;;  %7633 = vmatpush1.msra.mxu1 %v7459_v17  ;;  %v15530_v17 = vld [vmem:[%s15950_s23 + $0x10] sm:$0xff] }
0x13b5   :  { %v7424_v3 = vmul.f32 %v7417_v44, %v15466_v2  ;;  %v15542_v44 = vld [vmem:[%s15950_s23 + $0x30] ss:$0 sm:$0xff] }
0x13b7   :  { %v7408_v63 = vpop.permute.xlu1 %7407  ;;  %7634 = vmatprep.subr.mxu1 %v7424_v3  ;;  %v7374_v51 = vpop.permute.xlu0 %7373  ;;  %v15546_v3 = vrot.slane %v15522_v45, %v10819_v28 }
0x13b8   :  { %v7416_v1 = vsel %vm7415_vm14, %v7408_v63, %v7410_v56  ;;  %v15537_v56 = vld [vmem:[%s15950_s23 + $0x38] ss:$0 sm:$0xff]  ;;  %v15551_v63 = vld [vmem:[%s15951_s19] sm:$0xff] }
0x13b9   :  { %v7423_v5 = vmul.f32 %v7416_v1, %v15474_v59  ;;  %v15555_v1 = vrot.slane %v15530_v17, %v10819_v28  ;;  %v15569_v28 = vrot.slane %v15530_v17, %v10825_v30 }
0x13bb   :  { %v15487_v29 = vpop.permute.xlu1 %7375  ;;  %7635 = vmatpush1.msra.mxu1 %v7423_v5  ;;  %v7372_v18 = vpop.permute.xlu0 %7371 }
0x13bc   :  { %v7381_v43 = vsel %vm7379_vm15, %v7374_v51, %v15487_v29  ;;  %v7380_v20 = vsel %vm7379_vm15, %v7372_v18, %v7374_v51 }
0x13bd   :  { %v7387_v61 = vmul.f32 %v7380_v20, %v15481_v57  ;;  %v7388_v10 = vmul.f32 %v7381_v43, %v15485_v38 }
0x13bf   :  { %v7338_v13 = vpop.permute.xlu1 %7337  ;;  %7636 = vmatprep.subr.mxu1 %v7388_v10  ;;  %v15498_v47 = vpop.permute.xlu0 %7339 }
0x13c0   :  { %v7345_v14 = vsel %vm7343_vm0, %v7338_v13, %v15498_v47  ;;  %7637 = vmatpush1.msra.mxu1 %v7387_v61  ;;  %v15564_v61 = vrot.slane %v15522_v45, %v10825_v30  ;;  %v15582_v30 = vrot.slane %v15530_v17, %v10840_v37 }
0x13c1   :  { %v7352_v58 = vmul.f32 %v7345_v14, %v15496_v23 }
0x13c3   :  { %v7336_v6 = vpop.permute.xlu1 %7335  ;;  %7638 = vmatprep.subr.mxu1 %v7352_v58  ;;  %v7302_v12 = vpop.permute.xlu0 %7301 }
0x13c4   :  { %v7344_v31 = vsel %vm7343_vm0, %v7336_v6, %v7338_v13 }
0x13c5   :  { %v7351_v19 = vmul.f32 %v7344_v31, %v15504_v49 }
0x13c7   :  { %v15517_v15 = vpop.permute.xlu1 %7303  ;;  %7639 = vmatpush1.msra.mxu1 %v7351_v19  ;;  %v7300_v40 = vpop.permute.xlu0 %7299  ;;  %v15591_v19 = vrot.slane %v15522_v45, %v10849_v42 }
0x13c8   :  { %v7309_v7 = vsel %vm7307_vm1, %v7302_v12, %v15517_v15  ;;  %v7308_v53 = vsel %vm7307_vm1, %v7300_v40, %v7302_v12 }
0x13c9   :  { %v7316_v60 = vmul.f32 %v7309_v7, %v15511_v33  ;;  %v7315_v4 = vmul.f32 %v7308_v53, %v15515_v32 }
0x13cb   :  { %v7594_v51 = vpop.permute.xlu1 %7593  ;;  %7640 = vmatprep.subr.mxu1 %v7316_v60  ;;  %v7558_v5 = vpop.permute.xlu0 %7557  ;;  %v15606_v60 = vrot.slane %v15530_v17, %v10858_v46 }
0x13cc   :  { %v7598_v18 = vsel %vm7595_vm8, %v15392_v8, %v7594_v51  ;;  %v7606_v43 = vmul.f32 %v15537_v56, %v7594_v51  ;;  %v7562_v20 = vsel %vm7559_vm9, %v15408_v11, %v7558_v5  ;;  %7641 = vmatpush1.msra.mxu1 %v7315_v4  ;;  %v7570_v8 = vmul.f32 %v7558_v5, %v15546_v3 }
0x13cd   :  { %v7605_v10 = vmul.f32 %v15542_v44, %v7598_v18  ;;  %9766 = vmatmul.mubr.msk.f32.vlgmr.msra.gmra.mxu1 %vm270_vm7, %v15551_v63  ;;  %v15576_v11 = vrot.slane %v15522_v45, %v10840_v37  ;;  %v7569_v13 = vmul.f32 %v7562_v20, %v15555_v1  ;;  %v15596_v37 = vrot.slane %v15530_v17, %v10849_v42 }
0x13ce   :  { %7695 = vmatprep.subr.mxu1 %v7606_v43  ;;  %7745 = vmatprep.mubr.f32.mxu1 %v10616_v0  ;;  %v15615_v18 = vrot.slane %v15522_v45, %v10866_v50 }
0x13cf   :  { %v7522_v14 = vpop.permute.xlu1 %7521  ;;  %7696 = vmatpush1.msra.mxu1 %v7605_v10  ;;  %v7486_v58 = vpop.permute.xlu0 %7485 }
0x13d0   :  { %v7526_v6 = vsel %vm7523_vm10, %v15427_v22, %v7522_v14  ;;  %v7534_v12 = vmul.f32 %v7522_v14, %v15564_v61  ;;  %v7490_v31 = vsel %vm7487_vm11, %v15438_v16, %v7486_v58  ;;  %7697 = vmatprep.subr.mxu1 %v7570_v8  ;;  %v7498_v7 = vmul.f32 %v7486_v58, %v15576_v11 }
0x13d1   :  { %v7533_v40 = vmul.f32 %v7526_v6, %v15569_v28  ;;  %7698 = vmatpush1.msra.mxu1 %v7569_v13  ;;  %v15601_v22 = vrot.slane %v15522_v45, %v10858_v46  ;;  %v7497_v16 = vmul.f32 %v7490_v31, %v15582_v30  ;;  %v15620_v46 = vrot.slane %v15530_v17, %v10866_v50 }
0x13d2   :  { %7699 = vmatprep.subr.mxu1 %v7534_v12  ;;  %v15630_v8 = vrot.slane %v15530_v17, %v10874_v54  ;;  %v15639_v6 = vrot.slane %v15522_v45, %v10877_v55 }
0x13d3   :  { %v7450_v53 = vpop.permute.xlu1 %7449  ;;  %7700 = vmatpush1.msra.mxu1 %v7533_v40  ;;  %v7414_v4 = vpop.permute.xlu0 %7413 }
0x13d4   :  { %v7454_v42 = vsel %vm7451_vm13, %v15457_v41, %v7450_v53  ;;  %v7462_v51 = vmul.f32 %v7450_v53, %v15591_v19  ;;  %v7418_v5 = vsel %vm7415_vm14, %v15468_v9, %v7414_v4  ;;  %7701 = vmatprep.subr.mxu1 %v7498_v7  ;;  %v7426_v20 = vmul.f32 %v7414_v4, %v15601_v22 }
0x13d5   :  { %v7461_v43 = vmul.f32 %v7454_v42, %v15596_v37  ;;  %7702 = vmatpush1.msra.mxu1 %v7497_v16  ;;  %v15625_v41 = vrot.slane %v15522_v45, %v10874_v54  ;;  %v7425_v9 = vmul.f32 %v7418_v5, %v15606_v60  ;;  %v15644_v54 = vrot.slane %v15530_v17, %v10877_v55 }
0x13d6   :  { %7703 = vmatprep.subr.mxu1 %v7462_v51 }
0x13d7   :  { %v7378_v10 = vpop.permute.xlu1 %7377  ;;  %7704 = vmatpush1.msra.mxu1 %v7461_v43  ;;  %v7342_v13 = vpop.permute.xlu0 %7341 }
0x13d8   :  { %v7382_v50 = vsel %vm7379_vm15, %v15487_v29, %v7378_v10  ;;  %v7390_v14 = vmul.f32 %v7378_v10, %v15615_v18  ;;  %v7346_v58 = vsel %vm7343_vm0, %v15498_v47, %v7342_v13  ;;  %7705 = vmatprep.subr.mxu1 %v7426_v20  ;;  %v7354_v31 = vmul.f32 %v7342_v13, %v15625_v41 }
0x13d9   :  { %v7389_v12 = vmul.f32 %v7382_v50, %v15620_v46  ;;  %7706 = vmatpush1.msra.mxu1 %v7425_v9  ;;  %v7353_v29 = vmul.f32 %v7346_v58, %v15630_v8 }
0x13da   :  { %7707 = vmatprep.subr.mxu1 %v7390_v14 }
0x13db   :  { %v7306_v40 = vpop.permute.xlu1 %7305  ;;  %7708 = vmatpush1.msra.mxu1 %v7389_v12 }
0x13dc   :  { %v7310_v47 = vsel %vm7307_vm1, %v15517_v15, %v7306_v40  ;;  %v7318_v45 = vmul.f32 %v7306_v40, %v15639_v6  ;;  %7709 = vmatprep.subr.mxu1 %v7354_v31 }
0x13dd   :  { %v7317_v7 = vmul.f32 %v7310_v47, %v15644_v54  ;;  %7710 = vmatpush1.msra.mxu1 %v7353_v29 }
0x13de   :  { %7711 = vmatprep.subr.mxu1 %v7318_v45 }
0x13df   :  { %7712 = vmatpush1.msra.mxu1 %v7317_v7 }
0x13e0   :  { %9767 = vmatmul.mubr.msk.f32.vlgmr.msra.gmra.mxu1 %vm270_vm7, %v15551_v63 }
0x13e1   :  { %8125 = vmatprep.mubr.f32.mxu1 %v10616_v0 }
0x148d   :  { %v7676_v17 = vpop.f32.mrf.mxu1 }
0x148e   :  { %v7759_v53 = vmul.f32 %v7676_v17, %v7676_v17 }
0x148f   :  { %v7678_v16 = vpop.f32.mrf.mxu1 }
0x1490   :  { %v7760_v4 = vmul.f32 %v7678_v16, %v7678_v16  ;;  %v7752_v42 = vadd.f32 %v7678_v16, %v7676_v17 }
0x1492   :  { %v7763_v15 = vadd.f32 %v7760_v4, %v7759_v53 }
0x14a0   :  { %v7747_v51 = vpop.f32.mrf.mxu1 }
0x14a1   :  { %v7753_v5 = vadd.f32 %v7752_v42, %v7747_v51  ;;  %v7761_v43 = vmul.f32 %v7747_v51, %v7747_v51 }
0x14a2   :  { %v7749_v20 = vpop.f32.mrf.mxu1 }
0x14a3   :  { %v7764_v9 = vadd.f32 %v7763_v15, %v7761_v43  ;;  %v7754_v10 = vsel %vm15972_vm12, %v7749_v20, 0.0  ;;  %v7762_v13 = vmul.f32 %v7749_v20, %v7749_v20 }
0x14a4   :  { %v7755_v50 = vadd.f32 %v7754_v10, %v7753_v5 }
0x14a5   :  { %v7765_v14 = vsel %vm15972_vm12, %v7762_v13, 0.0 }
0x14a6   :  { %7756 = vadd.xlane.f32.xlu0 %v7755_v50  ;;  %v7766_v63 = vadd.f32 %v7765_v14, %v7764_v9 }
0x14a8   :  { %7767 = vadd.xlane.f32.xlu1 %v7766_v63 }
0x152f   :  { %v7757_v58 = vpop.xlane.xlu0 %7756 }
0x1530   :  { %v7758_v12 = vmul.f32 0.0023148148, %v7757_v58 }
0x1531   :  { %v7768_v31 = vpop.xlane.xlu1 %7767 }
0x1532   :  { %v7769_v29 = vmul.f32 0.0023148148, %v7768_v31  ;;  %v7770_v40 = vmul.f32 %v7758_v12, %v7758_v12  ;;  %v7773_v7 = vsub.f32 %v7678_v16, %v7758_v12  ;;  %v7772_v53 = vsub.f32 %v7676_v17, %v7758_v12 }
0x1533   :  { %v7775_v4 = vsub.f32 %v7749_v20, %v7758_v12  ;;  %v7774_v42 = vsub.f32 %v7747_v51, %v7758_v12 }
0x1534   :  { %v7771_v47 = vsub.f32 %v7769_v29, %v7770_v40 }
0x1536   :  { %v7776_v45 = vadd.f32 1e-05, %v7771_v47 }
0x1538   :  { %10594 = vrsqrt.f32 %v7776_v45 }
0x1545   :  { %v10595_v15 = vpop.eup %10594 }
0x1546   :  { %v7779_v43 = vmul.f32 %v10595_v15, %v7773_v7  ;;  %v7778_v5 = vmul.f32 %v10595_v15, %v7772_v53  ;;  %v7781_v10 = vmul.f32 %v10595_v15, %v7775_v4  ;;  %v7780_v13 = vmul.f32 %v10595_v15, %v7774_v42 }
0x1548   :  { %vm7783_vm2 = vcmp.ge.f32.partialorder %v7779_v43, 0.0  ;;  %v7787_v9 = vmul.f32 0.01, %v7779_v43  ;;  %vm7782_vm3 = vcmp.ge.f32.partialorder %v7778_v5, 0.0  ;;  %v7786_v50 = vmul.f32 0.01, %v7778_v5 }
0x1549   :  { %v7789_v58 = vmul.f32 0.01, %v7781_v10  ;;  %v7788_v31 = vmul.f32 0.01, %v7780_v13  ;;  %vm7785_vm4 = vcmp.ge.f32.partialorder %v7781_v10, 0.0  ;;  %vm7784_vm12 = vcmp.ge.f32.partialorder %v7780_v13, 0.0 }
0x154a   :  { %v7791_v14 = vsel %vm7783_vm2, %v7779_v43, %v7787_v9  ;;  %v7790_v63 = vsel %vm7782_vm3, %v7778_v5, %v7786_v50 }
0x154b   :  { %7801 = vrot.lane.b32.xlu1 %v7791_v14, %s10629_s18  ;;  %7799 = vrot.lane.b32.xlu0 %v7790_v63, %s10629_s18  ;;  %v7793_v17 = vsel %vm7785_vm4, %v7781_v10, %v7789_v58  ;;  %v7792_v16 = vsel %vm7784_vm12, %v7780_v13, %v7788_v31  ;;  %vm16001_vm12 = vcmask 392192  }
0x154c   :  { %vm16002_vm2 = vmmov %vm16001_vm12 }
0x154f   :  { %7805 = vrot.lane.b32.xlu1 %v7793_v17, %s10629_s18  ;;  %7803 = vrot.lane.b32.xlu0 %v7792_v16, %s10629_s18 }
0x15bd   :  { %v7802_v51 = vpop.permute.xlu1 %7801  ;;  %v7800_v20 = vpop.permute.xlu0 %7799 }
0x15be   :  { %v7807_v12 = vsel %vm7272_vm5, %v7800_v20, %v7802_v51  ;;  %v7812_v40 = vsel %vm7272_vm5, 0.0, %v7800_v20 }
0x15bf   :  { %7970 = vrot.lane.b32.xlu0 %v7807_v12, %s10621_s8 }
0x15c1   :  { %v7804_v29 = vpop.permute.xlu0 %7803  ;;  %v7806_v45 = vpop.permute.xlu1 %7805 }
0x15c2   :  { %v7808_v47 = vsel %vm7272_vm5, %v7802_v51, %v7804_v29  ;;  %v7809_v7 = vsel %vm7272_vm5, %v7804_v29, %v7806_v45 }
0x15c3   :  { %7968 = vrot.lane.b32.xlu0 %v7812_v40, %s10621_s8  ;;  %7972 = vrot.lane.b32.xlu1 %v7808_v47, %s10621_s8  ;;  %v7813_v53 = vsel %vm7279_vm6, %v7809_v7, 0.0 }
0x15c7   :  { %7953 = vrot.lane.b32.xlu0 %v7808_v47, %s10627_s28  ;;  %7951 = vrot.lane.b32.xlu1 %v7807_v12, %s10627_s28 }
0x15cb   :  { %7932 = vrot.lane.b32.xlu0 %v7807_v12, %s15997_s26  ;;  %7949 = vrot.lane.b32.xlu1 %v7812_v40, %s10627_s28 }
0x15cf   :  { %7913 = vrot.lane.b32.xlu0 %v7807_v12, %s15998_s15  ;;  %7934 = vrot.lane.b32.xlu1 %v7808_v47, %s15997_s26 }
0x15d3   :  { %7894 = vrot.lane.b32.xlu0 %v7807_v12, %s15999_s12  ;;  %7930 = vrot.lane.b32.xlu1 %v7812_v40, %s15997_s26 }
0x15d7   :  { %7875 = vrot.lane.b32.xlu0 %v7807_v12, %s16000_s29  ;;  %7915 = vrot.lane.b32.xlu1 %v7808_v47, %s15998_s15 }
0x15db   :  { %7856 = vrot.lane.b32.xlu0 %v7807_v12, %s10630_s1  ;;  %7911 = vrot.lane.b32.xlu1 %v7812_v40, %s15998_s15 }
0x15df   :  { %7837 = vrot.lane.b32.xlu0 %v7807_v12, %s10631_s11  ;;  %7896 = vrot.lane.b32.xlu1 %v7808_v47, %s15999_s12 }
0x15e3   :  { %7818 = vrot.lane.b32.xlu0 %v7807_v12, %s10632_s6  ;;  %7892 = vrot.lane.b32.xlu1 %v7812_v40, %s15999_s12 }
0x15e7   :  { %7974 = vrot.lane.b32.xlu0 %v7813_v53, %s10621_s8  ;;  %7877 = vrot.lane.b32.xlu1 %v7808_v47, %s16000_s29 }
0x15eb   :  { %7955 = vrot.lane.b32.xlu0 %v7813_v53, %s10627_s28  ;;  %7873 = vrot.lane.b32.xlu1 %v7812_v40, %s16000_s29 }
0x15ef   :  { %7936 = vrot.lane.b32.xlu0 %v7813_v53, %s15997_s26  ;;  %7858 = vrot.lane.b32.xlu1 %v7808_v47, %s10630_s1 }
0x15f3   :  { %7917 = vrot.lane.b32.xlu0 %v7813_v53, %s15998_s15  ;;  %7854 = vrot.lane.b32.xlu1 %v7812_v40, %s10630_s1 }
0x15f7   :  { %7898 = vrot.lane.b32.xlu0 %v7813_v53, %s15999_s12  ;;  %7839 = vrot.lane.b32.xlu1 %v7808_v47, %s10631_s11 }
0x15fb   :  { %7879 = vrot.lane.b32.xlu0 %v7813_v53, %s16000_s29  ;;  %7835 = vrot.lane.b32.xlu1 %v7812_v40, %s10631_s11 }
0x15ff   :  { %7860 = vrot.lane.b32.xlu0 %v7813_v53, %s10630_s1  ;;  %7820 = vrot.lane.b32.xlu1 %v7808_v47, %s10632_s6 }
0x1603   :  { %7841 = vrot.lane.b32.xlu0 %v7813_v53, %s10631_s11  ;;  %7816 = vrot.lane.b32.xlu1 %v7812_v40, %s10632_s6 }
0x1607   :  { %7822 = vrot.lane.b32.xlu1 %v7813_v53, %s10632_s6 }
0x1631   :  { %v7971_v4 = vpop.permute.xlu0 %7970 }
0x1635   :  { %v7973_v42 = vpop.permute.xlu1 %7972  ;;  %v7969_v15 = vpop.permute.xlu0 %7968 }
0x1636   :  { %v7977_v43 = vsel %vm7595_vm8, %v7971_v4, %v7973_v42  ;;  %v7976_v5 = vsel %vm7595_vm8, %v7969_v15, %v7971_v4 }
0x1637   :  { %v7984_v10 = vmul.f32 %v15385_v48, %v7977_v43  ;;  %v7983_v13 = vmul.f32 %v15380_v39, %v7976_v5 }
0x1639   :  { %v7952_v9 = vpop.permute.xlu1 %7951  ;;  %8004 = vmatprep.subr.mxu0 %v7984_v10  ;;  %v7954_v50 = vpop.permute.xlu0 %7953 }
0x163a   :  { %v7958_v14 = vsel %vm7559_vm9, %v7952_v9, %v7954_v50  ;;  %8005 = vmatpush1.msra.mxu0 %v7983_v13 }
0x163b   :  { %v7965_v63 = vmul.f32 %v7958_v14, %v15401_v25 }
0x163d   :  { %v7950_v58 = vpop.permute.xlu1 %7949  ;;  %8006 = vmatprep.subr.mxu0 %v7965_v63  ;;  %v7933_v31 = vpop.permute.xlu0 %7932 }
0x163e   :  { %v7957_v17 = vsel %vm7559_vm9, %v7950_v58, %v7952_v9 }
0x163f   :  { %v7964_v16 = vmul.f32 %v7957_v17, %v15414_v62 }
0x1641   :  { %v7935_v51 = vpop.permute.xlu1 %7934  ;;  %8007 = vmatpush1.msra.mxu0 %v7964_v16  ;;  %v7914_v48 = vpop.permute.xlu0 %7913 }
0x1642   :  { %v7939_v39 = vsel %vm7523_vm10, %v7933_v31, %v7935_v51 }
0x1643   :  { %v7946_v20 = vmul.f32 %v7939_v39, %v15425_v24 }
0x1645   :  { %v7931_v12 = vpop.permute.xlu1 %7930  ;;  %8008 = vmatprep.subr.mxu0 %v7946_v20  ;;  %v7895_v29 = vpop.permute.xlu0 %7894 }
0x1646   :  { %v7938_v40 = vsel %vm7523_vm10, %v7931_v12, %v7933_v31 }
0x1647   :  { %v7945_v47 = vmul.f32 %v7938_v40, %v15421_v35 }
0x1649   :  { %v7916_v45 = vpop.permute.xlu1 %7915  ;;  %8009 = vmatpush1.msra.mxu0 %v7945_v47  ;;  %v7876_v7 = vpop.permute.xlu0 %7875 }
0x164a   :  { %v7920_v53 = vsel %vm7487_vm11, %v7914_v48, %v7916_v45 }
0x164b   :  { %v7927_v4 = vmul.f32 %v7920_v53, %v15436_v52 }
0x164d   :  { %v7912_v15 = vpop.permute.xlu1 %7911  ;;  %8010 = vmatprep.subr.mxu0 %v7927_v4  ;;  %v7857_v43 = vpop.permute.xlu0 %7856 }
0x164e   :  { %v7919_v5 = vsel %vm7487_vm11, %v7912_v15, %v7914_v48 }
0x164f   :  { %v7926_v10 = vmul.f32 %v7919_v5, %v15444_v21 }
0x1651   :  { %v7897_v13 = vpop.permute.xlu1 %7896  ;;  %8011 = vmatpush1.msra.mxu0 %v7926_v10  ;;  %v7838_v9 = vpop.permute.xlu0 %7837 }
0x1652   :  { %v7901_v14 = vsel %vm7451_vm13, %v7895_v29, %v7897_v13 }
0x1653   :  { %v7908_v63 = vmul.f32 %v7901_v14, %v15455_v34 }
0x1655   :  { %v7893_v58 = vpop.permute.xlu1 %7892  ;;  %8012 = vmatprep.subr.mxu0 %v7908_v63  ;;  %v15720_v31 = vpop.permute.xlu0 %7818 }
0x1656   :  { %v7900_v17 = vsel %vm7451_vm13, %v7893_v58, %v7895_v29 }
0x1657   :  { %v7907_v16 = vmul.f32 %v7900_v17, %v15451_v36 }
0x1659   :  { %v7878_v39 = vpop.permute.xlu1 %7877  ;;  %8013 = vmatpush1.msra.mxu0 %v7907_v16  ;;  %v7975_v48 = vpop.permute.xlu0 %7974 }
0x165a   :  { %v7882_v20 = vsel %vm7415_vm14, %v7876_v7, %v7878_v39  ;;  %v7978_v12 = vsel %vm7595_vm8, %v7973_v42, %v7975_v48  ;;  %v7986_v40 = vmul.f32 %v15537_v56, %v7975_v48 }
0x165b   :  { %v7889_v47 = vmul.f32 %v7882_v20, %v15466_v2  ;;  %v7985_v53 = vmul.f32 %v15542_v44, %v7978_v12 }
0x165c   :  { %8075 = vmatprep.subr.mxu1 %v7986_v40 }
0x165d   :  { %v7874_v4 = vpop.permute.xlu1 %7873  ;;  %8014 = vmatprep.subr.mxu0 %v7889_v47  ;;  %8076 = vmatpush1.msra.mxu1 %v7985_v53  ;;  %v7956_v29 = vpop.permute.xlu0 %7955 }
0x165e   :  { %v7881_v15 = vsel %vm7415_vm14, %v7874_v4, %v7876_v7  ;;  %v7959_v5 = vsel %vm7559_vm9, %v7954_v50, %v7956_v29  ;;  %v7967_v10 = vmul.f32 %v7956_v29, %v15546_v3 }
0x165f   :  { %v7888_v14 = vmul.f32 %v7881_v15, %v15474_v59  ;;  %v7966_v42 = vmul.f32 %v7959_v5, %v15555_v1 }
0x1660   :  { %8077 = vmatprep.subr.mxu1 %v7967_v10 }
0x1661   :  { %v7859_v63 = vpop.permute.xlu1 %7858  ;;  %8015 = vmatpush1.msra.mxu0 %v7888_v14  ;;  %8078 = vmatpush1.msra.mxu1 %v7966_v42  ;;  %v7937_v58 = vpop.permute.xlu0 %7936 }
0x1662   :  { %v7863_v17 = vsel %vm7379_vm15, %v7857_v43, %v7859_v63  ;;  %v7940_v16 = vsel %vm7523_vm10, %v7935_v51, %v7937_v58  ;;  %v7948_v48 = vmul.f32 %v7937_v58, %v15564_v61 }
0x1663   :  { %v7870_v7 = vmul.f32 %v7863_v17, %v15485_v38  ;;  %v7947_v50 = vmul.f32 %v7940_v16, %v15569_v28 }
0x1664   :  { %8079 = vmatprep.subr.mxu1 %v7948_v48 }
0x1665   :  { %v7855_v20 = vpop.permute.xlu1 %7854  ;;  %8016 = vmatprep.subr.mxu0 %v7870_v7  ;;  %8080 = vmatpush1.msra.mxu1 %v7947_v50  ;;  %v7918_v12 = vpop.permute.xlu0 %7917 }
0x1666   :  { %v7862_v40 = vsel %vm7379_vm15, %v7855_v20, %v7857_v43  ;;  %v7921_v47 = vsel %vm7487_vm11, %v7916_v45, %v7918_v12  ;;  %v7929_v53 = vmul.f32 %v7918_v12, %v15576_v11 }
0x1667   :  { %v7869_v4 = vmul.f32 %v7862_v40, %v15481_v57  ;;  %v7928_v51 = vmul.f32 %v7921_v47, %v15582_v30 }
0x1668   :  { %8081 = vmatprep.subr.mxu1 %v7929_v53 }
0x1669   :  { %v7840_v29 = vpop.permute.xlu1 %7839  ;;  %8017 = vmatpush1.msra.mxu0 %v7869_v4  ;;  %8082 = vmatpush1.msra.mxu1 %v7928_v51  ;;  %v7899_v15 = vpop.permute.xlu0 %7898 }
0x166a   :  { %v7844_v5 = vsel %vm7343_vm0, %v7838_v9, %v7840_v29  ;;  %v7902_v10 = vsel %vm7451_vm13, %v7897_v13, %v7899_v15  ;;  %v7910_v14 = vmul.f32 %v7899_v15, %v15591_v19 }
0x166b   :  { %v7851_v43 = vmul.f32 %v7844_v5, %v15496_v23  ;;  %v7909_v45 = vmul.f32 %v7902_v10, %v15596_v37 }
0x166c   :  { %8083 = vmatprep.subr.mxu1 %v7910_v14  ;;  %v7794_v14 = vld [vmem:[%s15952_s20] sm:$0xff] }
0x166d   :  { %v7836_v42 = vpop.permute.xlu1 %7835  ;;  %8018 = vmatprep.subr.mxu0 %v7851_v43  ;;  %8084 = vmatpush1.msra.mxu1 %v7909_v45  ;;  %v7880_v58 = vpop.permute.xlu0 %7879 }
0x166e   :  { %v7843_v17 = vsel %vm7343_vm0, %v7836_v42, %v7838_v9  ;;  %v7883_v16 = vsel %vm7415_vm14, %v7878_v39, %v7880_v58  ;;  %v7891_v48 = vmul.f32 %v7880_v58, %v15601_v22 }
0x166f   :  { %v7850_v7 = vmul.f32 %v7843_v17, %v15504_v49  ;;  %v7890_v13 = vmul.f32 %v7883_v16, %v15606_v60 }
0x1670   :  { %8085 = vmatprep.subr.mxu1 %v7891_v48 }
0x1671   :  { %v7821_v50 = vpop.permute.xlu1 %7820  ;;  %8019 = vmatpush1.msra.mxu0 %v7850_v7  ;;  %8086 = vmatpush1.msra.mxu1 %v7890_v13  ;;  %v7861_v20 = vpop.permute.xlu0 %7860 }
0x1672   :  { %v7825_v12 = vsel %vm7307_vm1, %v15720_v31, %v7821_v50  ;;  %v7864_v40 = vsel %vm7379_vm15, %v7859_v63, %v7861_v20  ;;  %v7872_v9 = vmul.f32 %v7861_v20, %v15615_v18 }
0x1673   :  { %v7832_v39 = vmul.f32 %v7825_v12, %v15511_v33  ;;  %v7871_v47 = vmul.f32 %v7864_v40, %v15620_v46 }
0x1674   :  { %8087 = vmatprep.subr.mxu1 %v7872_v9 }
0x1675   :  { %v7817_v53 = vpop.permute.xlu1 %7816  ;;  %8020 = vmatprep.subr.mxu0 %v7832_v39  ;;  %8088 = vmatpush1.msra.mxu1 %v7871_v47  ;;  %v7842_v4 = vpop.permute.xlu0 %7841 }
0x1676   :  { %v7824_v51 = vsel %vm7307_vm1, %v7817_v53, %v15720_v31  ;;  %v7845_v15 = vsel %vm7343_vm0, %v7840_v29, %v7842_v4  ;;  %v7853_v5 = vmul.f32 %v7842_v4, %v15625_v41 }
0x1677   :  { %v7831_v63 = vmul.f32 %v7824_v51, %v15515_v32  ;;  %v7852_v10 = vmul.f32 %v7845_v15, %v15630_v8 }
0x1678   :  { %8089 = vmatprep.subr.mxu1 %v7853_v5 }
0x1679   :  { %v7823_v43 = vpop.permute.xlu1 %7822  ;;  %8021 = vmatpush1.msra.mxu0 %v7831_v63  ;;  %8090 = vmatpush1.msra.mxu1 %v7852_v10 }
0x167a   :  { %v7826_v45 = vsel %vm7307_vm1, %v7821_v50, %v7823_v43  ;;  %v7834_v31 = vmul.f32 %v7823_v43, %v15639_v6  ;;  %9768 = vmatmul.mubr.msk.f32.vlgmr.msra.gmra.mxu0 %vm270_vm7, %v7794_v14 }
0x167b   :  { %v7833_v29 = vmul.f32 %v7826_v45, %v15644_v54  ;;  %8444 = vmatprep.mubr.f32.mxu0 %v10616_v0 }
0x167c   :  { %8091 = vmatprep.subr.mxu1 %v7834_v31 }
0x167d   :  { %8092 = vmatpush1.msra.mxu1 %v7833_v29 }
0x167e   :  { %9769 = vmatmul.mubr.msk.f32.vlgmr.msra.gmra.mxu1 %vm270_vm7, %v7794_v14 }
0x167f   :  { %8515 = vmatprep.mubr.f32.mxu1 %v10616_v0 }
0x173a   :  { %v8056_v42 = vpop.f32.mrf.mxu0 }
0x173b   :  { %v8139_v58 = vmul.f32 %v8056_v42, %v8056_v42 }
0x173c   :  { %v8058_v17 = vpop.f32.mrf.mxu0 }
0x173d   :  { %v8132_v16 = vadd.f32 %v8058_v17, %v8056_v42  ;;  %v8140_v48 = vmul.f32 %v8058_v17, %v8058_v17 }
0x173e   :  { %v8127_v7 = vpop.f32.mrf.mxu1 }
0x173f   :  { %v8143_v13 = vadd.f32 %v8140_v48, %v8139_v58  ;;  %v8133_v50 = vadd.f32 %v8132_v16, %v8127_v7  ;;  %v8141_v20 = vmul.f32 %v8127_v7, %v8127_v7 }
0x1740   :  { %v8129_v12 = vpop.f32.mrf.mxu1 }
0x1741   :  { %v8144_v40 = vadd.f32 %v8143_v13, %v8141_v20  ;;  %v8134_v9 = vsel %vm16001_vm12, %v8129_v12, 0.0  ;;  %v8142_v39 = vmul.f32 %v8129_v12, %v8129_v12 }
0x1742   :  { %v8135_v47 = vadd.f32 %v8134_v9, %v8133_v50 }
0x1743   :  { %v8145_v53 = vsel %vm16002_vm2, %v8142_v39, 0.0 }
0x1744   :  { %8136 = vadd.xlane.f32.xlu0 %v8135_v47  ;;  %v8146_v4 = vadd.f32 %v8145_v53, %v8144_v40 }
0x1746   :  { %8147 = vadd.xlane.f32.xlu1 %v8146_v4 }
0x17cd   :  { %v8137_v0 = vpop.xlane.xlu0 %8136 }
0x17ce   :  { %v8138_v51 = vmul.f32 0.0023148148, %v8137_v0 }
0x17cf   :  { %v8148_v15 = vpop.xlane.xlu1 %8147 }
0x17d0   :  { %v8149_v5 = vmul.f32 0.0023148148, %v8148_v15  ;;  %v8150_v63 = vmul.f32 %v8138_v51, %v8138_v51  ;;  %v8153_v43 = vsub.f32 %v8058_v17, %v8138_v51  ;;  %v8152_v45 = vsub.f32 %v8056_v42, %v8138_v51 }
0x17d1   :  { %v8155_v31 = vsub.f32 %v8129_v12, %v8138_v51  ;;  %v8154_v29 = vsub.f32 %v8127_v7, %v8138_v51  ;;  %v33_v7 = vstv %s15953_s22 }
0x17d2   :  { %v8151_v10 = vsub.f32 %v8149_v5, %v8150_v63  ;;  %34 = vst [vmem:[#allocation2] sm:$0x1] %v33_v7 }
0x17d4   :  { %v8156_v14 = vadd.f32 1e-05, %v8151_v10 }
0x17d6   :  { %10596 = vrsqrt.f32 %v8156_v14 }
0x17e3   :  { %v10597_v58 = vpop.eup %10596 }
0x17e4   :  { %v8159_v16 = vmul.f32 %v10597_v58, %v8153_v43  ;;  %v8158_v48 = vmul.f32 %v10597_v58, %v8152_v45  ;;  %v8161_v13 = vmul.f32 %v10597_v58, %v8155_v31  ;;  %v8160_v50 = vmul.f32 %v10597_v58, %v8154_v29  ;;  %v8367_v43 = vld [vmem:[#allocation2] sm:$0x1] }
0x17e6   :  { %vm8163_vm3 = vcmp.ge.f32.partialorder %v8159_v16, 0.0  ;;  %v8167_v20 = vmul.f32 0.01, %v8159_v16  ;;  %vm8162_vm4 = vcmp.ge.f32.partialorder %v8158_v48, 0.0  ;;  %v8166_v40 = vmul.f32 0.01, %v8158_v48 }
0x17e7   :  { %v8169_v47 = vmul.f32 0.01, %v8161_v13  ;;  %v8168_v53 = vmul.f32 0.01, %v8160_v50  ;;  %vm8165_vm12 = vcmp.ge.f32.partialorder %v8161_v13, 0.0  ;;  %vm8164_vm2 = vcmp.ge.f32.partialorder %v8160_v50, 0.0 }
0x17e8   :  { %v8171_v9 = vsel %vm8163_vm3, %v8159_v16, %v8167_v20  ;;  %v8170_v39 = vsel %vm8162_vm4, %v8158_v48, %v8166_v40  ;;  %v10614_v48 = vld [vmem:[%s15950_s23 + $0x28] ss:$0 sm:$0xff] }
0x17e9   :  { %8181 = vrot.lane.b32.xlu1 %v8171_v9, %s10629_s18  ;;  %8179 = vrot.lane.b32.xlu0 %v8170_v39, %s10629_s18  ;;  %v8173_v42 = vsel %vm8165_vm12, %v8161_v13, %v8169_v47  ;;  %v8172_v17 = vsel %vm8164_vm2, %v8160_v50, %v8168_v53  ;;  %v10615_v50 = vld [vmem:[%s15950_s23 + $0x20] ss:$0 sm:$0xff] }
0x17ed   :  { %8185 = vrot.lane.b32.xlu1 %v8173_v42, %s10629_s18  ;;  %8183 = vrot.lane.b32.xlu0 %v8172_v17, %s10629_s18 }
0x185b   :  { %v8182_v12 = vpop.permute.xlu1 %8181  ;;  %v8180_v4 = vpop.permute.xlu0 %8179 }
0x185c   :  { %v8187_v0 = vsel %vm7272_vm5, %v8180_v4, %v8182_v12  ;;  %v8192_v15 = vsel %vm7272_vm5, 0.0, %v8180_v4 }
0x185d   :  { %8350 = vrot.lane.b32.xlu0 %v8187_v0, %s10621_s8 }
0x185f   :  { %v8184_v51 = vpop.permute.xlu0 %8183  ;;  %v8186_v63 = vpop.permute.xlu1 %8185 }
0x1860   :  { %v8188_v5 = vsel %vm7272_vm5, %v8182_v12, %v8184_v51  ;;  %v8189_v10 = vsel %vm7272_vm5, %v8184_v51, %v8186_v63 }
0x1861   :  { %8348 = vrot.lane.b32.xlu0 %v8192_v15, %s10621_s8  ;;  %8352 = vrot.lane.b32.xlu1 %v8188_v5, %s10621_s8  ;;  %v8193_v14 = vsel %vm7279_vm6, %v8189_v10, 0.0 }
0x1865   :  { %8331 = vrot.lane.b32.xlu0 %v8187_v0, %s10627_s28  ;;  %8333 = vrot.lane.b32.xlu1 %v8188_v5, %s10627_s28 }
0x1869   :  { %8329 = vrot.lane.b32.xlu0 %v8192_v15, %s10627_s28  ;;  %8314 = vrot.lane.b32.xlu1 %v8188_v5, %s15997_s26 }
0x186d   :  { %8312 = vrot.lane.b32.xlu0 %v8187_v0, %s15997_s26  ;;  %8295 = vrot.lane.b32.xlu1 %v8188_v5, %s15998_s15 }
0x1871   :  { %8310 = vrot.lane.b32.xlu0 %v8192_v15, %s15997_s26  ;;  %8276 = vrot.lane.b32.xlu1 %v8188_v5, %s15999_s12 }
0x1875   :  { %8293 = vrot.lane.b32.xlu0 %v8187_v0, %s15998_s15  ;;  %8257 = vrot.lane.b32.xlu1 %v8188_v5, %s16000_s29 }
0x1879   :  { %8291 = vrot.lane.b32.xlu0 %v8192_v15, %s15998_s15  ;;  %8238 = vrot.lane.b32.xlu1 %v8188_v5, %s10630_s1 }
0x187d   :  { %8274 = vrot.lane.b32.xlu0 %v8187_v0, %s15999_s12  ;;  %8219 = vrot.lane.b32.xlu1 %v8188_v5, %s10631_s11 }
0x1881   :  { %8272 = vrot.lane.b32.xlu0 %v8192_v15, %s15999_s12  ;;  %8200 = vrot.lane.b32.xlu1 %v8188_v5, %s10632_s6 }
0x1885   :  { %8255 = vrot.lane.b32.xlu0 %v8187_v0, %s16000_s29  ;;  %8354 = vrot.lane.b32.xlu1 %v8193_v14, %s10621_s8 }
0x1889   :  { %8253 = vrot.lane.b32.xlu0 %v8192_v15, %s16000_s29  ;;  %8335 = vrot.lane.b32.xlu1 %v8193_v14, %s10627_s28 }
0x188d   :  { %8236 = vrot.lane.b32.xlu0 %v8187_v0, %s10630_s1  ;;  %8316 = vrot.lane.b32.xlu1 %v8193_v14, %s15997_s26 }
0x1891   :  { %8234 = vrot.lane.b32.xlu0 %v8192_v15, %s10630_s1  ;;  %8297 = vrot.lane.b32.xlu1 %v8193_v14, %s15998_s15 }
0x1895   :  { %8217 = vrot.lane.b32.xlu0 %v8187_v0, %s10631_s11  ;;  %8278 = vrot.lane.b32.xlu1 %v8193_v14, %s15999_s12 }
0x1899   :  { %8215 = vrot.lane.b32.xlu0 %v8192_v15, %s10631_s11  ;;  %8259 = vrot.lane.b32.xlu1 %v8193_v14, %s16000_s29 }
0x189d   :  { %8198 = vrot.lane.b32.xlu0 %v8187_v0, %s10632_s6  ;;  %8240 = vrot.lane.b32.xlu1 %v8193_v14, %s10630_s1 }
0x18a1   :  { %8196 = vrot.lane.b32.xlu0 %v8192_v15, %s10632_s6  ;;  %8221 = vrot.lane.b32.xlu1 %v8193_v14, %s10631_s11 }
0x18a5   :  { %8370 = vperm.xlu0 %10578, %v8367_v43   ;;  %8202 = vrot.lane.b32.xlu1 %v8193_v14, %s10632_s6 }
0x18cf   :  { %v8351_v45 = vpop.permute.xlu0 %8350 }
0x18d3   :  { %v8353_v31 = vpop.permute.xlu1 %8352  ;;  %v8349_v29 = vpop.permute.xlu0 %8348 }
0x18d4   :  { %v8357_v58 = vsel %vm7595_vm8, %v8351_v45, %v8353_v31  ;;  %v8356_v16 = vsel %vm7595_vm8, %v8349_v29, %v8351_v45 }
0x18d5   :  { %v8364_v13 = vmul.f32 %v10614_v48, %v8357_v58  ;;  %v8363_v20 = vmul.f32 %v10615_v50, %v8356_v16 }
0x18d7   :  { %v8334_v40 = vpop.permute.xlu1 %8333  ;;  %8394 = vmatprep.subr.mxu0 %v8364_v13  ;;  %v8332_v9 = vpop.permute.xlu0 %8331 }
0x18d8   :  { %v8338_v39 = vsel %vm7559_vm9, %v8332_v9, %v8334_v40  ;;  %8395 = vmatpush1.msra.mxu0 %v8363_v20 }
0x18d9   :  { %v8345_v47 = vmul.f32 %v8338_v39, %v15401_v25 }
0x18db   :  { %v8315_v53 = vpop.permute.xlu1 %8314  ;;  %8396 = vmatprep.subr.mxu0 %v8345_v47  ;;  %v8330_v42 = vpop.permute.xlu0 %8329 }
0x18dc   :  { %v8337_v17 = vsel %vm7559_vm9, %v8330_v42, %v8332_v9 }
0x18dd   :  { %v8344_v7 = vmul.f32 %v8337_v17, %v15414_v62 }
0x18df   :  { %v15838_v12 = vpop.permute.xlu1 %8295  ;;  %8397 = vmatpush1.msra.mxu0 %v8344_v7  ;;  %v8313_v4 = vpop.permute.xlu0 %8312 }
0x18e0   :  { %v8319_v0 = vsel %vm7523_vm10, %v8313_v4, %v8315_v53 }
0x18e1   :  { %v8326_v51 = vmul.f32 %v8319_v0, %v15425_v24 }
0x18e3   :  { %v15842_v15 = vpop.permute.xlu1 %8276  ;;  %8398 = vmatprep.subr.mxu0 %v8326_v51  ;;  %v8311_v5 = vpop.permute.xlu0 %8310 }
0x18e4   :  { %v8318_v25 = vsel %vm7523_vm10, %v8311_v5, %v8313_v4 }
0x18e5   :  { %v8325_v63 = vmul.f32 %v8318_v25, %v15421_v35 }
0x18e7   :  { %v15846_v10 = vpop.permute.xlu1 %8257  ;;  %8399 = vmatpush1.msra.mxu0 %v8325_v63  ;;  %v8294_v62 = vpop.permute.xlu0 %8293 }
0x18e8   :  { %v8300_v14 = vsel %vm7487_vm11, %v8294_v62, %v15838_v12 }
0x18e9   :  { %v8307_v43 = vmul.f32 %v8300_v14, %v15436_v52 }
0x18eb   :  { %v15851_v45 = vpop.permute.xlu1 %8238  ;;  %8400 = vmatprep.subr.mxu0 %v8307_v43  ;;  %v8292_v24 = vpop.permute.xlu0 %8291 }
0x18ec   :  { %v8299_v29 = vsel %vm7487_vm11, %v8292_v24, %v8294_v62 }
0x18ed   :  { %v8306_v58 = vmul.f32 %v8299_v29, %v15444_v21 }
0x18ef   :  { %v15855_v16 = vpop.permute.xlu1 %8219  ;;  %8401 = vmatpush1.msra.mxu0 %v8306_v58  ;;  %v8275_v35 = vpop.permute.xlu0 %8274 }
0x18f0   :  { %v8281_v48 = vsel %vm7451_vm13, %v8275_v35, %v15842_v15 }
0x18f1   :  { %v8288_v13 = vmul.f32 %v8281_v48, %v15455_v34 }
0x18f3   :  { %v15860_v50 = vpop.permute.xlu1 %8200  ;;  %8402 = vmatprep.subr.mxu0 %v8288_v13  ;;  %v8273_v52 = vpop.permute.xlu0 %8272 }
0x18f4   :  { %v8280_v20 = vsel %vm7451_vm13, %v8273_v52, %v8275_v35 }
0x18f5   :  { %v8287_v9 = vmul.f32 %v8280_v20, %v15451_v36 }
0x18f7   :  { %v8355_v39 = vpop.permute.xlu1 %8354  ;;  %8403 = vmatpush1.msra.mxu0 %v8287_v9  ;;  %v8256_v21 = vpop.permute.xlu0 %8255 }
0x18f8   :  { %v8358_v47 = vsel %vm7595_vm8, %v8353_v31, %v8355_v39  ;;  %v8366_v42 = vmul.f32 %v15537_v56, %v8355_v39  ;;  %v8262_v17 = vsel %vm7415_vm14, %v8256_v21, %v15846_v10 }
0x18f9   :  { %v8365_v34 = vmul.f32 %v15542_v44, %v8358_v47  ;;  %v8269_v7 = vmul.f32 %v8262_v17, %v15466_v2 }
0x18fa   :  { %8465 = vmatprep.subr.mxu1 %v8366_v42 }
0x18fb   :  { %8466 = vmatpush1.msra.mxu1 %v8365_v34  ;;  %v8336_v4 = vpop.permute.xlu1 %8335  ;;  %8404 = vmatprep.subr.mxu0 %v8269_v7  ;;  %v8254_v0 = vpop.permute.xlu0 %8253 }
0x18fc   :  { %v8339_v36 = vsel %vm7559_vm9, %v8334_v40, %v8336_v4  ;;  %v8347_v51 = vmul.f32 %v8336_v4, %v15546_v3  ;;  %v8261_v31 = vsel %vm7415_vm14, %v8254_v0, %v8256_v21 }
0x18fd   :  { %v8346_v56 = vmul.f32 %v8339_v36, %v15555_v1  ;;  %v8268_v5 = vmul.f32 %v8261_v31, %v15474_v59 }
0x18fe   :  { %8467 = vmatprep.subr.mxu1 %v8347_v51 }
0x18ff   :  { %8468 = vmatpush1.msra.mxu1 %v8346_v56  ;;  %v8317_v44 = vpop.permute.xlu1 %8316  ;;  %8405 = vmatpush1.msra.mxu0 %v8268_v5  ;;  %v8237_v2 = vpop.permute.xlu0 %8236 }
0x1900   :  { %v8320_v25 = vsel %vm7523_vm10, %v8315_v53, %v8317_v44  ;;  %v8328_v63 = vmul.f32 %v8317_v44, %v15564_v61  ;;  %v8243_v40 = vsel %vm7379_vm15, %v8237_v2, %v15851_v45 }
0x1901   :  { %v8327_v3 = vmul.f32 %v8320_v25, %v15569_v28  ;;  %v8250_v62 = vmul.f32 %v8243_v40, %v15485_v38 }
0x1902   :  { %8469 = vmatprep.subr.mxu1 %v8328_v63 }
0x1903   :  { %8470 = vmatpush1.msra.mxu1 %v8327_v3  ;;  %v8298_v1 = vpop.permute.xlu1 %8297  ;;  %8406 = vmatprep.subr.mxu0 %v8250_v62  ;;  %v8235_v59 = vpop.permute.xlu0 %8234 }
0x1904   :  { %v8301_v14 = vsel %vm7487_vm11, %v15838_v12, %v8298_v1  ;;  %v8309_v43 = vmul.f32 %v8298_v1, %v15576_v11  ;;  %v8242_v53 = vsel %vm7379_vm15, %v8235_v59, %v8237_v2 }
0x1905   :  { %v8308_v61 = vmul.f32 %v8301_v14, %v15582_v30  ;;  %v8249_v24 = vmul.f32 %v8242_v53, %v15481_v57  ;;  %v10633_v53 = vmov 1966171168  }
0x1906   :  { %8471 = vmatprep.subr.mxu1 %v8309_v43 }
0x1907   :  { %8472 = vmatpush1.msra.mxu1 %v8308_v61  ;;  %v8279_v28 = vpop.permute.xlu1 %8278  ;;  %8407 = vmatpush1.msra.mxu0 %v8249_v24  ;;  %v8218_v38 = vpop.permute.xlu0 %8217  ;;  %v8553_v61 = vunpack.c.l.s4 %v10633_v53 }
0x1908   :  { %v8282_v29 = vsel %vm7451_vm13, %v15842_v15, %v8279_v28  ;;  %v8290_v58 = vmul.f32 %v8279_v28, %v15591_v19  ;;  %v8224_v12 = vsel %vm7343_vm0, %v8218_v38, %v15855_v16 }
0x1909   :  { %v8289_v11 = vmul.f32 %v8282_v29, %v15596_v37  ;;  %v8231_v35 = vmul.f32 %v8224_v12, %v15496_v23  ;;  %v8554_v24 = vunpack.c.0.s8 %v8553_v61 }
0x190a   :  { %8473 = vmatprep.subr.mxu1 %v8290_v58 }
0x190b   :  { %8474 = vmatpush1.msra.mxu1 %v8289_v11  ;;  %v8260_v57 = vpop.permute.xlu1 %8259  ;;  %8408 = vmatprep.subr.mxu0 %v8231_v35  ;;  %v8216_v30 = vpop.permute.xlu0 %8215  ;;  %v8557_v12 = vsub.s32 %v8554_v24, %v10816_v27 }
0x190c   :  { %v8263_v48 = vsel %vm7415_vm14, %v15846_v10, %v8260_v57  ;;  %v8271_v13 = vmul.f32 %v8260_v57, %v15601_v22  ;;  %v8223_v15 = vsel %vm7343_vm0, %v8216_v30, %v8218_v38 }
0x190d   :  { %v8270_v19 = vmul.f32 %v8263_v48, %v15606_v60  ;;  %v8230_v52 = vmul.f32 %v8223_v15, %v15504_v49 }
0x190e   :  { %8475 = vmatprep.subr.mxu1 %v8271_v13 }
0x190f   :  { %8476 = vmatpush1.msra.mxu1 %v8270_v19  ;;  %v8241_v37 = vpop.permute.xlu1 %8240  ;;  %8409 = vmatpush1.msra.mxu0 %v8230_v52  ;;  %v8199_v23 = vpop.permute.xlu0 %8198 }
0x1910   :  { %v8244_v20 = vsel %vm7379_vm15, %v15851_v45, %v8241_v37  ;;  %v8252_v9 = vmul.f32 %v8241_v37, %v15615_v18  ;;  %v8205_v10 = vsel %vm7307_vm1, %v8199_v23, %v15860_v50 }
0x1911   :  { %v8251_v22 = vmul.f32 %v8244_v20, %v15620_v46  ;;  %v8212_v39 = vmul.f32 %v8205_v10, %v15511_v33  ;;  %v8174_v33 = vld [vmem:[%s15954_s21] sm:$0x1] }
0x1912   :  { %8477 = vmatprep.subr.mxu1 %v8252_v9 }
0x1913   :  { %8478 = vmatpush1.msra.mxu1 %v8251_v22  ;;  %v8222_v49 = vpop.permute.xlu1 %8221  ;;  %8410 = vmatprep.subr.mxu0 %v8212_v39  ;;  %v8197_v60 = vpop.permute.xlu0 %8196 }
0x1914   :  { %v8225_v21 = vsel %vm7343_vm0, %v15855_v16, %v8222_v49  ;;  %v8233_v47 = vmul.f32 %v8222_v49, %v15625_v41  ;;  %v8204_v45 = vsel %vm7307_vm1, %v8197_v60, %v8199_v23 }
0x1915   :  { %v8232_v18 = vmul.f32 %v8225_v21, %v15630_v8  ;;  %v8211_v42 = vmul.f32 %v8204_v45, %v15515_v32 }
0x1916   :  { %8479 = vmatprep.subr.mxu1 %v8233_v47 }
0x1917   :  { %8480 = vmatpush1.msra.mxu1 %v8232_v18  ;;  %v8203_v46 = vpop.permute.xlu1 %8202  ;;  %8411 = vmatpush1.msra.mxu0 %v8211_v42 }
0x1918   :  { %v8206_v17 = vsel %vm7307_vm1, %v15860_v50, %v8203_v46  ;;  %v8214_v16 = vmul.f32 %v8203_v46, %v15639_v6  ;;  %9770 = vmatmul.mubr.msk.f32.vlgmr.msra.gmra.mxu0 %vm270_vm7, %v8174_v33 }
0x1919   :  { %v8213_v41 = vmul.f32 %v8206_v17, %v15644_v54 }
0x191a   :  { %8481 = vmatprep.subr.mxu1 %v8214_v16 }
0x191b   :  { %8482 = vmatpush1.msra.mxu1 %v8213_v41 }
0x191c   :  { %9771 = vmatmul.mubr.msk.f32.vlgmr.msra.gmra.mxu1 %vm270_vm7, %v8174_v33  ;;  %vm8577_vm7 = vcmp.lt.s32.totalorder %v197_v26, 432 }
0x1920   :  { %v8371_v32 = vpop.permute.xlu0 %8370 }
0x1921   :  { %v8376_v8 = vrot.slane %v8371_v32, %v10877_v55 }
0x19d8   :  { %v8446_v34 = vpop.f32.mrf.mxu0 }
0x19d9   :  { %v8447_v7 = vadd.f32 %v8446_v34, %v8376_v8 }
0x19da   :  { %v8448_v4 = vpop.f32.mrf.mxu0 }
0x19db   :  { %v8522_v0 = vsub.f32 0.0, %v8447_v7  ;;  %v8449_v36 = vadd.f32 %v8448_v4, %v8376_v8 }
0x19dc   :  { %v8517_v51 = vpop.f32.mrf.mxu1 }
0x19dd   :  { %v8526_v50 = vmul.f32 1.442695, %v8522_v0  ;;  %v8523_v31 = vsub.f32 0.0, %v8449_v36  ;;  %v8518_v6 = vadd.f32 %v8517_v51, %v8376_v8 }
0x19de   :  { %v8519_v56 = vpop.f32.mrf.mxu1 }
0x19df   :  { %10598 = vpow2.f32 %v8526_v50  ;;  %v8528_v5 = vmul.f32 1.442695, %v8523_v31  ;;  %v8524_v54 = vsub.f32 0.0, %v8518_v6  ;;  %v8520_v44 = vadd.f32 %v8519_v56, %v8376_v8 }
0x19e1   :  { %10600 = vpow2.f32 %v8528_v5  ;;  %v8530_v2 = vmul.f32 1.442695, %v8524_v54  ;;  %v8525_v25 = vsub.f32 0.0, %v8520_v44 }
0x19e3   :  { %10602 = vpow2.f32 %v8530_v2  ;;  %v8532_v63 = vmul.f32 1.442695, %v8525_v25 }
0x19e5   :  { %10604 = vpow2.f32 %v8532_v63 }
0x19ec   :  { %v10599_v55 = vpop.eup %10598 }
0x19ed   :  { %v8534_v3 = vadd.f32 1.0, %v10599_v55 }
0x19ee   :  { %v10601_v40 = vpop.eup %10600 }
0x19ef   :  { %v8535_v62 = vadd.f32 1.0, %v10601_v40 }
0x19f0   :  { %v10603_v1 = vpop.eup %10602 }
0x19f1   :  { %10606 = vrcp.f32 %v8535_v62  ;;  %v8536_v59 = vadd.f32 1.0, %v10603_v1 }
0x19f2   :  { %v10605_v14 = vpop.eup %10604  ;;  %10608 = vrcp.f32 %v8534_v3 }
0x19f3   :  { %v8537_v43 = vadd.f32 1.0, %v10605_v14  ;;  %10610 = vrcp.f32 %v8536_v59 }
0x19f5   :  { %10612 = vrcp.f32 %v8537_v43 }
0x19fe   :  { %v10607_v28 = vpop.eup %10606 }
0x19ff   :  { %v10609_v38 = vpop.eup %10608 }
0x1a00   :  { %v10611_v29 = vpop.eup %10610  ;;  %v8550_v58 = vcombine.low %v10609_v38, %v10607_v28 }
0x1a02   :  { %v10613_v11 = vpop.eup %10612  ;;  %v8558_v57 = vrot.slane %v8550_v58, %v8557_v12 }
0x1a03   :  { %v8551_v35 = vcombine.low %v10611_v29, %v10613_v11 }
0x1a05   :  { %v8565_v30 = vrot.slane %v8551_v35, %v8557_v12 }
0x1a07   :  { %v8566_v48 = vcombine.low %v8558_v57, %v8565_v30 }
0x1a09   :  { %v8573_v13 = vrot.slane %v8566_v48, %v8557_v12 }
0x1a0b   :  { %8579 = vst.msk [vmem:[%s15955_s27] sm:$0xf] %vm8577_vm7, %v8573_v13 }

</bundles_post_ra>
